<compile_context>
chip_gen: v7x
topology: tpu7x:2x2x1
jax: 0.10.0
libtpu: 0.0.40
codegen_flags: <defaults>
</compile_context>

<pallas_src>
import functools

import jax
import jax.numpy as jnp
import numpy as np
from jax.experimental import pallas as pl
from jax.experimental.pallas import tpu as pltpu

# ----------------------------- model sizes (scaled-down) -----------------------------
NUM_CLASSES = 8
IN_CH = 3
BB_C1, LOW_CH, BB_C3 = 16, 24, 32
DAMM_CH = 32          # stand-in for resnet's 2048
ASPP_BR, ASPP_OUT = 16, 32
INTER = DAMM_CH // 4  # DANet intermediate channels
DEC_LOW, DEC_CH = 16, 32


def _round_up(x, m):
    return ((x + m - 1) // m) * m


def _tile(n, cap):
    """Tile size (multiple of 128, capped) and padded extent for a matmul dim."""
    t = min(cap, _round_up(max(n, 1), 128))
    return t, _round_up(max(n, 1), t)


# ----------------------------- tiled fused matmul kernel -----------------------------
# out = relu_opt((A @ B) * scale + shift [+ add]); A/B/add bf16, accumulation f32,
# output bf16.  Grid (M//TM, N//TN, K//TK); accumulator lives in VMEM across K.

def _mm_kernel(*refs, relu, has_add):
    if has_add:
        a_ref, b_ref, s_ref, t_ref, add_ref, o_ref, acc_ref = refs
    else:
        a_ref, b_ref, s_ref, t_ref, o_ref, acc_ref = refs
        add_ref = None

    @pl.when(pl.program_id(2) == 0)
    def _():
        acc_ref[...] = jnp.zeros_like(acc_ref)

    acc_ref[...] += jnp.dot(a_ref[...], b_ref[...],
                            preferred_element_type=jnp.float32)

    @pl.when(pl.program_id(2) == pl.num_programs(2) - 1)
    def _():
        out = acc_ref[...] * s_ref[...] + t_ref[...]
        if has_add:
            out = out + add_ref[...].astype(jnp.float32)
        if relu:
            out = jnp.maximum(out, 0.0)
        o_ref[...] = out.astype(o_ref.dtype)


def fused_matmul(a, b_pad, n, scale_pad, shift_pad, add=None, relu=False):
    """out[:M, :n] = relu_opt((a @ b) * scale + shift [+ add]).

    `b_pad` (bf16), `scale_pad`/`shift_pad` (f32, shape (1, Np)) are pre-padded at
    parameter-build time so no weight cast/pad happens per forward pass.
    TM=256 keeps >=2 M-blocks for megacore sharding on the big early layers.
    """
    M, K = a.shape
    Kp, Np = b_pad.shape
    TM, Mp = _tile(M, 256)
    TN, _ = _tile(n, 256)
    TK, kp_expected = _tile(K, 512)
    assert Kp == kp_expected and Np % TN == 0

    a_p = a.astype(jnp.bfloat16)
    if (Mp, Kp) != (M, K):
        a_p = jnp.pad(a_p, ((0, Mp - M), (0, Kp - K)))

    in_specs = [
        pl.BlockSpec((TM, TK), lambda i, j, k: (i, k)),
        pl.BlockSpec((TK, TN), lambda i, j, k: (k, j)),
        pl.BlockSpec((1, TN), lambda i, j, k: (0, j)),
        pl.BlockSpec((1, TN), lambda i, j, k: (0, j)),
    ]
    operands = [a_p, b_pad, scale_pad, shift_pad]
    has_add = add is not None
    if has_add:
        add_p = add.astype(jnp.bfloat16)
        if add_p.shape != (Mp, Np):
            add_p = jnp.pad(add_p, ((0, Mp - add_p.shape[0]),
                                    (0, Np - add_p.shape[1])))
        in_specs.append(pl.BlockSpec((TM, TN), lambda i, j, k: (i, j)))
        operands.append(add_p)

    out = pl.pallas_call(
        functools.partial(_mm_kernel, relu=relu, has_add=has_add),
        out_shape=jax.ShapeDtypeStruct((Mp, Np), jnp.bfloat16),
        grid=(Mp // TM, Np // TN, Kp // TK),
        in_specs=in_specs,
        out_specs=pl.BlockSpec((TM, TN), lambda i, j, k: (i, j)),
        scratch_shapes=[pltpu.VMEM((TM, TN), jnp.float32)],
        compiler_params=pltpu.CompilerParams(
            dimension_semantics=("parallel", "parallel", "arbitrary"),
            vmem_limit_bytes=32 * 1024 * 1024),
    )(*operands)
    if (Mp, Np) != (M, n):
        out = out[:M, :n]
    return out


# ----------------------------- conv glue (NHWC, bf16) -----------------------------

def _im2col_nhwc(x, k, stride, padding, dilation):
    """NHWC patch extraction: pure slices + channel-concat (no transposes), bf16.
    TODO(synk): at realistic channel counts do the halo/shift extraction inside the
    matmul kernel instead of materializing k*k shifted copies in HBM."""
    N, H, W, C = x.shape
    if k == 1 and stride == 1 and padding == 0:
        return x.reshape(N * H * W, C), H, W
    Hout = (H + 2 * padding - dilation * (k - 1) - 1) // stride + 1
    Wout = (W + 2 * padding - dilation * (k - 1) - 1) // stride + 1
    xp = jnp.pad(x, ((0, 0), (padding, padding), (padding, padding), (0, 0)))
    cols = []
    for i in range(k):
        for j in range(k):
            hs, ws = i * dilation, j * dilation
            cols.append(xp[:, hs:hs + (Hout - 1) * stride + 1:stride,
                           ws:ws + (Wout - 1) * stride + 1:stride, :])
    col = jnp.concatenate(cols, axis=-1)                    # (N, Hout, Wout, k*k*C)
    return col.reshape(N * Hout * Wout, k * k * C), Hout, Wout


def conv2d(cp, x, stride=1, padding=0, dilation=1, relu=False, add=None):
    """NHWC conv (+folded BN / bias, +ReLU, +residual add) via one fused matmul."""
    N = x.shape[0]
    col, Hout, Wout = _im2col_nhwc(x, cp['k'], stride, padding, dilation)
    add_flat = None
    if add is not None:
        add_flat = add.reshape(N * Hout * Wout, cp['cout'])
    y = fused_matmul(col, cp['w'], cp['cout'], cp['scale'], cp['shift'],
                     add=add_flat, relu=relu)
    return y.reshape(N, Hout, Wout, cp['cout'])


# ----------------------------- attention kernels -----------------------------

def _pam_flash_kernel(g_ref, q_ref, k_ref, v_ref, x_ref, o_ref,
                      m_sc, l_sc, acc_sc):
    """Position attention (DANet) with online softmax over KV tiles."""
    kv = pl.program_id(2)

    @pl.when(kv == 0)
    def _():
        m_sc[...] = jnp.full(m_sc.shape, -jnp.inf, m_sc.dtype)
        l_sc[...] = jnp.zeros(l_sc.shape, l_sc.dtype)
        acc_sc[...] = jnp.zeros(acc_sc.shape, acc_sc.dtype)

    # energy tile = Q_tile @ K_tile^T (bf16 operands on the MXU, f32 accumulation)
    s = jnp.dot(q_ref[0], k_ref[0].T, preferred_element_type=jnp.float32)
    m_prev = m_sc[...]
    m_new = jnp.maximum(m_prev, jnp.max(s, axis=-1, keepdims=True))
    alpha = jnp.exp(m_prev - m_new)
    p = jnp.exp(s - m_new)
    l_sc[...] = alpha * l_sc[...] + jnp.sum(p, axis=-1, keepdims=True)
    acc_sc[...] = alpha * acc_sc[...] + jnp.dot(
        p.astype(jnp.bfloat16), v_ref[0], preferred_element_type=jnp.float32)
    m_sc[...] = m_new

    @pl.when(kv == pl.num_programs(2) - 1)
    def _():
        inv_l = pl.reciprocal(l_sc[...], approx=True)
        res = g_ref[0, 0] * (acc_sc[...] * inv_l) + x_ref[0].astype(jnp.float32)
        o_ref[0] = res.astype(o_ref.dtype)


def _cam_kernel(g_ref, x_ref, o_ref):
    """Channel attention (DANet): softmax(rowmax - X X^T) == softmax(-X X^T)."""
    xb = x_ref[0]                                                   # (HW, C) bf16
    energy = jnp.dot(xb.T, xb, preferred_element_type=jnp.float32)  # (C, C)
    energy = jnp.max(energy, axis=-1, keepdims=True) - energy
    m = jnp.max(energy, axis=-1, keepdims=True)
    e = jnp.exp(energy - m)
    attn = e * pl.reciprocal(jnp.sum(e, axis=-1, keepdims=True), approx=True)
    out = jnp.dot(xb, attn.astype(jnp.bfloat16).T,
                  preferred_element_type=jnp.float32)               # (HW, C)
    o_ref[0] = (g_ref[0, 0] * out + xb.astype(jnp.float32)).astype(o_ref.dtype)


def _attn_tile(hw, target=256):
    if hw <= target:
        return hw
    for t in range(target, 7, -8):
        if hw % t == 0:
            return t
    return hw


def pam(p, x):
    """Position attention module -- flash-style fused kernel, q/k/v from ONE matmul."""
    N, H, W, C = x.shape
    HW = H * W
    cq = max(C // 8, 1)
    qkv = conv2d(p['pam_qkv'], x).reshape(N, HW, 2 * cq + C)   # shared A operand
    q = qkv[:, :, :cq]
    k = qkv[:, :, cq:2 * cq]
    v = qkv[:, :, 2 * cq:]
    xf = x.reshape(N, HW, C)
    g = p['pam_gamma'].reshape(1, 1)
    TQ = _attn_tile(HW)
    TKV = _attn_tile(HW)
    out = pl.pallas_call(
        _pam_flash_kernel,
        out_shape=jax.ShapeDtypeStruct((N, HW, C), jnp.bfloat16),
        grid=(N, HW // TQ, HW // TKV),
        in_specs=[
            pl.BlockSpec(memory_space=pltpu.MemorySpace.SMEM),          # gamma
            pl.BlockSpec((1, TQ, cq), lambda n, qi, ki: (n, qi, 0)),
            pl.BlockSpec((1, TKV, cq), lambda n, qi, ki: (n, ki, 0)),
            pl.BlockSpec((1, TKV, C), lambda n, qi, ki: (n, ki, 0)),
            pl.BlockSpec((1, TQ, C), lambda n, qi, ki: (n, qi, 0)),
        ],
        out_specs=pl.BlockSpec((1, TQ, C), lambda n, qi, ki: (n, qi, 0)),
        scratch_shapes=[pltpu.VMEM((TQ, 1), jnp.float32),
                        pltpu.VMEM((TQ, 1), jnp.float32),
                        pltpu.VMEM((TQ, C), jnp.float32)],
        compiler_params=pltpu.CompilerParams(
            dimension_semantics=("parallel", "parallel", "arbitrary")),
    )(g, q, k, v, xf)
    return out.reshape(N, H, W, C)


def cam(p, x):
    """Channel attention module -- single fused Pallas kernel per image."""
    N, H, W, C = x.shape
    HW = H * W
    xf = x.reshape(N, HW, C)
    g = p['cam_gamma'].reshape(1, 1)
    out = pl.pallas_call(
        _cam_kernel,
        out_shape=jax.ShapeDtypeStruct((N, HW, C), jnp.bfloat16),
        grid=(N,),
        in_specs=[pl.BlockSpec(memory_space=pltpu.MemorySpace.SMEM),    # gamma
                  pl.BlockSpec((1, HW, C), lambda i: (i, 0, 0))],
        out_specs=pl.BlockSpec((1, HW, C), lambda i: (i, 0, 0)),
        compiler_params=pltpu.CompilerParams(dimension_semantics=("parallel",)),
    )(g, xf)
    return out.reshape(N, H, W, C)


# ----------------------------- bilinear-resize kernels -----------------------------

def _hinterp_kernel(mh_ref, x_ref, o_ref):
    o_ref[0] = jnp.dot(mh_ref[...], x_ref[0],
                       preferred_element_type=jnp.float32).astype(o_ref.dtype)


def _winterp_kernel(a_ref, b_ref, o_ref):
    o_ref[...] = jnp.dot(a_ref[...], b_ref[...],
                         preferred_element_type=jnp.float32).astype(o_ref.dtype)


def _interp_matrix(out_size, in_size):
    # align_corners=True linear interpolation matrix, built as a numpy constant.
    if in_size == 1:
        return np.ones((out_size, 1), np.float32)
    denom = max(out_size - 1, 1)
    pos = np.arange(out_size, dtype=np.float64) * (in_size - 1) / denom
    lo = np.clip(np.floor(pos).astype(np.int64), 0, in_size - 2)
    frac = (pos - lo).astype(np.float32)
    m = np.zeros((out_size, in_size), np.float32)
    m[np.arange(out_size), lo] += 1.0 - frac
    m[np.arange(out_size), lo + 1] += frac
    return m


def bilinear_upsample(x, out_h, out_w):
    """F.interpolate(mode='bilinear', align_corners=True) on NHWC bf16.
    H-interp is one lane-dense (W*C lanes) matmul per image; W-interp is a single
    matmul batched over N*out_h*C rows (tiny relayouts in between, bf16)."""
    N, H, W, C = x.shape
    if (H, W) == (out_h, out_w):
        return x
    mh = jnp.asarray(_interp_matrix(out_h, H), jnp.bfloat16)         # (OH, H)
    mwt = jnp.asarray(_interp_matrix(out_w, W).T, jnp.bfloat16)      # (W, OW)
    x2 = x.reshape(N, H, W * C)
    t = pl.pallas_call(
        _hinterp_kernel,
        out_shape=jax.ShapeDtypeStruct((N, out_h, W * C), jnp.bfloat16),
        grid=(N,),
        in_specs=[pl.BlockSpec((out_h, H), lambda i: (0, 0)),
                  pl.BlockSpec((1, H, W * C), lambda i: (i, 0, 0))],
        out_specs=pl.BlockSpec((1, out_h, W * C), lambda i: (i, 0, 0)),
        compiler_params=pltpu.CompilerParams(dimension_semantics=("parallel",)),
    )(mh, x2)
    t = t.reshape(N, out_h, W, C).transpose(0, 1, 3, 2).reshape(N * out_h * C, W)
    u = pl.pallas_call(
        _winterp_kernel,
        out_shape=jax.ShapeDtypeStruct((N * out_h * C, out_w), jnp.bfloat16),
    )(t, mwt)
    return u.reshape(N, out_h, C, out_w).transpose(0, 1, 3, 2)


# ----------------------------- global average pool kernel -----------------------------

def _gap_kernel(x_ref, o_ref):
    hw = x_ref.shape[1]
    s = jnp.sum(x_ref[0].astype(jnp.float32), axis=0, keepdims=True) * (1.0 / hw)
    o_ref[0] = s.astype(o_ref.dtype)


def global_avg_pool(x):
    N, H, W, C = x.shape
    xf = x.reshape(N, H * W, C)
    out = pl.pallas_call(
        _gap_kernel,
        out_shape=jax.ShapeDtypeStruct((N, 1, C), jnp.bfloat16),
        grid=(N,),
        in_specs=[pl.BlockSpec((1, H * W, C), lambda i: (i, 0, 0))],
        out_specs=pl.BlockSpec((1, 1, C), lambda i: (i, 0, 0)),
        compiler_params=pltpu.CompilerParams(dimension_semantics=("parallel",)),
    )(xf)
    return out.reshape(N, 1, 1, C)


# ----------------------------- parameters -----------------------------

def make_params(key):
    it = iter(jax.random.split(key, 200))

    def conv(cout, cin, k, *, bn=False, bias=False):
        fan_in = cin * k * k
        w = jax.random.normal(next(it), (cout, cin, k, k), jnp.float32) / np.sqrt(fan_in)
        wm = jnp.transpose(w, (2, 3, 1, 0)).reshape(k * k * cin, cout)
        if bn:  # inference-mode BatchNorm folded to per-channel scale/shift
            gamma = 1.0 + 0.1 * jax.random.normal(next(it), (cout,), jnp.float32)
            beta = 0.1 * jax.random.normal(next(it), (cout,), jnp.float32)
            mean = 0.1 * jax.random.normal(next(it), (cout,), jnp.float32)
            var = 1.0 + 0.5 * jax.random.uniform(next(it), (cout,), jnp.float32)
            scale = gamma / jnp.sqrt(var + 1e-5)
            shift = beta - mean * scale
        else:
            scale = jnp.ones((cout,), jnp.float32)
            shift = (0.05 * jax.random.normal(next(it), (cout,), jnp.float32)
                     if bias else jnp.zeros((cout,), jnp.float32))
        K = k * k * cin
        _, Kp = _tile(K, 512)
        _, Np = _tile(cout, 256)
        # Pre-cast + pre-pad once so the forward pass never re-pads/casts weights.
        return {
            'w': jnp.pad(wm, ((0, Kp - K), (0, Np - cout))).astype(jnp.bfloat16),
            'scale': jnp.pad(scale.reshape(1, cout), ((0, 0), (0, Np - cout))),
            'shift': jnp.pad(shift.reshape(1, cout), ((0, 0), (0, Np - cout))),
            'k': k, 'cout': cout,
        }

    p = {}
    # backbone stand-in (build_backbone not provided)
    p['bb1'] = conv(BB_C1, IN_CH, 3, bn=True)
    p['bb2'] = conv(LOW_CH, BB_C1, 3, bn=True)
    p['bb3'] = conv(BB_C3, LOW_CH, 3, bn=True)
    p['bb4'] = conv(DAMM_CH, BB_C3, 3, bn=True)
    # damm_conv1
    p['dc1'] = conv(DAMM_CH, DAMM_CH, 3, bn=True)
    # ASPP
    p['aspp1'] = conv(ASPP_BR, DAMM_CH, 1, bn=True)
    p['aspp2'] = conv(ASPP_BR, DAMM_CH, 3, bn=True)
    p['aspp3'] = conv(ASPP_BR, DAMM_CH, 3, bn=True)
    p['aspp4'] = conv(ASPP_BR, DAMM_CH, 3, bn=True)
    p['aspp_gp'] = conv(ASPP_BR, DAMM_CH, 1, bn=True)
    p['aspp_proj'] = conv(ASPP_OUT, 5 * ASPP_BR, 1, bn=True)
    # DAMM (dual attention head)
    p['d5a'] = conv(INTER, DAMM_CH, 3, bn=True)
    p['d5c'] = conv(INTER, DAMM_CH, 3, bn=True)
    cq = max(INTER // 8, 1)
    p['pam_qkv'] = conv(2 * cq + INTER, INTER, 1, bias=True)   # fused q/k/v 1x1 convs
    # PyTorch inits attention gammas to 0; use nonzero values so the path is exercised
    p['pam_gamma'] = jnp.asarray(0.5, jnp.float32)
    p['cam_gamma'] = jnp.asarray(0.5, jnp.float32)
    p['d51'] = conv(INTER, INTER, 3, bn=True)
    p['d52'] = conv(INTER, INTER, 3, bn=True)
    p['d6'] = conv(ASPP_OUT, INTER, 1, bias=True)
    p['d7'] = conv(ASPP_OUT, INTER, 1, bias=True)
    # decoder
    p['dec_low'] = conv(DEC_LOW, LOW_CH, 1, bn=True)
    p['dec1'] = conv(DEC_CH, ASPP_OUT + DEC_LOW, 3, bn=True)
    p['dec2'] = conv(DEC_CH, DEC_CH, 3, bn=True)
    p['dec_cls'] = conv(NUM_CLASSES, DEC_CH, 1, bias=True)
    return p


# ----------------------------- sub-modules -----------------------------

def aspp(p, x):
    N, H, W, _ = x.shape
    b1 = conv2d(p['aspp1'], x, relu=True)
    b2 = conv2d(p['aspp2'], x, padding=6, dilation=6, relu=True)
    b3 = conv2d(p['aspp3'], x, padding=12, dilation=12, relu=True)
    b4 = conv2d(p['aspp4'], x, padding=18, dilation=18, relu=True)
    pooled = global_avg_pool(x)
    b5 = conv2d(p['aspp_gp'], pooled, relu=True)
    b5 = jnp.broadcast_to(b5, (N, H, W, b5.shape[-1]))  # upsample from 1x1 == broadcast
    cat = jnp.concatenate([b1, b2, b3, b4, b5], axis=-1)
    # TODO(synk): ASPP Dropout(0.5) omitted -- inference/eval semantics (identity).
    return conv2d(p['aspp_proj'], cat, relu=True)


def damm(p, x, aspp_out):
    """Dual-attention head.  Returns x1 + x2; both adds are fused into the
    epilogues of the producing 1x1 conv matmuls (d6, d7)."""
    fa = conv2d(p['d5a'], x, padding=1, relu=True)
    sa = pam(p, fa)
    fa = conv2d(p['d51'], sa, padding=1, relu=True)
    oa = conv2d(p['d6'], fa, add=aspp_out)                # PAM branch + x1 (dropout omitted)
    fc = conv2d(p['d5c'], x, padding=1, relu=True)
    sc = cam(p, fc)
    fc = conv2d(p['d52'], sc, padding=1, relu=True)
    return conv2d(p['d7'], fc, add=oa)                    # CAM branch + (PAM + x1)


def decoder(p, x, low):
    low2 = conv2d(p['dec_low'], low, relu=True)
    xu = bilinear_upsample(x, low.shape[1], low.shape[2])
    cat = jnp.concatenate([xu, low2], axis=-1)
    h = conv2d(p['dec1'], cat, padding=1, relu=True)
    # TODO(synk): decoder Dropout(0.5/0.1) omitted -- inference/eval semantics (identity)
    h = conv2d(p['dec2'], h, padding=1, relu=True)
    return conv2d(p['dec_cls'], h)


def deeplab_forward(p, x_nchw):
    # Single NCHW->NHWC relayout at the boundary; whole network runs NHWC bf16.
    x = jnp.transpose(x_nchw, (0, 2, 3, 1)).astype(jnp.bfloat16)
    h = conv2d(p['bb1'], x, stride=2, padding=1, relu=True)
    low = conv2d(p['bb2'], h, stride=2, padding=1, relu=True)
    h = conv2d(p['bb3'], low, stride=2, padding=1, relu=True)
    h = conv2d(p['bb4'], h, stride=2, padding=1, relu=True)
    # damm_conv1: Conv2d(k=3, s=1, p=1, dilation=2, bias=False) + BN + ReLU
    # (spatial size shrinks by 2 -- exactly the PyTorch layer's behavior)
    h = conv2d(p['dc1'], h, stride=1, padding=1, dilation=2, relu=True)
    x1 = aspp(p, h)
    xs = damm(p, h, x1)                                   # x = x1 + x2 (adds fused)
    out = decoder(p, xs, low)
    out = bilinear_upsample(out, x_nchw.shape[2], x_nchw.shape[3])  # align_corners=True
    return jnp.transpose(out, (0, 3, 1, 2)).astype(jnp.float32)


if __name__ == "__main__":
    key = jax.random.PRNGKey(0)
    pkey, xkey = jax.random.split(key)
    params = make_params(pkey)
    x = jax.random.normal(xkey, (2, IN_CH, 64, 64), jnp.float32)

    # Params (incl. static ints like kernel size / cout) are closed over so they
    # stay Python-static; only the image is a traced argument.
    fwd = jax.jit(lambda inp: deeplab_forward(params, inp))
    out = jax.block_until_ready(fwd(x))

    assert out.shape == (2, NUM_CLASSES, 64, 64), out.shape
    assert bool(jnp.isfinite(out).all())
    print("KERNEL_OK")
</pallas_src>

<mosaic_0001>
module attributes {stable_mosaic.version = 11 : i64} {
  func.func @_mm_kernel(%arg0: i32, %arg1: i32, %arg2: i32, %arg3: memref<256x128xbf16, #tpu.memory_space<vmem>>, %arg4: memref<128x128xbf16, #tpu.memory_space<vmem>>, %arg5: memref<1x128xf32, #tpu.memory_space<vmem>>, %arg6: memref<1x128xf32, #tpu.memory_space<vmem>>, %arg7: memref<256x128xbf16, #tpu.memory_space<vmem>>, %arg8: memref<256x128xf32, #tpu.memory_space<vmem>>) attributes {dimension_semantics = [#tpu.dimension_semantics<parallel>, #tpu.dimension_semantics<parallel>, #tpu.dimension_semantics<arbitrary>], iteration_bounds = array<i64: 8, 1, 1>, scalar_prefetch = 0 : i64, scratch_operands = 1 : i64, tpu.core_type = #tpu.core_type<tc>, window_params = [{transform_indices = @transform_0, window_bounds = array<i64: 256, 128>}, {transform_indices = @transform_1, window_bounds = array<i64: 128, 128>}, {transform_indices = @transform_2, window_bounds = array<i64: 1, 128>}, {transform_indices = @transform_3, window_bounds = array<i64: 1, 128>}, {transform_indices = @transform_4, window_bounds = array<i64: 256, 128>}]} {
    %c0_i32 = arith.constant 0 : i32
    %0 = arith.cmpi eq, %arg2, %c0_i32 : i32
    %1 = arith.extui %0 : i1 to i32
    %c0_i32_0 = arith.constant 0 : i32
    %2 = arith.cmpi ne, %1, %c0_i32_0 : i32
    scf.if %2 {
      %cst_10 = arith.constant 0.000000e+00 : f32
      %12 = vector.broadcast %cst_10 : f32 to vector<256x128xf32>
      %c0_11 = arith.constant 0 : index
      %c0_12 = arith.constant 0 : index
      %13 = vector.load %arg8[%c0_11, %c0_12] : memref<256x128xf32, #tpu.memory_space<vmem>>, vector<256x128xf32>
      tpu.vector_store %arg8[%c0_11, %c0_12], %12 {strides = array<i32>} : memref<256x128xf32, #tpu.memory_space<vmem>>, vector<256x128xf32>,
    } else {
    }
    %c0 = arith.constant 0 : index
    %c0_1 = arith.constant 0 : index
    %3 = vector.load %arg8[%c0, %c0_1] : memref<256x128xf32, #tpu.memory_space<vmem>>, vector<256x128xf32>
    %c0_2 = arith.constant 0 : index
    %c0_3 = arith.constant 0 : index
    %4 = vector.load %arg3[%c0_2, %c0_3] : memref<256x128xbf16, #tpu.memory_space<vmem>>, vector<256x128xbf16>
    %c0_4 = arith.constant 0 : index
    %c0_5 = arith.constant 0 : index
    %5 = vector.load %arg4[%c0_4, %c0_5] : memref<128x128xbf16, #tpu.memory_space<vmem>>, vector<128x128xbf16>
    %cst = arith.constant dense<0.000000e+00> : vector<256x128xf32>
    %6 = tpu.matmul %4, %5, %cst {dimension_numbers = #tpu.dot_dimension_numbers<[1], [0], [0], [1], [0, 0, 1, 1], [], []>} : vector<256x128xbf16>, vector<128x128xbf16>, vector<256x128xf32> -> vector<256x128xf32>
    %7 = arith.addf %3, %6 : vector<256x128xf32>
    %c0_6 = arith.constant 0 : index
    %c0_7 = arith.constant 0 : index
    %8 = vector.load %arg8[%c0_6, %c0_7] : memref<256x128xf32, #tpu.memory_space<vmem>>, vector<256x128xf32>
    tpu.vector_store %arg8[%c0_6, %c0_7], %7 {strides = array<i32>} : memref<256x128xf32, #tpu.memory_space<vmem>>, vector<256x128xf32>,
    %c0_i32_8 = arith.constant 0 : i32
    %9 = arith.cmpi eq, %arg2, %c0_i32_8 : i32
    %10 = arith.extui %9 : i1 to i32
    %c0_i32_9 = arith.constant 0 : i32
    %11 = arith.cmpi ne, %10, %c0_i32_9 : i32
    scf.if %11 {
      %c0_10 = arith.constant 0 : index
      %c0_11 = arith.constant 0 : index
      %12 = vector.load %arg8[%c0_10, %c0_11] : memref<256x128xf32, #tpu.memory_space<vmem>>, vector<256x128xf32>
      %c0_12 = arith.constant 0 : index
      %c0_13 = arith.constant 0 : index
      %13 = vector.load %arg5[%c0_12, %c0_13] : memref<1x128xf32, #tpu.memory_space<vmem>>, vector<1x128xf32>
      %14 = vector.broadcast %13 : vector<1x128xf32> to vector<256x128xf32>
      %15 = arith.mulf %12, %14 : vector<256x128xf32>
      %c0_14 = arith.constant 0 : index
      %c0_15 = arith.constant 0 : index
      %16 = vector.load %arg6[%c0_14, %c0_15] : memref<1x128xf32, #tpu.memory_space<vmem>>, vector<1x128xf32>
      %17 = vector.broadcast %16 : vector<1x128xf32> to vector<256x128xf32>
      %18 = arith.addf %15, %17 : vector<256x128xf32>
      %cst_16 = arith.constant 0.000000e+00 : f32
      %19 = vector.broadcast %cst_16 : f32 to vector<256x128xf32>
      %20 = arith.maximumf %18, %19 : vector<256x128xf32>
      %21 = arith.truncf %20 : vector<256x128xf32> to vector<256x128xbf16>
      %c0_17 = arith.constant 0 : index
      %c0_18 = arith.constant 0 : index
      %22 = vector.load %arg7[%c0_17, %c0_18] : memref<256x128xbf16, #tpu.memory_space<vmem>>, vector<256x128xbf16>
      tpu.vector_store %arg7[%c0_17, %c0_18], %21 {strides = array<i32>} : memref<256x128xbf16, #tpu.memory_space<vmem>>, vector<256x128xbf16>,
    } else {
    }
    return
  }
  func.func @transform_0(%arg0: i32, %arg1: i32, %arg2: i32) -> (i32, i32) {
    %c0_i32 = arith.constant 0 : i32
    return %arg0, %arg2 : i32, i32
  }
  func.func @transform_1(%arg0: i32, %arg1: i32, %arg2: i32) -> (i32, i32) {
    %c0_i32 = arith.constant 0 : i32
    return %arg2, %arg1 : i32, i32
  }
  func.func @transform_2(%arg0: i32, %arg1: i32, %arg2: i32) -> (i32, i32) {
    %c0_i32 = arith.constant 0 : i32
    %c0_i32_0 = arith.constant 0 : i32
    return %c0_i32, %arg1 : i32, i32
  }
  func.func @transform_3(%arg0: i32, %arg1: i32, %arg2: i32) -> (i32, i32) {
    %c0_i32 = arith.constant 0 : i32
    %c0_i32_0 = arith.constant 0 : i32
    return %c0_i32, %arg1 : i32, i32
  }
  func.func @transform_4(%arg0: i32, %arg1: i32, %arg2: i32) -> (i32, i32) {
    %c0_i32 = arith.constant 0 : i32
    return %arg0, %arg1 : i32, i32
  }
}

module attributes {stable_mosaic.version = 11 : i64} {
  func.func @_mm_kernel(%arg0: i32, %arg1: i32, %arg2: i32, %arg3: memref<256x256xbf16, #tpu.memory_space<vmem>>, %arg4: memref<256x128xbf16, #tpu.memory_space<vmem>>, %arg5: memref<1x128xf32, #tpu.memory_space<vmem>>, %arg6: memref<1x128xf32, #tpu.memory_space<vmem>>, %arg7: memref<256x128xbf16, #tpu.memory_space<vmem>>, %arg8: memref<256x128xf32, #tpu.memory_space<vmem>>) attributes {dimension_semantics = [#tpu.dimension_semantics<parallel>, #tpu.dimension_semantics<parallel>, #tpu.dimension_semantics<arbitrary>], iteration_bounds = array<i64: 2, 1, 1>, scalar_prefetch = 0 : i64, scratch_operands = 1 : i64, tpu.core_type = #tpu.core_type<tc>, window_params = [{transform_indices = @transform_0, window_bounds = array<i64: 256, 256>}, {transform_indices = @transform_1, window_bounds = array<i64: 256, 128>}, {transform_indices = @transform_2, window_bounds = array<i64: 1, 128>}, {transform_indices = @transform_3, window_bounds = array<i64: 1, 128>}, {transform_indices = @transform_4, window_bounds = array<i64: 256, 128>}]} {
    %c0_i32 = arith.constant 0 : i32
    %0 = arith.cmpi eq, %arg2, %c0_i32 : i32
    %1 = arith.extui %0 : i1 to i32
    %c0_i32_0 = arith.constant 0 : i32
    %2 = arith.cmpi ne, %1, %c0_i32_0 : i32
    scf.if %2 {
      %cst_10 = arith.constant 0.000000e+00 : f32
      %12 = vector.broadcast %cst_10 : f32 to vector<256x128xf32>
      %c0_11 = arith.constant 0 : index
      %c0_12 = arith.constant 0 : index
      %13 = vector.load %arg8[%c0_11, %c0_12] : memref<256x128xf32, #tpu.memory_space<vmem>>, vector<256x128xf32>
      tpu.vector_store %arg8[%c0_11, %c0_12], %12 {strides = array<i32>} : memref<256x128xf32, #tpu.memory_space<vmem>>, vector<256x128xf32>,
    } else {
    }
    %c0 = arith.constant 0 : index
    %c0_1 = arith.constant 0 : index
    %3 = vector.load %arg8[%c0, %c0_1] : memref<256x128xf32, #tpu.memory_space<vmem>>, vector<256x128xf32>
    %c0_2 = arith.constant 0 : index
    %c0_3 = arith.constant 0 : index
    %4 = vector.load %arg3[%c0_2, %c0_3] : memref<256x256xbf16, #tpu.memory_space<vmem>>, vector<256x256xbf16>
    %c0_4 = arith.constant 0 : index
    %c0_5 = arith.constant 0 : index
    %5 = vector.load %arg4[%c0_4, %c0_5] : memref<256x128xbf16, #tpu.memory_space<vmem>>, vector<256x128xbf16>
    %cst = arith.constant dense<0.000000e+00> : vector<256x128xf32>
    %6 = tpu.matmul %4, %5, %cst {dimension_numbers = #tpu.dot_dimension_numbers<[1], [0], [0], [1], [0, 0, 1, 1], [], []>} : vector<256x256xbf16>, vector<256x128xbf16>, vector<256x128xf32> -> vector<256x128xf32>
    %7 = arith.addf %3, %6 : vector<256x128xf32>
    %c0_6 = arith.constant 0 : index
    %c0_7 = arith.constant 0 : index
    %8 = vector.load %arg8[%c0_6, %c0_7] : memref<256x128xf32, #tpu.memory_space<vmem>>, vector<256x128xf32>
    tpu.vector_store %arg8[%c0_6, %c0_7], %7 {strides = array<i32>} : memref<256x128xf32, #tpu.memory_space<vmem>>, vector<256x128xf32>,
    %c0_i32_8 = arith.constant 0 : i32
    %9 = arith.cmpi eq, %arg2, %c0_i32_8 : i32
    %10 = arith.extui %9 : i1 to i32
    %c0_i32_9 = arith.constant 0 : i32
    %11 = arith.cmpi ne, %10, %c0_i32_9 : i32
    scf.if %11 {
      %c0_10 = arith.constant 0 : index
      %c0_11 = arith.constant 0 : index
      %12 = vector.load %arg8[%c0_10, %c0_11] : memref<256x128xf32, #tpu.memory_space<vmem>>, vector<256x128xf32>
      %c0_12 = arith.constant 0 : index
      %c0_13 = arith.constant 0 : index
      %13 = vector.load %arg5[%c0_12, %c0_13] : memref<1x128xf32, #tpu.memory_space<vmem>>, vector<1x128xf32>
      %14 = vector.broadcast %13 : vector<1x128xf32> to vector<256x128xf32>
      %15 = arith.mulf %12, %14 : vector<256x128xf32>
      %c0_14 = arith.constant 0 : index
      %c0_15 = arith.constant 0 : index
      %16 = vector.load %arg6[%c0_14, %c0_15] : memref<1x128xf32, #tpu.memory_space<vmem>>, vector<1x128xf32>
      %17 = vector.broadcast %16 : vector<1x128xf32> to vector<256x128xf32>
      %18 = arith.addf %15, %17 : vector<256x128xf32>
      %cst_16 = arith.constant 0.000000e+00 : f32
      %19 = vector.broadcast %cst_16 : f32 to vector<256x128xf32>
      %20 = arith.maximumf %18, %19 : vector<256x128xf32>
      %21 = arith.truncf %20 : vector<256x128xf32> to vector<256x128xbf16>
      %c0_17 = arith.constant 0 : index
      %c0_18 = arith.constant 0 : index
      %22 = vector.load %arg7[%c0_17, %c0_18] : memref<256x128xbf16, #tpu.memory_space<vmem>>, vector<256x128xbf16>
      tpu.vector_store %arg7[%c0_17, %c0_18], %21 {strides = array<i32>} : memref<256x128xbf16, #tpu.memory_space<vmem>>, vector<256x128xbf16>,
    } else {
    }
    return
  }
  func.func @transform_0(%arg0: i32, %arg1: i32, %arg2: i32) -> (i32, i32) {
    %c0_i32 = arith.constant 0 : i32
    return %arg0, %arg2 : i32, i32
  }
  func.func @transform_1(%arg0: i32, %arg1: i32, %arg2: i32) -> (i32, i32) {
    %c0_i32 = arith.constant 0 : i32
    return %arg2, %arg1 : i32, i32
  }
  func.func @transform_2(%arg0: i32, %arg1: i32, %arg2: i32) -> (i32, i32) {
    %c0_i32 = arith.constant 0 : i32
    %c0_i32_0 = arith.constant 0 : i32
    return %c0_i32, %arg1 : i32, i32
  }
  func.func @transform_3(%arg0: i32, %arg1: i32, %arg2: i32) -> (i32, i32) {
    %c0_i32 = arith.constant 0 : i32
    %c0_i32_0 = arith.constant 0 : i32
    return %c0_i32, %arg1 : i32, i32
  }
  func.func @transform_4(%arg0: i32, %arg1: i32, %arg2: i32) -> (i32, i32) {
    %c0_i32 = arith.constant 0 : i32
    return %arg0, %arg1 : i32, i32
  }
}

module attributes {stable_mosaic.version = 11 : i64} {
  func.func @_mm_kernel(%arg0: i32, %arg1: i32, %arg2: i32, %arg3: memref<128x256xbf16, #tpu.memory_space<vmem>>, %arg4: memref<256x128xbf16, #tpu.memory_space<vmem>>, %arg5: memref<1x128xf32, #tpu.memory_space<vmem>>, %arg6: memref<1x128xf32, #tpu.memory_space<vmem>>, %arg7: memref<128x128xbf16, #tpu.memory_space<vmem>>, %arg8: memref<128x128xf32, #tpu.memory_space<vmem>>) attributes {dimension_semantics = [#tpu.dimension_semantics<parallel>, #tpu.dimension_semantics<parallel>, #tpu.dimension_semantics<arbitrary>], iteration_bounds = array<i64: 1, 1, 1>, scalar_prefetch = 0 : i64, scratch_operands = 1 : i64, tpu.core_type = #tpu.core_type<tc>, window_params = [{transform_indices = @transform_0, window_bounds = array<i64: 128, 256>}, {transform_indices = @transform_1, window_bounds = array<i64: 256, 128>}, {transform_indices = @transform_2, window_bounds = array<i64: 1, 128>}, {transform_indices = @transform_3, window_bounds = array<i64: 1, 128>}, {transform_indices = @transform_4, window_bounds = array<i64: 128, 128>}]} {
    %c0_i32 = arith.constant 0 : i32
    %0 = arith.cmpi eq, %arg2, %c0_i32 : i32
    %1 = arith.extui %0 : i1 to i32
    %c0_i32_0 = arith.constant 0 : i32
    %2 = arith.cmpi ne, %1, %c0_i32_0 : i32
    scf.if %2 {
      %cst_10 = arith.constant 0.000000e+00 : f32
      %12 = vector.broadcast %cst_10 : f32 to vector<128x128xf32>
      %c0_11 = arith.constant 0 : index
      %c0_12 = arith.constant 0 : index
      %13 = vector.load %arg8[%c0_11, %c0_12] : memref<128x128xf32, #tpu.memory_space<vmem>>, vector<128x128xf32>
      tpu.vector_store %arg8[%c0_11, %c0_12], %12 {strides = array<i32>} : memref<128x128xf32, #tpu.memory_space<vmem>>, vector<128x128xf32>,
    } else {
    }
    %c0 = arith.constant 0 : index
    %c0_1 = arith.constant 0 : index
    %3 = vector.load %arg8[%c0, %c0_1] : memref<128x128xf32, #tpu.memory_space<vmem>>, vector<128x128xf32>
    %c0_2 = arith.constant 0 : index
    %c0_3 = arith.constant 0 : index
    %4 = vector.load %arg3[%c0_2, %c0_3] : memref<128x256xbf16, #tpu.memory_space<vmem>>, vector<128x256xbf16>
    %c0_4 = arith.constant 0 : index
    %c0_5 = arith.constant 0 : index
    %5 = vector.load %arg4[%c0_4, %c0_5] : memref<256x128xbf16, #tpu.memory_space<vmem>>, vector<256x128xbf16>
    %cst = arith.constant dense<0.000000e+00> : vector<128x128xf32>
    %6 = tpu.matmul %4, %5, %cst {dimension_numbers = #tpu.dot_dimension_numbers<[1], [0], [0], [1], [0, 0, 1, 1], [], []>} : vector<128x256xbf16>, vector<256x128xbf16>, vector<128x128xf32> -> vector<128x128xf32>
    %7 = arith.addf %3, %6 : vector<128x128xf32>
    %c0_6 = arith.constant 0 : index
    %c0_7 = arith.constant 0 : index
    %8 = vector.load %arg8[%c0_6, %c0_7] : memref<128x128xf32, #tpu.memory_space<vmem>>, vector<128x128xf32>
    tpu.vector_store %arg8[%c0_6, %c0_7], %7 {strides = array<i32>} : memref<128x128xf32, #tpu.memory_space<vmem>>, vector<128x128xf32>,
    %c0_i32_8 = arith.constant 0 : i32
    %9 = arith.cmpi eq, %arg2, %c0_i32_8 : i32
    %10 = arith.extui %9 : i1 to i32
    %c0_i32_9 = arith.constant 0 : i32
    %11 = arith.cmpi ne, %10, %c0_i32_9 : i32
    scf.if %11 {
      %c0_10 = arith.constant 0 : index
      %c0_11 = arith.constant 0 : index
      %12 = vector.load %arg8[%c0_10, %c0_11] : memref<128x128xf32, #tpu.memory_space<vmem>>, vector<128x128xf32>
      %c0_12 = arith.constant 0 : index
      %c0_13 = arith.constant 0 : index
      %13 = vector.load %arg5[%c0_12, %c0_13] : memref<1x128xf32, #tpu.memory_space<vmem>>, vector<1x128xf32>
      %14 = vector.broadcast %13 : vector<1x128xf32> to vector<128x128xf32>
      %15 = arith.mulf %12, %14 : vector<128x128xf32>
      %c0_14 = arith.constant 0 : index
      %c0_15 = arith.constant 0 : index
      %16 = vector.load %arg6[%c0_14, %c0_15] : memref<1x128xf32, #tpu.memory_space<vmem>>, vector<1x128xf32>
      %17 = vector.broadcast %16 : vector<1x128xf32> to vector<128x128xf32>
      %18 = arith.addf %15, %17 : vector<128x128xf32>
      %cst_16 = arith.constant 0.000000e+00 : f32
      %19 = vector.broadcast %cst_16 : f32 to vector<128x128xf32>
      %20 = arith.maximumf %18, %19 : vector<128x128xf32>
      %21 = arith.truncf %20 : vector<128x128xf32> to vector<128x128xbf16>
      %c0_17 = arith.constant 0 : index
      %c0_18 = arith.constant 0 : index
      %22 = vector.load %arg7[%c0_17, %c0_18] : memref<128x128xbf16, #tpu.memory_space<vmem>>, vector<128x128xbf16>
      tpu.vector_store %arg7[%c0_17, %c0_18], %21 {strides = array<i32>} : memref<128x128xbf16, #tpu.memory_space<vmem>>, vector<128x128xbf16>,
    } else {
    }
    return
  }
  func.func @transform_0(%arg0: i32, %arg1: i32, %arg2: i32) -> (i32, i32) {
    %c0_i32 = arith.constant 0 : i32
    return %arg0, %arg2 : i32, i32
  }
  func.func @transform_1(%arg0: i32, %arg1: i32, %arg2: i32) -> (i32, i32) {
    %c0_i32 = arith.constant 0 : i32
    return %arg2, %arg1 : i32, i32
  }
  func.func @transform_2(%arg0: i32, %arg1: i32, %arg2: i32) -> (i32, i32) {
    %c0_i32 = arith.constant 0 : i32
    %c0_i32_0 = arith.constant 0 : i32
    return %c0_i32, %arg1 : i32, i32
  }
  func.func @transform_3(%arg0: i32, %arg1: i32, %arg2: i32) -> (i32, i32) {
    %c0_i32 = arith.constant 0 : i32
    %c0_i32_0 = arith.constant 0 : i32
    return %c0_i32, %arg1 : i32, i32
  }
  func.func @transform_4(%arg0: i32, %arg1: i32, %arg2: i32) -> (i32, i32) {
    %c0_i32 = arith.constant 0 : i32
    return %arg0, %arg1 : i32, i32
  }
}

module attributes {stable_mosaic.version = 11 : i64} {
  func.func @_mm_kernel(%arg0: i32, %arg1: i32, %arg2: i32, %arg3: memref<128x384xbf16, #tpu.memory_space<vmem>>, %arg4: memref<384x128xbf16, #tpu.memory_space<vmem>>, %arg5: memref<1x128xf32, #tpu.memory_space<vmem>>, %arg6: memref<1x128xf32, #tpu.memory_space<vmem>>, %arg7: memref<128x128xbf16, #tpu.memory_space<vmem>>, %arg8: memref<128x128xf32, #tpu.memory_space<vmem>>) attributes {dimension_semantics = [#tpu.dimension_semantics<parallel>, #tpu.dimension_semantics<parallel>, #tpu.dimension_semantics<arbitrary>], iteration_bounds = array<i64: 1, 1, 1>, scalar_prefetch = 0 : i64, scratch_operands = 1 : i64, tpu.core_type = #tpu.core_type<tc>, window_params = [{transform_indices = @transform_0, window_bounds = array<i64: 128, 384>}, {transform_indices = @transform_1, window_bounds = array<i64: 384, 128>}, {transform_indices = @transform_2, window_bounds = array<i64: 1, 128>}, {transform_indices = @transform_3, window_bounds = array<i64: 1, 128>}, {transform_indices = @transform_4, window_bounds = array<i64: 128, 128>}]} {
    %c0_i32 = arith.constant 0 : i32
    %0 = arith.cmpi eq, %arg2, %c0_i32 : i32
    %1 = arith.extui %0 : i1 to i32
    %c0_i32_0 = arith.constant 0 : i32
    %2 = arith.cmpi ne, %1, %c0_i32_0 : i32
    scf.if %2 {
      %cst_10 = arith.constant 0.000000e+00 : f32
      %12 = vector.broadcast %cst_10 : f32 to vector<128x128xf32>
      %c0_11 = arith.constant 0 : index
      %c0_12 = arith.constant 0 : index
      %13 = vector.load %arg8[%c0_11, %c0_12] : memref<128x128xf32, #tpu.memory_space<vmem>>, vector<128x128xf32>
      tpu.vector_store %arg8[%c0_11, %c0_12], %12 {strides = array<i32>} : memref<128x128xf32, #tpu.memory_space<vmem>>, vector<128x128xf32>,
    } else {
    }
    %c0 = arith.constant 0 : index
    %c0_1 = arith.constant 0 : index
    %3 = vector.load %arg8[%c0, %c0_1] : memref<128x128xf32, #tpu.memory_space<vmem>>, vector<128x128xf32>
    %c0_2 = arith.constant 0 : index
    %c0_3 = arith.constant 0 : index
    %4 = vector.load %arg3[%c0_2, %c0_3] : memref<128x384xbf16, #tpu.memory_space<vmem>>, vector<128x384xbf16>
    %c0_4 = arith.constant 0 : index
    %c0_5 = arith.constant 0 : index
    %5 = vector.load %arg4[%c0_4, %c0_5] : memref<384x128xbf16, #tpu.memory_space<vmem>>, vector<384x128xbf16>
    %cst = arith.constant dense<0.000000e+00> : vector<128x128xf32>
    %6 = tpu.matmul %4, %5, %cst {dimension_numbers = #tpu.dot_dimension_numbers<[1], [0], [0], [1], [0, 0, 1, 1], [], []>} : vector<128x384xbf16>, vector<384x128xbf16>, vector<128x128xf32> -> vector<128x128xf32>
    %7 = arith.addf %3, %6 : vector<128x128xf32>
    %c0_6 = arith.constant 0 : index
    %c0_7 = arith.constant 0 : index
    %8 = vector.load %arg8[%c0_6, %c0_7] : memref<128x128xf32, #tpu.memory_space<vmem>>, vector<128x128xf32>
    tpu.vector_store %arg8[%c0_6, %c0_7], %7 {strides = array<i32>} : memref<128x128xf32, #tpu.memory_space<vmem>>, vector<128x128xf32>,
    %c0_i32_8 = arith.constant 0 : i32
    %9 = arith.cmpi eq, %arg2, %c0_i32_8 : i32
    %10 = arith.extui %9 : i1 to i32
    %c0_i32_9 = arith.constant 0 : i32
    %11 = arith.cmpi ne, %10, %c0_i32_9 : i32
    scf.if %11 {
      %c0_10 = arith.constant 0 : index
      %c0_11 = arith.constant 0 : index
      %12 = vector.load %arg8[%c0_10, %c0_11] : memref<128x128xf32, #tpu.memory_space<vmem>>, vector<128x128xf32>
      %c0_12 = arith.constant 0 : index
      %c0_13 = arith.constant 0 : index
      %13 = vector.load %arg5[%c0_12, %c0_13] : memref<1x128xf32, #tpu.memory_space<vmem>>, vector<1x128xf32>
      %14 = vector.broadcast %13 : vector<1x128xf32> to vector<128x128xf32>
      %15 = arith.mulf %12, %14 : vector<128x128xf32>
      %c0_14 = arith.constant 0 : index
      %c0_15 = arith.constant 0 : index
      %16 = vector.load %arg6[%c0_14, %c0_15] : memref<1x128xf32, #tpu.memory_space<vmem>>, vector<1x128xf32>
      %17 = vector.broadcast %16 : vector<1x128xf32> to vector<128x128xf32>
      %18 = arith.addf %15, %17 : vector<128x128xf32>
      %cst_16 = arith.constant 0.000000e+00 : f32
      %19 = vector.broadcast %cst_16 : f32 to vector<128x128xf32>
      %20 = arith.maximumf %18, %19 : vector<128x128xf32>
      %21 = arith.truncf %20 : vector<128x128xf32> to vector<128x128xbf16>
      %c0_17 = arith.constant 0 : index
      %c0_18 = arith.constant 0 : index
      %22 = vector.load %arg7[%c0_17, %c0_18] : memref<128x128xbf16, #tpu.memory_space<vmem>>, vector<128x128xbf16>
      tpu.vector_store %arg7[%c0_17, %c0_18], %21 {strides = array<i32>} : memref<128x128xbf16, #tpu.memory_space<vmem>>, vector<128x128xbf16>,
    } else {
    }
    return
  }
  func.func @transform_0(%arg0: i32, %arg1: i32, %arg2: i32) -> (i32, i32) {
    %c0_i32 = arith.constant 0 : i32
    return %arg0, %arg2 : i32, i32
  }
  func.func @transform_1(%arg0: i32, %arg1: i32, %arg2: i32) -> (i32, i32) {
    %c0_i32 = arith.constant 0 : i32
    return %arg2, %arg1 : i32, i32
  }
  func.func @transform_2(%arg0: i32, %arg1: i32, %arg2: i32) -> (i32, i32) {
    %c0_i32 = arith.constant 0 : i32
    %c0_i32_0 = arith.constant 0 : i32
    return %c0_i32, %arg1 : i32, i32
  }
  func.func @transform_3(%arg0: i32, %arg1: i32, %arg2: i32) -> (i32, i32) {
    %c0_i32 = arith.constant 0 : i32
    %c0_i32_0 = arith.constant 0 : i32
    return %c0_i32, %arg1 : i32, i32
  }
  func.func @transform_4(%arg0: i32, %arg1: i32, %arg2: i32) -> (i32, i32) {
    %c0_i32 = arith.constant 0 : i32
    return %arg0, %arg1 : i32, i32
  }
}

module attributes {stable_mosaic.version = 11 : i64} {
  func.func @_gap_kernel(%arg0: i32, %arg1: memref<1x4x32xbf16, #tpu.memory_space<vmem>>, %arg2: memref<1x1x32xbf16, #tpu.memory_space<vmem>>) attributes {dimension_semantics = [#tpu.dimension_semantics<parallel>], iteration_bounds = array<i64: 2>, scalar_prefetch = 0 : i64, scratch_operands = 0 : i64, tpu.core_type = #tpu.core_type<tc>, window_params = [{transform_indices = @transform_0, window_bounds = array<i64: 1, 4, 32>}, {transform_indices = @transform_1, window_bounds = array<i64: 1, 1, 32>}]} {
    %c0 = arith.constant 0 : index
    %c0_0 = arith.constant 0 : index
    %c0_1 = arith.constant 0 : index
    %0 = vector.load %arg1[%c0, %c0_0, %c0_1] : memref<1x4x32xbf16, #tpu.memory_space<vmem>>, vector<1x4x32xbf16>
    %1 = vector.shape_cast %0 : vector<1x4x32xbf16> to vector<4x32xbf16>
    %2 = arith.extf %1 : vector<4x32xbf16> to vector<4x32xf32>
    %cst = arith.constant dense<0.000000e+00> : vector<32xf32>
    %3 = vector.multi_reduction <add>, %2, %cst [0] : vector<4x32xf32> to vector<32xf32>
    %4 = vector.shape_cast %3 : vector<32xf32> to vector<1x32xf32>
    %cst_2 = arith.constant 2.500000e-01 : f32
    %5 = vector.broadcast %cst_2 : f32 to vector<1x32xf32>
    %6 = arith.mulf %4, %5 : vector<1x32xf32>
    %7 = arith.truncf %6 : vector<1x32xf32> to vector<1x32xbf16>
    %c0_3 = arith.constant 0 : index
    %c0_4 = arith.constant 0 : index
    %c0_5 = arith.constant 0 : index
    %8 = vector.load %arg2[%c0_3, %c0_4, %c0_5] : memref<1x1x32xbf16, #tpu.memory_space<vmem>>, vector<1x1x32xbf16>
    %9 = vector.shape_cast %8 : vector<1x1x32xbf16> to vector<1x32xbf16>
    %10 = vector.shape_cast %7 : vector<1x32xbf16> to vector<1x1x32xbf16>
    tpu.vector_store %arg2[%c0_3, %c0_4, %c0_5], %10 {strides = array<i32>} : memref<1x1x32xbf16, #tpu.memory_space<vmem>>, vector<1x1x32xbf16>,
    return
  }
  func.func @transform_0(%arg0: i32) -> (i32, i32, i32) {
    %c0_i32 = arith.constant 0 : i32
    %c0_i32_0 = arith.constant 0 : i32
    %c0_i32_1 = arith.constant 0 : i32
    return %arg0, %c0_i32, %c0_i32_0 : i32, i32, i32
  }
  func.func @transform_1(%arg0: i32) -> (i32, i32, i32) {
    %c0_i32 = arith.constant 0 : i32
    %c0_i32_0 = arith.constant 0 : i32
    %c0_i32_1 = arith.constant 0 : i32
    return %arg0, %c0_i32, %c0_i32_0 : i32, i32, i32
  }
}

module attributes {stable_mosaic.version = 11 : i64} {
  func.func @_mm_kernel(%arg0: i32, %arg1: i32, %arg2: i32, %arg3: memref<128x128xbf16, #tpu.memory_space<vmem>>, %arg4: memref<128x128xbf16, #tpu.memory_space<vmem>>, %arg5: memref<1x128xf32, #tpu.memory_space<vmem>>, %arg6: memref<1x128xf32, #tpu.memory_space<vmem>>, %arg7: memref<128x128xbf16, #tpu.memory_space<vmem>>, %arg8: memref<128x128xf32, #tpu.memory_space<vmem>>) attributes {dimension_semantics = [#tpu.dimension_semantics<parallel>, #tpu.dimension_semantics<parallel>, #tpu.dimension_semantics<arbitrary>], iteration_bounds = array<i64: 1, 1, 1>, scalar_prefetch = 0 : i64, scratch_operands = 1 : i64, tpu.core_type = #tpu.core_type<tc>, window_params = [{transform_indices = @transform_0, window_bounds = array<i64: 128, 128>}, {transform_indices = @transform_1, window_bounds = array<i64: 128, 128>}, {transform_indices = @transform_2, window_bounds = array<i64: 1, 128>}, {transform_indices = @transform_3, window_bounds = array<i64: 1, 128>}, {transform_indices = @transform_4, window_bounds = array<i64: 128, 128>}]} {
    %c0_i32 = arith.constant 0 : i32
    %0 = arith.cmpi eq, %arg2, %c0_i32 : i32
    %1 = arith.extui %0 : i1 to i32
    %c0_i32_0 = arith.constant 0 : i32
    %2 = arith.cmpi ne, %1, %c0_i32_0 : i32
    scf.if %2 {
      %cst_10 = arith.constant 0.000000e+00 : f32
      %12 = vector.broadcast %cst_10 : f32 to vector<128x128xf32>
      %c0_11 = arith.constant 0 : index
      %c0_12 = arith.constant 0 : index
      %13 = vector.load %arg8[%c0_11, %c0_12] : memref<128x128xf32, #tpu.memory_space<vmem>>, vector<128x128xf32>
      tpu.vector_store %arg8[%c0_11, %c0_12], %12 {strides = array<i32>} : memref<128x128xf32, #tpu.memory_space<vmem>>, vector<128x128xf32>,
    } else {
    }
    %c0 = arith.constant 0 : index
    %c0_1 = arith.constant 0 : index
    %3 = vector.load %arg8[%c0, %c0_1] : memref<128x128xf32, #tpu.memory_space<vmem>>, vector<128x128xf32>
    %c0_2 = arith.constant 0 : index
    %c0_3 = arith.constant 0 : index
    %4 = vector.load %arg3[%c0_2, %c0_3] : memref<128x128xbf16, #tpu.memory_space<vmem>>, vector<128x128xbf16>
    %c0_4 = arith.constant 0 : index
    %c0_5 = arith.constant 0 : index
    %5 = vector.load %arg4[%c0_4, %c0_5] : memref<128x128xbf16, #tpu.memory_space<vmem>>, vector<128x128xbf16>
    %cst = arith.constant dense<0.000000e+00> : vector<128x128xf32>
    %6 = tpu.matmul %4, %5, %cst {dimension_numbers = #tpu.dot_dimension_numbers<[1], [0], [0], [1], [0, 0, 1, 1], [], []>} : vector<128x128xbf16>, vector<128x128xbf16>, vector<128x128xf32> -> vector<128x128xf32>
    %7 = arith.addf %3, %6 : vector<128x128xf32>
    %c0_6 = arith.constant 0 : index
    %c0_7 = arith.constant 0 : index
    %8 = vector.load %arg8[%c0_6, %c0_7] : memref<128x128xf32, #tpu.memory_space<vmem>>, vector<128x128xf32>
    tpu.vector_store %arg8[%c0_6, %c0_7], %7 {strides = array<i32>} : memref<128x128xf32, #tpu.memory_space<vmem>>, vector<128x128xf32>,
    %c0_i32_8 = arith.constant 0 : i32
    %9 = arith.cmpi eq, %arg2, %c0_i32_8 : i32
    %10 = arith.extui %9 : i1 to i32
    %c0_i32_9 = arith.constant 0 : i32
    %11 = arith.cmpi ne, %10, %c0_i32_9 : i32
    scf.if %11 {
      %c0_10 = arith.constant 0 : index
      %c0_11 = arith.constant 0 : index
      %12 = vector.load %arg8[%c0_10, %c0_11] : memref<128x128xf32, #tpu.memory_space<vmem>>, vector<128x128xf32>
      %c0_12 = arith.constant 0 : index
      %c0_13 = arith.constant 0 : index
      %13 = vector.load %arg5[%c0_12, %c0_13] : memref<1x128xf32, #tpu.memory_space<vmem>>, vector<1x128xf32>
      %14 = vector.broadcast %13 : vector<1x128xf32> to vector<128x128xf32>
      %15 = arith.mulf %12, %14 : vector<128x128xf32>
      %c0_14 = arith.constant 0 : index
      %c0_15 = arith.constant 0 : index
      %16 = vector.load %arg6[%c0_14, %c0_15] : memref<1x128xf32, #tpu.memory_space<vmem>>, vector<1x128xf32>
      %17 = vector.broadcast %16 : vector<1x128xf32> to vector<128x128xf32>
      %18 = arith.addf %15, %17 : vector<128x128xf32>
      %cst_16 = arith.constant 0.000000e+00 : f32
      %19 = vector.broadcast %cst_16 : f32 to vector<128x128xf32>
      %20 = arith.maximumf %18, %19 : vector<128x128xf32>
      %21 = arith.truncf %20 : vector<128x128xf32> to vector<128x128xbf16>
      %c0_17 = arith.constant 0 : index
      %c0_18 = arith.constant 0 : index
      %22 = vector.load %arg7[%c0_17, %c0_18] : memref<128x128xbf16, #tpu.memory_space<vmem>>, vector<128x128xbf16>
      tpu.vector_store %arg7[%c0_17, %c0_18], %21 {strides = array<i32>} : memref<128x128xbf16, #tpu.memory_space<vmem>>, vector<128x128xbf16>,
    } else {
    }
    return
  }
  func.func @transform_0(%arg0: i32, %arg1: i32, %arg2: i32) -> (i32, i32) {
    %c0_i32 = arith.constant 0 : i32
    return %arg0, %arg2 : i32, i32
  }
  func.func @transform_1(%arg0: i32, %arg1: i32, %arg2: i32) -> (i32, i32) {
    %c0_i32 = arith.constant 0 : i32
    return %arg2, %arg1 : i32, i32
  }
  func.func @transform_2(%arg0: i32, %arg1: i32, %arg2: i32) -> (i32, i32) {
    %c0_i32 = arith.constant 0 : i32
    %c0_i32_0 = arith.constant 0 : i32
    return %c0_i32, %arg1 : i32, i32
  }
  func.func @transform_3(%arg0: i32, %arg1: i32, %arg2: i32) -> (i32, i32) {
    %c0_i32 = arith.constant 0 : i32
    %c0_i32_0 = arith.constant 0 : i32
    return %c0_i32, %arg1 : i32, i32
  }
  func.func @transform_4(%arg0: i32, %arg1: i32, %arg2: i32) -> (i32, i32) {
    %c0_i32 = arith.constant 0 : i32
    return %arg0, %arg1 : i32, i32
  }
}

module attributes {stable_mosaic.version = 11 : i64} {
  func.func @_mm_kernel(%arg0: i32, %arg1: i32, %arg2: i32, %arg3: memref<128x128xbf16, #tpu.memory_space<vmem>>, %arg4: memref<128x128xbf16, #tpu.memory_space<vmem>>, %arg5: memref<1x128xf32, #tpu.memory_space<vmem>>, %arg6: memref<1x128xf32, #tpu.memory_space<vmem>>, %arg7: memref<128x128xbf16, #tpu.memory_space<vmem>>, %arg8: memref<128x128xf32, #tpu.memory_space<vmem>>) attributes {dimension_semantics = [#tpu.dimension_semantics<parallel>, #tpu.dimension_semantics<parallel>, #tpu.dimension_semantics<arbitrary>], iteration_bounds = array<i64: 1, 1, 1>, scalar_prefetch = 0 : i64, scratch_operands = 1 : i64, tpu.core_type = #tpu.core_type<tc>, window_params = [{transform_indices = @transform_0, window_bounds = array<i64: 128, 128>}, {transform_indices = @transform_1, window_bounds = array<i64: 128, 128>}, {transform_indices = @transform_2, window_bounds = array<i64: 1, 128>}, {transform_indices = @transform_3, window_bounds = array<i64: 1, 128>}, {transform_indices = @transform_4, window_bounds = array<i64: 128, 128>}]} {
    %c0_i32 = arith.constant 0 : i32
    %0 = arith.cmpi eq, %arg2, %c0_i32 : i32
    %1 = arith.extui %0 : i1 to i32
    %c0_i32_0 = arith.constant 0 : i32
    %2 = arith.cmpi ne, %1, %c0_i32_0 : i32
    scf.if %2 {
      %cst_10 = arith.constant 0.000000e+00 : f32
      %12 = vector.broadcast %cst_10 : f32 to vector<128x128xf32>
      %c0_11 = arith.constant 0 : index
      %c0_12 = arith.constant 0 : index
      %13 = vector.load %arg8[%c0_11, %c0_12] : memref<128x128xf32, #tpu.memory_space<vmem>>, vector<128x128xf32>
      tpu.vector_store %arg8[%c0_11, %c0_12], %12 {strides = array<i32>} : memref<128x128xf32, #tpu.memory_space<vmem>>, vector<128x128xf32>,
    } else {
    }
    %c0 = arith.constant 0 : index
    %c0_1 = arith.constant 0 : index
    %3 = vector.load %arg8[%c0, %c0_1] : memref<128x128xf32, #tpu.memory_space<vmem>>, vector<128x128xf32>
    %c0_2 = arith.constant 0 : index
    %c0_3 = arith.constant 0 : index
    %4 = vector.load %arg3[%c0_2, %c0_3] : memref<128x128xbf16, #tpu.memory_space<vmem>>, vector<128x128xbf16>
    %c0_4 = arith.constant 0 : index
    %c0_5 = arith.constant 0 : index
    %5 = vector.load %arg4[%c0_4, %c0_5] : memref<128x128xbf16, #tpu.memory_space<vmem>>, vector<128x128xbf16>
    %cst = arith.constant dense<0.000000e+00> : vector<128x128xf32>
    %6 = tpu.matmul %4, %5, %cst {dimension_numbers = #tpu.dot_dimension_numbers<[1], [0], [0], [1], [0, 0, 1, 1], [], []>} : vector<128x128xbf16>, vector<128x128xbf16>, vector<128x128xf32> -> vector<128x128xf32>
    %7 = arith.addf %3, %6 : vector<128x128xf32>
    %c0_6 = arith.constant 0 : index
    %c0_7 = arith.constant 0 : index
    %8 = vector.load %arg8[%c0_6, %c0_7] : memref<128x128xf32, #tpu.memory_space<vmem>>, vector<128x128xf32>
    tpu.vector_store %arg8[%c0_6, %c0_7], %7 {strides = array<i32>} : memref<128x128xf32, #tpu.memory_space<vmem>>, vector<128x128xf32>,
    %c0_i32_8 = arith.constant 0 : i32
    %9 = arith.cmpi eq, %arg2, %c0_i32_8 : i32
    %10 = arith.extui %9 : i1 to i32
    %c0_i32_9 = arith.constant 0 : i32
    %11 = arith.cmpi ne, %10, %c0_i32_9 : i32
    scf.if %11 {
      %c0_10 = arith.constant 0 : index
      %c0_11 = arith.constant 0 : index
      %12 = vector.load %arg8[%c0_10, %c0_11] : memref<128x128xf32, #tpu.memory_space<vmem>>, vector<128x128xf32>
      %c0_12 = arith.constant 0 : index
      %c0_13 = arith.constant 0 : index
      %13 = vector.load %arg5[%c0_12, %c0_13] : memref<1x128xf32, #tpu.memory_space<vmem>>, vector<1x128xf32>
      %14 = vector.broadcast %13 : vector<1x128xf32> to vector<128x128xf32>
      %15 = arith.mulf %12, %14 : vector<128x128xf32>
      %c0_14 = arith.constant 0 : index
      %c0_15 = arith.constant 0 : index
      %16 = vector.load %arg6[%c0_14, %c0_15] : memref<1x128xf32, #tpu.memory_space<vmem>>, vector<1x128xf32>
      %17 = vector.broadcast %16 : vector<1x128xf32> to vector<128x128xf32>
      %18 = arith.addf %15, %17 : vector<128x128xf32>
      %19 = arith.truncf %18 : vector<128x128xf32> to vector<128x128xbf16>
      %c0_16 = arith.constant 0 : index
      %c0_17 = arith.constant 0 : index
      %20 = vector.load %arg7[%c0_16, %c0_17] : memref<128x128xbf16, #tpu.memory_space<vmem>>, vector<128x128xbf16>
      tpu.vector_store %arg7[%c0_16, %c0_17], %19 {strides = array<i32>} : memref<128x128xbf16, #tpu.memory_space<vmem>>, vector<128x128xbf16>,
    } else {
    }
    return
  }
  func.func @transform_0(%arg0: i32, %arg1: i32, %arg2: i32) -> (i32, i32) {
    %c0_i32 = arith.constant 0 : i32
    return %arg0, %arg2 : i32, i32
  }
  func.func @transform_1(%arg0: i32, %arg1: i32, %arg2: i32) -> (i32, i32) {
    %c0_i32 = arith.constant 0 : i32
    return %arg2, %arg1 : i32, i32
  }
  func.func @transform_2(%arg0: i32, %arg1: i32, %arg2: i32) -> (i32, i32) {
    %c0_i32 = arith.constant 0 : i32
    %c0_i32_0 = arith.constant 0 : i32
    return %c0_i32, %arg1 : i32, i32
  }
  func.func @transform_3(%arg0: i32, %arg1: i32, %arg2: i32) -> (i32, i32) {
    %c0_i32 = arith.constant 0 : i32
    %c0_i32_0 = arith.constant 0 : i32
    return %c0_i32, %arg1 : i32, i32
  }
  func.func @transform_4(%arg0: i32, %arg1: i32, %arg2: i32) -> (i32, i32) {
    %c0_i32 = arith.constant 0 : i32
    return %arg0, %arg1 : i32, i32
  }
}

module attributes {stable_mosaic.version = 11 : i64} {
  func.func @_pam_flash_kernel(%arg0: i32, %arg1: i32, %arg2: i32, %arg3: memref<1x1xf32, #tpu.memory_space<smem>>, %arg4: memref<1x4x1xbf16, #tpu.memory_space<vmem>>, %arg5: memref<1x4x1xbf16, #tpu.memory_space<vmem>>, %arg6: memref<1x4x8xbf16, #tpu.memory_space<vmem>>, %arg7: memref<1x4x8xbf16, #tpu.memory_space<vmem>>, %arg8: memref<1x4x8xbf16, #tpu.memory_space<vmem>>, %arg9: memref<4x1xf32, #tpu.memory_space<vmem>>, %arg10: memref<4x1xf32, #tpu.memory_space<vmem>>, %arg11: memref<4x8xf32, #tpu.memory_space<vmem>>) attributes {dimension_semantics = [#tpu.dimension_semantics<parallel>, #tpu.dimension_semantics<parallel>, #tpu.dimension_semantics<arbitrary>], iteration_bounds = array<i64: 2, 1, 1>, scalar_prefetch = 0 : i64, scratch_operands = 3 : i64, tpu.core_type = #tpu.core_type<tc>, window_params = [{transform_indices = @transform_0, window_bounds = array<i64: 1, 1>}, {transform_indices = @transform_1, window_bounds = array<i64: 1, 4, 1>}, {transform_indices = @transform_2, window_bounds = array<i64: 1, 4, 1>}, {transform_indices = @transform_3, window_bounds = array<i64: 1, 4, 8>}, {transform_indices = @transform_4, window_bounds = array<i64: 1, 4, 8>}, {transform_indices = @transform_5, window_bounds = array<i64: 1, 4, 8>}]} {
    %c0_i32 = arith.constant 0 : i32
    %0 = arith.cmpi eq, %arg2, %c0_i32 : i32
    %1 = arith.extui %0 : i1 to i32
    %c0_i32_0 = arith.constant 0 : i32
    %2 = arith.cmpi ne, %1, %c0_i32_0 : i32
    scf.if %2 {
      %cst_26 = arith.constant 0xFF800000 : f32
      %37 = vector.broadcast %cst_26 : f32 to vector<4x1xf32>
      %c0_27 = arith.constant 0 : index
      %c0_28 = arith.constant 0 : index
      %38 = vector.load %arg9[%c0_27, %c0_28] : memref<4x1xf32, #tpu.memory_space<vmem>>, vector<4x1xf32>
      tpu.vector_store %arg9[%c0_27, %c0_28], %37 {strides = array<i32>} : memref<4x1xf32, #tpu.memory_space<vmem>>, vector<4x1xf32>,
      %cst_29 = arith.constant 0.000000e+00 : f32
      %39 = vector.broadcast %cst_29 : f32 to vector<4x1xf32>
      %c0_30 = arith.constant 0 : index
      %c0_31 = arith.constant 0 : index
      %40 = vector.load %arg10[%c0_30, %c0_31] : memref<4x1xf32, #tpu.memory_space<vmem>>, vector<4x1xf32>
      tpu.vector_store %arg10[%c0_30, %c0_31], %39 {strides = array<i32>} : memref<4x1xf32, #tpu.memory_space<vmem>>, vector<4x1xf32>,
      %cst_32 = arith.constant 0.000000e+00 : f32
      %41 = vector.broadcast %cst_32 : f32 to vector<4x8xf32>
      %c0_33 = arith.constant 0 : index
      %c0_34 = arith.constant 0 : index
      %42 = vector.load %arg11[%c0_33, %c0_34] : memref<4x8xf32, #tpu.memory_space<vmem>>, vector<4x8xf32>
      tpu.vector_store %arg11[%c0_33, %c0_34], %41 {strides = array<i32>} : memref<4x8xf32, #tpu.memory_space<vmem>>, vector<4x8xf32>,
    } else {
    }
    %c0 = arith.constant 0 : index
    %c0_1 = arith.constant 0 : index
    %c0_2 = arith.constant 0 : index
    %3 = vector.load %arg4[%c0, %c0_1, %c0_2] : memref<1x4x1xbf16, #tpu.memory_space<vmem>>, vector<1x4x1xbf16>
    %4 = vector.shape_cast %3 : vector<1x4x1xbf16> to vector<4x1xbf16>
    %c0_3 = arith.constant 0 : index
    %c0_4 = arith.constant 0 : index
    %c0_5 = arith.constant 0 : index
    %5 = vector.load %arg5[%c0_3, %c0_4, %c0_5] : memref<1x4x1xbf16, #tpu.memory_space<vmem>>, vector<1x4x1xbf16>
    %6 = vector.shape_cast %5 : vector<1x4x1xbf16> to vector<4x1xbf16>
    %7 = tpu.transpose %6, [1, 0] : vector<4x1xbf16> -> vector<1x4xbf16>
    %cst = arith.constant dense<0.000000e+00> : vector<4x4xf32>
    %8 = tpu.matmul %4, %7, %cst {dimension_numbers = #tpu.dot_dimension_numbers<[1], [0], [0], [1], [0, 0, 1, 1], [], []>} : vector<4x1xbf16>, vector<1x4xbf16>, vector<4x4xf32> -> vector<4x4xf32>
    %c0_6 = arith.constant 0 : index
    %c0_7 = arith.constant 0 : index
    %9 = vector.load %arg9[%c0_6, %c0_7] : memref<4x1xf32, #tpu.memory_space<vmem>>, vector<4x1xf32>
    %cst_8 = arith.constant dense<0xFF800000> : vector<4xf32>
    %10 = vector.multi_reduction <maximumf>, %8, %cst_8 [1] : vector<4x4xf32> to vector<4xf32>
    %11 = vector.shape_cast %10 : vector<4xf32> to vector<4x1xf32>
    %12 = arith.maximumf %9, %11 : vector<4x1xf32>
    %13 = arith.subf %9, %12 : vector<4x1xf32>
    %14 = math.exp %13 : vector<4x1xf32>
    %15 = vector.broadcast %12 : vector<4x1xf32> to vector<4x4xf32>
    %16 = arith.subf %8, %15 : vector<4x4xf32>
    %17 = math.exp %16 : vector<4x4xf32>
    %c0_9 = arith.constant 0 : index
    %c0_10 = arith.constant 0 : index
    %18 = vector.load %arg10[%c0_9, %c0_10] : memref<4x1xf32, #tpu.memory_space<vmem>>, vector<4x1xf32>
    %19 = arith.mulf %14, %18 : vector<4x1xf32>
    %cst_11 = arith.constant dense<0.000000e+00> : vector<4xf32>
    %20 = vector.multi_reduction <add>, %17, %cst_11 [1] : vector<4x4xf32> to vector<4xf32>
    %21 = vector.shape_cast %20 : vector<4xf32> to vector<4x1xf32>
    %22 = arith.addf %19, %21 : vector<4x1xf32>
    %c0_12 = arith.constant 0 : index
    %c0_13 = arith.constant 0 : index
    %23 = vector.load %arg10[%c0_12, %c0_13] : memref<4x1xf32, #tpu.memory_space<vmem>>, vector<4x1xf32>
    tpu.vector_store %arg10[%c0_12, %c0_13], %22 {strides = array<i32>} : memref<4x1xf32, #tpu.memory_space<vmem>>, vector<4x1xf32>,
    %c0_14 = arith.constant 0 : index
    %c0_15 = arith.constant 0 : index
    %24 = vector.load %arg11[%c0_14, %c0_15] : memref<4x8xf32, #tpu.memory_space<vmem>>, vector<4x8xf32>
    %25 = vector.broadcast %14 : vector<4x1xf32> to vector<4x8xf32>
    %26 = arith.mulf %25, %24 : vector<4x8xf32>
    %27 = arith.truncf %17 : vector<4x4xf32> to vector<4x4xbf16>
    %c0_16 = arith.constant 0 : index
    %c0_17 = arith.constant 0 : index
    %c0_18 = arith.constant 0 : index
    %28 = vector.load %arg6[%c0_16, %c0_17, %c0_18] : memref<1x4x8xbf16, #tpu.memory_space<vmem>>, vector<1x4x8xbf16>
    %29 = vector.shape_cast %28 : vector<1x4x8xbf16> to vector<4x8xbf16>
    %cst_19 = arith.constant dense<0.000000e+00> : vector<4x8xf32>
    %30 = tpu.matmul %27, %29, %cst_19 {dimension_numbers = #tpu.dot_dimension_numbers<[1], [0], [0], [1], [0, 0, 1, 1], [], []>} : vector<4x4xbf16>, vector<4x8xbf16>, vector<4x8xf32> -> vector<4x8xf32>
    %31 = arith.addf %26, %30 : vector<4x8xf32>
    %c0_20 = arith.constant 0 : index
    %c0_21 = arith.constant 0 : index
    %32 = vector.load %arg11[%c0_20, %c0_21] : memref<4x8xf32, #tpu.memory_space<vmem>>, vector<4x8xf32>
    tpu.vector_store %arg11[%c0_20, %c0_21], %31 {strides = array<i32>} : memref<4x8xf32, #tpu.memory_space<vmem>>, vector<4x8xf32>,
    %c0_22 = arith.constant 0 : index
    %c0_23 = arith.constant 0 : index
    %33 = vector.load %arg9[%c0_22, %c0_23] : memref<4x1xf32, #tpu.memory_space<vmem>>, vector<4x1xf32>
    tpu.vector_store %arg9[%c0_22, %c0_23], %12 {strides = array<i32>} : memref<4x1xf32, #tpu.memory_space<vmem>>, vector<4x1xf32>,
    %c0_i32_24 = arith.constant 0 : i32
    %34 = arith.cmpi eq, %arg2, %c0_i32_24 : i32
    %35 = arith.extui %34 : i1 to i32
    %c0_i32_25 = arith.constant 0 : i32
    %36 = arith.cmpi ne, %35, %c0_i32_25 : i32
    scf.if %36 {
      %c0_26 = arith.constant 0 : index
      %c0_27 = arith.constant 0 : index
      %37 = vector.load %arg10[%c0_26, %c0_27] : memref<4x1xf32, #tpu.memory_space<vmem>>, vector<4x1xf32>
      %38 = tpu.reciprocal %37 {approx = true} : vector<4x1xf32> -> vector<4x1xf32>
      %c0_28 = arith.constant 0 : index
      %c0_29 = arith.constant 0 : index
      %39 = memref.load %arg3[%c0_28, %c0_29] : memref<1x1xf32, #tpu.memory_space<smem>>
      %c0_30 = arith.constant 0 : index
      %c0_31 = arith.constant 0 : index
      %40 = vector.load %arg11[%c0_30, %c0_31] : memref<4x8xf32, #tpu.memory_space<vmem>>, vector<4x8xf32>
      %41 = vector.broadcast %38 : vector<4x1xf32> to vector<4x8xf32>
      %42 = arith.mulf %40, %41 : vector<4x8xf32>
      %43 = vector.broadcast %39 : f32 to vector<4x8xf32>
      %44 = arith.mulf %43, %42 : vector<4x8xf32>
      %c0_32 = arith.constant 0 : index
      %c0_33 = arith.constant 0 : index
      %c0_34 = arith.constant 0 : index
      %45 = vector.load %arg7[%c0_32, %c0_33, %c0_34] : memref<1x4x8xbf16, #tpu.memory_space<vmem>>, vector<1x4x8xbf16>
      %46 = vector.shape_cast %45 : vector<1x4x8xbf16> to vector<4x8xbf16>
      %47 = arith.extf %46 : vector<4x8xbf16> to vector<4x8xf32>
      %48 = arith.addf %44, %47 : vector<4x8xf32>
      %49 = arith.truncf %48 : vector<4x8xf32> to vector<4x8xbf16>
      %c0_35 = arith.constant 0 : index
      %c0_36 = arith.constant 0 : index
      %c0_37 = arith.constant 0 : index
      %50 = vector.load %arg8[%c0_35, %c0_36, %c0_37] : memref<1x4x8xbf16, #tpu.memory_space<vmem>>, vector<1x4x8xbf16>
      %51 = vector.shape_cast %50 : vector<1x4x8xbf16> to vector<4x8xbf16>
      %52 = vector.shape_cast %49 : vector<4x8xbf16> to vector<1x4x8xbf16>
      tpu.vector_store %arg8[%c0_35, %c0_36, %c0_37], %52 {strides = array<i32>} : memref<1x4x8xbf16, #tpu.memory_space<vmem>>, vector<1x4x8xbf16>,
    } else {
    }
    return
  }
  func.func @transform_0(%arg0: i32, %arg1: i32, %arg2: i32) -> (i32, i32) {
    %c0_i32 = arith.constant 0 : i32
    %c0_i32_0 = arith.constant 0 : i32
    %c0_i32_1 = arith.constant 0 : i32
    return %c0_i32, %c0_i32_0 : i32, i32
  }
  func.func @transform_1(%arg0: i32, %arg1: i32, %arg2: i32) -> (i32, i32, i32) {
    %c0_i32 = arith.constant 0 : i32
    %c0_i32_0 = arith.constant 0 : i32
    return %arg0, %arg1, %c0_i32 : i32, i32, i32
  }
  func.func @transform_2(%arg0: i32, %arg1: i32, %arg2: i32) -> (i32, i32, i32) {
    %c0_i32 = arith.constant 0 : i32
    %c0_i32_0 = arith.constant 0 : i32
    return %arg0, %arg2, %c0_i32 : i32, i32, i32
  }
  func.func @transform_3(%arg0: i32, %arg1: i32, %arg2: i32) -> (i32, i32, i32) {
    %c0_i32 = arith.constant 0 : i32
    %c0_i32_0 = arith.constant 0 : i32
    return %arg0, %arg2, %c0_i32 : i32, i32, i32
  }
  func.func @transform_4(%arg0: i32, %arg1: i32, %arg2: i32) -> (i32, i32, i32) {
    %c0_i32 = arith.constant 0 : i32
    %c0_i32_0 = arith.constant 0 : i32
    return %arg0, %arg1, %c0_i32 : i32, i32, i32
  }
  func.func @transform_5(%arg0: i32, %arg1: i32, %arg2: i32) -> (i32, i32, i32) {
    %c0_i32 = arith.constant 0 : i32
    %c0_i32_0 = arith.constant 0 : i32
    return %arg0, %arg1, %c0_i32 : i32, i32, i32
  }
}

module attributes {stable_mosaic.version = 11 : i64} {
  func.func @_mm_kernel(%arg0: i32, %arg1: i32, %arg2: i32, %arg3: memref<128x128xbf16, #tpu.memory_space<vmem>>, %arg4: memref<128x128xbf16, #tpu.memory_space<vmem>>, %arg5: memref<1x128xf32, #tpu.memory_space<vmem>>, %arg6: memref<1x128xf32, #tpu.memory_space<vmem>>, %arg7: memref<128x128xbf16, #tpu.memory_space<vmem>>, %arg8: memref<128x128xbf16, #tpu.memory_space<vmem>>, %arg9: memref<128x128xf32, #tpu.memory_space<vmem>>) attributes {dimension_semantics = [#tpu.dimension_semantics<parallel>, #tpu.dimension_semantics<parallel>, #tpu.dimension_semantics<arbitrary>], iteration_bounds = array<i64: 1, 1, 1>, scalar_prefetch = 0 : i64, scratch_operands = 1 : i64, tpu.core_type = #tpu.core_type<tc>, window_params = [{transform_indices = @transform_0, window_bounds = array<i64: 128, 128>}, {transform_indices = @transform_1, window_bounds = array<i64: 128, 128>}, {transform_indices = @transform_2, window_bounds = array<i64: 1, 128>}, {transform_indices = @transform_3, window_bounds = array<i64: 1, 128>}, {transform_indices = @transform_4, window_bounds = array<i64: 128, 128>}, {transform_indices = @transform_5, window_bounds = array<i64: 128, 128>}]} {
    %c0_i32 = arith.constant 0 : i32
    %0 = arith.cmpi eq, %arg2, %c0_i32 : i32
    %1 = arith.extui %0 : i1 to i32
    %c0_i32_0 = arith.constant 0 : i32
    %2 = arith.cmpi ne, %1, %c0_i32_0 : i32
    scf.if %2 {
      %cst_10 = arith.constant 0.000000e+00 : f32
      %12 = vector.broadcast %cst_10 : f32 to vector<128x128xf32>
      %c0_11 = arith.constant 0 : index
      %c0_12 = arith.constant 0 : index
      %13 = vector.load %arg9[%c0_11, %c0_12] : memref<128x128xf32, #tpu.memory_space<vmem>>, vector<128x128xf32>
      tpu.vector_store %arg9[%c0_11, %c0_12], %12 {strides = array<i32>} : memref<128x128xf32, #tpu.memory_space<vmem>>, vector<128x128xf32>,
    } else {
    }
    %c0 = arith.constant 0 : index
    %c0_1 = arith.constant 0 : index
    %3 = vector.load %arg9[%c0, %c0_1] : memref<128x128xf32, #tpu.memory_space<vmem>>, vector<128x128xf32>
    %c0_2 = arith.constant 0 : index
    %c0_3 = arith.constant 0 : index
    %4 = vector.load %arg3[%c0_2, %c0_3] : memref<128x128xbf16, #tpu.memory_space<vmem>>, vector<128x128xbf16>
    %c0_4 = arith.constant 0 : index
    %c0_5 = arith.constant 0 : index
    %5 = vector.load %arg4[%c0_4, %c0_5] : memref<128x128xbf16, #tpu.memory_space<vmem>>, vector<128x128xbf16>
    %cst = arith.constant dense<0.000000e+00> : vector<128x128xf32>
    %6 = tpu.matmul %4, %5, %cst {dimension_numbers = #tpu.dot_dimension_numbers<[1], [0], [0], [1], [0, 0, 1, 1], [], []>} : vector<128x128xbf16>, vector<128x128xbf16>, vector<128x128xf32> -> vector<128x128xf32>
    %7 = arith.addf %3, %6 : vector<128x128xf32>
    %c0_6 = arith.constant 0 : index
    %c0_7 = arith.constant 0 : index
    %8 = vector.load %arg9[%c0_6, %c0_7] : memref<128x128xf32, #tpu.memory_space<vmem>>, vector<128x128xf32>
    tpu.vector_store %arg9[%c0_6, %c0_7], %7 {strides = array<i32>} : memref<128x128xf32, #tpu.memory_space<vmem>>, vector<128x128xf32>,
    %c0_i32_8 = arith.constant 0 : i32
    %9 = arith.cmpi eq, %arg2, %c0_i32_8 : i32
    %10 = arith.extui %9 : i1 to i32
    %c0_i32_9 = arith.constant 0 : i32
    %11 = arith.cmpi ne, %10, %c0_i32_9 : i32
    scf.if %11 {
      %c0_10 = arith.constant 0 : index
      %c0_11 = arith.constant 0 : index
      %12 = vector.load %arg9[%c0_10, %c0_11] : memref<128x128xf32, #tpu.memory_space<vmem>>, vector<128x128xf32>
      %c0_12 = arith.constant 0 : index
      %c0_13 = arith.constant 0 : index
      %13 = vector.load %arg5[%c0_12, %c0_13] : memref<1x128xf32, #tpu.memory_space<vmem>>, vector<1x128xf32>
      %14 = vector.broadcast %13 : vector<1x128xf32> to vector<128x128xf32>
      %15 = arith.mulf %12, %14 : vector<128x128xf32>
      %c0_14 = arith.constant 0 : index
      %c0_15 = arith.constant 0 : index
      %16 = vector.load %arg6[%c0_14, %c0_15] : memref<1x128xf32, #tpu.memory_space<vmem>>, vector<1x128xf32>
      %17 = vector.broadcast %16 : vector<1x128xf32> to vector<128x128xf32>
      %18 = arith.addf %15, %17 : vector<128x128xf32>
      %c0_16 = arith.constant 0 : index
      %c0_17 = arith.constant 0 : index
      %19 = vector.load %arg7[%c0_16, %c0_17] : memref<128x128xbf16, #tpu.memory_space<vmem>>, vector<128x128xbf16>
      %20 = arith.extf %19 : vector<128x128xbf16> to vector<128x128xf32>
      %21 = arith.addf %18, %20 : vector<128x128xf32>
      %22 = arith.truncf %21 : vector<128x128xf32> to vector<128x128xbf16>
      %c0_18 = arith.constant 0 : index
      %c0_19 = arith.constant 0 : index
      %23 = vector.load %arg8[%c0_18, %c0_19] : memref<128x128xbf16, #tpu.memory_space<vmem>>, vector<128x128xbf16>
      tpu.vector_store %arg8[%c0_18, %c0_19], %22 {strides = array<i32>} : memref<128x128xbf16, #tpu.memory_space<vmem>>, vector<128x128xbf16>,
    } else {
    }
    return
  }
  func.func @transform_0(%arg0: i32, %arg1: i32, %arg2: i32) -> (i32, i32) {
    %c0_i32 = arith.constant 0 : i32
    return %arg0, %arg2 : i32, i32
  }
  func.func @transform_1(%arg0: i32, %arg1: i32, %arg2: i32) -> (i32, i32) {
    %c0_i32 = arith.constant 0 : i32
    return %arg2, %arg1 : i32, i32
  }
  func.func @transform_2(%arg0: i32, %arg1: i32, %arg2: i32) -> (i32, i32) {
    %c0_i32 = arith.constant 0 : i32
    %c0_i32_0 = arith.constant 0 : i32
    return %c0_i32, %arg1 : i32, i32
  }
  func.func @transform_3(%arg0: i32, %arg1: i32, %arg2: i32) -> (i32, i32) {
    %c0_i32 = arith.constant 0 : i32
    %c0_i32_0 = arith.constant 0 : i32
    return %c0_i32, %arg1 : i32, i32
  }
  func.func @transform_4(%arg0: i32, %arg1: i32, %arg2: i32) -> (i32, i32) {
    %c0_i32 = arith.constant 0 : i32
    return %arg0, %arg1 : i32, i32
  }
  func.func @transform_5(%arg0: i32, %arg1: i32, %arg2: i32) -> (i32, i32) {
    %c0_i32 = arith.constant 0 : i32
    return %arg0, %arg1 : i32, i32
  }
}

module attributes {stable_mosaic.version = 11 : i64} {
  func.func @_cam_kernel(%arg0: i32, %arg1: memref<1x1xf32, #tpu.memory_space<smem>>, %arg2: memref<1x4x8xbf16, #tpu.memory_space<vmem>>, %arg3: memref<1x4x8xbf16, #tpu.memory_space<vmem>>) attributes {dimension_semantics = [#tpu.dimension_semantics<parallel>], iteration_bounds = array<i64: 2>, scalar_prefetch = 0 : i64, scratch_operands = 0 : i64, tpu.core_type = #tpu.core_type<tc>, window_params = [{transform_indices = @transform_0, window_bounds = array<i64: 1, 1>}, {transform_indices = @transform_1, window_bounds = array<i64: 1, 4, 8>}, {transform_indices = @transform_2, window_bounds = array<i64: 1, 4, 8>}]} {
    %c0 = arith.constant 0 : index
    %c0_0 = arith.constant 0 : index
    %c0_1 = arith.constant 0 : index
    %0 = vector.load %arg2[%c0, %c0_0, %c0_1] : memref<1x4x8xbf16, #tpu.memory_space<vmem>>, vector<1x4x8xbf16>
    %1 = vector.shape_cast %0 : vector<1x4x8xbf16> to vector<4x8xbf16>
    %2 = tpu.transpose %1, [1, 0] : vector<4x8xbf16> -> vector<8x4xbf16>
    %cst = arith.constant dense<0.000000e+00> : vector<8x8xf32>
    %3 = tpu.matmul %2, %1, %cst {dimension_numbers = #tpu.dot_dimension_numbers<[1], [0], [0], [1], [0, 0, 1, 1], [], []>} : vector<8x4xbf16>, vector<4x8xbf16>, vector<8x8xf32> -> vector<8x8xf32>
    %cst_2 = arith.constant dense<0xFF800000> : vector<8xf32>
    %4 = vector.multi_reduction <maximumf>, %3, %cst_2 [1] : vector<8x8xf32> to vector<8xf32>
    %5 = vector.shape_cast %4 : vector<8xf32> to vector<8x1xf32>
    %6 = vector.broadcast %5 : vector<8x1xf32> to vector<8x8xf32>
    %7 = arith.subf %6, %3 : vector<8x8xf32>
    %cst_3 = arith.constant dense<0xFF800000> : vector<8xf32>
    %8 = vector.multi_reduction <maximumf>, %7, %cst_3 [1] : vector<8x8xf32> to vector<8xf32>
    %9 = vector.shape_cast %8 : vector<8xf32> to vector<8x1xf32>
    %10 = vector.broadcast %9 : vector<8x1xf32> to vector<8x8xf32>
    %11 = arith.subf %7, %10 : vector<8x8xf32>
    %12 = math.exp %11 : vector<8x8xf32>
    %cst_4 = arith.constant dense<0.000000e+00> : vector<8xf32>
    %13 = vector.multi_reduction <add>, %12, %cst_4 [1] : vector<8x8xf32> to vector<8xf32>
    %14 = vector.shape_cast %13 : vector<8xf32> to vector<8x1xf32>
    %15 = tpu.reciprocal %14 {approx = true} : vector<8x1xf32> -> vector<8x1xf32>
    %16 = vector.broadcast %15 : vector<8x1xf32> to vector<8x8xf32>
    %17 = arith.mulf %12, %16 : vector<8x8xf32>
    %18 = arith.truncf %17 : vector<8x8xf32> to vector<8x8xbf16>
    %19 = tpu.transpose %18, [1, 0] : vector<8x8xbf16> -> vector<8x8xbf16>
    %cst_5 = arith.constant dense<0.000000e+00> : vector<4x8xf32>
    %20 = tpu.matmul %1, %19, %cst_5 {dimension_numbers = #tpu.dot_dimension_numbers<[1], [0], [0], [1], [0, 0, 1, 1], [], []>} : vector<4x8xbf16>, vector<8x8xbf16>, vector<4x8xf32> -> vector<4x8xf32>
    %c0_6 = arith.constant 0 : index
    %c0_7 = arith.constant 0 : index
    %21 = memref.load %arg1[%c0_6, %c0_7] : memref<1x1xf32, #tpu.memory_space<smem>>
    %22 = vector.broadcast %21 : f32 to vector<4x8xf32>
    %23 = arith.mulf %22, %20 : vector<4x8xf32>
    %24 = arith.extf %1 : vector<4x8xbf16> to vector<4x8xf32>
    %25 = arith.addf %23, %24 : vector<4x8xf32>
    %26 = arith.truncf %25 : vector<4x8xf32> to vector<4x8xbf16>
    %c0_8 = arith.constant 0 : index
    %c0_9 = arith.constant 0 : index
    %c0_10 = arith.constant 0 : index
    %27 = vector.load %arg3[%c0_8, %c0_9, %c0_10] : memref<1x4x8xbf16, #tpu.memory_space<vmem>>, vector<1x4x8xbf16>
    %28 = vector.shape_cast %27 : vector<1x4x8xbf16> to vector<4x8xbf16>
    %29 = vector.shape_cast %26 : vector<4x8xbf16> to vector<1x4x8xbf16>
    tpu.vector_store %arg3[%c0_8, %c0_9, %c0_10], %29 {strides = array<i32>} : memref<1x4x8xbf16, #tpu.memory_space<vmem>>, vector<1x4x8xbf16>,
    return
  }
  func.func @transform_0(%arg0: i32) -> (i32, i32) {
    %c0_i32 = arith.constant 0 : i32
    %c0_i32_0 = arith.constant 0 : i32
    %c0_i32_1 = arith.constant 0 : i32
    return %c0_i32, %c0_i32_0 : i32, i32
  }
  func.func @transform_1(%arg0: i32) -> (i32, i32, i32) {
    %c0_i32 = arith.constant 0 : i32
    %c0_i32_0 = arith.constant 0 : i32
    %c0_i32_1 = arith.constant 0 : i32
    return %arg0, %c0_i32, %c0_i32_0 : i32, i32, i32
  }
  func.func @transform_2(%arg0: i32) -> (i32, i32, i32) {
    %c0_i32 = arith.constant 0 : i32
    %c0_i32_0 = arith.constant 0 : i32
    %c0_i32_1 = arith.constant 0 : i32
    return %arg0, %c0_i32, %c0_i32_0 : i32, i32, i32
  }
}

module attributes {stable_mosaic.version = 11 : i64} {
  func.func @_hinterp_kernel(%arg0: i32, %arg1: memref<16x2xbf16, #tpu.memory_space<vmem>>, %arg2: memref<1x2x64xbf16, #tpu.memory_space<vmem>>, %arg3: memref<1x16x64xbf16, #tpu.memory_space<vmem>>) attributes {dimension_semantics = [#tpu.dimension_semantics<parallel>], iteration_bounds = array<i64: 2>, scalar_prefetch = 0 : i64, scratch_operands = 0 : i64, tpu.core_type = #tpu.core_type<tc>, window_params = [{pipeline_mode = #tpu.pipeline_mode<synchronous>, transform_indices = @transform_0, window_bounds = array<i64: 16, 2>}, {transform_indices = @transform_1, window_bounds = array<i64: 1, 2, 64>}, {transform_indices = @transform_2, window_bounds = array<i64: 1, 16, 64>}]} {
    %c0 = arith.constant 0 : index
    %c0_0 = arith.constant 0 : index
    %0 = vector.load %arg1[%c0, %c0_0] : memref<16x2xbf16, #tpu.memory_space<vmem>>, vector<16x2xbf16>
    %c0_1 = arith.constant 0 : index
    %c0_2 = arith.constant 0 : index
    %c0_3 = arith.constant 0 : index
    %1 = vector.load %arg2[%c0_1, %c0_2, %c0_3] : memref<1x2x64xbf16, #tpu.memory_space<vmem>>, vector<1x2x64xbf16>
    %2 = vector.shape_cast %1 : vector<1x2x64xbf16> to vector<2x64xbf16>
    %cst = arith.constant dense<0.000000e+00> : vector<16x64xf32>
    %3 = tpu.matmul %0, %2, %cst {dimension_numbers = #tpu.dot_dimension_numbers<[1], [0], [0], [1], [0, 0, 1, 1], [], []>} : vector<16x2xbf16>, vector<2x64xbf16>, vector<16x64xf32> -> vector<16x64xf32>
    %4 = arith.truncf %3 : vector<16x64xf32> to vector<16x64xbf16>
    %c0_4 = arith.constant 0 : index
    %c0_5 = arith.constant 0 : index
    %c0_6 = arith.constant 0 : index
    %5 = vector.load %arg3[%c0_4, %c0_5, %c0_6] : memref<1x16x64xbf16, #tpu.memory_space<vmem>>, vector<1x16x64xbf16>
    %6 = vector.shape_cast %5 : vector<1x16x64xbf16> to vector<16x64xbf16>
    %7 = vector.shape_cast %4 : vector<16x64xbf16> to vector<1x16x64xbf16>
    tpu.vector_store %arg3[%c0_4, %c0_5, %c0_6], %7 {strides = array<i32>} : memref<1x16x64xbf16, #tpu.memory_space<vmem>>, vector<1x16x64xbf16>,
    return
  }
  func.func @transform_0(%arg0: i32) -> (i32, i32) {
    %c0_i32 = arith.constant 0 : i32
    %c0_i32_0 = arith.constant 0 : i32
    %c0_i32_1 = arith.constant 0 : i32
    return %c0_i32, %c0_i32_0 : i32, i32
  }
  func.func @transform_1(%arg0: i32) -> (i32, i32, i32) {
    %c0_i32 = arith.constant 0 : i32
    %c0_i32_0 = arith.constant 0 : i32
    %c0_i32_1 = arith.constant 0 : i32
    return %arg0, %c0_i32, %c0_i32_0 : i32, i32, i32
  }
  func.func @transform_2(%arg0: i32) -> (i32, i32, i32) {
    %c0_i32 = arith.constant 0 : i32
    %c0_i32_0 = arith.constant 0 : i32
    %c0_i32_1 = arith.constant 0 : i32
    return %arg0, %c0_i32, %c0_i32_0 : i32, i32, i32
  }
}

module attributes {stable_mosaic.version = 11 : i64} {
  func.func @_winterp_kernel(%arg0: memref<1024x2xbf16, #tpu.memory_space<vmem>>, %arg1: memref<2x16xbf16, #tpu.memory_space<vmem>>, %arg2: memref<1024x16xbf16, #tpu.memory_space<vmem>>) attributes {dimension_semantics = [], scalar_prefetch = 0 : i64, scratch_operands = 0 : i64, tpu.core_type = #tpu.core_type<tc>} {
    %c0 = arith.constant 0 : index
    %c0_0 = arith.constant 0 : index
    %0 = vector.load %arg0[%c0, %c0_0] : memref<1024x2xbf16, #tpu.memory_space<vmem>>, vector<1024x2xbf16>
    %c0_1 = arith.constant 0 : index
    %c0_2 = arith.constant 0 : index
    %1 = vector.load %arg1[%c0_1, %c0_2] : memref<2x16xbf16, #tpu.memory_space<vmem>>, vector<2x16xbf16>
    %cst = arith.constant dense<0.000000e+00> : vector<1024x16xf32>
    %2 = tpu.matmul %0, %1, %cst {dimension_numbers = #tpu.dot_dimension_numbers<[1], [0], [0], [1], [0, 0, 1, 1], [], []>} : vector<1024x2xbf16>, vector<2x16xbf16>, vector<1024x16xf32> -> vector<1024x16xf32>
    %3 = arith.truncf %2 : vector<1024x16xf32> to vector<1024x16xbf16>
    %c0_3 = arith.constant 0 : index
    %c0_4 = arith.constant 0 : index
    %4 = vector.load %arg2[%c0_3, %c0_4] : memref<1024x16xbf16, #tpu.memory_space<vmem>>, vector<1024x16xbf16>
    tpu.vector_store %arg2[%c0_3, %c0_4], %3 {strides = array<i32>} : memref<1024x16xbf16, #tpu.memory_space<vmem>>, vector<1024x16xbf16>,
    return
  }
}

module attributes {stable_mosaic.version = 11 : i64} {
  func.func @_mm_kernel(%arg0: i32, %arg1: i32, %arg2: i32, %arg3: memref<256x128xbf16, #tpu.memory_space<vmem>>, %arg4: memref<128x128xbf16, #tpu.memory_space<vmem>>, %arg5: memref<1x128xf32, #tpu.memory_space<vmem>>, %arg6: memref<1x128xf32, #tpu.memory_space<vmem>>, %arg7: memref<256x128xbf16, #tpu.memory_space<vmem>>, %arg8: memref<256x128xf32, #tpu.memory_space<vmem>>) attributes {dimension_semantics = [#tpu.dimension_semantics<parallel>, #tpu.dimension_semantics<parallel>, #tpu.dimension_semantics<arbitrary>], iteration_bounds = array<i64: 2, 1, 1>, scalar_prefetch = 0 : i64, scratch_operands = 1 : i64, tpu.core_type = #tpu.core_type<tc>, window_params = [{transform_indices = @transform_0, window_bounds = array<i64: 256, 128>}, {transform_indices = @transform_1, window_bounds = array<i64: 128, 128>}, {transform_indices = @transform_2, window_bounds = array<i64: 1, 128>}, {transform_indices = @transform_3, window_bounds = array<i64: 1, 128>}, {transform_indices = @transform_4, window_bounds = array<i64: 256, 128>}]} {
    %c0_i32 = arith.constant 0 : i32
    %0 = arith.cmpi eq, %arg2, %c0_i32 : i32
    %1 = arith.extui %0 : i1 to i32
    %c0_i32_0 = arith.constant 0 : i32
    %2 = arith.cmpi ne, %1, %c0_i32_0 : i32
    scf.if %2 {
      %cst_10 = arith.constant 0.000000e+00 : f32
      %12 = vector.broadcast %cst_10 : f32 to vector<256x128xf32>
      %c0_11 = arith.constant 0 : index
      %c0_12 = arith.constant 0 : index
      %13 = vector.load %arg8[%c0_11, %c0_12] : memref<256x128xf32, #tpu.memory_space<vmem>>, vector<256x128xf32>
      tpu.vector_store %arg8[%c0_11, %c0_12], %12 {strides = array<i32>} : memref<256x128xf32, #tpu.memory_space<vmem>>, vector<256x128xf32>,
    } else {
    }
    %c0 = arith.constant 0 : index
    %c0_1 = arith.constant 0 : index
    %3 = vector.load %arg8[%c0, %c0_1] : memref<256x128xf32, #tpu.memory_space<vmem>>, vector<256x128xf32>
    %c0_2 = arith.constant 0 : index
    %c0_3 = arith.constant 0 : index
    %4 = vector.load %arg3[%c0_2, %c0_3] : memref<256x128xbf16, #tpu.memory_space<vmem>>, vector<256x128xbf16>
    %c0_4 = arith.constant 0 : index
    %c0_5 = arith.constant 0 : index
    %5 = vector.load %arg4[%c0_4, %c0_5] : memref<128x128xbf16, #tpu.memory_space<vmem>>, vector<128x128xbf16>
    %cst = arith.constant dense<0.000000e+00> : vector<256x128xf32>
    %6 = tpu.matmul %4, %5, %cst {dimension_numbers = #tpu.dot_dimension_numbers<[1], [0], [0], [1], [0, 0, 1, 1], [], []>} : vector<256x128xbf16>, vector<128x128xbf16>, vector<256x128xf32> -> vector<256x128xf32>
    %7 = arith.addf %3, %6 : vector<256x128xf32>
    %c0_6 = arith.constant 0 : index
    %c0_7 = arith.constant 0 : index
    %8 = vector.load %arg8[%c0_6, %c0_7] : memref<256x128xf32, #tpu.memory_space<vmem>>, vector<256x128xf32>
    tpu.vector_store %arg8[%c0_6, %c0_7], %7 {strides = array<i32>} : memref<256x128xf32, #tpu.memory_space<vmem>>, vector<256x128xf32>,
    %c0_i32_8 = arith.constant 0 : i32
    %9 = arith.cmpi eq, %arg2, %c0_i32_8 : i32
    %10 = arith.extui %9 : i1 to i32
    %c0_i32_9 = arith.constant 0 : i32
    %11 = arith.cmpi ne, %10, %c0_i32_9 : i32
    scf.if %11 {
      %c0_10 = arith.constant 0 : index
      %c0_11 = arith.constant 0 : index
      %12 = vector.load %arg8[%c0_10, %c0_11] : memref<256x128xf32, #tpu.memory_space<vmem>>, vector<256x128xf32>
      %c0_12 = arith.constant 0 : index
      %c0_13 = arith.constant 0 : index
      %13 = vector.load %arg5[%c0_12, %c0_13] : memref<1x128xf32, #tpu.memory_space<vmem>>, vector<1x128xf32>
      %14 = vector.broadcast %13 : vector<1x128xf32> to vector<256x128xf32>
      %15 = arith.mulf %12, %14 : vector<256x128xf32>
      %c0_14 = arith.constant 0 : index
      %c0_15 = arith.constant 0 : index
      %16 = vector.load %arg6[%c0_14, %c0_15] : memref<1x128xf32, #tpu.memory_space<vmem>>, vector<1x128xf32>
      %17 = vector.broadcast %16 : vector<1x128xf32> to vector<256x128xf32>
      %18 = arith.addf %15, %17 : vector<256x128xf32>
      %cst_16 = arith.constant 0.000000e+00 : f32
      %19 = vector.broadcast %cst_16 : f32 to vector<256x128xf32>
      %20 = arith.maximumf %18, %19 : vector<256x128xf32>
      %21 = arith.truncf %20 : vector<256x128xf32> to vector<256x128xbf16>
      %c0_17 = arith.constant 0 : index
      %c0_18 = arith.constant 0 : index
      %22 = vector.load %arg7[%c0_17, %c0_18] : memref<256x128xbf16, #tpu.memory_space<vmem>>, vector<256x128xbf16>
      tpu.vector_store %arg7[%c0_17, %c0_18], %21 {strides = array<i32>} : memref<256x128xbf16, #tpu.memory_space<vmem>>, vector<256x128xbf16>,
    } else {
    }
    return
  }
  func.func @transform_0(%arg0: i32, %arg1: i32, %arg2: i32) -> (i32, i32) {
    %c0_i32 = arith.constant 0 : i32
    return %arg0, %arg2 : i32, i32
  }
  func.func @transform_1(%arg0: i32, %arg1: i32, %arg2: i32) -> (i32, i32) {
    %c0_i32 = arith.constant 0 : i32
    return %arg2, %arg1 : i32, i32
  }
  func.func @transform_2(%arg0: i32, %arg1: i32, %arg2: i32) -> (i32, i32) {
    %c0_i32 = arith.constant 0 : i32
    %c0_i32_0 = arith.constant 0 : i32
    return %c0_i32, %arg1 : i32, i32
  }
  func.func @transform_3(%arg0: i32, %arg1: i32, %arg2: i32) -> (i32, i32) {
    %c0_i32 = arith.constant 0 : i32
    %c0_i32_0 = arith.constant 0 : i32
    return %c0_i32, %arg1 : i32, i32
  }
  func.func @transform_4(%arg0: i32, %arg1: i32, %arg2: i32) -> (i32, i32) {
    %c0_i32 = arith.constant 0 : i32
    return %arg0, %arg1 : i32, i32
  }
}

module attributes {stable_mosaic.version = 11 : i64} {
  func.func @_mm_kernel(%arg0: i32, %arg1: i32, %arg2: i32, %arg3: memref<256x512xbf16, #tpu.memory_space<vmem>>, %arg4: memref<512x128xbf16, #tpu.memory_space<vmem>>, %arg5: memref<1x128xf32, #tpu.memory_space<vmem>>, %arg6: memref<1x128xf32, #tpu.memory_space<vmem>>, %arg7: memref<256x128xbf16, #tpu.memory_space<vmem>>, %arg8: memref<256x128xf32, #tpu.memory_space<vmem>>) attributes {dimension_semantics = [#tpu.dimension_semantics<parallel>, #tpu.dimension_semantics<parallel>, #tpu.dimension_semantics<arbitrary>], iteration_bounds = array<i64: 2, 1, 1>, scalar_prefetch = 0 : i64, scratch_operands = 1 : i64, tpu.core_type = #tpu.core_type<tc>, window_params = [{transform_indices = @transform_0, window_bounds = array<i64: 256, 512>}, {transform_indices = @transform_1, window_bounds = array<i64: 512, 128>}, {transform_indices = @transform_2, window_bounds = array<i64: 1, 128>}, {transform_indices = @transform_3, window_bounds = array<i64: 1, 128>}, {transform_indices = @transform_4, window_bounds = array<i64: 256, 128>}]} {
    %c0_i32 = arith.constant 0 : i32
    %0 = arith.cmpi eq, %arg2, %c0_i32 : i32
    %1 = arith.extui %0 : i1 to i32
    %c0_i32_0 = arith.constant 0 : i32
    %2 = arith.cmpi ne, %1, %c0_i32_0 : i32
    scf.if %2 {
      %cst_10 = arith.constant 0.000000e+00 : f32
      %12 = vector.broadcast %cst_10 : f32 to vector<256x128xf32>
      %c0_11 = arith.constant 0 : index
      %c0_12 = arith.constant 0 : index
      %13 = vector.load %arg8[%c0_11, %c0_12] : memref<256x128xf32, #tpu.memory_space<vmem>>, vector<256x128xf32>
      tpu.vector_store %arg8[%c0_11, %c0_12], %12 {strides = array<i32>} : memref<256x128xf32, #tpu.memory_space<vmem>>, vector<256x128xf32>,
    } else {
    }
    %c0 = arith.constant 0 : index
    %c0_1 = arith.constant 0 : index
    %3 = vector.load %arg8[%c0, %c0_1] : memref<256x128xf32, #tpu.memory_space<vmem>>, vector<256x128xf32>
    %c0_2 = arith.constant 0 : index
    %c0_3 = arith.constant 0 : index
    %4 = vector.load %arg3[%c0_2, %c0_3] : memref<256x512xbf16, #tpu.memory_space<vmem>>, vector<256x512xbf16>
    %c0_4 = arith.constant 0 : index
    %c0_5 = arith.constant 0 : index
    %5 = vector.load %arg4[%c0_4, %c0_5] : memref<512x128xbf16, #tpu.memory_space<vmem>>, vector<512x128xbf16>
    %cst = arith.constant dense<0.000000e+00> : vector<256x128xf32>
    %6 = tpu.matmul %4, %5, %cst {dimension_numbers = #tpu.dot_dimension_numbers<[1], [0], [0], [1], [0, 0, 1, 1], [], []>} : vector<256x512xbf16>, vector<512x128xbf16>, vector<256x128xf32> -> vector<256x128xf32>
    %7 = arith.addf %3, %6 : vector<256x128xf32>
    %c0_6 = arith.constant 0 : index
    %c0_7 = arith.constant 0 : index
    %8 = vector.load %arg8[%c0_6, %c0_7] : memref<256x128xf32, #tpu.memory_space<vmem>>, vector<256x128xf32>
    tpu.vector_store %arg8[%c0_6, %c0_7], %7 {strides = array<i32>} : memref<256x128xf32, #tpu.memory_space<vmem>>, vector<256x128xf32>,
    %c0_i32_8 = arith.constant 0 : i32
    %9 = arith.cmpi eq, %arg2, %c0_i32_8 : i32
    %10 = arith.extui %9 : i1 to i32
    %c0_i32_9 = arith.constant 0 : i32
    %11 = arith.cmpi ne, %10, %c0_i32_9 : i32
    scf.if %11 {
      %c0_10 = arith.constant 0 : index
      %c0_11 = arith.constant 0 : index
      %12 = vector.load %arg8[%c0_10, %c0_11] : memref<256x128xf32, #tpu.memory_space<vmem>>, vector<256x128xf32>
      %c0_12 = arith.constant 0 : index
      %c0_13 = arith.constant 0 : index
      %13 = vector.load %arg5[%c0_12, %c0_13] : memref<1x128xf32, #tpu.memory_space<vmem>>, vector<1x128xf32>
      %14 = vector.broadcast %13 : vector<1x128xf32> to vector<256x128xf32>
      %15 = arith.mulf %12, %14 : vector<256x128xf32>
      %c0_14 = arith.constant 0 : index
      %c0_15 = arith.constant 0 : index
      %16 = vector.load %arg6[%c0_14, %c0_15] : memref<1x128xf32, #tpu.memory_space<vmem>>, vector<1x128xf32>
      %17 = vector.broadcast %16 : vector<1x128xf32> to vector<256x128xf32>
      %18 = arith.addf %15, %17 : vector<256x128xf32>
      %cst_16 = arith.constant 0.000000e+00 : f32
      %19 = vector.broadcast %cst_16 : f32 to vector<256x128xf32>
      %20 = arith.maximumf %18, %19 : vector<256x128xf32>
      %21 = arith.truncf %20 : vector<256x128xf32> to vector<256x128xbf16>
      %c0_17 = arith.constant 0 : index
      %c0_18 = arith.constant 0 : index
      %22 = vector.load %arg7[%c0_17, %c0_18] : memref<256x128xbf16, #tpu.memory_space<vmem>>, vector<256x128xbf16>
      tpu.vector_store %arg7[%c0_17, %c0_18], %21 {strides = array<i32>} : memref<256x128xbf16, #tpu.memory_space<vmem>>, vector<256x128xbf16>,
    } else {
    }
    return
  }
  func.func @transform_0(%arg0: i32, %arg1: i32, %arg2: i32) -> (i32, i32) {
    %c0_i32 = arith.constant 0 : i32
    return %arg0, %arg2 : i32, i32
  }
  func.func @transform_1(%arg0: i32, %arg1: i32, %arg2: i32) -> (i32, i32) {
    %c0_i32 = arith.constant 0 : i32
    return %arg2, %arg1 : i32, i32
  }
  func.func @transform_2(%arg0: i32, %arg1: i32, %arg2: i32) -> (i32, i32) {
    %c0_i32 = arith.constant 0 : i32
    %c0_i32_0 = arith.constant 0 : i32
    return %c0_i32, %arg1 : i32, i32
  }
  func.func @transform_3(%arg0: i32, %arg1: i32, %arg2: i32) -> (i32, i32) {
    %c0_i32 = arith.constant 0 : i32
    %c0_i32_0 = arith.constant 0 : i32
    return %c0_i32, %arg1 : i32, i32
  }
  func.func @transform_4(%arg0: i32, %arg1: i32, %arg2: i32) -> (i32, i32) {
    %c0_i32 = arith.constant 0 : i32
    return %arg0, %arg1 : i32, i32
  }
}

module attributes {stable_mosaic.version = 11 : i64} {
  func.func @_mm_kernel(%arg0: i32, %arg1: i32, %arg2: i32, %arg3: memref<256x384xbf16, #tpu.memory_space<vmem>>, %arg4: memref<384x128xbf16, #tpu.memory_space<vmem>>, %arg5: memref<1x128xf32, #tpu.memory_space<vmem>>, %arg6: memref<1x128xf32, #tpu.memory_space<vmem>>, %arg7: memref<256x128xbf16, #tpu.memory_space<vmem>>, %arg8: memref<256x128xf32, #tpu.memory_space<vmem>>) attributes {dimension_semantics = [#tpu.dimension_semantics<parallel>, #tpu.dimension_semantics<parallel>, #tpu.dimension_semantics<arbitrary>], iteration_bounds = array<i64: 2, 1, 1>, scalar_prefetch = 0 : i64, scratch_operands = 1 : i64, tpu.core_type = #tpu.core_type<tc>, window_params = [{transform_indices = @transform_0, window_bounds = array<i64: 256, 384>}, {transform_indices = @transform_1, window_bounds = array<i64: 384, 128>}, {transform_indices = @transform_2, window_bounds = array<i64: 1, 128>}, {transform_indices = @transform_3, window_bounds = array<i64: 1, 128>}, {transform_indices = @transform_4, window_bounds = array<i64: 256, 128>}]} {
    %c0_i32 = arith.constant 0 : i32
    %0 = arith.cmpi eq, %arg2, %c0_i32 : i32
    %1 = arith.extui %0 : i1 to i32
    %c0_i32_0 = arith.constant 0 : i32
    %2 = arith.cmpi ne, %1, %c0_i32_0 : i32
    scf.if %2 {
      %cst_10 = arith.constant 0.000000e+00 : f32
      %12 = vector.broadcast %cst_10 : f32 to vector<256x128xf32>
      %c0_11 = arith.constant 0 : index
      %c0_12 = arith.constant 0 : index
      %13 = vector.load %arg8[%c0_11, %c0_12] : memref<256x128xf32, #tpu.memory_space<vmem>>, vector<256x128xf32>
      tpu.vector_store %arg8[%c0_11, %c0_12], %12 {strides = array<i32>} : memref<256x128xf32, #tpu.memory_space<vmem>>, vector<256x128xf32>,
    } else {
    }
    %c0 = arith.constant 0 : index
    %c0_1 = arith.constant 0 : index
    %3 = vector.load %arg8[%c0, %c0_1] : memref<256x128xf32, #tpu.memory_space<vmem>>, vector<256x128xf32>
    %c0_2 = arith.constant 0 : index
    %c0_3 = arith.constant 0 : index
    %4 = vector.load %arg3[%c0_2, %c0_3] : memref<256x384xbf16, #tpu.memory_space<vmem>>, vector<256x384xbf16>
    %c0_4 = arith.constant 0 : index
    %c0_5 = arith.constant 0 : index
    %5 = vector.load %arg4[%c0_4, %c0_5] : memref<384x128xbf16, #tpu.memory_space<vmem>>, vector<384x128xbf16>
    %cst = arith.constant dense<0.000000e+00> : vector<256x128xf32>
    %6 = tpu.matmul %4, %5, %cst {dimension_numbers = #tpu.dot_dimension_numbers<[1], [0], [0], [1], [0, 0, 1, 1], [], []>} : vector<256x384xbf16>, vector<384x128xbf16>, vector<256x128xf32> -> vector<256x128xf32>
    %7 = arith.addf %3, %6 : vector<256x128xf32>
    %c0_6 = arith.constant 0 : index
    %c0_7 = arith.constant 0 : index
    %8 = vector.load %arg8[%c0_6, %c0_7] : memref<256x128xf32, #tpu.memory_space<vmem>>, vector<256x128xf32>
    tpu.vector_store %arg8[%c0_6, %c0_7], %7 {strides = array<i32>} : memref<256x128xf32, #tpu.memory_space<vmem>>, vector<256x128xf32>,
    %c0_i32_8 = arith.constant 0 : i32
    %9 = arith.cmpi eq, %arg2, %c0_i32_8 : i32
    %10 = arith.extui %9 : i1 to i32
    %c0_i32_9 = arith.constant 0 : i32
    %11 = arith.cmpi ne, %10, %c0_i32_9 : i32
    scf.if %11 {
      %c0_10 = arith.constant 0 : index
      %c0_11 = arith.constant 0 : index
      %12 = vector.load %arg8[%c0_10, %c0_11] : memref<256x128xf32, #tpu.memory_space<vmem>>, vector<256x128xf32>
      %c0_12 = arith.constant 0 : index
      %c0_13 = arith.constant 0 : index
      %13 = vector.load %arg5[%c0_12, %c0_13] : memref<1x128xf32, #tpu.memory_space<vmem>>, vector<1x128xf32>
      %14 = vector.broadcast %13 : vector<1x128xf32> to vector<256x128xf32>
      %15 = arith.mulf %12, %14 : vector<256x128xf32>
      %c0_14 = arith.constant 0 : index
      %c0_15 = arith.constant 0 : index
      %16 = vector.load %arg6[%c0_14, %c0_15] : memref<1x128xf32, #tpu.memory_space<vmem>>, vector<1x128xf32>
      %17 = vector.broadcast %16 : vector<1x128xf32> to vector<256x128xf32>
      %18 = arith.addf %15, %17 : vector<256x128xf32>
      %cst_16 = arith.constant 0.000000e+00 : f32
      %19 = vector.broadcast %cst_16 : f32 to vector<256x128xf32>
      %20 = arith.maximumf %18, %19 : vector<256x128xf32>
      %21 = arith.truncf %20 : vector<256x128xf32> to vector<256x128xbf16>
      %c0_17 = arith.constant 0 : index
      %c0_18 = arith.constant 0 : index
      %22 = vector.load %arg7[%c0_17, %c0_18] : memref<256x128xbf16, #tpu.memory_space<vmem>>, vector<256x128xbf16>
      tpu.vector_store %arg7[%c0_17, %c0_18], %21 {strides = array<i32>} : memref<256x128xbf16, #tpu.memory_space<vmem>>, vector<256x128xbf16>,
    } else {
    }
    return
  }
  func.func @transform_0(%arg0: i32, %arg1: i32, %arg2: i32) -> (i32, i32) {
    %c0_i32 = arith.constant 0 : i32
    return %arg0, %arg2 : i32, i32
  }
  func.func @transform_1(%arg0: i32, %arg1: i32, %arg2: i32) -> (i32, i32) {
    %c0_i32 = arith.constant 0 : i32
    return %arg2, %arg1 : i32, i32
  }
  func.func @transform_2(%arg0: i32, %arg1: i32, %arg2: i32) -> (i32, i32) {
    %c0_i32 = arith.constant 0 : i32
    %c0_i32_0 = arith.constant 0 : i32
    return %c0_i32, %arg1 : i32, i32
  }
  func.func @transform_3(%arg0: i32, %arg1: i32, %arg2: i32) -> (i32, i32) {
    %c0_i32 = arith.constant 0 : i32
    %c0_i32_0 = arith.constant 0 : i32
    return %c0_i32, %arg1 : i32, i32
  }
  func.func @transform_4(%arg0: i32, %arg1: i32, %arg2: i32) -> (i32, i32) {
    %c0_i32 = arith.constant 0 : i32
    return %arg0, %arg1 : i32, i32
  }
}

module attributes {stable_mosaic.version = 11 : i64} {
  func.func @_mm_kernel(%arg0: i32, %arg1: i32, %arg2: i32, %arg3: memref<256x128xbf16, #tpu.memory_space<vmem>>, %arg4: memref<128x128xbf16, #tpu.memory_space<vmem>>, %arg5: memref<1x128xf32, #tpu.memory_space<vmem>>, %arg6: memref<1x128xf32, #tpu.memory_space<vmem>>, %arg7: memref<256x128xbf16, #tpu.memory_space<vmem>>, %arg8: memref<256x128xf32, #tpu.memory_space<vmem>>) attributes {dimension_semantics = [#tpu.dimension_semantics<parallel>, #tpu.dimension_semantics<parallel>, #tpu.dimension_semantics<arbitrary>], iteration_bounds = array<i64: 2, 1, 1>, scalar_prefetch = 0 : i64, scratch_operands = 1 : i64, tpu.core_type = #tpu.core_type<tc>, window_params = [{transform_indices = @transform_0, window_bounds = array<i64: 256, 128>}, {transform_indices = @transform_1, window_bounds = array<i64: 128, 128>}, {transform_indices = @transform_2, window_bounds = array<i64: 1, 128>}, {transform_indices = @transform_3, window_bounds = array<i64: 1, 128>}, {transform_indices = @transform_4, window_bounds = array<i64: 256, 128>}]} {
    %c0_i32 = arith.constant 0 : i32
    %0 = arith.cmpi eq, %arg2, %c0_i32 : i32
    %1 = arith.extui %0 : i1 to i32
    %c0_i32_0 = arith.constant 0 : i32
    %2 = arith.cmpi ne, %1, %c0_i32_0 : i32
    scf.if %2 {
      %cst_10 = arith.constant 0.000000e+00 : f32
      %12 = vector.broadcast %cst_10 : f32 to vector<256x128xf32>
      %c0_11 = arith.constant 0 : index
      %c0_12 = arith.constant 0 : index
      %13 = vector.load %arg8[%c0_11, %c0_12] : memref<256x128xf32, #tpu.memory_space<vmem>>, vector<256x128xf32>
      tpu.vector_store %arg8[%c0_11, %c0_12], %12 {strides = array<i32>} : memref<256x128xf32, #tpu.memory_space<vmem>>, vector<256x128xf32>,
    } else {
    }
    %c0 = arith.constant 0 : index
    %c0_1 = arith.constant 0 : index
    %3 = vector.load %arg8[%c0, %c0_1] : memref<256x128xf32, #tpu.memory_space<vmem>>, vector<256x128xf32>
    %c0_2 = arith.constant 0 : index
    %c0_3 = arith.constant 0 : index
    %4 = vector.load %arg3[%c0_2, %c0_3] : memref<256x128xbf16, #tpu.memory_space<vmem>>, vector<256x128xbf16>
    %c0_4 = arith.constant 0 : index
    %c0_5 = arith.constant 0 : index
    %5 = vector.load %arg4[%c0_4, %c0_5] : memref<128x128xbf16, #tpu.memory_space<vmem>>, vector<128x128xbf16>
    %cst = arith.constant dense<0.000000e+00> : vector<256x128xf32>
    %6 = tpu.matmul %4, %5, %cst {dimension_numbers = #tpu.dot_dimension_numbers<[1], [0], [0], [1], [0, 0, 1, 1], [], []>} : vector<256x128xbf16>, vector<128x128xbf16>, vector<256x128xf32> -> vector<256x128xf32>
    %7 = arith.addf %3, %6 : vector<256x128xf32>
    %c0_6 = arith.constant 0 : index
    %c0_7 = arith.constant 0 : index
    %8 = vector.load %arg8[%c0_6, %c0_7] : memref<256x128xf32, #tpu.memory_space<vmem>>, vector<256x128xf32>
    tpu.vector_store %arg8[%c0_6, %c0_7], %7 {strides = array<i32>} : memref<256x128xf32, #tpu.memory_space<vmem>>, vector<256x128xf32>,
    %c0_i32_8 = arith.constant 0 : i32
    %9 = arith.cmpi eq, %arg2, %c0_i32_8 : i32
    %10 = arith.extui %9 : i1 to i32
    %c0_i32_9 = arith.constant 0 : i32
    %11 = arith.cmpi ne, %10, %c0_i32_9 : i32
    scf.if %11 {
      %c0_10 = arith.constant 0 : index
      %c0_11 = arith.constant 0 : index
      %12 = vector.load %arg8[%c0_10, %c0_11] : memref<256x128xf32, #tpu.memory_space<vmem>>, vector<256x128xf32>
      %c0_12 = arith.constant 0 : index
      %c0_13 = arith.constant 0 : index
      %13 = vector.load %arg5[%c0_12, %c0_13] : memref<1x128xf32, #tpu.memory_space<vmem>>, vector<1x128xf32>
      %14 = vector.broadcast %13 : vector<1x128xf32> to vector<256x128xf32>
      %15 = arith.mulf %12, %14 : vector<256x128xf32>
      %c0_14 = arith.constant 0 : index
      %c0_15 = arith.constant 0 : index
      %16 = vector.load %arg6[%c0_14, %c0_15] : memref<1x128xf32, #tpu.memory_space<vmem>>, vector<1x128xf32>
      %17 = vector.broadcast %16 : vector<1x128xf32> to vector<256x128xf32>
      %18 = arith.addf %15, %17 : vector<256x128xf32>
      %19 = arith.truncf %18 : vector<256x128xf32> to vector<256x128xbf16>
      %c0_16 = arith.constant 0 : index
      %c0_17 = arith.constant 0 : index
      %20 = vector.load %arg7[%c0_16, %c0_17] : memref<256x128xbf16, #tpu.memory_space<vmem>>, vector<256x128xbf16>
      tpu.vector_store %arg7[%c0_16, %c0_17], %19 {strides = array<i32>} : memref<256x128xbf16, #tpu.memory_space<vmem>>, vector<256x128xbf16>,
    } else {
    }
    return
  }
  func.func @transform_0(%arg0: i32, %arg1: i32, %arg2: i32) -> (i32, i32) {
    %c0_i32 = arith.constant 0 : i32
    return %arg0, %arg2 : i32, i32
  }
  func.func @transform_1(%arg0: i32, %arg1: i32, %arg2: i32) -> (i32, i32) {
    %c0_i32 = arith.constant 0 : i32
    return %arg2, %arg1 : i32, i32
  }
  func.func @transform_2(%arg0: i32, %arg1: i32, %arg2: i32) -> (i32, i32) {
    %c0_i32 = arith.constant 0 : i32
    %c0_i32_0 = arith.constant 0 : i32
    return %c0_i32, %arg1 : i32, i32
  }
  func.func @transform_3(%arg0: i32, %arg1: i32, %arg2: i32) -> (i32, i32) {
    %c0_i32 = arith.constant 0 : i32
    %c0_i32_0 = arith.constant 0 : i32
    return %c0_i32, %arg1 : i32, i32
  }
  func.func @transform_4(%arg0: i32, %arg1: i32, %arg2: i32) -> (i32, i32) {
    %c0_i32 = arith.constant 0 : i32
    return %arg0, %arg1 : i32, i32
  }
}

module attributes {stable_mosaic.version = 11 : i64} {
  func.func @_hinterp_kernel(%arg0: i32, %arg1: memref<64x16xbf16, #tpu.memory_space<vmem>>, %arg2: memref<1x16x128xbf16, #tpu.memory_space<vmem>>, %arg3: memref<1x64x128xbf16, #tpu.memory_space<vmem>>) attributes {dimension_semantics = [#tpu.dimension_semantics<parallel>], iteration_bounds = array<i64: 2>, scalar_prefetch = 0 : i64, scratch_operands = 0 : i64, tpu.core_type = #tpu.core_type<tc>, window_params = [{pipeline_mode = #tpu.pipeline_mode<synchronous>, transform_indices = @transform_0, window_bounds = array<i64: 64, 16>}, {transform_indices = @transform_1, window_bounds = array<i64: 1, 16, 128>}, {transform_indices = @transform_2, window_bounds = array<i64: 1, 64, 128>}]} {
    %c0 = arith.constant 0 : index
    %c0_0 = arith.constant 0 : index
    %0 = vector.load %arg1[%c0, %c0_0] : memref<64x16xbf16, #tpu.memory_space<vmem>>, vector<64x16xbf16>
    %c0_1 = arith.constant 0 : index
    %c0_2 = arith.constant 0 : index
    %c0_3 = arith.constant 0 : index
    %1 = vector.load %arg2[%c0_1, %c0_2, %c0_3] : memref<1x16x128xbf16, #tpu.memory_space<vmem>>, vector<1x16x128xbf16>
    %2 = vector.shape_cast %1 : vector<1x16x128xbf16> to vector<16x128xbf16>
    %cst = arith.constant dense<0.000000e+00> : vector<64x128xf32>
    %3 = tpu.matmul %0, %2, %cst {dimension_numbers = #tpu.dot_dimension_numbers<[1], [0], [0], [1], [0, 0, 1, 1], [], []>} : vector<64x16xbf16>, vector<16x128xbf16>, vector<64x128xf32> -> vector<64x128xf32>
    %4 = arith.truncf %3 : vector<64x128xf32> to vector<64x128xbf16>
    %c0_4 = arith.constant 0 : index
    %c0_5 = arith.constant 0 : index
    %c0_6 = arith.constant 0 : index
    %5 = vector.load %arg3[%c0_4, %c0_5, %c0_6] : memref<1x64x128xbf16, #tpu.memory_space<vmem>>, vector<1x64x128xbf16>
    %6 = vector.shape_cast %5 : vector<1x64x128xbf16> to vector<64x128xbf16>
    %7 = vector.shape_cast %4 : vector<64x128xbf16> to vector<1x64x128xbf16>
    tpu.vector_store %arg3[%c0_4, %c0_5, %c0_6], %7 {strides = array<i32>} : memref<1x64x128xbf16, #tpu.memory_space<vmem>>, vector<1x64x128xbf16>,
    return
  }
  func.func @transform_0(%arg0: i32) -> (i32, i32) {
    %c0_i32 = arith.constant 0 : i32
    %c0_i32_0 = arith.constant 0 : i32
    %c0_i32_1 = arith.constant 0 : i32
    return %c0_i32, %c0_i32_0 : i32, i32
  }
  func.func @transform_1(%arg0: i32) -> (i32, i32, i32) {
    %c0_i32 = arith.constant 0 : i32
    %c0_i32_0 = arith.constant 0 : i32
    %c0_i32_1 = arith.constant 0 : i32
    return %arg0, %c0_i32, %c0_i32_0 : i32, i32, i32
  }
  func.func @transform_2(%arg0: i32) -> (i32, i32, i32) {
    %c0_i32 = arith.constant 0 : i32
    %c0_i32_0 = arith.constant 0 : i32
    %c0_i32_1 = arith.constant 0 : i32
    return %arg0, %c0_i32, %c0_i32_0 : i32, i32, i32
  }
}

module attributes {stable_mosaic.version = 11 : i64} {
  func.func @_winterp_kernel(%arg0: memref<1024x16xbf16, #tpu.memory_space<vmem>>, %arg1: memref<16x64xbf16, #tpu.memory_space<vmem>>, %arg2: memref<1024x64xbf16, #tpu.memory_space<vmem>>) attributes {dimension_semantics = [], scalar_prefetch = 0 : i64, scratch_operands = 0 : i64, tpu.core_type = #tpu.core_type<tc>} {
    %c0 = arith.constant 0 : index
    %c0_0 = arith.constant 0 : index
    %0 = vector.load %arg0[%c0, %c0_0] : memref<1024x16xbf16, #tpu.memory_space<vmem>>, vector<1024x16xbf16>
    %c0_1 = arith.constant 0 : index
    %c0_2 = arith.constant 0 : index
    %1 = vector.load %arg1[%c0_1, %c0_2] : memref<16x64xbf16, #tpu.memory_space<vmem>>, vector<16x64xbf16>
    %cst = arith.constant dense<0.000000e+00> : vector<1024x64xf32>
    %2 = tpu.matmul %0, %1, %cst {dimension_numbers = #tpu.dot_dimension_numbers<[1], [0], [0], [1], [0, 0, 1, 1], [], []>} : vector<1024x16xbf16>, vector<16x64xbf16>, vector<1024x64xf32> -> vector<1024x64xf32>
    %3 = arith.truncf %2 : vector<1024x64xf32> to vector<1024x64xbf16>
    %c0_3 = arith.constant 0 : index
    %c0_4 = arith.constant 0 : index
    %4 = vector.load %arg2[%c0_3, %c0_4] : memref<1024x64xbf16, #tpu.memory_space<vmem>>, vector<1024x64xbf16>
    tpu.vector_store %arg2[%c0_3, %c0_4], %3 {strides = array<i32>} : memref<1024x64xbf16, #tpu.memory_space<vmem>>, vector<1024x64xbf16>,
    return
  }
}

</mosaic_0001>

<bundles_post_ra>
// kernel: _lambda_.29
= control target key start
LH: loop header
LB: loop body
LE: loop exit
PB: predicated region body
PF: predicated region fallthrough
CT: control target
= control target key end

     0   :  { %s1598_s15 = smov 0   ;;  %s1600_s16 = smov 0   ;;  %s1772_s0 = inlined_call_operand.vmem [shape: bf16[2048,128], index: 0, kind: input, shape index: {}]   ;;  %s1773_s1 = inlined_call_operand.vmem [shape: bf16[128,128], index: 1, kind: input, shape index: {}]   ;;  %s1774_s2 = inlined_call_operand.vmem [shape: f32[1,128], index: 2, kind: input, shape index: {}]   ;;  %s1775_s3 = inlined_call_operand.vmem [shape: f32[1,128], index: 3, kind: input, shape index: {}]   ;;  %s1776_s4 = inlined_call_operand.vmem [shape: bf16[2048,128], index: 4, kind: output, shape index: {}]  }
   0x1   :  { %s1602_s17 = smov 0  }
   0x2 LB: > { %s33_s18 = sadd.s32 1, %s1567_s16  ;;  %p1221_p0 = scmp.ge.s32.totalorder %s1571_s17, 1  ;;  %s1571_s17 = sphi %s1602_s17, %s14_s17   ;;  %s1567_s16 = sphi %s1600_s16, %s1778_s16   ;;  %s1563_s15 = sphi %s1598_s15, %s1777_s15  }
   0x3   : > { %p35_p1 = scmp.ge.s32.totalorder %s33_s18, 8  ;;  %p221_p2 = scmp.lt.s32.totalorder %s1571_s17, 9 }
   0x5   : > { %s1780_s18 = smov (%p35_p1, %s33_s18), 0  ;;  %p222_p3 = pnand %p1221_p0, %p221_p2 }
   0x6   : > { %v1525_v0 = vld [vmem:[%s1773_s1] sm:$0xff] (!%p222_p3)   ;;  %s1222_s21 = sshll.u32 (!%p222_p3), %s1563_s15, 5  ;;  %v1526_v1 = vld [vmem:[%s1773_s1 + $0x8] sm:$0xff] (!%p222_p3)   ;;  %v1527_v2 = vld [vmem:[%s1773_s1 + $0x10] sm:$0xff] (!%p222_p3)  }
   0x7   : > { %225 = sbr.rel (%p222_p3) target bundleno = 288 (0x120), region = 36  ;;  %p268_p4 = scmp.lt.s32.totalorder (!%p222_p3), %s1222_s21, 255  ;;  %1437 = vmatprep.subr.bf16.mxu0 (!%p222_p3), %v1525_v0  ;;  %1485 = vmatprep.subr.bf16.mxu1 (!%p222_p3), %v1525_v0  ;;  %v1528_v3 = vld [vmem:[%s1773_s1 + $0x18] sm:$0xff] (!%p222_p3)   ;;  %v1529_v6 = vld [vmem:[%s1773_s1 + $0x20] sm:$0xff] (!%p222_p3)   ;;  %v1530_v7 = vld [vmem:[%s1773_s1 + $0x28] sm:$0xff] (!%p222_p3)  }
   0x8   : > { %1438 = vmatpush3.bf16.msra.mxu0 (!%p222_p3), %v1525_v0  ;;  %1493 = vmatpush3.bf16.msra.mxu1 (!%p222_p3), %v1525_v0  ;;  %v1531_v8 = vld [vmem:[%s1773_s1 + $0x30] sm:$0xff] (!%p222_p3)   ;;  %v1532_v9 = vld [vmem:[%s1773_s1 + $0x38] sm:$0xff] (!%p222_p3)   ;;  %v1669_v24 = vld [vmem:[%s1774_s2] ss:$0 sm:$0xff] (!%p222_p3) }
   0x9   : > { %1439 = vmatprep.subr.bf16.mxu0 (!%p222_p3), %v1526_v1  ;;  %1486 = vmatprep.subr.bf16.mxu1 (!%p222_p3), %v1526_v1  ;;  %v1674_v26 = vld [vmem:[%s1775_s3] ss:$0 sm:$0xff] (!%p222_p3) }
   0xc   : > { %1440 = vmatpush3.bf16.msra.mxu0 (!%p222_p3), %v1526_v1  ;;  %1494 = vmatpush3.bf16.msra.mxu1 (!%p222_p3), %v1526_v1 }
   0xd   : > { %1441 = vmatprep.subr.bf16.mxu0 (!%p222_p3), %v1527_v2  ;;  %1487 = vmatprep.subr.bf16.mxu1 (!%p222_p3), %v1527_v2 }
   0xe   : > { %s1782_s21 = smov (!%p268_p4, %s1222_s21), 255 }
   0xf   : > { %s1223_s26 = sshll.u32 %s1782_s21, 2 }
  0x10   : > { %s1633_s29 = scalar_lea.vmem %s1772_s0, %s1223_s26  ;;  %1442 = vmatpush3.bf16.msra.mxu0 %v1527_v2  ;;  %1495 = vmatpush3.bf16.msra.mxu1 %v1527_v2  ;;  %s1697_s24 = scalar_lea.vmem %s1776_s4, %s1223_s26 }
  0x11   : > { %v1533_v4 = vld [vmem:[%s1633_s29] sm:$0xff]   ;;  %1443 = vmatprep.subr.bf16.mxu0 %v1528_v3  ;;  %1488 = vmatprep.subr.bf16.mxu1 %v1528_v3  ;;  %v1535_v10 = vld [vmem:[%s1633_s29 + $0x8] sm:$0xff]   ;;  %v1537_v12 = vld [vmem:[%s1633_s29 + $0x10] sm:$0xff]  }
  0x12   : > { %v1534_v5 = vld [vmem:[%s1633_s29 + $0x40] sm:$0xff]   ;;  %1453 = vmatprep.mubr.bf16.mxu0 %v1533_v4  ;;  %v1536_v11 = vld [vmem:[%s1633_s29 + $0x48] sm:$0xff]   ;;  %v1538_v13 = vld [vmem:[%s1633_s29 + $0x50] sm:$0xff]  }
  0x13   : > { %1469 = vmatprep.mubr.bf16.mxu1 %v1534_v5  ;;  %v1539_v14 = vld [vmem:[%s1633_s29 + $0x18] sm:$0xff]   ;;  %v1541_v16 = vld [vmem:[%s1633_s29 + $0x20] sm:$0xff]   ;;  %v1543_v18 = vld [vmem:[%s1633_s29 + $0x28] sm:$0xff]  }
  0x14   : > { %1444 = vmatpush3.bf16.msra.mxu0 %v1528_v3  ;;  %1496 = vmatpush3.bf16.msra.mxu1 %v1528_v3  ;;  %v1540_v15 = vld [vmem:[%s1633_s29 + $0x58] sm:$0xff]   ;;  %v1542_v17 = vld [vmem:[%s1633_s29 + $0x60] sm:$0xff]   ;;  %v1544_v19 = vld [vmem:[%s1633_s29 + $0x68] sm:$0xff]  }
  0x15   : > { %1445 = vmatprep.subr.bf16.mxu0 %v1529_v6  ;;  %1489 = vmatprep.subr.bf16.mxu1 %v1529_v6  ;;  %v1545_v20 = vld [vmem:[%s1633_s29 + $0x30] sm:$0xff]   ;;  %v1547_v22 = vld [vmem:[%s1633_s29 + $0x38] sm:$0xff]  }
  0x16   : > { %v1546_v21 = vld [vmem:[%s1633_s29 + $0x70] sm:$0xff]   ;;  %v1548_v23 = vld [vmem:[%s1633_s29 + $0x78] sm:$0xff]  }
  0x18   : > { %1446 = vmatpush3.bf16.msra.mxu0 %v1529_v6  ;;  %1497 = vmatpush3.bf16.msra.mxu1 %v1529_v6 }
  0x19   : > { %1447 = vmatprep.subr.bf16.mxu0 %v1530_v7  ;;  %1490 = vmatprep.subr.bf16.mxu1 %v1530_v7 }
  0x1c   : > { %1448 = vmatpush3.bf16.msra.mxu0 %v1530_v7  ;;  %1498 = vmatpush3.bf16.msra.mxu1 %v1530_v7 }
  0x1d   : > { %1449 = vmatprep.subr.bf16.mxu0 %v1531_v8  ;;  %1491 = vmatprep.subr.bf16.mxu1 %v1531_v8 }
  0x20   : > { %1450 = vmatpush3.bf16.msra.mxu0 %v1531_v8  ;;  %1499 = vmatpush3.bf16.msra.mxu1 %v1531_v8 }
  0x21   : > { %1451 = vmatprep.subr.bf16.mxu0 %v1532_v9  ;;  %1492 = vmatprep.subr.bf16.mxu1 %v1532_v9 }
  0x24   : > { %1452 = vmatpush3.bf16.msra.mxu0 %v1532_v9  ;;  %1500 = vmatpush3.bf16.msra.mxu1 %v1532_v9 }
  0x27   : > { %1454 = vmatmul.mubr.bf16.vlgmr.msra.gmra.mrb[0].mxu0 %v1535_v10  ;;  %1470 = vmatmul.mubr.bf16.vlgmr.msra.gmra.mrb[0].mxu1 %v1536_v11 }
  0x28   : > { %1457 = vmatprep.mubr.bf16.mxu0 %v1537_v12  ;;  %1473 = vmatprep.mubr.bf16.mxu1 %v1538_v13 }
  0x2f   : > { %1458 = vmatmul.mubr.bf16.gmra.mrb[4].mxu0 %v1539_v14  ;;  %1474 = vmatmul.mubr.bf16.gmra.mrb[4].mxu1 %v1540_v15 }
  0x30   : > { %1461 = vmatprep.mubr.bf16.mxu0 %v1541_v16  ;;  %1477 = vmatprep.mubr.bf16.mxu1 %v1542_v17 }
  0x37   : > { %1462 = vmatmul.mubr.bf16.gmra.mrb[8].mxu0 %v1543_v18  ;;  %1478 = vmatmul.mubr.bf16.gmra.mrb[8].mxu1 %v1544_v19 }
  0x38   : > { %1465 = vmatprep.mubr.bf16.mxu0 %v1545_v20  ;;  %1481 = vmatprep.mubr.bf16.mxu1 %v1546_v21 }
  0x3f   : > { %1466 = vmatmul.mubr.bf16.gmra.mrb[12].mxu0 %v1547_v22  ;;  %1482 = vmatmul.mubr.bf16.gmra.mrb[12].mxu1 %v1548_v23 }
  0xfa   : > { %v1455_v25 = vpop.f32.mrb[0].mxu0  ;;  %v1471_v27 = vpop.f32.mrb[0].mxu1 }
  0xfb   : > { %v830_v28 = vmul.f32 %v1455_v25, %v1669_v24  ;;  %v846_v29 = vmul.f32 %v1471_v27, %v1669_v24  ;;  %v595_v30 = vpop.f32.mrb[1].mxu0  ;;  %v659_v31 = vpop.f32.mrb[1].mxu1 }
  0xfc   : > { %v828_v32 = vmul.f32 %v1669_v24, %v595_v30  ;;  %v844_v33 = vmul.f32 %v1669_v24, %v659_v31  ;;  %v1456_v34 = vpop.f32.mrb[2].mxu0  ;;  %v1472_v35 = vpop.f32.mrb[2].mxu1 }
  0xfd   : > { %v869_v36 = vadd.f32 %v1674_v26, %v830_v28  ;;  %v885_v37 = vadd.f32 %v1674_v26, %v846_v29  ;;  %v831_v38 = vmul.f32 %v1456_v34, %v1669_v24  ;;  %v847_v39 = vmul.f32 %v1472_v35, %v1669_v24  ;;  %v598_v40 = vpop.f32.mrb[3].mxu0  ;;  %v662_v41 = vpop.f32.mrb[3].mxu1 }
  0xfe   : > { %v867_v42 = vadd.f32 %v1674_v26, %v828_v32  ;;  %v883_v43 = vadd.f32 %v1674_v26, %v844_v33  ;;  %v829_v44 = vmul.f32 %v1669_v24, %v598_v40  ;;  %v845_v45 = vmul.f32 %v1669_v24, %v662_v41 }
  0xff   : > { %v870_v46 = vadd.f32 %v1674_v26, %v831_v38  ;;  %v886_v47 = vadd.f32 %v1674_v26, %v847_v39  ;;  %v901_v50 = vmax.f32 %v869_v36, 0.0  ;;  %v917_v51 = vmax.f32 %v885_v37, 0.0 }
 0x100   : > { %v868_v48 = vadd.f32 %v1674_v26, %v829_v44  ;;  %v884_v49 = vadd.f32 %v1674_v26, %v845_v45  ;;  %v899_v54 = vmax.f32 %v867_v42, 0.0  ;;  %v915_v55 = vmax.f32 %v883_v43, 0.0 }
 0x101   : > { %v902_v52 = vmax.f32 %v870_v46, 0.0  ;;  %v918_v53 = vmax.f32 %v886_v47, 0.0 }
 0x102   : > { %v900_v56 = vmax.f32 %v868_v48, 0.0  ;;  %v916_v57 = vmax.f32 %v884_v49, 0.0  ;;  %v1459_v58 = vpop.f32.mrb[4].mxu0  ;;  %v1475_v59 = vpop.f32.mrb[4].mxu1 }
 0x103   : > { %v1326_v60 = vpack.c.bf16 %v902_v52, %v901_v50  ;;  %v1366_v61 = vpack.c.bf16 %v918_v53, %v917_v51  ;;  %v834_v62 = vmul.f32 %v1459_v58, %v1669_v24  ;;  %v850_v63 = vmul.f32 %v1475_v59, %v1669_v24  ;;  %v611_v0 = vpop.f32.mrb[5].mxu0  ;;  %v675_v1 = vpop.f32.mrb[5].mxu1 }
 0x104   : > { %v1321_v2 = vpack.c.bf16 %v900_v56, %v899_v54  ;;  %v1361_v3 = vpack.c.bf16 %v916_v57, %v915_v55  ;;  %v832_v4 = vmul.f32 %v1669_v24, %v611_v0  ;;  %v848_v5 = vmul.f32 %v1669_v24, %v675_v1  ;;  %v1460_v6 = vpop.f32.mrb[6].mxu0  ;;  %v1476_v7 = vpop.f32.mrb[6].mxu1 }
 0x105   : > { %1398 = vst [vmem:[%s1697_s24 + $0x8] sm:$0xff] %v1326_v60   ;;  %1406 = vst [vmem:[%s1697_s24 + $0x48] sm:$0xff] %v1366_v61   ;;  %v873_v8 = vadd.f32 %v1674_v26, %v834_v62  ;;  %v889_v9 = vadd.f32 %v1674_v26, %v850_v63  ;;  %v835_v10 = vmul.f32 %v1460_v6, %v1669_v24  ;;  %v614_v12 = vpop.f32.mrb[7].mxu0  ;;  %v678_v13 = vpop.f32.mrb[7].mxu1 }
 0x106   : > { %v851_v11 = vmul.f32 %v1476_v7, %v1669_v24  ;;  %1322 = vst [vmem:[%s1697_s24] sm:$0xff] %v1321_v2   ;;  %1405 = vst [vmem:[%s1697_s24 + $0x40] sm:$0xff] %v1361_v3   ;;  %v871_v14 = vadd.f32 %v1674_v26, %v832_v4  ;;  %v887_v15 = vadd.f32 %v1674_v26, %v848_v5 }
 0x107   : > { %v833_v16 = vmul.f32 %v1669_v24, %v614_v12  ;;  %v849_v17 = vmul.f32 %v1669_v24, %v678_v13  ;;  %v874_v18 = vadd.f32 %v1674_v26, %v835_v10  ;;  %v905_v22 = vmax.f32 %v873_v8, 0.0 }
 0x108   : > { %v890_v19 = vadd.f32 %v1674_v26, %v851_v11  ;;  %v921_v23 = vmax.f32 %v889_v9, 0.0  ;;  %v903_v28 = vmax.f32 %v871_v14, 0.0  ;;  %v919_v29 = vmax.f32 %v887_v15, 0.0 }
 0x109   : > { %v872_v20 = vadd.f32 %v1674_v26, %v833_v16  ;;  %v888_v21 = vadd.f32 %v1674_v26, %v849_v17  ;;  %v906_v25 = vmax.f32 %v874_v18, 0.0 }
 0x10a   : > { %v922_v27 = vmax.f32 %v890_v19, 0.0  ;;  %v1463_v32 = vpop.f32.mrb[8].mxu0  ;;  %v1479_v33 = vpop.f32.mrb[8].mxu1 }
 0x10b   : > { %v904_v30 = vmax.f32 %v872_v20, 0.0  ;;  %v920_v31 = vmax.f32 %v888_v21, 0.0  ;;  %v1336_v34 = vpack.c.bf16 %v906_v25, %v905_v22  ;;  %v838_v36 = vmul.f32 %v1463_v32, %v1669_v24  ;;  %v627_v38 = vpop.f32.mrb[9].mxu0  ;;  %v691_v39 = vpop.f32.mrb[9].mxu1 }
 0x10c   : > { %v1376_v35 = vpack.c.bf16 %v922_v27, %v921_v23  ;;  %v854_v37 = vmul.f32 %v1479_v33, %v1669_v24  ;;  %v836_v42 = vmul.f32 %v1669_v24, %v627_v38  ;;  %v852_v43 = vmul.f32 %v1669_v24, %v691_v39  ;;  %v1464_v44 = vpop.f32.mrb[10].mxu0  ;;  %v1480_v45 = vpop.f32.mrb[10].mxu1 }
 0x10d   : > { %v1331_v40 = vpack.c.bf16 %v904_v30, %v903_v28  ;;  %v1371_v41 = vpack.c.bf16 %v920_v31, %v919_v29  ;;  %1400 = vst [vmem:[%s1697_s24 + $0x18] sm:$0xff] %v1336_v34   ;;  %v877_v46 = vadd.f32 %v1674_v26, %v838_v36  ;;  %v839_v48 = vmul.f32 %v1464_v44, %v1669_v24  ;;  %v630_v50 = vpop.f32.mrb[11].mxu0  ;;  %v694_v51 = vpop.f32.mrb[11].mxu1 }
 0x10e   : > { %1408 = vst [vmem:[%s1697_s24 + $0x58] sm:$0xff] %v1376_v35   ;;  %v893_v47 = vadd.f32 %v1674_v26, %v854_v37  ;;  %v855_v49 = vmul.f32 %v1480_v45, %v1669_v24  ;;  %v875_v52 = vadd.f32 %v1674_v26, %v836_v42  ;;  %v891_v53 = vadd.f32 %v1674_v26, %v852_v43 }
 0x10f   : > { %1399 = vst [vmem:[%s1697_s24 + $0x10] sm:$0xff] %v1331_v40   ;;  %1407 = vst [vmem:[%s1697_s24 + $0x50] sm:$0xff] %v1371_v41   ;;  %v837_v54 = vmul.f32 %v1669_v24, %v630_v50  ;;  %v853_v55 = vmul.f32 %v1669_v24, %v694_v51  ;;  %v878_v56 = vadd.f32 %v1674_v26, %v839_v48  ;;  %v909_v60 = vmax.f32 %v877_v46, 0.0 }
 0x110   : > { %v894_v57 = vadd.f32 %v1674_v26, %v855_v49  ;;  %v925_v61 = vmax.f32 %v893_v47, 0.0  ;;  %v907_v0 = vmax.f32 %v875_v52, 0.0  ;;  %v923_v1 = vmax.f32 %v891_v53, 0.0 }
 0x111   : > { %v876_v58 = vadd.f32 %v1674_v26, %v837_v54  ;;  %v892_v59 = vadd.f32 %v1674_v26, %v853_v55  ;;  %v910_v62 = vmax.f32 %v878_v56, 0.0 }
 0x112   : > { %v926_v63 = vmax.f32 %v894_v57, 0.0  ;;  %v1467_v4 = vpop.f32.mrb[12].mxu0  ;;  %v1483_v5 = vpop.f32.mrb[12].mxu1 }
 0x113   : > { %v908_v2 = vmax.f32 %v876_v58, 0.0  ;;  %v924_v3 = vmax.f32 %v892_v59, 0.0  ;;  %v1346_v6 = vpack.c.bf16 %v910_v62, %v909_v60  ;;  %v842_v8 = vmul.f32 %v1467_v4, %v1669_v24  ;;  %v643_v10 = vpop.f32.mrb[13].mxu0  ;;  %v707_v11 = vpop.f32.mrb[13].mxu1 }
 0x114   : > { %v1386_v7 = vpack.c.bf16 %v926_v63, %v925_v61  ;;  %v858_v9 = vmul.f32 %v1483_v5, %v1669_v24  ;;  %v840_v14 = vmul.f32 %v1669_v24, %v643_v10  ;;  %v856_v15 = vmul.f32 %v1669_v24, %v707_v11  ;;  %v1468_v16 = vpop.f32.mrb[14].mxu0  ;;  %v1484_v17 = vpop.f32.mrb[14].mxu1 }
 0x115   : > { %v1341_v12 = vpack.c.bf16 %v908_v2, %v907_v0  ;;  %v1381_v13 = vpack.c.bf16 %v924_v3, %v923_v1  ;;  %1402 = vst [vmem:[%s1697_s24 + $0x28] sm:$0xff] %v1346_v6   ;;  %v881_v18 = vadd.f32 %v1674_v26, %v842_v8  ;;  %v843_v20 = vmul.f32 %v1468_v16, %v1669_v24  ;;  %v646_v22 = vpop.f32.mrb[15].mxu0  ;;  %v710_v23 = vpop.f32.mrb[15].mxu1 }
 0x116   : > { %1410 = vst [vmem:[%s1697_s24 + $0x68] sm:$0xff] %v1386_v7   ;;  %v897_v19 = vadd.f32 %v1674_v26, %v858_v9  ;;  %v859_v21 = vmul.f32 %v1484_v17, %v1669_v24  ;;  %v879_v25 = vadd.f32 %v1674_v26, %v840_v14  ;;  %v895_v27 = vadd.f32 %v1674_v26, %v856_v15 }
 0x117   : > { %1401 = vst [vmem:[%s1697_s24 + $0x20] sm:$0xff] %v1341_v12   ;;  %1409 = vst [vmem:[%s1697_s24 + $0x60] sm:$0xff] %v1381_v13   ;;  %v841_v28 = vmul.f32 %v1669_v24, %v646_v22  ;;  %v857_v29 = vmul.f32 %v1669_v24, %v710_v23  ;;  %v882_v30 = vadd.f32 %v1674_v26, %v843_v20  ;;  %v913_v34 = vmax.f32 %v881_v18, 0.0 }
 0x118   : > { %v898_v31 = vadd.f32 %v1674_v26, %v859_v21  ;;  %v929_v35 = vmax.f32 %v897_v19, 0.0  ;;  %v911_v38 = vmax.f32 %v879_v25, 0.0  ;;  %v927_v39 = vmax.f32 %v895_v27, 0.0 }
 0x119   : > { %v880_v32 = vadd.f32 %v1674_v26, %v841_v28  ;;  %v896_v33 = vadd.f32 %v1674_v26, %v857_v29  ;;  %v914_v36 = vmax.f32 %v882_v30, 0.0 }
 0x11a   : > { %v930_v37 = vmax.f32 %v898_v31, 0.0 }
 0x11b   : > { %v912_v40 = vmax.f32 %v880_v32, 0.0  ;;  %v928_v24 = vmax.f32 %v896_v33, 0.0  ;;  %v1356_v41 = vpack.c.bf16 %v914_v36, %v913_v34 }
 0x11c   : > { %v1396_v42 = vpack.c.bf16 %v930_v37, %v929_v35 }
 0x11d   : > { %v1351_v43 = vpack.c.bf16 %v912_v40, %v911_v38  ;;  %v1391_v44 = vpack.c.bf16 %v928_v24, %v927_v39  ;;  %1404 = vst [vmem:[%s1697_s24 + $0x38] sm:$0xff] %v1356_v41  }
 0x11e   : > { %1412 = vst [vmem:[%s1697_s24 + $0x78] sm:$0xff] %v1396_v42  }
 0x11f   : > { %1403 = vst [vmem:[%s1697_s24 + $0x30] sm:$0xff] %v1351_v43   ;;  %1411 = vst [vmem:[%s1697_s24 + $0x70] sm:$0xff] %v1391_v44  }
 0x120 PF: > { %s14_s17 = sadd.s32 1, %s1571_s17   ;;  %s1777_s15 = smov %s1567_s16 }
 0x121   : > { %p11_p5 = scmp.ge.s32.totalorder %s14_s17, 10   ;;  %s1778_s16 = smov %s1780_s18 }
 0x123   :  { %13 = sbr.rel (!%p11_p5) target bundleno = 2 (0x2), region = 83 }

// kernel: _lambda_.30
= control target key start
LH: loop header
LB: loop body
LE: loop exit
PB: predicated region body
PF: predicated region fallthrough
CT: control target
= control target key end

     0   :  { %s1843_s15 = smov 0   ;;  %s1845_s16 = smov 0   ;;  %s2054_s0 = inlined_call_operand.vmem [shape: bf16[512,256], index: 0, kind: input, shape index: {}]   ;;  %s2055_s1 = inlined_call_operand.vmem [shape: bf16[256,128], index: 1, kind: input, shape index: {}]   ;;  %s2056_s2 = inlined_call_operand.vmem [shape: f32[1,128], index: 2, kind: input, shape index: {}]   ;;  %s2057_s3 = inlined_call_operand.vmem [shape: f32[1,128], index: 3, kind: input, shape index: {}]   ;;  %s2058_s4 = inlined_call_operand.vmem [shape: bf16[512,128], index: 4, kind: output, shape index: {}]  }
   0x1   :  { %s1847_s17 = smov 0  }
   0x2 LB: > { %s33_s18 = sadd.s32 1, %s1812_s16  ;;  %p1360_p0 = scmp.ge.s32.totalorder %s1816_s17, 1  ;;  %s1816_s17 = sphi %s1847_s17, %s14_s17   ;;  %s1812_s16 = sphi %s1845_s16, %s2060_s16   ;;  %s1808_s15 = sphi %s1843_s15, %s2059_s15  }
   0x3   : > { %p35_p1 = scmp.ge.s32.totalorder %s33_s18, 2  ;;  %p224_p2 = scmp.lt.s32.totalorder %s1816_s17, 3 }
   0x5   : > { %s2062_s18 = smov (%p35_p1, %s33_s18), 0  ;;  %p225_p3 = pnand %p1360_p0, %p224_p2 }
   0x6   : > { %v1730_v0 = vld [vmem:[%s2055_s1 + $0x40] sm:$0xff] (!%p225_p3)   ;;  %s1361_s21 = sshll.u32 (!%p225_p3), %s1808_s15, 5  ;;  %v1732_v2 = vld [vmem:[%s2055_s1 + $0x48] sm:$0xff] (!%p225_p3)   ;;  %v1734_v4 = vld [vmem:[%s2055_s1 + $0x50] sm:$0xff] (!%p225_p3)  }
   0x7   : > { %228 = sbr.rel (%p225_p3) target bundleno = 322 (0x142), region = 36  ;;  %v1731_v1 = vld [vmem:[%s2055_s1] sm:$0xff] (!%p225_p3)   ;;  %1578 = vmatprep.subr.bf16.mxu0 (!%p225_p3), %v1730_v0  ;;  %1690 = vmatprep.subr.bf16.mxu1 (!%p225_p3), %v1730_v0  ;;  %v1733_v3 = vld [vmem:[%s2055_s1 + $0x8] sm:$0xff] (!%p225_p3)   ;;  %p274_p4 = scmp.lt.s32.totalorder (!%p225_p3), %s1361_s21, 63  ;;  %v1735_v5 = vld [vmem:[%s2055_s1 + $0x10] sm:$0xff] (!%p225_p3)  }
   0x8   : > { %1579 = vmatpush3.bf16.msra.mxu0 (!%p225_p3), %v1731_v1  ;;  %1698 = vmatpush3.bf16.msra.mxu1 (!%p225_p3), %v1731_v1  ;;  %v1736_v6 = vld [vmem:[%s2055_s1 + $0x58] sm:$0xff] (!%p225_p3)   ;;  %v1738_v8 = vld [vmem:[%s2055_s1 + $0x60] sm:$0xff] (!%p225_p3)   ;;  %v1740_v10 = vld [vmem:[%s2055_s1 + $0x68] sm:$0xff] (!%p225_p3)  }
   0x9   : > { %1580 = vmatprep.subr.bf16.mxu0 (!%p225_p3), %v1732_v2  ;;  %1691 = vmatprep.subr.bf16.mxu1 (!%p225_p3), %v1732_v2  ;;  %v1737_v7 = vld [vmem:[%s2055_s1 + $0x18] sm:$0xff] (!%p225_p3)   ;;  %v1739_v9 = vld [vmem:[%s2055_s1 + $0x20] sm:$0xff] (!%p225_p3)   ;;  %v1741_v13 = vld [vmem:[%s2055_s1 + $0x28] sm:$0xff] (!%p225_p3)  }
   0xa   : > { %v1742_v14 = vld [vmem:[%s2055_s1 + $0x70] sm:$0xff] (!%p225_p3)   ;;  %v1744_v16 = vld [vmem:[%s2055_s1 + $0x78] sm:$0xff] (!%p225_p3)   ;;  %v1952_v51 = vld [vmem:[%s2056_s2] ss:$0 sm:$0xff] (!%p225_p3) }
   0xb   : > { %v1743_v15 = vld [vmem:[%s2055_s1 + $0x30] sm:$0xff] (!%p225_p3)   ;;  %v1745_v17 = vld [vmem:[%s2055_s1 + $0x38] sm:$0xff] (!%p225_p3)   ;;  %v1957_v57 = vld [vmem:[%s2057_s3] ss:$0 sm:$0xff] (!%p225_p3) }
   0xc   : > { %1581 = vmatpush3.bf16.msra.mxu0 (!%p225_p3), %v1733_v3  ;;  %1699 = vmatpush3.bf16.msra.mxu1 (!%p225_p3), %v1733_v3 }
   0xd   : > { %1582 = vmatprep.subr.bf16.mxu0 (!%p225_p3), %v1734_v4  ;;  %1692 = vmatprep.subr.bf16.mxu1 (!%p225_p3), %v1734_v4 }
   0xe   : > { %s2064_s21 = smov (!%p274_p4, %s1361_s21), 63 }
   0xf   : > { %s1450_s10 = sshll.u32 %s2064_s21, 3  ;;  %s1365_s12 = sshll.u32 %s2064_s21, 2 }
  0x10   : > { %1583 = vmatpush3.bf16.msra.mxu0 %v1735_v5  ;;  %1700 = vmatpush3.bf16.msra.mxu1 %v1735_v5  ;;  %s1894_s15 = scalar_lea.vmem %s2054_s0, %s1450_s10  ;;  %s1971_s21 = scalar_lea.vmem %s2058_s4, %s1365_s12 }
  0x11   : > { %1584 = vmatprep.subr.bf16.mxu0 %v1736_v6  ;;  %1693 = vmatprep.subr.bf16.mxu1 %v1736_v6  ;;  %v1748_v11 = vld [vmem:[%s1894_s15 + $0x4] ss:$8 sps:$4 sm:$0xff]   ;;  %v1746_v18 = vld [vmem:[%s1894_s15] ss:$8 sps:$4 sm:$0xff]   ;;  %v1752_v20 = vld [vmem:[%s1894_s15 + $0x14] ss:$8 sps:$4 sm:$0xff]  }
  0x12   : > { %v1751_v12 = vld [vmem:[%s1894_s15 + $0x84] ss:$8 sps:$4 sm:$0xff]   ;;  %729 = vmatprep.mubr.bf16.mxu0 %v1748_v11  ;;  %v1749_v19 = vld [vmem:[%s1894_s15 + $0x80] ss:$8 sps:$4 sm:$0xff]   ;;  %v1754_v21 = vld [vmem:[%s1894_s15 + $0x94] ss:$8 sps:$4 sm:$0xff]  }
  0x13   : > { %793 = vmatprep.mubr.bf16.mxu1 %v1751_v12  ;;  %v1756_v22 = vld [vmem:[%s1894_s15 + $0x10] ss:$8 sps:$4 sm:$0xff]   ;;  %v1758_v24 = vld [vmem:[%s1894_s15 + $0x24] ss:$8 sps:$4 sm:$0xff]   ;;  %v1762_v26 = vld [vmem:[%s1894_s15 + $0x20] ss:$8 sps:$4 sm:$0xff]  }
  0x14   : > { %1585 = vmatpush3.bf16.msra.mxu0 %v1737_v7  ;;  %1701 = vmatpush3.bf16.msra.mxu1 %v1737_v7  ;;  %v1757_v23 = vld [vmem:[%s1894_s15 + $0x90] ss:$8 sps:$4 sm:$0xff]   ;;  %v1760_v25 = vld [vmem:[%s1894_s15 + $0xa4] ss:$8 sps:$4 sm:$0xff]   ;;  %v1763_v27 = vld [vmem:[%s1894_s15 + $0xa0] ss:$8 sps:$4 sm:$0xff]  }
  0x15   : > { %1586 = vmatprep.subr.bf16.mxu0 %v1738_v8  ;;  %1694 = vmatprep.subr.bf16.mxu1 %v1738_v8  ;;  %v1764_v28 = vld [vmem:[%s1894_s15 + $0x34] ss:$8 sps:$4 sm:$0xff]   ;;  %v1768_v30 = vld [vmem:[%s1894_s15 + $0x30] ss:$8 sps:$4 sm:$0xff]   ;;  %v1770_v32 = vld [vmem:[%s1894_s15 + $0x44] ss:$8 sps:$4 sm:$0xff]  }
  0x16   : > { %v1766_v29 = vld [vmem:[%s1894_s15 + $0xb4] ss:$8 sps:$4 sm:$0xff]   ;;  %v1769_v31 = vld [vmem:[%s1894_s15 + $0xb0] ss:$8 sps:$4 sm:$0xff]   ;;  %v1772_v33 = vld [vmem:[%s1894_s15 + $0xc4] ss:$8 sps:$4 sm:$0xff]  }
  0x17   : > { %v1774_v34 = vld [vmem:[%s1894_s15 + $0x40] ss:$8 sps:$4 sm:$0xff]   ;;  %v1776_v36 = vld [vmem:[%s1894_s15 + $0x54] ss:$8 sps:$4 sm:$0xff]   ;;  %v1780_v38 = vld [vmem:[%s1894_s15 + $0x50] ss:$8 sps:$4 sm:$0xff]  }
  0x18   : > { %1587 = vmatpush3.bf16.msra.mxu0 %v1739_v9  ;;  %1702 = vmatpush3.bf16.msra.mxu1 %v1739_v9  ;;  %v1775_v35 = vld [vmem:[%s1894_s15 + $0xc0] ss:$8 sps:$4 sm:$0xff]   ;;  %v1778_v37 = vld [vmem:[%s1894_s15 + $0xd4] ss:$8 sps:$4 sm:$0xff]   ;;  %v1781_v39 = vld [vmem:[%s1894_s15 + $0xd0] ss:$8 sps:$4 sm:$0xff]  }
  0x19   : > { %1588 = vmatprep.subr.bf16.mxu0 %v1740_v10  ;;  %1695 = vmatprep.subr.bf16.mxu1 %v1740_v10  ;;  %v1782_v40 = vld [vmem:[%s1894_s15 + $0x64] ss:$8 sps:$4 sm:$0xff]   ;;  %v1786_v42 = vld [vmem:[%s1894_s15 + $0x60] ss:$8 sps:$4 sm:$0xff]   ;;  %v1788_v44 = vld [vmem:[%s1894_s15 + $0x74] ss:$8 sps:$4 sm:$0xff]  }
  0x1a   : > { %v1784_v41 = vld [vmem:[%s1894_s15 + $0xe4] ss:$8 sps:$4 sm:$0xff]   ;;  %v1787_v43 = vld [vmem:[%s1894_s15 + $0xe0] ss:$8 sps:$4 sm:$0xff]   ;;  %v1790_v45 = vld [vmem:[%s1894_s15 + $0xf4] ss:$8 sps:$4 sm:$0xff]  }
  0x1b   : > { %v1792_v46 = vld [vmem:[%s1894_s15 + $0x70] ss:$8 sps:$4 sm:$0xff]  }
  0x1c   : > { %1589 = vmatpush3.bf16.msra.mxu0 %v1741_v13  ;;  %1703 = vmatpush3.bf16.msra.mxu1 %v1741_v13  ;;  %v1793_v47 = vld [vmem:[%s1894_s15 + $0xf0] ss:$8 sps:$4 sm:$0xff]  }
  0x1d   : > { %1590 = vmatprep.subr.bf16.mxu0 %v1742_v14  ;;  %1696 = vmatprep.subr.bf16.mxu1 %v1742_v14 }
  0x20   : > { %1591 = vmatpush3.bf16.msra.mxu0 %v1743_v15  ;;  %1704 = vmatpush3.bf16.msra.mxu1 %v1743_v15 }
  0x21   : > { %1592 = vmatprep.subr.bf16.mxu0 %v1744_v16  ;;  %1697 = vmatprep.subr.bf16.mxu1 %v1744_v16 }
  0x24   : > { %1593 = vmatpush3.bf16.msra.mxu0 %v1745_v17  ;;  %1705 = vmatpush3.bf16.msra.mxu1 %v1745_v17 }
  0x27   : > { %730 = vmatmul.mubr.bf16.vlgmr.msra.gmra.mrb[0].mxu0 %v1746_v18  ;;  %794 = vmatmul.mubr.bf16.vlgmr.msra.gmra.mrb[0].mxu1 %v1749_v19 }
  0x28   : > { %737 = vmatprep.mubr.bf16.mxu0 %v1752_v20  ;;  %801 = vmatprep.mubr.bf16.mxu1 %v1754_v21 }
  0x2f   : > { %738 = vmatmul.mubr.bf16.gmra.mrb[4].mxu0 %v1756_v22  ;;  %802 = vmatmul.mubr.bf16.gmra.mrb[4].mxu1 %v1757_v23 }
  0x30   : > { %745 = vmatprep.mubr.bf16.mxu0 %v1758_v24  ;;  %809 = vmatprep.mubr.bf16.mxu1 %v1760_v25 }
  0x37   : > { %746 = vmatmul.mubr.bf16.gmra.mrb[8].mxu0 %v1762_v26  ;;  %810 = vmatmul.mubr.bf16.gmra.mrb[8].mxu1 %v1763_v27 }
  0x38   : > { %753 = vmatprep.mubr.bf16.mxu0 %v1764_v28  ;;  %817 = vmatprep.mubr.bf16.mxu1 %v1766_v29 }
  0x3f   : > { %754 = vmatmul.mubr.bf16.gmra.mrb[12].mxu0 %v1768_v30  ;;  %818 = vmatmul.mubr.bf16.gmra.mrb[12].mxu1 %v1769_v31 }
  0x40   : > { %761 = vmatprep.mubr.bf16.mxu0 %v1770_v32  ;;  %825 = vmatprep.mubr.bf16.mxu1 %v1772_v33 }
  0x47   : > { %762 = vmatmul.mubr.bf16.gmra.mrb[16].mxu0 %v1774_v34  ;;  %826 = vmatmul.mubr.bf16.gmra.mrb[16].mxu1 %v1775_v35 }
  0x48   : > { %769 = vmatprep.mubr.bf16.mxu0 %v1776_v36  ;;  %833 = vmatprep.mubr.bf16.mxu1 %v1778_v37 }
  0x4f   : > { %770 = vmatmul.mubr.bf16.gmra.mrb[20].mxu0 %v1780_v38  ;;  %834 = vmatmul.mubr.bf16.gmra.mrb[20].mxu1 %v1781_v39 }
  0x50   : > { %777 = vmatprep.mubr.bf16.mxu0 %v1782_v40  ;;  %841 = vmatprep.mubr.bf16.mxu1 %v1784_v41 }
  0x57   : > { %778 = vmatmul.mubr.bf16.gmra.mrb[24].mxu0 %v1786_v42  ;;  %842 = vmatmul.mubr.bf16.gmra.mrb[24].mxu1 %v1787_v43 }
  0x58   : > { %785 = vmatprep.mubr.bf16.mxu0 %v1788_v44  ;;  %849 = vmatprep.mubr.bf16.mxu1 %v1790_v45 }
  0x5f   : > { %786 = vmatmul.mubr.bf16.gmra.mrb[28].mxu0 %v1792_v46  ;;  %850 = vmatmul.mubr.bf16.gmra.mrb[28].mxu1 %v1793_v47 }
  0xfa   : > { %v1594_v48 = vpop.f32.mrb[0].mxu0  ;;  %v1642_v49 = vpop.f32.mrb[0].mxu1 }
  0xfb   : > { %v1595_v50 = vpop.f32.mrb[1].mxu0  ;;  %v1643_v52 = vpop.f32.mrb[1].mxu1 }
  0xfc   : > { %v1596_v53 = vadd.f32 %v1595_v50, %v1594_v48  ;;  %v1644_v54 = vadd.f32 %v1643_v52, %v1642_v49  ;;  %v1597_v55 = vpop.f32.mrb[2].mxu0  ;;  %v1645_v56 = vpop.f32.mrb[2].mxu1 }
  0xfd   : > { %v1598_v58 = vpop.f32.mrb[3].mxu0  ;;  %v1646_v59 = vpop.f32.mrb[3].mxu1 }
  0xfe   : > { %v964_v60 = vmul.f32 %v1596_v53, %v1952_v51  ;;  %v980_v61 = vmul.f32 %v1644_v54, %v1952_v51  ;;  %v1599_v62 = vadd.f32 %v1598_v58, %v1597_v55  ;;  %v1647_v63 = vadd.f32 %v1646_v59, %v1645_v56 }
 0x100   : > { %v1003_v0 = vadd.f32 %v1957_v57, %v964_v60  ;;  %v1019_v1 = vadd.f32 %v1957_v57, %v980_v61  ;;  %v965_v2 = vmul.f32 %v1599_v62, %v1952_v51  ;;  %v981_v3 = vmul.f32 %v1647_v63, %v1952_v51 }
 0x102   : > { %v1004_v4 = vadd.f32 %v1957_v57, %v965_v2  ;;  %v1020_v5 = vadd.f32 %v1957_v57, %v981_v3  ;;  %v1600_v6 = vpop.f32.mrb[4].mxu0  ;;  %v1648_v7 = vpop.f32.mrb[4].mxu1  ;;  %v1035_v8 = vmax.f32 %v1003_v0, 0.0  ;;  %v1051_v9 = vmax.f32 %v1019_v1, 0.0 }
 0x103   : > { %v1601_v10 = vpop.f32.mrb[5].mxu0  ;;  %v1649_v11 = vpop.f32.mrb[5].mxu1 }
 0x104   : > { %v1036_v12 = vmax.f32 %v1004_v4, 0.0  ;;  %v1052_v13 = vmax.f32 %v1020_v5, 0.0  ;;  %v1602_v14 = vadd.f32 %v1601_v10, %v1600_v6  ;;  %v1650_v15 = vadd.f32 %v1649_v11, %v1648_v7  ;;  %v1603_v16 = vpop.f32.mrb[6].mxu0  ;;  %v1651_v17 = vpop.f32.mrb[6].mxu1 }
 0x105   : > { %v1604_v18 = vpop.f32.mrb[7].mxu0  ;;  %v1652_v19 = vpop.f32.mrb[7].mxu1 }
 0x106   : > { %v1486_v20 = vpack.c.bf16 %v1036_v12, %v1035_v8  ;;  %v1526_v21 = vpack.c.bf16 %v1052_v13, %v1051_v9  ;;  %v966_v22 = vmul.f32 %v1602_v14, %v1952_v51  ;;  %v982_v23 = vmul.f32 %v1650_v15, %v1952_v51 }
 0x107   : > { %v1605_v24 = vadd.f32 %v1604_v18, %v1603_v16  ;;  %v1653_v25 = vadd.f32 %v1652_v19, %v1651_v17 }
 0x108   : > { %1487 = vst [vmem:[%s1971_s21] sm:$0xff] %v1486_v20   ;;  %1570 = vst [vmem:[%s1971_s21 + $0x40] sm:$0xff] %v1526_v21   ;;  %v1005_v26 = vadd.f32 %v1957_v57, %v966_v22  ;;  %v1021_v27 = vadd.f32 %v1957_v57, %v982_v23 }
 0x109   : > { %v967_v28 = vmul.f32 %v1605_v24, %v1952_v51  ;;  %v983_v29 = vmul.f32 %v1653_v25, %v1952_v51 }
 0x10a   : > { %v1606_v30 = vpop.f32.mrb[8].mxu0  ;;  %v1654_v31 = vpop.f32.mrb[8].mxu1  ;;  %v1037_v40 = vmax.f32 %v1005_v26, 0.0  ;;  %v1053_v41 = vmax.f32 %v1021_v27, 0.0 }
 0x10b   : > { %v1006_v32 = vadd.f32 %v1957_v57, %v967_v28  ;;  %v1022_v33 = vadd.f32 %v1957_v57, %v983_v29  ;;  %v1607_v34 = vpop.f32.mrb[9].mxu0  ;;  %v1655_v35 = vpop.f32.mrb[9].mxu1 }
 0x10c   : > { %v1608_v36 = vadd.f32 %v1607_v34, %v1606_v30  ;;  %v1656_v37 = vadd.f32 %v1655_v35, %v1654_v31  ;;  %v1609_v38 = vpop.f32.mrb[10].mxu0  ;;  %v1657_v39 = vpop.f32.mrb[10].mxu1 }
 0x10d   : > { %v1038_v42 = vmax.f32 %v1006_v32, 0.0  ;;  %v1054_v43 = vmax.f32 %v1022_v33, 0.0  ;;  %v1610_v44 = vpop.f32.mrb[11].mxu0  ;;  %v1658_v45 = vpop.f32.mrb[11].mxu1 }
 0x10e   : > { %v968_v46 = vmul.f32 %v1608_v36, %v1952_v51  ;;  %v984_v47 = vmul.f32 %v1656_v37, %v1952_v51  ;;  %v1611_v48 = vadd.f32 %v1610_v44, %v1609_v38  ;;  %v1659_v49 = vadd.f32 %v1658_v45, %v1657_v39 }
 0x10f   : > { %v1491_v50 = vpack.c.bf16 %v1038_v42, %v1037_v40  ;;  %v1531_v52 = vpack.c.bf16 %v1054_v43, %v1053_v41 }
 0x110   : > { %v1007_v53 = vadd.f32 %v1957_v57, %v968_v46  ;;  %v1023_v54 = vadd.f32 %v1957_v57, %v984_v47  ;;  %v969_v55 = vmul.f32 %v1611_v48, %v1952_v51  ;;  %v985_v56 = vmul.f32 %v1659_v49, %v1952_v51 }
 0x111   : > { %1563 = vst [vmem:[%s1971_s21 + $0x8] sm:$0xff] %v1491_v50   ;;  %1571 = vst [vmem:[%s1971_s21 + $0x48] sm:$0xff] %v1531_v52  }
 0x112   : > { %v1008_v58 = vadd.f32 %v1957_v57, %v969_v55  ;;  %v1024_v59 = vadd.f32 %v1957_v57, %v985_v56  ;;  %v1612_v60 = vpop.f32.mrb[12].mxu0  ;;  %v1660_v61 = vpop.f32.mrb[12].mxu1  ;;  %v1039_v62 = vmax.f32 %v1007_v53, 0.0  ;;  %v1055_v63 = vmax.f32 %v1023_v54, 0.0 }
 0x113   : > { %v1613_v0 = vpop.f32.mrb[13].mxu0  ;;  %v1661_v1 = vpop.f32.mrb[13].mxu1 }
 0x114   : > { %v1040_v2 = vmax.f32 %v1008_v58, 0.0  ;;  %v1056_v3 = vmax.f32 %v1024_v59, 0.0  ;;  %v1614_v4 = vadd.f32 %v1613_v0, %v1612_v60  ;;  %v1662_v5 = vadd.f32 %v1661_v1, %v1660_v61  ;;  %v1615_v6 = vpop.f32.mrb[14].mxu0  ;;  %v1663_v7 = vpop.f32.mrb[14].mxu1 }
 0x115   : > { %v1616_v8 = vpop.f32.mrb[15].mxu0  ;;  %v1664_v9 = vpop.f32.mrb[15].mxu1 }
 0x116   : > { %v1496_v10 = vpack.c.bf16 %v1040_v2, %v1039_v62  ;;  %v1536_v11 = vpack.c.bf16 %v1056_v3, %v1055_v63  ;;  %v970_v12 = vmul.f32 %v1614_v4, %v1952_v51  ;;  %v986_v13 = vmul.f32 %v1662_v5, %v1952_v51 }
 0x117   : > { %v1617_v14 = vadd.f32 %v1616_v8, %v1615_v6  ;;  %v1665_v15 = vadd.f32 %v1664_v9, %v1663_v7 }
 0x118   : > { %1564 = vst [vmem:[%s1971_s21 + $0x10] sm:$0xff] %v1496_v10   ;;  %1572 = vst [vmem:[%s1971_s21 + $0x50] sm:$0xff] %v1536_v11   ;;  %v1009_v16 = vadd.f32 %v1957_v57, %v970_v12  ;;  %v1025_v17 = vadd.f32 %v1957_v57, %v986_v13 }
 0x119   : > { %v971_v18 = vmul.f32 %v1617_v14, %v1952_v51  ;;  %v987_v19 = vmul.f32 %v1665_v15, %v1952_v51 }
 0x11a   : > { %v1618_v20 = vpop.f32.mrb[16].mxu0  ;;  %v1666_v21 = vpop.f32.mrb[16].mxu1  ;;  %v1041_v30 = vmax.f32 %v1009_v16, 0.0  ;;  %v1057_v31 = vmax.f32 %v1025_v17, 0.0 }
 0x11b   : > { %v1010_v22 = vadd.f32 %v1957_v57, %v971_v18  ;;  %v1026_v23 = vadd.f32 %v1957_v57, %v987_v19  ;;  %v1619_v24 = vpop.f32.mrb[17].mxu0  ;;  %v1667_v25 = vpop.f32.mrb[17].mxu1 }
 0x11c   : > { %v1620_v26 = vadd.f32 %v1619_v24, %v1618_v20  ;;  %v1668_v27 = vadd.f32 %v1667_v25, %v1666_v21  ;;  %v1621_v28 = vpop.f32.mrb[18].mxu0  ;;  %v1669_v29 = vpop.f32.mrb[18].mxu1 }
 0x11d   : > { %v1042_v32 = vmax.f32 %v1010_v22, 0.0  ;;  %v1058_v33 = vmax.f32 %v1026_v23, 0.0  ;;  %v1622_v34 = vpop.f32.mrb[19].mxu0  ;;  %v1670_v35 = vpop.f32.mrb[19].mxu1 }
 0x11e   : > { %v972_v36 = vmul.f32 %v1620_v26, %v1952_v51  ;;  %v988_v37 = vmul.f32 %v1668_v27, %v1952_v51  ;;  %v1623_v38 = vadd.f32 %v1622_v34, %v1621_v28  ;;  %v1671_v39 = vadd.f32 %v1670_v35, %v1669_v29 }
 0x11f   : > { %v1501_v40 = vpack.c.bf16 %v1042_v32, %v1041_v30  ;;  %v1541_v41 = vpack.c.bf16 %v1058_v33, %v1057_v31 }
 0x120   : > { %v1011_v42 = vadd.f32 %v1957_v57, %v972_v36  ;;  %v1027_v43 = vadd.f32 %v1957_v57, %v988_v37  ;;  %v973_v44 = vmul.f32 %v1623_v38, %v1952_v51  ;;  %v989_v45 = vmul.f32 %v1671_v39, %v1952_v51 }
 0x121   : > { %1565 = vst [vmem:[%s1971_s21 + $0x18] sm:$0xff] %v1501_v40   ;;  %1573 = vst [vmem:[%s1971_s21 + $0x58] sm:$0xff] %v1541_v41  }
 0x122   : > { %v1012_v46 = vadd.f32 %v1957_v57, %v973_v44  ;;  %v1028_v47 = vadd.f32 %v1957_v57, %v989_v45  ;;  %v1624_v48 = vpop.f32.mrb[20].mxu0  ;;  %v1672_v49 = vpop.f32.mrb[20].mxu1  ;;  %v1043_v50 = vmax.f32 %v1011_v42, 0.0  ;;  %v1059_v52 = vmax.f32 %v1027_v43, 0.0 }
 0x123   : > { %v1625_v53 = vpop.f32.mrb[21].mxu0  ;;  %v1673_v54 = vpop.f32.mrb[21].mxu1 }
 0x124   : > { %v1044_v55 = vmax.f32 %v1012_v46, 0.0  ;;  %v1060_v56 = vmax.f32 %v1028_v47, 0.0  ;;  %v1626_v58 = vadd.f32 %v1625_v53, %v1624_v48  ;;  %v1674_v59 = vadd.f32 %v1673_v54, %v1672_v49  ;;  %v1627_v60 = vpop.f32.mrb[22].mxu0  ;;  %v1675_v61 = vpop.f32.mrb[22].mxu1 }
 0x125   : > { %v1628_v62 = vpop.f32.mrb[23].mxu0  ;;  %v1676_v63 = vpop.f32.mrb[23].mxu1 }
 0x126   : > { %v1506_v0 = vpack.c.bf16 %v1044_v55, %v1043_v50  ;;  %v1546_v1 = vpack.c.bf16 %v1060_v56, %v1059_v52  ;;  %v974_v2 = vmul.f32 %v1626_v58, %v1952_v51  ;;  %v990_v3 = vmul.f32 %v1674_v59, %v1952_v51 }
 0x127   : > { %v1629_v4 = vadd.f32 %v1628_v62, %v1627_v60  ;;  %v1677_v5 = vadd.f32 %v1676_v63, %v1675_v61 }
 0x128   : > { %1566 = vst [vmem:[%s1971_s21 + $0x20] sm:$0xff] %v1506_v0   ;;  %1574 = vst [vmem:[%s1971_s21 + $0x60] sm:$0xff] %v1546_v1   ;;  %v1013_v6 = vadd.f32 %v1957_v57, %v974_v2  ;;  %v1029_v7 = vadd.f32 %v1957_v57, %v990_v3 }
 0x129   : > { %v975_v8 = vmul.f32 %v1629_v4, %v1952_v51  ;;  %v991_v9 = vmul.f32 %v1677_v5, %v1952_v51 }
 0x12a   : > { %v1630_v10 = vpop.f32.mrb[24].mxu0  ;;  %v1678_v11 = vpop.f32.mrb[24].mxu1  ;;  %v1045_v20 = vmax.f32 %v1013_v6, 0.0  ;;  %v1061_v21 = vmax.f32 %v1029_v7, 0.0 }
 0x12b   : > { %v1014_v12 = vadd.f32 %v1957_v57, %v975_v8  ;;  %v1030_v13 = vadd.f32 %v1957_v57, %v991_v9  ;;  %v1631_v14 = vpop.f32.mrb[25].mxu0  ;;  %v1679_v15 = vpop.f32.mrb[25].mxu1 }
 0x12c   : > { %v1632_v16 = vadd.f32 %v1631_v14, %v1630_v10  ;;  %v1680_v17 = vadd.f32 %v1679_v15, %v1678_v11  ;;  %v1633_v18 = vpop.f32.mrb[26].mxu0  ;;  %v1681_v19 = vpop.f32.mrb[26].mxu1 }
 0x12d   : > { %v1046_v22 = vmax.f32 %v1014_v12, 0.0  ;;  %v1062_v23 = vmax.f32 %v1030_v13, 0.0  ;;  %v1634_v24 = vpop.f32.mrb[27].mxu0  ;;  %v1682_v25 = vpop.f32.mrb[27].mxu1 }
 0x12e   : > { %v976_v26 = vmul.f32 %v1632_v16, %v1952_v51  ;;  %v992_v27 = vmul.f32 %v1680_v17, %v1952_v51  ;;  %v1635_v28 = vadd.f32 %v1634_v24, %v1633_v18  ;;  %v1683_v29 = vadd.f32 %v1682_v25, %v1681_v19 }
 0x12f   : > { %v1511_v30 = vpack.c.bf16 %v1046_v22, %v1045_v20  ;;  %v1551_v31 = vpack.c.bf16 %v1062_v23, %v1061_v21 }
 0x130   : > { %v1015_v32 = vadd.f32 %v1957_v57, %v976_v26  ;;  %v1031_v33 = vadd.f32 %v1957_v57, %v992_v27  ;;  %v977_v34 = vmul.f32 %v1635_v28, %v1952_v51  ;;  %v993_v35 = vmul.f32 %v1683_v29, %v1952_v51 }
 0x131   : > { %1567 = vst [vmem:[%s1971_s21 + $0x28] sm:$0xff] %v1511_v30   ;;  %1575 = vst [vmem:[%s1971_s21 + $0x68] sm:$0xff] %v1551_v31  }
 0x132   : > { %v1016_v36 = vadd.f32 %v1957_v57, %v977_v34  ;;  %v1032_v37 = vadd.f32 %v1957_v57, %v993_v35  ;;  %v1636_v38 = vpop.f32.mrb[28].mxu0  ;;  %v1684_v39 = vpop.f32.mrb[28].mxu1  ;;  %v1047_v40 = vmax.f32 %v1015_v32, 0.0  ;;  %v1063_v41 = vmax.f32 %v1031_v33, 0.0 }
 0x133   : > { %v1637_v42 = vpop.f32.mrb[29].mxu0  ;;  %v1685_v43 = vpop.f32.mrb[29].mxu1 }
 0x134   : > { %v1048_v44 = vmax.f32 %v1016_v36, 0.0  ;;  %v1064_v45 = vmax.f32 %v1032_v37, 0.0  ;;  %v1638_v46 = vadd.f32 %v1637_v42, %v1636_v38  ;;  %v1686_v47 = vadd.f32 %v1685_v43, %v1684_v39  ;;  %v1639_v48 = vpop.f32.mrb[30].mxu0  ;;  %v1687_v49 = vpop.f32.mrb[30].mxu1 }
 0x135   : > { %v1640_v50 = vpop.f32.mrb[31].mxu0  ;;  %v1688_v52 = vpop.f32.mrb[31].mxu1 }
 0x136   : > { %v1516_v53 = vpack.c.bf16 %v1048_v44, %v1047_v40  ;;  %v1556_v54 = vpack.c.bf16 %v1064_v45, %v1063_v41  ;;  %v978_v55 = vmul.f32 %v1638_v46, %v1952_v51  ;;  %v994_v56 = vmul.f32 %v1686_v47, %v1952_v51 }
 0x137   : > { %v1641_v58 = vadd.f32 %v1640_v50, %v1639_v48  ;;  %v1689_v59 = vadd.f32 %v1688_v52, %v1687_v49 }
 0x138   : > { %1568 = vst [vmem:[%s1971_s21 + $0x30] sm:$0xff] %v1516_v53   ;;  %1576 = vst [vmem:[%s1971_s21 + $0x70] sm:$0xff] %v1556_v54   ;;  %v1017_v60 = vadd.f32 %v1957_v57, %v978_v55  ;;  %v1033_v61 = vadd.f32 %v1957_v57, %v994_v56 }
 0x139   : > { %v979_v62 = vmul.f32 %v1641_v58, %v1952_v51  ;;  %v995_v63 = vmul.f32 %v1689_v59, %v1952_v51 }
 0x13a   : > { %v1049_v2 = vmax.f32 %v1017_v60, 0.0  ;;  %v1065_v3 = vmax.f32 %v1033_v61, 0.0 }
 0x13b   : > { %v1018_v0 = vadd.f32 %v1957_v57, %v979_v62  ;;  %v1034_v1 = vadd.f32 %v1957_v57, %v995_v63 }
 0x13d   : > { %v1050_v4 = vmax.f32 %v1018_v0, 0.0  ;;  %v1066_v5 = vmax.f32 %v1034_v1, 0.0 }
 0x13f   : > { %v1521_v6 = vpack.c.bf16 %v1050_v4, %v1049_v2  ;;  %v1561_v7 = vpack.c.bf16 %v1066_v5, %v1065_v3 }
 0x141   : > { %1569 = vst [vmem:[%s1971_s21 + $0x38] sm:$0xff] %v1521_v6   ;;  %1577 = vst [vmem:[%s1971_s21 + $0x78] sm:$0xff] %v1561_v7  }
 0x142 PF: > { %s14_s17 = sadd.s32 1, %s1816_s17   ;;  %s2059_s15 = smov %s1812_s16 }
 0x143   : > { %p11_p5 = scmp.ge.s32.totalorder %s14_s17, 4   ;;  %s2060_s16 = smov %s2062_s18 }
 0x145   :  { %13 = sbr.rel (!%p11_p5) target bundleno = 2 (0x2), region = 83 }

// kernel: _lambda_.31
= control target key start
LH: loop header
LB: loop body
LE: loop exit
PB: predicated region body
PF: predicated region fallthrough
CT: control target
= control target key end

     0   :  { %s992_s1 = inlined_call_operand.vmem [shape: bf16[256,128], index: 1, kind: input, shape index: {}]   ;;  %s993_s0 = inlined_call_operand.vmem [shape: bf16[128,256], index: 0, kind: input, shape index: {}]   ;;  %s994_s2 = inlined_call_operand.vmem [shape: f32[1,128], index: 2, kind: input, shape index: {}]   ;;  %s995_s3 = inlined_call_operand.vmem [shape: f32[1,128], index: 3, kind: input, shape index: {}]   ;;  %s996_s4 = inlined_call_operand.vmem [shape: bf16[128,128], index: 4, kind: output, shape index: {}]  }
   0x1   :  { %v765_v0 = vld [vmem:[%s992_s1 + $0x40] sm:$0xff]   ;;  %v767_v2 = vld [vmem:[%s992_s1 + $0x48] sm:$0xff]   ;;  %v769_v4 = vld [vmem:[%s992_s1 + $0x50] sm:$0xff]  }
   0x2   :  { %v766_v1 = vld [vmem:[%s992_s1] sm:$0xff]   ;;  %685 = vmatprep.subr.bf16.mxu0 %v765_v0  ;;  %749 = vmatprep.subr.bf16.mxu1 %v765_v0  ;;  %v768_v3 = vld [vmem:[%s992_s1 + $0x8] sm:$0xff]   ;;  %v770_v5 = vld [vmem:[%s992_s1 + $0x10] sm:$0xff]  }
   0x3   :  { %686 = vmatpush3.bf16.msra.mxu0 %v766_v1  ;;  %757 = vmatpush3.bf16.msra.mxu1 %v766_v1  ;;  %v771_v6 = vld [vmem:[%s992_s1 + $0x58] sm:$0xff]   ;;  %v773_v8 = vld [vmem:[%s992_s1 + $0x60] sm:$0xff]   ;;  %v775_v10 = vld [vmem:[%s992_s1 + $0x68] sm:$0xff]  }
   0x4   :  { %687 = vmatprep.subr.bf16.mxu0 %v767_v2  ;;  %750 = vmatprep.subr.bf16.mxu1 %v767_v2  ;;  %v772_v7 = vld [vmem:[%s992_s1 + $0x18] sm:$0xff]   ;;  %v774_v9 = vld [vmem:[%s992_s1 + $0x20] sm:$0xff]   ;;  %v776_v13 = vld [vmem:[%s992_s1 + $0x28] sm:$0xff]  }
   0x5   :  { %v783_v11 = vld [vmem:[%s993_s0 + $0x4] ss:$8 sps:$4 sm:$0xff]   ;;  %v777_v14 = vld [vmem:[%s992_s1 + $0x70] sm:$0xff]   ;;  %v779_v16 = vld [vmem:[%s992_s1 + $0x78] sm:$0xff]  }
   0x6   :  { %v786_v12 = vld [vmem:[%s993_s0 + $0x44] ss:$8 sps:$4 sm:$0xff]   ;;  %310 = vmatprep.mubr.bf16.mxu0 %v783_v11  ;;  %v778_v15 = vld [vmem:[%s992_s1 + $0x30] sm:$0xff]   ;;  %v780_v17 = vld [vmem:[%s992_s1 + $0x38] sm:$0xff]  }
   0x7   :  { %688 = vmatpush3.bf16.msra.mxu0 %v768_v3  ;;  %758 = vmatpush3.bf16.msra.mxu1 %v768_v3  ;;  %v781_v18 = vld [vmem:[%s993_s0] ss:$8 sps:$4 sm:$0xff]   ;;  %v787_v20 = vld [vmem:[%s993_s0 + $0x14] ss:$8 sps:$4 sm:$0xff]   ;;  %v791_v22 = vld [vmem:[%s993_s0 + $0x10] ss:$8 sps:$4 sm:$0xff]  }
   0x8   :  { %689 = vmatprep.subr.bf16.mxu0 %v769_v4  ;;  %751 = vmatprep.subr.bf16.mxu1 %v769_v4  ;;  %v784_v19 = vld [vmem:[%s993_s0 + $0x40] ss:$8 sps:$4 sm:$0xff]   ;;  %v789_v21 = vld [vmem:[%s993_s0 + $0x54] ss:$8 sps:$4 sm:$0xff]   ;;  %v792_v23 = vld [vmem:[%s993_s0 + $0x50] ss:$8 sps:$4 sm:$0xff]  }
   0x9   :  { %342 = vmatprep.mubr.bf16.mxu1 %v786_v12  ;;  %v793_v24 = vld [vmem:[%s993_s0 + $0x24] ss:$8 sps:$4 sm:$0xff]   ;;  %v797_v26 = vld [vmem:[%s993_s0 + $0x20] ss:$8 sps:$4 sm:$0xff]   ;;  %v799_v28 = vld [vmem:[%s993_s0 + $0x34] ss:$8 sps:$4 sm:$0xff]  }
   0xa   :  { %v795_v25 = vld [vmem:[%s993_s0 + $0x64] ss:$8 sps:$4 sm:$0xff]   ;;  %v798_v27 = vld [vmem:[%s993_s0 + $0x60] ss:$8 sps:$4 sm:$0xff]   ;;  %v801_v29 = vld [vmem:[%s993_s0 + $0x74] ss:$8 sps:$4 sm:$0xff]  }
   0xb   :  { %690 = vmatpush3.bf16.msra.mxu0 %v770_v5  ;;  %759 = vmatpush3.bf16.msra.mxu1 %v770_v5  ;;  %v803_v30 = vld [vmem:[%s993_s0 + $0x30] ss:$8 sps:$4 sm:$0xff]   ;;  %v929_v35 = vld [vmem:[%s994_s2] ss:$0 sm:$0xff] }
   0xc   :  { %691 = vmatprep.subr.bf16.mxu0 %v771_v6  ;;  %752 = vmatprep.subr.bf16.mxu1 %v771_v6  ;;  %v804_v31 = vld [vmem:[%s993_s0 + $0x70] ss:$8 sps:$4 sm:$0xff]   ;;  %v934_v41 = vld [vmem:[%s995_s3] ss:$0 sm:$0xff] }
   0xf   :  { %692 = vmatpush3.bf16.msra.mxu0 %v772_v7  ;;  %760 = vmatpush3.bf16.msra.mxu1 %v772_v7 }
  0x10   :  { %693 = vmatprep.subr.bf16.mxu0 %v773_v8  ;;  %753 = vmatprep.subr.bf16.mxu1 %v773_v8 }
  0x13   :  { %694 = vmatpush3.bf16.msra.mxu0 %v774_v9  ;;  %761 = vmatpush3.bf16.msra.mxu1 %v774_v9 }
  0x14   :  { %695 = vmatprep.subr.bf16.mxu0 %v775_v10  ;;  %754 = vmatprep.subr.bf16.mxu1 %v775_v10 }
  0x17   :  { %696 = vmatpush3.bf16.msra.mxu0 %v776_v13  ;;  %762 = vmatpush3.bf16.msra.mxu1 %v776_v13 }
  0x18   :  { %697 = vmatprep.subr.bf16.mxu0 %v777_v14  ;;  %755 = vmatprep.subr.bf16.mxu1 %v777_v14 }
  0x1b   :  { %698 = vmatpush3.bf16.msra.mxu0 %v778_v15  ;;  %763 = vmatpush3.bf16.msra.mxu1 %v778_v15 }
  0x1c   :  { %699 = vmatprep.subr.bf16.mxu0 %v779_v16  ;;  %756 = vmatprep.subr.bf16.mxu1 %v779_v16 }
  0x1f   :  { %700 = vmatpush3.bf16.msra.mxu0 %v780_v17  ;;  %764 = vmatpush3.bf16.msra.mxu1 %v780_v17 }
  0x22   :  { %311 = vmatmul.mubr.bf16.vlgmr.msra.gmra.mrb[0].mxu0 %v781_v18  ;;  %343 = vmatmul.mubr.bf16.vlgmr.msra.gmra.mrb[0].mxu1 %v784_v19 }
  0x23   :  { %318 = vmatprep.mubr.bf16.mxu0 %v787_v20  ;;  %350 = vmatprep.mubr.bf16.mxu1 %v789_v21 }
  0x2a   :  { %319 = vmatmul.mubr.bf16.gmra.mrb[4].mxu0 %v791_v22  ;;  %351 = vmatmul.mubr.bf16.gmra.mrb[4].mxu1 %v792_v23 }
  0x2b   :  { %326 = vmatprep.mubr.bf16.mxu0 %v793_v24  ;;  %358 = vmatprep.mubr.bf16.mxu1 %v795_v25 }
  0x32   :  { %327 = vmatmul.mubr.bf16.gmra.mrb[8].mxu0 %v797_v26  ;;  %359 = vmatmul.mubr.bf16.gmra.mrb[8].mxu1 %v798_v27 }
  0x33   :  { %334 = vmatprep.mubr.bf16.mxu0 %v799_v28  ;;  %366 = vmatprep.mubr.bf16.mxu1 %v801_v29 }
  0x3a   :  { %335 = vmatmul.mubr.bf16.gmra.mrb[12].mxu0 %v803_v30  ;;  %367 = vmatmul.mubr.bf16.gmra.mrb[12].mxu1 %v804_v31 }
  0xf5   :  { %v701_v32 = vpop.f32.mrb[0].mxu0  ;;  %v725_v33 = vpop.f32.mrb[0].mxu1 }
  0xf6   :  { %v702_v34 = vpop.f32.mrb[1].mxu0  ;;  %v726_v36 = vpop.f32.mrb[1].mxu1 }
  0xf7   :  { %v703_v37 = vadd.f32 %v702_v34, %v701_v32  ;;  %v727_v38 = vadd.f32 %v726_v36, %v725_v33  ;;  %v704_v39 = vpop.f32.mrb[2].mxu0  ;;  %v728_v40 = vpop.f32.mrb[2].mxu1 }
  0xf8   :  { %v705_v42 = vpop.f32.mrb[3].mxu0  ;;  %v729_v43 = vpop.f32.mrb[3].mxu1 }
  0xf9   :  { %v433_v44 = vmul.f32 %v703_v37, %v929_v35  ;;  %v441_v45 = vmul.f32 %v727_v38, %v929_v35  ;;  %v706_v46 = vadd.f32 %v705_v42, %v704_v39  ;;  %v730_v47 = vadd.f32 %v729_v43, %v728_v40 }
  0xfb   :  { %v456_v48 = vadd.f32 %v934_v41, %v433_v44  ;;  %v464_v49 = vadd.f32 %v934_v41, %v441_v45  ;;  %v434_v50 = vmul.f32 %v706_v46, %v929_v35  ;;  %v442_v51 = vmul.f32 %v730_v47, %v929_v35 }
  0xfd   :  { %v457_v52 = vadd.f32 %v934_v41, %v434_v50  ;;  %v465_v53 = vadd.f32 %v934_v41, %v442_v51  ;;  %v707_v54 = vpop.f32.mrb[4].mxu0  ;;  %v731_v55 = vpop.f32.mrb[4].mxu1  ;;  %v472_v56 = vmax.f32 %v456_v48, 0.0  ;;  %v480_v57 = vmax.f32 %v464_v49, 0.0 }
  0xfe   :  { %v708_v58 = vpop.f32.mrb[5].mxu0  ;;  %v732_v59 = vpop.f32.mrb[5].mxu1 }
  0xff   :  { %v473_v60 = vmax.f32 %v457_v52, 0.0  ;;  %v481_v61 = vmax.f32 %v465_v53, 0.0  ;;  %v709_v62 = vadd.f32 %v708_v58, %v707_v54  ;;  %v733_v63 = vadd.f32 %v732_v59, %v731_v55  ;;  %v710_v0 = vpop.f32.mrb[6].mxu0  ;;  %v734_v1 = vpop.f32.mrb[6].mxu1 }
 0x100   :  { %v711_v2 = vpop.f32.mrb[7].mxu0  ;;  %v735_v3 = vpop.f32.mrb[7].mxu1 }
 0x101   :  { %v641_v4 = vpack.c.bf16 %v473_v60, %v472_v56  ;;  %v661_v5 = vpack.c.bf16 %v481_v61, %v480_v57  ;;  %v435_v6 = vmul.f32 %v709_v62, %v929_v35  ;;  %v443_v7 = vmul.f32 %v733_v63, %v929_v35 }
 0x102   :  { %v712_v8 = vadd.f32 %v711_v2, %v710_v0  ;;  %v736_v9 = vadd.f32 %v735_v3, %v734_v1 }
 0x103   :  { %642 = vst [vmem:[%s996_s4] sm:$0xff] %v641_v4   ;;  %681 = vst [vmem:[%s996_s4 + $0x20] sm:$0xff] %v661_v5   ;;  %v458_v10 = vadd.f32 %v934_v41, %v435_v6  ;;  %v466_v11 = vadd.f32 %v934_v41, %v443_v7 }
 0x104   :  { %v436_v12 = vmul.f32 %v712_v8, %v929_v35  ;;  %v444_v13 = vmul.f32 %v736_v9, %v929_v35 }
 0x105   :  { %v713_v14 = vpop.f32.mrb[8].mxu0  ;;  %v737_v15 = vpop.f32.mrb[8].mxu1  ;;  %v474_v24 = vmax.f32 %v458_v10, 0.0  ;;  %v482_v25 = vmax.f32 %v466_v11, 0.0 }
 0x106   :  { %v459_v16 = vadd.f32 %v934_v41, %v436_v12  ;;  %v467_v17 = vadd.f32 %v934_v41, %v444_v13  ;;  %v714_v18 = vpop.f32.mrb[9].mxu0  ;;  %v738_v19 = vpop.f32.mrb[9].mxu1 }
 0x107   :  { %v715_v20 = vadd.f32 %v714_v18, %v713_v14  ;;  %v739_v21 = vadd.f32 %v738_v19, %v737_v15  ;;  %v716_v22 = vpop.f32.mrb[10].mxu0  ;;  %v740_v23 = vpop.f32.mrb[10].mxu1 }
 0x108   :  { %v475_v26 = vmax.f32 %v459_v16, 0.0  ;;  %v483_v27 = vmax.f32 %v467_v17, 0.0  ;;  %v717_v28 = vpop.f32.mrb[11].mxu0  ;;  %v741_v29 = vpop.f32.mrb[11].mxu1 }
 0x109   :  { %v437_v30 = vmul.f32 %v715_v20, %v929_v35  ;;  %v445_v31 = vmul.f32 %v739_v21, %v929_v35  ;;  %v718_v32 = vadd.f32 %v717_v28, %v716_v22  ;;  %v742_v33 = vadd.f32 %v741_v29, %v740_v23 }
 0x10a   :  { %v646_v34 = vpack.c.bf16 %v475_v26, %v474_v24  ;;  %v666_v36 = vpack.c.bf16 %v483_v27, %v482_v25 }
 0x10b   :  { %v460_v37 = vadd.f32 %v934_v41, %v437_v30  ;;  %v468_v38 = vadd.f32 %v934_v41, %v445_v31  ;;  %v438_v39 = vmul.f32 %v718_v32, %v929_v35  ;;  %v446_v40 = vmul.f32 %v742_v33, %v929_v35 }
 0x10c   :  { %678 = vst [vmem:[%s996_s4 + $0x8] sm:$0xff] %v646_v34   ;;  %682 = vst [vmem:[%s996_s4 + $0x28] sm:$0xff] %v666_v36  }
 0x10d   :  { %v461_v42 = vadd.f32 %v934_v41, %v438_v39  ;;  %v469_v43 = vadd.f32 %v934_v41, %v446_v40  ;;  %v719_v44 = vpop.f32.mrb[12].mxu0  ;;  %v743_v45 = vpop.f32.mrb[12].mxu1  ;;  %v476_v46 = vmax.f32 %v460_v37, 0.0  ;;  %v484_v47 = vmax.f32 %v468_v38, 0.0 }
 0x10e   :  { %v720_v48 = vpop.f32.mrb[13].mxu0  ;;  %v744_v49 = vpop.f32.mrb[13].mxu1 }
 0x10f   :  { %v477_v50 = vmax.f32 %v461_v42, 0.0  ;;  %v485_v51 = vmax.f32 %v469_v43, 0.0  ;;  %v721_v52 = vadd.f32 %v720_v48, %v719_v44  ;;  %v745_v53 = vadd.f32 %v744_v49, %v743_v45  ;;  %v722_v54 = vpop.f32.mrb[14].mxu0  ;;  %v746_v55 = vpop.f32.mrb[14].mxu1 }
 0x110   :  { %v723_v56 = vpop.f32.mrb[15].mxu0  ;;  %v747_v57 = vpop.f32.mrb[15].mxu1 }
 0x111   :  { %v651_v58 = vpack.c.bf16 %v477_v50, %v476_v46  ;;  %v671_v59 = vpack.c.bf16 %v485_v51, %v484_v47  ;;  %v439_v60 = vmul.f32 %v721_v52, %v929_v35  ;;  %v447_v61 = vmul.f32 %v745_v53, %v929_v35 }
 0x112   :  { %v724_v62 = vadd.f32 %v723_v56, %v722_v54  ;;  %v748_v63 = vadd.f32 %v747_v57, %v746_v55 }
 0x113   :  { %679 = vst [vmem:[%s996_s4 + $0x10] sm:$0xff] %v651_v58   ;;  %683 = vst [vmem:[%s996_s4 + $0x30] sm:$0xff] %v671_v59   ;;  %v462_v0 = vadd.f32 %v934_v41, %v439_v60  ;;  %v470_v1 = vadd.f32 %v934_v41, %v447_v61 }
 0x114   :  { %v440_v2 = vmul.f32 %v724_v62, %v929_v35  ;;  %v448_v3 = vmul.f32 %v748_v63, %v929_v35 }
 0x115   :  { %v478_v6 = vmax.f32 %v462_v0, 0.0  ;;  %v486_v7 = vmax.f32 %v470_v1, 0.0 }
 0x116   :  { %v463_v4 = vadd.f32 %v934_v41, %v440_v2  ;;  %v471_v5 = vadd.f32 %v934_v41, %v448_v3 }
 0x118   :  { %v479_v8 = vmax.f32 %v463_v4, 0.0  ;;  %v487_v9 = vmax.f32 %v471_v5, 0.0 }
 0x11a   :  { %v656_v10 = vpack.c.bf16 %v479_v8, %v478_v6  ;;  %v676_v11 = vpack.c.bf16 %v487_v9, %v486_v7 }
 0x11c   :  { %680 = vst [vmem:[%s996_s4 + $0x18] sm:$0xff] %v656_v10   ;;  %684 = vst [vmem:[%s996_s4 + $0x38] sm:$0xff] %v676_v11  }

// kernel: _lambda_.32
= control target key start
LH: loop header
LB: loop body
LE: loop exit
PB: predicated region body
PF: predicated region fallthrough
CT: control target
= control target key end

     0   :  { %s1335_s1 = inlined_call_operand.vmem [shape: bf16[384,128], index: 1, kind: input, shape index: {}]   ;;  %s1336_s0 = inlined_call_operand.vmem [shape: bf16[128,384], index: 0, kind: input, shape index: {}]   ;;  %s1337_s2 = inlined_call_operand.vmem [shape: f32[1,128], index: 2, kind: input, shape index: {}]   ;;  %s1338_s3 = inlined_call_operand.vmem [shape: f32[1,128], index: 3, kind: input, shape index: {}]   ;;  %s1339_s4 = inlined_call_operand.vmem [shape: bf16[128,128], index: 4, kind: output, shape index: {}]  }
   0x1   :  { %v1038_v0 = vld [vmem:[%s1335_s1 + $0x40] sm:$0xff]   ;;  %v1041_v3 = vld [vmem:[%s1335_s1 + $0x48] sm:$0xff]   ;;  %v1044_v6 = vld [vmem:[%s1335_s1 + $0x50] sm:$0xff]  }
   0x2   :  { %v1039_v1 = vld [vmem:[%s1335_s1] sm:$0xff]   ;;  %926 = vmatprep.subr.bf16.mxu0 %v1038_v0  ;;  %v1042_v4 = vld [vmem:[%s1335_s1 + $0x8] sm:$0xff]   ;;  %v1045_v7 = vld [vmem:[%s1335_s1 + $0x10] sm:$0xff]  }
   0x3   :  { %v1040_v2 = vld [vmem:[%s1335_s1 + $0x80] sm:$0xff]   ;;  %927 = vmatpush3.bf16.msra.mxu0 %v1039_v1  ;;  %v1043_v5 = vld [vmem:[%s1335_s1 + $0x88] sm:$0xff]   ;;  %v1046_v8 = vld [vmem:[%s1335_s1 + $0x90] sm:$0xff]  }
   0x4   :  { %1006 = vmatprep.subr.bf16.mxu1 %v1040_v2  ;;  %928 = vmatprep.subr.bf16.mxu0 %v1041_v3  ;;  %v1047_v9 = vld [vmem:[%s1335_s1 + $0x58] sm:$0xff]   ;;  %v1050_v12 = vld [vmem:[%s1335_s1 + $0x60] sm:$0xff]   ;;  %v1053_v15 = vld [vmem:[%s1335_s1 + $0x68] sm:$0xff]  }
   0x5   :  { %1007 = vmatpush3.bf16.msra.mxu1 %v1040_v2  ;;  %v1048_v10 = vld [vmem:[%s1335_s1 + $0x18] sm:$0xff]   ;;  %v1052_v13 = vld [vmem:[%s1335_s1 + $0xa0] sm:$0xff]   ;;  %v1055_v16 = vld [vmem:[%s1335_s1 + $0xa8] sm:$0xff]  }
   0x6   :  { %1008 = vmatprep.subr.bf16.mxu1 %v1043_v5  ;;  %v1049_v11 = vld [vmem:[%s1335_s1 + $0x98] sm:$0xff]   ;;  %v1051_v14 = vld [vmem:[%s1335_s1 + $0x20] sm:$0xff]   ;;  %v1054_v17 = vld [vmem:[%s1335_s1 + $0x28] sm:$0xff]  }
   0x7   :  { %929 = vmatpush3.bf16.msra.mxu0 %v1042_v4  ;;  %v1056_v18 = vld [vmem:[%s1335_s1 + $0x70] sm:$0xff]   ;;  %v1059_v21 = vld [vmem:[%s1335_s1 + $0x78] sm:$0xff]   ;;  %v1062_v26 = vld [vmem:[%s1336_s0] ss:$12 sps:$4 sm:$0xff]  }
   0x8   :  { %930 = vmatprep.subr.bf16.mxu0 %v1044_v6  ;;  %v1057_v19 = vld [vmem:[%s1335_s1 + $0x30] sm:$0xff]   ;;  %v1061_v22 = vld [vmem:[%s1335_s1 + $0xb8] sm:$0xff]   ;;  %v1066_v28 = vld [vmem:[%s1336_s0 + $0x20] ss:$12 sps:$4 sm:$0xff]  }
   0x9   :  { %1009 = vmatpush3.bf16.msra.mxu1 %v1043_v5  ;;  %v1058_v20 = vld [vmem:[%s1335_s1 + $0xb0] sm:$0xff]   ;;  %v1060_v25 = vld [vmem:[%s1335_s1 + $0x38] sm:$0xff]   ;;  %v1082_v36 = vld [vmem:[%s1336_s0 + $0x80] ss:$12 sps:$4 sm:$0xff]  }
   0xa   :  { %1010 = vmatprep.subr.bf16.mxu1 %v1046_v8  ;;  %v1064_v23 = vld [vmem:[%s1336_s0 + $0x4] ss:$12 sps:$4 sm:$0xff]   ;;  %v1065_v24 = vld [vmem:[%s1336_s0 + $0x8] ss:$12 sps:$4 sm:$0xff]   ;;  %v1075_v35 = vld [vmem:[%s1336_s0 + $0x4c] ss:$12 sps:$4 sm:$0xff]  }
   0xb   :  { %931 = vmatpush3.bf16.msra.mxu0 %v1045_v7  ;;  %438 = vmatprep.mubr.bf16.mxu0 %v1064_v23  ;;  %v1067_v27 = vld [vmem:[%s1336_s0 + $0x1c] ss:$12 sps:$4 sm:$0xff]   ;;  %v1073_v29 = vld [vmem:[%s1336_s0 + $0x38] ss:$12 sps:$4 sm:$0xff]   ;;  %v1070_v31 = vld [vmem:[%s1336_s0 + $0x34] ss:$12 sps:$4 sm:$0xff]  }
   0xc   :  { %932 = vmatprep.subr.bf16.mxu0 %v1047_v9  ;;  %1022 = vmatprep.mubr.bf16.mxu1 %v1065_v24  ;;  %v1069_v30 = vld [vmem:[%s1336_s0 + $0x18] ss:$12 sps:$4 sm:$0xff]   ;;  %v1074_v32 = vld [vmem:[%s1336_s0 + $0x50] ss:$12 sps:$4 sm:$0xff]   ;;  %v1081_v33 = vld [vmem:[%s1336_s0 + $0x68] ss:$12 sps:$4 sm:$0xff]  }
   0xd   :  { %1011 = vmatpush3.bf16.msra.mxu1 %v1046_v8  ;;  %v1072_v34 = vld [vmem:[%s1336_s0 + $0x30] ss:$12 sps:$4 sm:$0xff]   ;;  %v1089_v37 = vld [vmem:[%s1336_s0 + $0x98] ss:$12 sps:$4 sm:$0xff]   ;;  %v1077_v38 = vld [vmem:[%s1336_s0 + $0x48] ss:$12 sps:$4 sm:$0xff]  }
   0xe   :  { %1012 = vmatprep.subr.bf16.mxu1 %v1049_v11  ;;  %v1078_v39 = vld [vmem:[%s1336_s0 + $0x64] ss:$12 sps:$4 sm:$0xff]   ;;  %v1080_v41 = vld [vmem:[%s1336_s0 + $0x60] ss:$12 sps:$4 sm:$0xff]   ;;  %v1083_v42 = vld [vmem:[%s1336_s0 + $0x7c] ss:$12 sps:$4 sm:$0xff]  }
   0xf   :  { %933 = vmatpush3.bf16.msra.mxu0 %v1048_v10  ;;  %v1090_v40 = vld [vmem:[%s1336_s0 + $0xb0] ss:$12 sps:$4 sm:$0xff]   ;;  %v1085_v43 = vld [vmem:[%s1336_s0 + $0x78] ss:$12 sps:$4 sm:$0xff]   ;;  %v1086_v44 = vld [vmem:[%s1336_s0 + $0x94] ss:$12 sps:$4 sm:$0xff]  }
  0x10   :  { %934 = vmatprep.subr.bf16.mxu0 %v1050_v12  ;;  %v1088_v45 = vld [vmem:[%s1336_s0 + $0x90] ss:$12 sps:$4 sm:$0xff]   ;;  %v1091_v46 = vld [vmem:[%s1336_s0 + $0xac] ss:$12 sps:$4 sm:$0xff]   ;;  %v1093_v47 = vld [vmem:[%s1336_s0 + $0xa8] ss:$12 sps:$4 sm:$0xff]  }
  0x11   :  { %1013 = vmatpush3.bf16.msra.mxu1 %v1049_v11  ;;  %v1266_v55 = vld [vmem:[%s1337_s2] ss:$0 sm:$0xff] }
  0x12   :  { %1014 = vmatprep.subr.bf16.mxu1 %v1052_v13  ;;  %v1271_v59 = vld [vmem:[%s1338_s3] ss:$0 sm:$0xff] }
  0x13   :  { %935 = vmatpush3.bf16.msra.mxu0 %v1051_v14 }
  0x14   :  { %936 = vmatprep.subr.bf16.mxu0 %v1053_v15 }
  0x15   :  { %1015 = vmatpush3.bf16.msra.mxu1 %v1052_v13 }
  0x16   :  { %1016 = vmatprep.subr.bf16.mxu1 %v1055_v16 }
  0x17   :  { %937 = vmatpush3.bf16.msra.mxu0 %v1054_v17 }
  0x18   :  { %938 = vmatprep.subr.bf16.mxu0 %v1056_v18 }
  0x19   :  { %1017 = vmatpush3.bf16.msra.mxu1 %v1055_v16 }
  0x1a   :  { %1018 = vmatprep.subr.bf16.mxu1 %v1058_v20 }
  0x1b   :  { %939 = vmatpush3.bf16.msra.mxu0 %v1057_v19 }
  0x1c   :  { %940 = vmatprep.subr.bf16.mxu0 %v1059_v21 }
  0x1d   :  { %1019 = vmatpush3.bf16.msra.mxu1 %v1058_v20 }
  0x1e   :  { %1020 = vmatprep.subr.bf16.mxu1 %v1061_v22 }
  0x1f   :  { %941 = vmatpush3.bf16.msra.mxu0 %v1060_v25 }
  0x21   :  { %1021 = vmatpush3.bf16.msra.mxu1 %v1061_v22 }
  0x22   :  { %439 = vmatmul.mubr.bf16.vlgmr.msra.gmra.mrb[0].mxu0 %v1062_v26 }
  0x23   :  { %446 = vmatprep.mubr.bf16.mxu0 %v1067_v27 }
  0x24   :  { %1023 = vmatmul.mubr.bf16.vlgmr.msra.gmra.mrb[0].mxu1 %v1066_v28 }
  0x25   :  { %1026 = vmatprep.mubr.bf16.mxu1 %v1073_v29 }
  0x2a   :  { %447 = vmatmul.mubr.bf16.gmra.mrb[4].mxu0 %v1069_v30 }
  0x2b   :  { %454 = vmatprep.mubr.bf16.mxu0 %v1070_v31 }
  0x2c   :  { %1027 = vmatmul.mubr.bf16.gmra.mrb[4].mxu1 %v1074_v32 }
  0x2d   :  { %1030 = vmatprep.mubr.bf16.mxu1 %v1081_v33 }
  0x32   :  { %455 = vmatmul.mubr.bf16.gmra.mrb[8].mxu0 %v1072_v34 }
  0x33   :  { %462 = vmatprep.mubr.bf16.mxu0 %v1075_v35 }
  0x34   :  { %1031 = vmatmul.mubr.bf16.gmra.mrb[8].mxu1 %v1082_v36 }
  0x35   :  { %1034 = vmatprep.mubr.bf16.mxu1 %v1089_v37 }
  0x3a   :  { %463 = vmatmul.mubr.bf16.gmra.mrb[12].mxu0 %v1077_v38 }
  0x3b   :  { %470 = vmatprep.mubr.bf16.mxu0 %v1078_v39 }
  0x3c   :  { %1035 = vmatmul.mubr.bf16.gmra.mrb[12].mxu1 %v1090_v40 }
  0x42   :  { %471 = vmatmul.mubr.bf16.gmra.mrb[16].mxu0 %v1080_v41 }
  0x43   :  { %478 = vmatprep.mubr.bf16.mxu0 %v1083_v42 }
  0x4a   :  { %479 = vmatmul.mubr.bf16.gmra.mrb[20].mxu0 %v1085_v43 }
  0x4b   :  { %486 = vmatprep.mubr.bf16.mxu0 %v1086_v44 }
  0x52   :  { %487 = vmatmul.mubr.bf16.gmra.mrb[24].mxu0 %v1088_v45 }
  0x53   :  { %494 = vmatprep.mubr.bf16.mxu0 %v1091_v46 }
  0x5a   :  { %495 = vmatmul.mubr.bf16.gmra.mrb[28].mxu0 %v1093_v47 }
  0xf5   :  { %v942_v48 = vpop.f32.mrb[0].mxu0 }
  0xf6   :  { %v943_v49 = vpop.f32.mrb[1].mxu0 }
  0xf7   :  { %v944_v50 = vadd.f32 %v943_v49, %v942_v48  ;;  %v945_v51 = vpop.f32.mrb[2].mxu0  ;;  %v1024_v52 = vpop.f32.mrb[0].mxu1 }
  0xf8   :  { %v946_v53 = vpop.f32.mrb[3].mxu0  ;;  %v537_v54 = vpop.f32.mrb[1].mxu1 }
  0xf9   :  { %v947_v56 = vadd.f32 %v946_v53, %v945_v51  ;;  %v538_v57 = vadd.f32 %v944_v50, %v537_v54  ;;  %v1025_v58 = vpop.f32.mrb[2].mxu1 }
  0xfa   :  { %v540_v60 = vpop.f32.mrb[3].mxu1 }
  0xfb   :  { %v658_v61 = vmul.f32 %v1266_v55, %v538_v57  ;;  %v541_v62 = vadd.f32 %v947_v56, %v540_v60 }
  0xfd   :  { %v681_v63 = vadd.f32 %v1271_v59, %v658_v61  ;;  %v659_v0 = vmul.f32 %v1266_v55, %v541_v62  ;;  %v948_v1 = vpop.f32.mrb[4].mxu0 }
  0xfe   :  { %v949_v2 = vpop.f32.mrb[5].mxu0 }
  0xff   :  { %v682_v3 = vadd.f32 %v1271_v59, %v659_v0  ;;  %v950_v4 = vadd.f32 %v949_v2, %v948_v1  ;;  %v951_v5 = vpop.f32.mrb[6].mxu0  ;;  %v1028_v6 = vpop.f32.mrb[4].mxu1  ;;  %v697_v9 = vmax.f32 %v681_v63, 0.0 }
 0x100   :  { %v952_v7 = vpop.f32.mrb[7].mxu0  ;;  %v553_v8 = vpop.f32.mrb[5].mxu1 }
 0x101   :  { %v698_v10 = vmax.f32 %v682_v3, 0.0  ;;  %v546_v11 = vadd.f32 %v1024_v52, %v950_v4  ;;  %v953_v12 = vadd.f32 %v952_v7, %v951_v5  ;;  %v1029_v13 = vpop.f32.mrb[6].mxu1 }
 0x102   :  { %v556_v14 = vpop.f32.mrb[7].mxu1 }
 0x103   :  { %v882_v15 = vpack.c.bf16 %v698_v10, %v697_v9  ;;  %v660_v16 = vmul.f32 %v1266_v55, %v546_v11  ;;  %v549_v17 = vadd.f32 %v1025_v58, %v953_v12 }
 0x105   :  { %883 = vst [vmem:[%s1339_s4] sm:$0xff] %v882_v15   ;;  %v683_v18 = vadd.f32 %v1271_v59, %v660_v16  ;;  %v661_v19 = vmul.f32 %v1266_v55, %v549_v17  ;;  %v954_v20 = vpop.f32.mrb[8].mxu0 }
 0x106   :  { %v955_v21 = vpop.f32.mrb[9].mxu0 }
 0x107   :  { %v684_v22 = vadd.f32 %v1271_v59, %v661_v19  ;;  %v956_v23 = vadd.f32 %v955_v21, %v954_v20  ;;  %v957_v24 = vpop.f32.mrb[10].mxu0  ;;  %v1032_v25 = vpop.f32.mrb[8].mxu1  ;;  %v699_v28 = vmax.f32 %v683_v18, 0.0 }
 0x108   :  { %v958_v26 = vpop.f32.mrb[11].mxu0  ;;  %v569_v27 = vpop.f32.mrb[9].mxu1 }
 0x109   :  { %v700_v29 = vmax.f32 %v684_v22, 0.0  ;;  %v959_v30 = vadd.f32 %v958_v26, %v957_v24  ;;  %v554_v31 = vadd.f32 %v956_v23, %v553_v8  ;;  %v1033_v32 = vpop.f32.mrb[10].mxu1 }
 0x10a   :  { %v572_v33 = vpop.f32.mrb[11].mxu1 }
 0x10b   :  { %v887_v34 = vpack.c.bf16 %v700_v29, %v699_v28  ;;  %v662_v35 = vmul.f32 %v1266_v55, %v554_v31  ;;  %v557_v36 = vadd.f32 %v959_v30, %v556_v14 }
 0x10d   :  { %919 = vst [vmem:[%s1339_s4 + $0x8] sm:$0xff] %v887_v34   ;;  %v685_v37 = vadd.f32 %v1271_v59, %v662_v35  ;;  %v663_v38 = vmul.f32 %v1266_v55, %v557_v36  ;;  %v960_v39 = vpop.f32.mrb[12].mxu0 }
 0x10e   :  { %v961_v40 = vpop.f32.mrb[13].mxu0 }
 0x10f   :  { %v686_v41 = vadd.f32 %v1271_v59, %v663_v38  ;;  %v962_v42 = vadd.f32 %v961_v40, %v960_v39  ;;  %v963_v43 = vpop.f32.mrb[14].mxu0  ;;  %v1291_v44 = vpop.f32.mrb[12].mxu1  ;;  %v701_v47 = vmax.f32 %v685_v37, 0.0 }
 0x110   :  { %v964_v45 = vpop.f32.mrb[15].mxu0  ;;  %v585_v46 = vpop.f32.mrb[13].mxu1 }
 0x111   :  { %v702_v48 = vmax.f32 %v686_v41, 0.0  ;;  %v562_v49 = vadd.f32 %v1028_v6, %v962_v42  ;;  %v965_v50 = vadd.f32 %v964_v45, %v963_v43  ;;  %v1293_v51 = vpop.f32.mrb[14].mxu1 }
 0x112   :  { %v588_v52 = vpop.f32.mrb[15].mxu1 }
 0x113   :  { %v892_v53 = vpack.c.bf16 %v702_v48, %v701_v47  ;;  %v664_v54 = vmul.f32 %v1266_v55, %v562_v49  ;;  %v565_v56 = vadd.f32 %v1029_v13, %v965_v50 }
 0x115   :  { %920 = vst [vmem:[%s1339_s4 + $0x10] sm:$0xff] %v892_v53   ;;  %v687_v57 = vadd.f32 %v1271_v59, %v664_v54  ;;  %v665_v58 = vmul.f32 %v1266_v55, %v565_v56  ;;  %v966_v60 = vpop.f32.mrb[16].mxu0 }
 0x116   :  { %v967_v61 = vpop.f32.mrb[17].mxu0 }
 0x117   :  { %v688_v62 = vadd.f32 %v1271_v59, %v665_v58  ;;  %v968_v63 = vadd.f32 %v967_v61, %v966_v60  ;;  %v969_v0 = vpop.f32.mrb[18].mxu0  ;;  %v703_v2 = vmax.f32 %v687_v57, 0.0 }
 0x118   :  { %v970_v1 = vpop.f32.mrb[19].mxu0 }
 0x119   :  { %v704_v3 = vmax.f32 %v688_v62, 0.0  ;;  %v971_v4 = vadd.f32 %v970_v1, %v969_v0  ;;  %v570_v5 = vadd.f32 %v968_v63, %v569_v27 }
 0x11b   :  { %v897_v6 = vpack.c.bf16 %v704_v3, %v703_v2  ;;  %v666_v7 = vmul.f32 %v1266_v55, %v570_v5  ;;  %v573_v8 = vadd.f32 %v971_v4, %v572_v33 }
 0x11d   :  { %921 = vst [vmem:[%s1339_s4 + $0x18] sm:$0xff] %v897_v6   ;;  %v689_v9 = vadd.f32 %v1271_v59, %v666_v7  ;;  %v667_v10 = vmul.f32 %v1266_v55, %v573_v8  ;;  %v972_v11 = vpop.f32.mrb[20].mxu0 }
 0x11e   :  { %v973_v12 = vpop.f32.mrb[21].mxu0 }
 0x11f   :  { %v690_v13 = vadd.f32 %v1271_v59, %v667_v10  ;;  %v974_v14 = vadd.f32 %v973_v12, %v972_v11  ;;  %v975_v15 = vpop.f32.mrb[22].mxu0  ;;  %v705_v17 = vmax.f32 %v689_v9, 0.0 }
 0x120   :  { %v976_v16 = vpop.f32.mrb[23].mxu0 }
 0x121   :  { %v706_v18 = vmax.f32 %v690_v13, 0.0  ;;  %v578_v19 = vadd.f32 %v1032_v25, %v974_v14  ;;  %v977_v20 = vadd.f32 %v976_v16, %v975_v15 }
 0x123   :  { %v902_v21 = vpack.c.bf16 %v706_v18, %v705_v17  ;;  %v668_v22 = vmul.f32 %v1266_v55, %v578_v19  ;;  %v581_v23 = vadd.f32 %v1033_v32, %v977_v20 }
 0x125   :  { %922 = vst [vmem:[%s1339_s4 + $0x20] sm:$0xff] %v902_v21   ;;  %v691_v24 = vadd.f32 %v1271_v59, %v668_v22  ;;  %v669_v26 = vmul.f32 %v1266_v55, %v581_v23  ;;  %v978_v27 = vpop.f32.mrb[24].mxu0 }
 0x126   :  { %v979_v28 = vpop.f32.mrb[25].mxu0 }
 0x127   :  { %v692_v29 = vadd.f32 %v1271_v59, %v669_v26  ;;  %v980_v30 = vadd.f32 %v979_v28, %v978_v27  ;;  %v981_v31 = vpop.f32.mrb[26].mxu0  ;;  %v707_v33 = vmax.f32 %v691_v24, 0.0 }
 0x128   :  { %v982_v25 = vpop.f32.mrb[27].mxu0 }
 0x129   :  { %v708_v34 = vmax.f32 %v692_v29, 0.0  ;;  %v983_v35 = vadd.f32 %v982_v25, %v981_v31  ;;  %v586_v36 = vadd.f32 %v980_v30, %v585_v46 }
 0x12b   :  { %v907_v32 = vpack.c.bf16 %v708_v34, %v707_v33  ;;  %v670_v37 = vmul.f32 %v1266_v55, %v586_v36  ;;  %v589_v38 = vadd.f32 %v983_v35, %v588_v52 }
 0x12d   :  { %923 = vst [vmem:[%s1339_s4 + $0x28] sm:$0xff] %v907_v32   ;;  %v693_v39 = vadd.f32 %v1271_v59, %v670_v37  ;;  %v671_v40 = vmul.f32 %v1266_v55, %v589_v38  ;;  %v984_v41 = vpop.f32.mrb[28].mxu0 }
 0x12e   :  { %v985_v42 = vpop.f32.mrb[29].mxu0 }
 0x12f   :  { %v694_v43 = vadd.f32 %v1271_v59, %v671_v40  ;;  %v986_v45 = vadd.f32 %v985_v42, %v984_v41  ;;  %v987_v47 = vpop.f32.mrb[30].mxu0  ;;  %v709_v46 = vmax.f32 %v693_v39, 0.0 }
 0x130   :  { %v988_v48 = vpop.f32.mrb[31].mxu0 }
 0x131   :  { %v710_v49 = vmax.f32 %v694_v43, 0.0  ;;  %v594_v50 = vadd.f32 %v1291_v44, %v986_v45  ;;  %v989_v52 = vadd.f32 %v988_v48, %v987_v47 }
 0x133   :  { %v912_v53 = vpack.c.bf16 %v710_v49, %v709_v46  ;;  %v672_v54 = vmul.f32 %v1266_v55, %v594_v50  ;;  %v597_v56 = vadd.f32 %v1293_v51, %v989_v52 }
 0x135   :  { %924 = vst [vmem:[%s1339_s4 + $0x30] sm:$0xff] %v912_v53   ;;  %v695_v57 = vadd.f32 %v1271_v59, %v672_v54  ;;  %v673_v58 = vmul.f32 %v1266_v55, %v597_v56 }
 0x137   :  { %v696_v60 = vadd.f32 %v1271_v59, %v673_v58  ;;  %v711_v61 = vmax.f32 %v695_v57, 0.0 }
 0x139   :  { %v712_v62 = vmax.f32 %v696_v60, 0.0 }
 0x13b   :  { %v917_v63 = vpack.c.bf16 %v712_v62, %v711_v61 }
 0x13d   :  { %925 = vst [vmem:[%s1339_s4 + $0x38] sm:$0xff] %v917_v63  }

// kernel: _lambda_.38
= control target key start
LH: loop header
LB: loop body
LE: loop exit
PB: predicated region body
PF: predicated region fallthrough
CT: control target
= control target key end

     0   :  { %s209_s6 = smov 0   ;;  %s226_s0 = inlined_call_operand.vmem [shape: bf16[2,4,32], index: 0, kind: input, shape index: {}]   ;;  %s227_s1 = inlined_call_operand.vmem [shape: bf16[2,1,32], index: 1, kind: output, shape index: {}]  }
   0x1 LB: > { %s175_s7 = sadd.s32 4294967295, %s197_s6   ;;  %p179_p0 = scmp.ge.s32.totalorder %s197_s6, 1  ;;  %s197_s6 = sphi %s209_s6, %s11_s6  }
   0x2   : > { %p86_p1 = scmp.lt.s32.totalorder %s197_s6, 3 }
   0x4   : > { %p87_p2 = pnand %p179_p0, %p86_p1 }
   0x5   : > { %p103_p3 = scmp.lt.s32.totalorder (!%p87_p2), %s175_s7, 1  ;;  %vm112_vm0 = vcmask (!%p87_p2), 257024   ;;  %vm122_vm1 = vcmask (!%p87_p2), 253952   ;;  %vm123_vm2 = vsmask.f32 (!%p87_p2), 256 }
   0x6   : > { %90 = sbr.rel (%p87_p2) target bundleno = 38 (0x26), region = 24  ;;  %vm124_vm3 = vmand (!%p87_p2), %vm122_vm1, %vm123_vm2 }
   0xd   : > { %s229_s7 = smov (!%p103_p3, %s175_s7), 1 }
   0xe   : > { %s180_s8 = sshll.u32 %s229_s7, 1  ;;  %s109_s14 = scalar_lea.vmem %s227_s1, %s229_s7 }
   0xf   : > { %s106_s11 = scalar_lea.vmem %s226_s0, %s180_s8  ;;  %v125_v10 = vld [vmem:[%s109_s14] sm:$0x1] }
  0x10   : > { %v110_v0 = vld [vmem:[%s106_s11] sm:$0x3] }
  0x11   : > { %v111_v1 = vunpack.c.l.bf16 %v110_v0 }
  0x13   : > { %v113_v2 = vsel %vm112_vm0, %v111_v1, 0.0 }
  0x14   : > { %v114_v3 = vrot.slane %v113_v2, 4 }
  0x16   : > { %v115_v4 = vadd.f32 %v114_v3, %v113_v2 }
  0x18   : > { %v116_v5 = vrot.slane %v115_v4, 2 }
  0x1a   : > { %v117_v6 = vadd.f32 %v116_v5, %v115_v4 }
  0x1c   : > { %v118_v7 = vrot.slane %v117_v6, 1 }
  0x1e   : > { %v119_v8 = vadd.f32 %v118_v7, %v117_v6 }
  0x20   : > { %v120_v9 = vmul.f32 0.25, %v119_v8 }
  0x22   : > { %v121_v11 = vpack.c.bf16 %v120_v9, %v120_v9 }
  0x24   : > { %v126_v12 = vsel %vm124_vm3, %v121_v11, %v125_v10 }
  0x25   : > { %127 = vst [vmem:[%s109_s14] sm:$0x1] %v126_v12 }
  0x26 PF: > { %s11_s6 = sadd.s32 1, %s197_s6  }
  0x27   : > { %p8_p4 = scmp.ge.s32.totalorder %s11_s6, 4  }
  0x29   :  { %10 = sbr.rel (!%p8_p4) target bundleno = 1 (0x1), region = 54 }

// kernel: _lambda_.39
= control target key start
LH: loop header
LB: loop body
LE: loop exit
PB: predicated region body
PF: predicated region fallthrough
CT: control target
= control target key end

     0   :  { %s774_s1 = inlined_call_operand.vmem [shape: bf16[128,128], index: 1, kind: input, shape index: {}]   ;;  %s775_s0 = inlined_call_operand.vmem [shape: bf16[128,128], index: 0, kind: input, shape index: {}]   ;;  %s776_s2 = inlined_call_operand.vmem [shape: f32[1,128], index: 2, kind: input, shape index: {}]   ;;  %s777_s3 = inlined_call_operand.vmem [shape: f32[1,128], index: 3, kind: input, shape index: {}]   ;;  %s778_s4 = inlined_call_operand.vmem [shape: bf16[128,128], index: 4, kind: output, shape index: {}]  }
   0x1   :  { %v637_v0 = vld [vmem:[%s774_s1] sm:$0xff]   ;;  %v638_v1 = vld [vmem:[%s774_s1 + $0x8] sm:$0xff]   ;;  %v639_v2 = vld [vmem:[%s774_s1 + $0x10] sm:$0xff]  }
   0x2   :  { %589 = vmatprep.subr.bf16.mxu0 %v637_v0  ;;  %621 = vmatprep.subr.bf16.mxu1 %v637_v0  ;;  %v640_v3 = vld [vmem:[%s774_s1 + $0x18] sm:$0xff]   ;;  %v645_v4 = vld [vmem:[%s775_s0] sm:$0xff]   ;;  %v642_v7 = vld [vmem:[%s774_s1 + $0x28] sm:$0xff]  }
   0x3   :  { %590 = vmatpush3.bf16.msra.mxu0 %v637_v0  ;;  %629 = vmatpush3.bf16.msra.mxu1 %v637_v0  ;;  %v646_v5 = vld [vmem:[%s775_s0 + $0x20] sm:$0xff]   ;;  %v643_v8 = vld [vmem:[%s774_s1 + $0x30] sm:$0xff]   ;;  %v644_v9 = vld [vmem:[%s774_s1 + $0x38] sm:$0xff]  }
   0x4   :  { %591 = vmatprep.subr.bf16.mxu0 %v638_v1  ;;  %622 = vmatprep.subr.bf16.mxu1 %v638_v1  ;;  %v641_v6 = vld [vmem:[%s774_s1 + $0x20] sm:$0xff]   ;;  %v647_v10 = vld [vmem:[%s775_s0 + $0x8] sm:$0xff]   ;;  %v649_v12 = vld [vmem:[%s775_s0 + $0x10] sm:$0xff]  }
   0x5   :  { %605 = vmatprep.mubr.bf16.mxu0 %v645_v4  ;;  %613 = vmatprep.mubr.bf16.mxu1 %v646_v5  ;;  %v648_v11 = vld [vmem:[%s775_s0 + $0x28] sm:$0xff]   ;;  %v650_v13 = vld [vmem:[%s775_s0 + $0x30] sm:$0xff]   ;;  %v651_v14 = vld [vmem:[%s775_s0 + $0x18] sm:$0xff]  }
   0x6   :  { %v652_v15 = vld [vmem:[%s775_s0 + $0x38] sm:$0xff]   ;;  %v492_v16 = vld [vmem:[%s776_s2] ss:$0 sm:$0xff] }
   0x7   :  { %592 = vmatpush3.bf16.msra.mxu0 %v638_v1  ;;  %630 = vmatpush3.bf16.msra.mxu1 %v638_v1  ;;  %v732_v18 = vld [vmem:[%s777_s3] ss:$0 sm:$0xff] }
   0x8   :  { %593 = vmatprep.subr.bf16.mxu0 %v639_v2  ;;  %623 = vmatprep.subr.bf16.mxu1 %v639_v2 }
   0xb   :  { %594 = vmatpush3.bf16.msra.mxu0 %v639_v2  ;;  %631 = vmatpush3.bf16.msra.mxu1 %v639_v2 }
   0xc   :  { %595 = vmatprep.subr.bf16.mxu0 %v640_v3  ;;  %624 = vmatprep.subr.bf16.mxu1 %v640_v3 }
   0xf   :  { %596 = vmatpush3.bf16.msra.mxu0 %v640_v3  ;;  %632 = vmatpush3.bf16.msra.mxu1 %v640_v3 }
  0x10   :  { %597 = vmatprep.subr.bf16.mxu0 %v641_v6  ;;  %625 = vmatprep.subr.bf16.mxu1 %v641_v6 }
  0x13   :  { %598 = vmatpush3.bf16.msra.mxu0 %v641_v6  ;;  %633 = vmatpush3.bf16.msra.mxu1 %v641_v6 }
  0x14   :  { %599 = vmatprep.subr.bf16.mxu0 %v642_v7  ;;  %626 = vmatprep.subr.bf16.mxu1 %v642_v7 }
  0x17   :  { %600 = vmatpush3.bf16.msra.mxu0 %v642_v7  ;;  %634 = vmatpush3.bf16.msra.mxu1 %v642_v7 }
  0x18   :  { %601 = vmatprep.subr.bf16.mxu0 %v643_v8  ;;  %627 = vmatprep.subr.bf16.mxu1 %v643_v8 }
  0x1b   :  { %602 = vmatpush3.bf16.msra.mxu0 %v643_v8  ;;  %635 = vmatpush3.bf16.msra.mxu1 %v643_v8 }
  0x1c   :  { %603 = vmatprep.subr.bf16.mxu0 %v644_v9  ;;  %628 = vmatprep.subr.bf16.mxu1 %v644_v9 }
  0x1f   :  { %604 = vmatpush3.bf16.msra.mxu0 %v644_v9  ;;  %636 = vmatpush3.bf16.msra.mxu1 %v644_v9 }
  0x22   :  { %606 = vmatmul.mubr.bf16.vlgmr.msra.gmra.mrb[0].mxu0 %v647_v10  ;;  %614 = vmatmul.mubr.bf16.vlgmr.msra.gmra.mrb[0].mxu1 %v648_v11 }
  0x23   :  { %609 = vmatprep.mubr.bf16.mxu0 %v649_v12  ;;  %617 = vmatprep.mubr.bf16.mxu1 %v650_v13 }
  0x2a   :  { %610 = vmatmul.mubr.bf16.gmra.mrb[4].mxu0 %v651_v14  ;;  %618 = vmatmul.mubr.bf16.gmra.mrb[4].mxu1 %v652_v15 }
  0xf5   :  { %v607_v17 = vpop.f32.mrb[0].mxu0  ;;  %v615_v19 = vpop.f32.mrb[0].mxu1 }
  0xf6   :  { %v339_v20 = vmul.f32 %v607_v17, %v492_v16  ;;  %v347_v21 = vmul.f32 %v615_v19, %v492_v16  ;;  %v216_v22 = vpop.f32.mrb[1].mxu0  ;;  %v248_v23 = vpop.f32.mrb[1].mxu1 }
  0xf7   :  { %v337_v24 = vmul.f32 %v492_v16, %v216_v22  ;;  %v345_v25 = vmul.f32 %v492_v16, %v248_v23  ;;  %v608_v26 = vpop.f32.mrb[2].mxu0  ;;  %v616_v27 = vpop.f32.mrb[2].mxu1 }
  0xf8   :  { %v362_v28 = vadd.f32 %v732_v18, %v339_v20  ;;  %v370_v29 = vadd.f32 %v732_v18, %v347_v21  ;;  %v340_v30 = vmul.f32 %v608_v26, %v492_v16  ;;  %v348_v31 = vmul.f32 %v616_v27, %v492_v16  ;;  %v219_v32 = vpop.f32.mrb[3].mxu0  ;;  %v251_v33 = vpop.f32.mrb[3].mxu1 }
  0xf9   :  { %v360_v34 = vadd.f32 %v732_v18, %v337_v24  ;;  %v368_v35 = vadd.f32 %v732_v18, %v345_v25  ;;  %v338_v36 = vmul.f32 %v492_v16, %v219_v32  ;;  %v346_v37 = vmul.f32 %v492_v16, %v251_v33 }
  0xfa   :  { %v363_v38 = vadd.f32 %v732_v18, %v340_v30  ;;  %v371_v39 = vadd.f32 %v732_v18, %v348_v31  ;;  %v378_v42 = vmax.f32 %v362_v28, 0.0  ;;  %v386_v43 = vmax.f32 %v370_v29, 0.0 }
  0xfb   :  { %v361_v40 = vadd.f32 %v732_v18, %v338_v36  ;;  %v369_v41 = vadd.f32 %v732_v18, %v346_v37  ;;  %v376_v46 = vmax.f32 %v360_v34, 0.0  ;;  %v384_v47 = vmax.f32 %v368_v35, 0.0 }
  0xfc   :  { %v379_v44 = vmax.f32 %v363_v38, 0.0  ;;  %v387_v45 = vmax.f32 %v371_v39, 0.0 }
  0xfd   :  { %v377_v48 = vmax.f32 %v361_v40, 0.0  ;;  %v385_v49 = vmax.f32 %v369_v41, 0.0  ;;  %v611_v50 = vpop.f32.mrb[4].mxu0  ;;  %v619_v51 = vpop.f32.mrb[4].mxu1 }
  0xfe   :  { %v534_v52 = vpack.c.bf16 %v379_v44, %v378_v42  ;;  %v554_v53 = vpack.c.bf16 %v387_v45, %v386_v43  ;;  %v343_v54 = vmul.f32 %v611_v50, %v492_v16  ;;  %v351_v55 = vmul.f32 %v619_v51, %v492_v16  ;;  %v232_v56 = vpop.f32.mrb[5].mxu0  ;;  %v264_v57 = vpop.f32.mrb[5].mxu1 }
  0xff   :  { %v529_v58 = vpack.c.bf16 %v377_v48, %v376_v46  ;;  %v549_v59 = vpack.c.bf16 %v385_v49, %v384_v47  ;;  %v341_v60 = vmul.f32 %v492_v16, %v232_v56  ;;  %v349_v61 = vmul.f32 %v492_v16, %v264_v57  ;;  %v612_v62 = vpop.f32.mrb[6].mxu0  ;;  %v620_v63 = vpop.f32.mrb[6].mxu1 }
 0x100   :  { %566 = vst [vmem:[%s778_s4 + $0x8] sm:$0xff] %v534_v52   ;;  %570 = vst [vmem:[%s778_s4 + $0x28] sm:$0xff] %v554_v53   ;;  %v366_v0 = vadd.f32 %v732_v18, %v343_v54  ;;  %v374_v1 = vadd.f32 %v732_v18, %v351_v55  ;;  %v344_v2 = vmul.f32 %v612_v62, %v492_v16  ;;  %v235_v4 = vpop.f32.mrb[7].mxu0  ;;  %v267_v5 = vpop.f32.mrb[7].mxu1 }
 0x101   :  { %v352_v3 = vmul.f32 %v620_v63, %v492_v16  ;;  %530 = vst [vmem:[%s778_s4] sm:$0xff] %v529_v58   ;;  %569 = vst [vmem:[%s778_s4 + $0x20] sm:$0xff] %v549_v59   ;;  %v364_v6 = vadd.f32 %v732_v18, %v341_v60  ;;  %v372_v7 = vadd.f32 %v732_v18, %v349_v61 }
 0x102   :  { %v342_v8 = vmul.f32 %v492_v16, %v235_v4  ;;  %v350_v9 = vmul.f32 %v492_v16, %v267_v5  ;;  %v367_v10 = vadd.f32 %v732_v18, %v344_v2  ;;  %v382_v14 = vmax.f32 %v366_v0, 0.0 }
 0x103   :  { %v375_v11 = vadd.f32 %v732_v18, %v352_v3  ;;  %v390_v15 = vmax.f32 %v374_v1, 0.0  ;;  %v380_v20 = vmax.f32 %v364_v6, 0.0  ;;  %v388_v21 = vmax.f32 %v372_v7, 0.0 }
 0x104   :  { %v365_v12 = vadd.f32 %v732_v18, %v342_v8  ;;  %v373_v13 = vadd.f32 %v732_v18, %v350_v9  ;;  %v383_v17 = vmax.f32 %v367_v10, 0.0 }
 0x105   :  { %v391_v19 = vmax.f32 %v375_v11, 0.0 }
 0x106   :  { %v381_v22 = vmax.f32 %v365_v12, 0.0  ;;  %v389_v23 = vmax.f32 %v373_v13, 0.0  ;;  %v544_v24 = vpack.c.bf16 %v383_v17, %v382_v14 }
 0x107   :  { %v564_v25 = vpack.c.bf16 %v391_v19, %v390_v15 }
 0x108   :  { %v539_v26 = vpack.c.bf16 %v381_v22, %v380_v20  ;;  %v559_v16 = vpack.c.bf16 %v389_v23, %v388_v21  ;;  %568 = vst [vmem:[%s778_s4 + $0x18] sm:$0xff] %v544_v24  }
 0x109   :  { %572 = vst [vmem:[%s778_s4 + $0x38] sm:$0xff] %v564_v25  }
 0x10a   :  { %567 = vst [vmem:[%s778_s4 + $0x10] sm:$0xff] %v539_v26   ;;  %571 = vst [vmem:[%s778_s4 + $0x30] sm:$0xff] %v559_v16  }

// kernel: _lambda_.42
= control target key start
LH: loop header
LB: loop body
LE: loop exit
PB: predicated region body
PF: predicated region fallthrough
CT: control target
= control target key end

     0   :  { %s740_s1 = inlined_call_operand.vmem [shape: bf16[128,128], index: 1, kind: input, shape index: {}]   ;;  %s741_s0 = inlined_call_operand.vmem [shape: bf16[128,128], index: 0, kind: input, shape index: {}]   ;;  %s742_s2 = inlined_call_operand.vmem [shape: f32[1,128], index: 2, kind: input, shape index: {}]   ;;  %s743_s3 = inlined_call_operand.vmem [shape: f32[1,128], index: 3, kind: input, shape index: {}]   ;;  %s744_s4 = inlined_call_operand.vmem [shape: bf16[128,128], index: 4, kind: output, shape index: {}]  }
   0x1   :  { %v621_v0 = vld [vmem:[%s740_s1] sm:$0xff]   ;;  %v622_v1 = vld [vmem:[%s740_s1 + $0x8] sm:$0xff]   ;;  %v623_v2 = vld [vmem:[%s740_s1 + $0x10] sm:$0xff]  }
   0x2   :  { %573 = vmatprep.subr.bf16.mxu0 %v621_v0  ;;  %605 = vmatprep.subr.bf16.mxu1 %v621_v0  ;;  %v624_v3 = vld [vmem:[%s740_s1 + $0x18] sm:$0xff]   ;;  %v629_v4 = vld [vmem:[%s741_s0] sm:$0xff]   ;;  %v626_v7 = vld [vmem:[%s740_s1 + $0x28] sm:$0xff]  }
   0x3   :  { %574 = vmatpush3.bf16.msra.mxu0 %v621_v0  ;;  %613 = vmatpush3.bf16.msra.mxu1 %v621_v0  ;;  %v630_v5 = vld [vmem:[%s741_s0 + $0x20] sm:$0xff]   ;;  %v627_v8 = vld [vmem:[%s740_s1 + $0x30] sm:$0xff]   ;;  %v628_v9 = vld [vmem:[%s740_s1 + $0x38] sm:$0xff]  }
   0x4   :  { %575 = vmatprep.subr.bf16.mxu0 %v622_v1  ;;  %606 = vmatprep.subr.bf16.mxu1 %v622_v1  ;;  %v625_v6 = vld [vmem:[%s740_s1 + $0x20] sm:$0xff]   ;;  %v631_v10 = vld [vmem:[%s741_s0 + $0x8] sm:$0xff]   ;;  %v633_v12 = vld [vmem:[%s741_s0 + $0x10] sm:$0xff]  }
   0x5   :  { %589 = vmatprep.mubr.bf16.mxu0 %v629_v4  ;;  %597 = vmatprep.mubr.bf16.mxu1 %v630_v5  ;;  %v632_v11 = vld [vmem:[%s741_s0 + $0x28] sm:$0xff]   ;;  %v634_v13 = vld [vmem:[%s741_s0 + $0x30] sm:$0xff]   ;;  %v635_v14 = vld [vmem:[%s741_s0 + $0x18] sm:$0xff]  }
   0x6   :  { %v636_v15 = vld [vmem:[%s741_s0 + $0x38] sm:$0xff]   ;;  %v476_v16 = vld [vmem:[%s742_s2] ss:$0 sm:$0xff] }
   0x7   :  { %576 = vmatpush3.bf16.msra.mxu0 %v622_v1  ;;  %614 = vmatpush3.bf16.msra.mxu1 %v622_v1  ;;  %v477_v23 = vld [vmem:[%s743_s3] ss:$0 sm:$0xff] }
   0x8   :  { %577 = vmatprep.subr.bf16.mxu0 %v623_v2  ;;  %607 = vmatprep.subr.bf16.mxu1 %v623_v2 }
   0xb   :  { %578 = vmatpush3.bf16.msra.mxu0 %v623_v2  ;;  %615 = vmatpush3.bf16.msra.mxu1 %v623_v2 }
   0xc   :  { %579 = vmatprep.subr.bf16.mxu0 %v624_v3  ;;  %608 = vmatprep.subr.bf16.mxu1 %v624_v3 }
   0xf   :  { %580 = vmatpush3.bf16.msra.mxu0 %v624_v3  ;;  %616 = vmatpush3.bf16.msra.mxu1 %v624_v3 }
  0x10   :  { %581 = vmatprep.subr.bf16.mxu0 %v625_v6  ;;  %609 = vmatprep.subr.bf16.mxu1 %v625_v6 }
  0x13   :  { %582 = vmatpush3.bf16.msra.mxu0 %v625_v6  ;;  %617 = vmatpush3.bf16.msra.mxu1 %v625_v6 }
  0x14   :  { %583 = vmatprep.subr.bf16.mxu0 %v626_v7  ;;  %610 = vmatprep.subr.bf16.mxu1 %v626_v7 }
  0x17   :  { %584 = vmatpush3.bf16.msra.mxu0 %v626_v7  ;;  %618 = vmatpush3.bf16.msra.mxu1 %v626_v7 }
  0x18   :  { %585 = vmatprep.subr.bf16.mxu0 %v627_v8  ;;  %611 = vmatprep.subr.bf16.mxu1 %v627_v8 }
  0x1b   :  { %586 = vmatpush3.bf16.msra.mxu0 %v627_v8  ;;  %619 = vmatpush3.bf16.msra.mxu1 %v627_v8 }
  0x1c   :  { %587 = vmatprep.subr.bf16.mxu0 %v628_v9  ;;  %612 = vmatprep.subr.bf16.mxu1 %v628_v9 }
  0x1f   :  { %588 = vmatpush3.bf16.msra.mxu0 %v628_v9  ;;  %620 = vmatpush3.bf16.msra.mxu1 %v628_v9 }
  0x22   :  { %590 = vmatmul.mubr.bf16.vlgmr.msra.gmra.mrb[0].mxu0 %v631_v10  ;;  %598 = vmatmul.mubr.bf16.vlgmr.msra.gmra.mrb[0].mxu1 %v632_v11 }
  0x23   :  { %593 = vmatprep.mubr.bf16.mxu0 %v633_v12  ;;  %601 = vmatprep.mubr.bf16.mxu1 %v634_v13 }
  0x2a   :  { %594 = vmatmul.mubr.bf16.gmra.mrb[4].mxu0 %v635_v14  ;;  %602 = vmatmul.mubr.bf16.gmra.mrb[4].mxu1 %v636_v15 }
  0xf5   :  { %v591_v17 = vpop.f32.mrb[0].mxu0  ;;  %v599_v18 = vpop.f32.mrb[0].mxu1 }
  0xf6   :  { %v339_v19 = vmul.f32 %v591_v17, %v476_v16  ;;  %v347_v20 = vmul.f32 %v599_v18, %v476_v16  ;;  %v216_v21 = vpop.f32.mrb[1].mxu0  ;;  %v248_v22 = vpop.f32.mrb[1].mxu1 }
  0xf7   :  { %v337_v24 = vmul.f32 %v476_v16, %v216_v21  ;;  %v345_v25 = vmul.f32 %v476_v16, %v248_v22  ;;  %v592_v26 = vpop.f32.mrb[2].mxu0  ;;  %v600_v27 = vpop.f32.mrb[2].mxu1 }
  0xf8   :  { %v340_v28 = vmul.f32 %v592_v26, %v476_v16  ;;  %v348_v29 = vmul.f32 %v600_v27, %v476_v16  ;;  %v219_v30 = vpop.f32.mrb[3].mxu0  ;;  %v251_v31 = vpop.f32.mrb[3].mxu1  ;;  %v362_v34 = vadd.f32 %v477_v23, %v339_v19  ;;  %v370_v35 = vadd.f32 %v477_v23, %v347_v20 }
  0xf9   :  { %v338_v32 = vmul.f32 %v476_v16, %v219_v30  ;;  %v346_v33 = vmul.f32 %v476_v16, %v251_v31  ;;  %v360_v38 = vadd.f32 %v477_v23, %v337_v24  ;;  %v368_v39 = vadd.f32 %v477_v23, %v345_v25 }
  0xfa   :  { %v363_v36 = vadd.f32 %v477_v23, %v340_v28  ;;  %v371_v37 = vadd.f32 %v477_v23, %v348_v29 }
  0xfb   :  { %v361_v40 = vadd.f32 %v477_v23, %v338_v32  ;;  %v369_v41 = vadd.f32 %v477_v23, %v346_v33 }
  0xfc   :  { %v518_v42 = vpack.c.bf16 %v363_v36, %v362_v34  ;;  %v538_v43 = vpack.c.bf16 %v371_v37, %v370_v35 }
  0xfd   :  { %v513_v44 = vpack.c.bf16 %v361_v40, %v360_v38  ;;  %v533_v45 = vpack.c.bf16 %v369_v41, %v368_v39  ;;  %v595_v46 = vpop.f32.mrb[4].mxu0  ;;  %v603_v47 = vpop.f32.mrb[4].mxu1 }
  0xfe   :  { %550 = vst [vmem:[%s744_s4 + $0x8] sm:$0xff] %v518_v42   ;;  %554 = vst [vmem:[%s744_s4 + $0x28] sm:$0xff] %v538_v43   ;;  %v343_v48 = vmul.f32 %v595_v46, %v476_v16  ;;  %v351_v49 = vmul.f32 %v603_v47, %v476_v16  ;;  %v232_v50 = vpop.f32.mrb[5].mxu0  ;;  %v264_v51 = vpop.f32.mrb[5].mxu1 }
  0xff   :  { %514 = vst [vmem:[%s744_s4] sm:$0xff] %v513_v44   ;;  %553 = vst [vmem:[%s744_s4 + $0x20] sm:$0xff] %v533_v45   ;;  %v341_v52 = vmul.f32 %v476_v16, %v232_v50  ;;  %v349_v53 = vmul.f32 %v476_v16, %v264_v51  ;;  %v596_v54 = vpop.f32.mrb[6].mxu0  ;;  %v604_v55 = vpop.f32.mrb[6].mxu1 }
 0x100   :  { %v344_v56 = vmul.f32 %v596_v54, %v476_v16  ;;  %v352_v57 = vmul.f32 %v604_v55, %v476_v16  ;;  %v235_v58 = vpop.f32.mrb[7].mxu0  ;;  %v267_v59 = vpop.f32.mrb[7].mxu1  ;;  %v366_v62 = vadd.f32 %v477_v23, %v343_v48  ;;  %v374_v63 = vadd.f32 %v477_v23, %v351_v49 }
 0x101   :  { %v342_v60 = vmul.f32 %v476_v16, %v235_v58  ;;  %v350_v61 = vmul.f32 %v476_v16, %v267_v59  ;;  %v364_v2 = vadd.f32 %v477_v23, %v341_v52  ;;  %v372_v3 = vadd.f32 %v477_v23, %v349_v53 }
 0x102   :  { %v367_v0 = vadd.f32 %v477_v23, %v344_v56  ;;  %v375_v1 = vadd.f32 %v477_v23, %v352_v57 }
 0x103   :  { %v365_v4 = vadd.f32 %v477_v23, %v342_v60  ;;  %v373_v5 = vadd.f32 %v477_v23, %v350_v61 }
 0x104   :  { %v528_v6 = vpack.c.bf16 %v367_v0, %v366_v62  ;;  %v548_v7 = vpack.c.bf16 %v375_v1, %v374_v63 }
 0x105   :  { %v523_v8 = vpack.c.bf16 %v365_v4, %v364_v2  ;;  %v543_v9 = vpack.c.bf16 %v373_v5, %v372_v3 }
 0x106   :  { %552 = vst [vmem:[%s744_s4 + $0x18] sm:$0xff] %v528_v6   ;;  %556 = vst [vmem:[%s744_s4 + $0x38] sm:$0xff] %v548_v7  }
 0x107   :  { %551 = vst [vmem:[%s744_s4 + $0x10] sm:$0xff] %v523_v8   ;;  %555 = vst [vmem:[%s744_s4 + $0x30] sm:$0xff] %v543_v9  }

// kernel: _lambda_.43
= control target key start
LH: loop header
LB: loop body
LE: loop exit
PB: predicated region body
PF: predicated region fallthrough
CT: control target
= control target key end

     0   :  { %s758_s20 = smov 0   ;;  %s760_s21 = smov 0   ;;  %s815_s0 = inlined_call_operand.<no memory space> [shape: f32[1,1], index: 0, kind: input, shape index: {}]   ;;  %s816_s1 = inlined_call_operand.vmem [shape: bf16[2,4,1], index: 1, kind: input, shape index: {}]   ;;  %s817_s2 = inlined_call_operand.vmem [shape: bf16[2,4,1], index: 2, kind: input, shape index: {}]   ;;  %s818_s3 = inlined_call_operand.vmem [shape: bf16[2,4,8], index: 3, kind: input, shape index: {}]   ;;  %s819_s4 = inlined_call_operand.vmem [shape: bf16[2,4,8], index: 4, kind: input, shape index: {}]   ;;  %s820_s5 = inlined_call_operand.vmem [shape: bf16[2,4,8], index: 5, kind: output, shape index: {}]  }
   0x1   :  { %10 = sst [smem:[#allocation5]] %s815_s0  ;;  %s762_s22 = smov 0  }
   0x2 LB: > { %s35_s0 = sadd.s32 1, %s715_s21  ;;  %p635_p0 = scmp.ge.s32.totalorder %s719_s22, 1  ;;  %s719_s22 = sphi %s762_s22, %s16_s22   ;;  %s715_s21 = sphi %s760_s21, %s822_s21   ;;  %s711_s20 = sphi %s758_s20, %s821_s20  }
   0x3   : > { %p37_p1 = scmp.ge.s32.totalorder %s35_s0, 2  ;;  %p255_p2 = scmp.lt.s32.totalorder %s719_s22, 3 }
   0x5   : > { %s824_s0 = smov (%p37_p1, %s35_s0), 0  ;;  %p256_p3 = pnand %p635_p0, %p255_p2 }
   0x6   : > { %vm351_vm0 = vcmask (!%p256_p3), 60416   ;;  %p308_p4 = scmp.lt.s32.totalorder (!%p256_p3), %s711_s20, 1  ;;  %v721_v0 = vmov (!%p256_p3), 0.0   ;;  %vm722_vm1 = vmmov (!%p256_p3), 0   ;;  %vm355_vm2 = vcmask (!%p256_p3), 7168   ;;  %s493_s8 = sld [smem:[#allocation5]] (!%p256_p3) }
   0x7   : > { %259 = sbr.rel (%p256_p3) target bundleno = 827 (0x33b), region = 40  ;;  %352 = vst.msk [vmem:[#allocation4] sm:$0xf] (!%p256_p3), %vm351_vm0, %v721_v0  ;;  %649 = vmatprep.subr.bf16.mxu0 (!%p256_p3), %v721_v0  ;;  %651 = vmatprep.mubr.msk.bf16.mxu0 (!%p256_p3), %vm722_vm1, %v721_v0  ;;  %vm348_vm3 = vcmask (!%p256_p3), 3072   ;;  %v723_v4 = vmov (!%p256_p3), -inf   ;;  %vm403_vm4 = vcmask (!%p256_p3), 27648  }
   0x8   : > { %655 = vmatprep.subr.bf16.mxu1 (!%p256_p3), %v721_v0  ;;  %657 = vmatprep.mubr.msk.bf16.mxu1 (!%p256_p3), %vm722_vm1, %v721_v0  ;;  %349 = vst.msk [vmem:[#allocation2] sm:$0xf] (!%p256_p3), %vm348_vm3, %v723_v4  ;;  %350 = vst.msk [vmem:[#allocation3] sm:$0xf] (!%p256_p3), %vm348_vm3, %v721_v0  ;;  %v724_v10 = vmov (!%p256_p3), 0   ;;  %vm440_vm5 = vcmask (!%p256_p3), 1041408  }
   0x9   : > { %689 = vset.pattern.permute.xlu0 (!%p256_p3), %v724_v10  ;;  %690 = vset.pattern.permute.xlu1 (!%p256_p3), %v724_v10  ;;  %vm436_vm6 = vcmask (!%p256_p3), 31744   ;;  %vm507_vm7 = vcmask (!%p256_p3), 58368  }
   0xc   : > { %v501_v41 = vstv (!%p256_p3), %s493_s8 }
   0xe   : > { %s826_s20 = smov (!%p308_p4, %s711_s20), 1  ;;  %v427_v31 = vld [vmem:[#allocation4] sm:$0xf] }
   0xf   : > { %s777_s23 = sshll.u32 %s826_s20, 1  ;;  %v402_v11 = vld [vmem:[#allocation2] sm:$0xf]  ;;  %v419_v25 = vld [vmem:[#allocation3] sm:$0xf] }
  0x10   : > { %s321_s26 = scalar_lea.vmem %s817_s2, %s777_s23  ;;  %s314_s29 = scalar_lea.vmem %s816_s1, %s777_s23 }
  0x11   : > { %v354_v1 = vld [vmem:[%s321_s26] sm:$0x3]  ;;  %s328_s7 = scalar_lea.vmem %s818_s3, %s777_s23  ;;  %s335_s11 = scalar_lea.vmem %s819_s4, %s777_s23 }
  0x12   : > { %v360_v2 = vsel %vm355_vm2, %v354_v1, 0  ;;  %v353_v3 = vld [vmem:[%s314_s29] sm:$0x3]  ;;  %s342_s14 = scalar_lea.vmem %s820_s5, %s777_s23 }
  0x13   : > { %650 = vmatpush3.bf16.xpose.msra.mxu0 %v360_v2  ;;  %v435_v15 = vld [vmem:[%s328_s7] sm:$0x3] }
  0x14   : > { %v442_v16 = vsel %vm440_vm5, %v435_v15, 0  ;;  %v503_v39 = vld [vmem:[%s335_s11] sm:$0x3] }
  0x15   : > { %656 = vmatpush3.bf16.msra.mxu1 %v442_v16  ;;  %v504_v43 = vunpack.c.l.bf16 %v503_v39 }
  0x1a   : > { %652 = vmatmul.mubr.msk.bf16.vlgmr.msra.gmra.mrb[0].mxu0 %vm355_vm2, %v353_v3 }
  0xed   : > { %v396_v5 = vpop.f32.mrb[0].mxu0 }
  0xee   : > { %v653_v6 = vpop.f32.mrb[1].mxu0  ;;  %v404_v7 = vsel %vm403_vm4, %v396_v5, -inf }
  0xef   : > { %405 = vmax.xlane.f32.xlu0 %v404_v7  ;;  %v399_v8 = vpop.f32.mrb[2].mxu0 }
  0xf0   : > { %v654_v9 = vpop.f32.mrb[3].mxu0 }
 0x17c   : > { %v406_v12 = vpop.xlane.xlu0 %405 }
 0x17d   : > { %v407_v13 = vmax.f32 %v402_v11, %v406_v12 }
 0x17f   : > { %v408_v14 = vsub.f32 %v402_v11, %v407_v13  ;;  %487 = vst.msk [vmem:[#allocation2] sm:$0xf] %vm348_vm3, %v407_v13  ;;  %413 = vperm.xlu0 %689, %v407_v13  }
 0x181   : > { %v409_v23 = vmul.f32 1.442695, %v408_v14 }
 0x1fe   : > { %v414_v17 = vpop.permute.xlu0 %413 }
 0x1ff   : > { %v416_v18 = vsub.f32 %v396_v5, %v414_v17 }
 0x201   : > { %v417_v19 = vmul.f32 1.442695, %v416_v18 }
 0x203   : > { %691 = vpow2.f32 %v417_v19 }
 0x204   : > { %693 = vpow2.f32 %v409_v23 }
 0x20d   : > { %v692_v20 = vpop.eup %691 }
 0x20e   : > { %v421_v21 = vsel %vm403_vm4, %v692_v20, 0.0  ;;  %v434_v22 = vpack.c.bf16 %v692_v20, %v692_v20  ;;  %v694_v24 = vpop.eup %693 }
 0x20f   : > { %422 = vadd.xlane.f32.xlu1 %v421_v21  ;;  %v420_v26 = vmul.f32 %v694_v24, %v419_v25 }
 0x210   : > { %658 = vmatmul.mubr.msk.bf16.vlgmr.msra.gmra.mrb[0].mxu1 %vm436_vm6, %v434_v22 }
 0x220   : > { %430 = vperm.xlu1 %690, %v694_v24  }
 0x29c   : > { %v423_v27 = vpop.xlane.xlu1 %422 }
 0x29d   : > { %v424_v28 = vadd.f32 %v423_v27, %v420_v26 }
 0x29f   : > { %426 = vst.msk [vmem:[#allocation3] sm:$0xf] %vm348_vm3, %v424_v28 }
 0x2a0   : > { %v431_v32 = vpop.permute.xlu1 %430 }
 0x2a1   : > { %v433_v33 = vmul.f32 %v431_v32, %v427_v31 }
 0x2a6   : > { %v491_v29 = vld [vmem:[#allocation3] sm:$0xf] }
 0x2a7   : > { %695 = vrcp.f32 %v491_v29 }
 0x2b1   : > { %v696_v30 = vpop.eup %695 }
 0x2b2   : > { %497 = vperm.xlu1 %690, %v696_v30  }
 0x2e3   : > { %v478_v34 = vpop.f32.mrb[0].mxu1 }
 0x2e4   : > { %v484_v35 = vadd.f32 %v478_v34, %v433_v33  ;;  %v659_v36 = vpop.f32.mrb[1].mxu1 }
 0x2e5   : > { %v481_v37 = vpop.f32.mrb[2].mxu1 }
 0x2e6   : > { %486 = vst.msk [vmem:[#allocation4] sm:$0xf] %vm351_vm0, %v484_v35  ;;  %v660_v38 = vpop.f32.mrb[3].mxu1 }
 0x2ed   : > { %v494_v40 = vld [vmem:[#allocation4] sm:$0xf] }
 0x331   : > { %v498_v42 = vpop.permute.xlu1 %497 }
 0x332   : > { %v500_v44 = vmul.f32 %v498_v42, %v494_v40 }
 0x334   : > { %v502_v45 = vmul.f32 %v501_v41, %v500_v44 }
 0x336   : > { %v505_v46 = vadd.f32 %v504_v43, %v502_v45 }
 0x338   : > { %v506_v47 = vpack.c.bf16 %v505_v46, %v505_v46 }
 0x33a   : > { %508 = vst.msk [vmem:[%s342_s14] sm:$0x3] %vm507_vm7, %v506_v47 }
 0x33b PF: > { %s16_s22 = sadd.s32 1, %s719_s22   ;;  %s821_s20 = smov %s715_s21 }
 0x33c   : > { %p13_p5 = scmp.ge.s32.totalorder %s16_s22, 4   ;;  %s822_s21 = smov %s824_s0 }
 0x33e   :  { %15 = sbr.rel (!%p13_p5) target bundleno = 2 (0x2), region = 87 }

// kernel: _lambda_.45
= control target key start
LH: loop header
LB: loop body
LE: loop exit
PB: predicated region body
PF: predicated region fallthrough
CT: control target
= control target key end

     0   :  { %s919_s1 = inlined_call_operand.vmem [shape: bf16[128,128], index: 1, kind: input, shape index: {}]   ;;  %s920_s0 = inlined_call_operand.vmem [shape: bf16[128,128], index: 0, kind: input, shape index: {}]   ;;  %s921_s4 = inlined_call_operand.vmem [shape: bf16[128,128], index: 4, kind: input, shape index: {}]   ;;  %s922_s2 = inlined_call_operand.vmem [shape: f32[1,128], index: 2, kind: input, shape index: {}]   ;;  %s923_s3 = inlined_call_operand.vmem [shape: f32[1,128], index: 3, kind: input, shape index: {}]   ;;  %s924_s5 = inlined_call_operand.vmem [shape: bf16[128,128], index: 5, kind: output, shape index: {}]  }
   0x1   :  { %v711_v0 = vld [vmem:[%s919_s1] sm:$0xff]   ;;  %v712_v1 = vld [vmem:[%s919_s1 + $0x8] sm:$0xff]   ;;  %v713_v2 = vld [vmem:[%s919_s1 + $0x10] sm:$0xff]  }
   0x2   :  { %663 = vmatprep.subr.bf16.mxu0 %v711_v0  ;;  %695 = vmatprep.subr.bf16.mxu1 %v711_v0  ;;  %v714_v3 = vld [vmem:[%s919_s1 + $0x18] sm:$0xff]   ;;  %v719_v4 = vld [vmem:[%s920_s0] sm:$0xff]   ;;  %v716_v7 = vld [vmem:[%s919_s1 + $0x28] sm:$0xff]  }
   0x3   :  { %664 = vmatpush3.bf16.msra.mxu0 %v711_v0  ;;  %703 = vmatpush3.bf16.msra.mxu1 %v711_v0  ;;  %v720_v5 = vld [vmem:[%s920_s0 + $0x20] sm:$0xff]   ;;  %v717_v8 = vld [vmem:[%s919_s1 + $0x30] sm:$0xff]   ;;  %v718_v9 = vld [vmem:[%s919_s1 + $0x38] sm:$0xff]  }
   0x4   :  { %665 = vmatprep.subr.bf16.mxu0 %v712_v1  ;;  %696 = vmatprep.subr.bf16.mxu1 %v712_v1  ;;  %v715_v6 = vld [vmem:[%s919_s1 + $0x20] sm:$0xff]   ;;  %v721_v10 = vld [vmem:[%s920_s0 + $0x8] sm:$0xff]   ;;  %v723_v12 = vld [vmem:[%s920_s0 + $0x10] sm:$0xff]  }
   0x5   :  { %679 = vmatprep.mubr.bf16.mxu0 %v719_v4  ;;  %687 = vmatprep.mubr.bf16.mxu1 %v720_v5  ;;  %v722_v11 = vld [vmem:[%s920_s0 + $0x28] sm:$0xff]   ;;  %v724_v13 = vld [vmem:[%s920_s0 + $0x30] sm:$0xff]   ;;  %v725_v14 = vld [vmem:[%s920_s0 + $0x18] sm:$0xff]  }
   0x6   :  { %v726_v15 = vld [vmem:[%s920_s0 + $0x38] sm:$0xff]   ;;  %v633_v16 = vld [vmem:[%s921_s4 + $0x8] sm:$0xff]   ;;  %v562_v18 = vld [vmem:[%s921_s4] sm:$0xff]  }
   0x7   :  { %666 = vmatpush3.bf16.msra.mxu0 %v712_v1  ;;  %704 = vmatpush3.bf16.msra.mxu1 %v712_v1  ;;  %v637_v17 = vld [vmem:[%s921_s4 + $0x28] sm:$0xff]   ;;  %v636_v19 = vld [vmem:[%s921_s4 + $0x20] sm:$0xff]   ;;  %v825_v21 = vld [vmem:[%s921_s4 + $0x18] sm:$0xff]   ;;  %v567_v23 = vunpack.c.l.bf16 %v633_v16  ;;  %v563_v25 = vunpack.c.l.bf16 %v562_v18  ;;  %v568_v32 = vunpack.c.h.bf16 %v633_v16  ;;  %v564_v34 = vunpack.c.h.bf16 %v562_v18 }
   0x8   :  { %667 = vmatprep.subr.bf16.mxu0 %v713_v2  ;;  %697 = vmatprep.subr.bf16.mxu1 %v713_v2  ;;  %v820_v20 = vld [vmem:[%s922_s2] ss:$0 sm:$0xff]  ;;  %v830_v22 = vld [vmem:[%s921_s4 + $0x38] sm:$0xff]   ;;  %v583_v24 = vunpack.c.l.bf16 %v637_v17  ;;  %v579_v26 = vunpack.c.l.bf16 %v636_v19  ;;  %v835_v27 = vld [vmem:[%s921_s4 + $0x10] sm:$0xff]   ;;  %v584_v33 = vunpack.c.h.bf16 %v637_v17  ;;  %v580_v35 = vunpack.c.h.bf16 %v636_v19 }
   0x9   :  { %v840_v28 = vld [vmem:[%s921_s4 + $0x30] sm:$0xff]   ;;  %v845_v30 = vld [vmem:[%s923_s3] ss:$0 sm:$0xff]  ;;  %v575_v40 = vunpack.c.l.bf16 %v825_v21  ;;  %v591_v41 = vunpack.c.l.bf16 %v830_v22  ;;  %v571_v46 = vunpack.c.l.bf16 %v835_v27  ;;  %v576_v60 = vunpack.c.h.bf16 %v825_v21 }
   0xa   :  { %v587_v47 = vunpack.c.l.bf16 %v840_v28  ;;  %v592_v61 = vunpack.c.h.bf16 %v830_v22  ;;  %v572_v0 = vunpack.c.h.bf16 %v835_v27  ;;  %v588_v1 = vunpack.c.h.bf16 %v840_v28 }
   0xb   :  { %668 = vmatpush3.bf16.msra.mxu0 %v713_v2  ;;  %705 = vmatpush3.bf16.msra.mxu1 %v713_v2 }
   0xc   :  { %669 = vmatprep.subr.bf16.mxu0 %v714_v3  ;;  %698 = vmatprep.subr.bf16.mxu1 %v714_v3 }
   0xf   :  { %670 = vmatpush3.bf16.msra.mxu0 %v714_v3  ;;  %706 = vmatpush3.bf16.msra.mxu1 %v714_v3 }
  0x10   :  { %671 = vmatprep.subr.bf16.mxu0 %v715_v6  ;;  %699 = vmatprep.subr.bf16.mxu1 %v715_v6 }
  0x13   :  { %672 = vmatpush3.bf16.msra.mxu0 %v715_v6  ;;  %707 = vmatpush3.bf16.msra.mxu1 %v715_v6 }
  0x14   :  { %673 = vmatprep.subr.bf16.mxu0 %v716_v7  ;;  %700 = vmatprep.subr.bf16.mxu1 %v716_v7 }
  0x17   :  { %674 = vmatpush3.bf16.msra.mxu0 %v716_v7  ;;  %708 = vmatpush3.bf16.msra.mxu1 %v716_v7 }
  0x18   :  { %675 = vmatprep.subr.bf16.mxu0 %v717_v8  ;;  %701 = vmatprep.subr.bf16.mxu1 %v717_v8 }
  0x1b   :  { %676 = vmatpush3.bf16.msra.mxu0 %v717_v8  ;;  %709 = vmatpush3.bf16.msra.mxu1 %v717_v8 }
  0x1c   :  { %677 = vmatprep.subr.bf16.mxu0 %v718_v9  ;;  %702 = vmatprep.subr.bf16.mxu1 %v718_v9 }
  0x1f   :  { %678 = vmatpush3.bf16.msra.mxu0 %v718_v9  ;;  %710 = vmatpush3.bf16.msra.mxu1 %v718_v9 }
  0x22   :  { %680 = vmatmul.mubr.bf16.vlgmr.msra.gmra.mrb[0].mxu0 %v721_v10  ;;  %688 = vmatmul.mubr.bf16.vlgmr.msra.gmra.mrb[0].mxu1 %v722_v11 }
  0x23   :  { %683 = vmatprep.mubr.bf16.mxu0 %v723_v12  ;;  %691 = vmatprep.mubr.bf16.mxu1 %v724_v13 }
  0x2a   :  { %684 = vmatmul.mubr.bf16.gmra.mrb[4].mxu0 %v725_v14  ;;  %692 = vmatmul.mubr.bf16.gmra.mrb[4].mxu1 %v726_v15 }
  0xf5   :  { %v681_v29 = vpop.f32.mrb[0].mxu0  ;;  %v689_v31 = vpop.f32.mrb[0].mxu1 }
  0xf6   :  { %v342_v36 = vmul.f32 %v681_v29, %v820_v20  ;;  %v350_v37 = vmul.f32 %v689_v31, %v820_v20  ;;  %v219_v38 = vpop.f32.mrb[1].mxu0  ;;  %v251_v39 = vpop.f32.mrb[1].mxu1 }
  0xf7   :  { %v340_v42 = vmul.f32 %v820_v20, %v219_v38  ;;  %v348_v43 = vmul.f32 %v820_v20, %v251_v39  ;;  %v682_v44 = vpop.f32.mrb[2].mxu0  ;;  %v690_v45 = vpop.f32.mrb[2].mxu1 }
  0xf8   :  { %v365_v48 = vadd.f32 %v845_v30, %v342_v36  ;;  %v373_v49 = vadd.f32 %v845_v30, %v350_v37  ;;  %v343_v50 = vmul.f32 %v682_v44, %v820_v20  ;;  %v351_v51 = vmul.f32 %v690_v45, %v820_v20  ;;  %v222_v52 = vpop.f32.mrb[3].mxu0  ;;  %v254_v53 = vpop.f32.mrb[3].mxu1 }
  0xf9   :  { %v363_v54 = vadd.f32 %v845_v30, %v340_v42  ;;  %v371_v55 = vadd.f32 %v845_v30, %v348_v43  ;;  %v341_v56 = vmul.f32 %v820_v20, %v222_v52  ;;  %v349_v57 = vmul.f32 %v820_v20, %v254_v53 }
  0xfa   :  { %v366_v58 = vadd.f32 %v845_v30, %v343_v50  ;;  %v374_v59 = vadd.f32 %v845_v30, %v351_v51  ;;  %v413_v2 = vadd.f32 %v567_v23, %v365_v48  ;;  %v421_v3 = vadd.f32 %v583_v24, %v373_v49 }
  0xfb   :  { %v364_v62 = vadd.f32 %v845_v30, %v341_v56  ;;  %v372_v63 = vadd.f32 %v845_v30, %v349_v57  ;;  %v411_v6 = vadd.f32 %v563_v25, %v363_v54  ;;  %v419_v7 = vadd.f32 %v579_v26, %v371_v55 }
  0xfc   :  { %v414_v4 = vadd.f32 %v568_v32, %v366_v58  ;;  %v422_v5 = vadd.f32 %v584_v33, %v374_v59 }
  0xfd   :  { %v412_v8 = vadd.f32 %v564_v34, %v364_v62  ;;  %v420_v9 = vadd.f32 %v580_v35, %v372_v63  ;;  %v685_v10 = vpop.f32.mrb[4].mxu0  ;;  %v693_v11 = vpop.f32.mrb[4].mxu1 }
  0xfe   :  { %v601_v12 = vpack.c.bf16 %v414_v4, %v413_v2  ;;  %v621_v13 = vpack.c.bf16 %v422_v5, %v421_v3  ;;  %v346_v14 = vmul.f32 %v685_v10, %v820_v20  ;;  %v354_v15 = vmul.f32 %v693_v11, %v820_v20  ;;  %v235_v16 = vpop.f32.mrb[5].mxu0  ;;  %v267_v17 = vpop.f32.mrb[5].mxu1 }
  0xff   :  { %v596_v18 = vpack.c.bf16 %v412_v8, %v411_v6  ;;  %v616_v19 = vpack.c.bf16 %v420_v9, %v419_v7  ;;  %v344_v23 = vmul.f32 %v820_v20, %v235_v16  ;;  %v352_v24 = vmul.f32 %v820_v20, %v267_v17  ;;  %v686_v25 = vpop.f32.mrb[6].mxu0  ;;  %v694_v26 = vpop.f32.mrb[6].mxu1 }
 0x100   :  { %640 = vst [vmem:[%s924_s5 + $0x8] sm:$0xff] %v601_v12   ;;  %644 = vst [vmem:[%s924_s5 + $0x28] sm:$0xff] %v621_v13   ;;  %v369_v29 = vadd.f32 %v845_v30, %v346_v14  ;;  %v377_v31 = vadd.f32 %v845_v30, %v354_v15  ;;  %v347_v32 = vmul.f32 %v686_v25, %v820_v20  ;;  %v238_v34 = vpop.f32.mrb[7].mxu0  ;;  %v270_v35 = vpop.f32.mrb[7].mxu1 }
 0x101   :  { %v355_v33 = vmul.f32 %v694_v26, %v820_v20  ;;  %597 = vst [vmem:[%s924_s5] sm:$0xff] %v596_v18   ;;  %643 = vst [vmem:[%s924_s5 + $0x20] sm:$0xff] %v616_v19   ;;  %v367_v36 = vadd.f32 %v845_v30, %v344_v23  ;;  %v375_v37 = vadd.f32 %v845_v30, %v352_v24 }
 0x102   :  { %v345_v38 = vmul.f32 %v820_v20, %v238_v34  ;;  %v353_v39 = vmul.f32 %v820_v20, %v270_v35  ;;  %v370_v42 = vadd.f32 %v845_v30, %v347_v32  ;;  %v417_v48 = vadd.f32 %v575_v40, %v369_v29 }
 0x103   :  { %v378_v43 = vadd.f32 %v845_v30, %v355_v33  ;;  %v425_v49 = vadd.f32 %v591_v41, %v377_v31  ;;  %v415_v52 = vadd.f32 %v571_v46, %v367_v36  ;;  %v423_v20 = vadd.f32 %v587_v47, %v375_v37 }
 0x104   :  { %v368_v44 = vadd.f32 %v845_v30, %v345_v38  ;;  %v376_v45 = vadd.f32 %v845_v30, %v353_v39  ;;  %v418_v50 = vadd.f32 %v576_v60, %v370_v42 }
 0x105   :  { %v426_v51 = vadd.f32 %v592_v61, %v378_v43 }
 0x106   :  { %v416_v53 = vadd.f32 %v572_v0, %v368_v44  ;;  %v424_v54 = vadd.f32 %v588_v1, %v376_v45  ;;  %v611_v55 = vpack.c.bf16 %v418_v50, %v417_v48 }
 0x107   :  { %v631_v56 = vpack.c.bf16 %v426_v51, %v425_v49 }
 0x108   :  { %v606_v57 = vpack.c.bf16 %v416_v53, %v415_v52  ;;  %v626_v30 = vpack.c.bf16 %v424_v54, %v423_v20  ;;  %642 = vst [vmem:[%s924_s5 + $0x18] sm:$0xff] %v611_v55  }
 0x109   :  { %646 = vst [vmem:[%s924_s5 + $0x38] sm:$0xff] %v631_v56  }
 0x10a   :  { %641 = vst [vmem:[%s924_s5 + $0x10] sm:$0xff] %v606_v57   ;;  %645 = vst [vmem:[%s924_s5 + $0x30] sm:$0xff] %v626_v30  }

// kernel: _lambda_.47
= control target key start
LH: loop header
LB: loop body
LE: loop exit
PB: predicated region body
PF: predicated region fallthrough
CT: control target
= control target key end

     0   :  { %s399_s11 = smov 0   ;;  %s428_s0 = inlined_call_operand.<no memory space> [shape: f32[1,1], index: 0, kind: input, shape index: {}]   ;;  %s429_s1 = inlined_call_operand.vmem [shape: bf16[2,4,8], index: 1, kind: input, shape index: {}]   ;;  %s430_s2 = inlined_call_operand.vmem [shape: bf16[2,4,8], index: 2, kind: output, shape index: {}]  }
   0x1   :  { %7 = sst [smem:[#allocation2]] %s428_s0 }
   0x2 LB: > { %s329_s12 = sadd.s32 4294967295, %s377_s11   ;;  %p333_p0 = scmp.ge.s32.totalorder %s377_s11, 1  ;;  %s377_s11 = sphi %s399_s11, %s13_s11  }
   0x3   : > { %p112_p1 = scmp.lt.s32.totalorder %s377_s11, 3 }
   0x5   : > { %p113_p2 = pnand %p333_p0, %p112_p1 }
   0x6   : > { %p132_p3 = scmp.lt.s32.totalorder (!%p113_p2), %s329_s12, 1  ;;  %v379_v0 = vmov (!%p113_p2), 0.0   ;;  %vm380_vm0 = vmmov (!%p113_p2), 0   ;;  %vm162_vm1 = vcmask (!%p113_p2), 1041408   ;;  %vm158_vm2 = vcmask (!%p113_p2), 31744   ;;  %s268_s16 = sld [smem:[#allocation2]] (!%p113_p2) }
   0x7   : > { %116 = sbr.rel (%p113_p2) target bundleno = 1021 (0x3fd), region = 28  ;;  %344 = vmatprep.subr.bf16.mxu0 (!%p113_p2), %v379_v0  ;;  %346 = vmatprep.mubr.msk.bf16.mxu0 (!%p113_p2), %vm380_vm0, %v379_v0  ;;  %vm206_vm3 = vcmask (!%p113_p2), 64512   ;;  %vm274_vm4 = vcmask (!%p113_p2), 58368  }
   0x8   : > { %350 = vmatprep.subr.bf16.mxu1 (!%p113_p2), %v379_v0  ;;  %352 = vmatprep.mubr.msk.bf16.mxu1 (!%p113_p2), %vm380_vm0, %v379_v0 }
   0xc   : > { %v269_v22 = vstv (!%p113_p2), %s268_s16 }
   0xe   : > { %s432_s12 = smov (!%p132_p3, %s329_s12), 1 }
   0xf   : > { %s334_s0 = sshll.u32 %s432_s12, 1 }
  0x10   : > { %s135_s15 = scalar_lea.vmem %s429_s1, %s334_s0  ;;  %s139_s19 = scalar_lea.vmem %s430_s2, %s334_s0 }
  0x11   : > { %v141_v1 = vld [vmem:[%s135_s15] sm:$0x3] }
  0x12   : > { %142 = vxpose.xlu0.c.b16.start.end [1/1] (short) (narrow) %v141_v1, 16  ;;  %v164_v2 = vsel %vm162_vm1, %v141_v1, 0  ;;  %v271_v23 = vunpack.c.l.bf16 %v141_v1 }
  0x13   : > { %345 = vmatpush3.bf16.msra.mxu0 %v164_v2 }
  0x78   : > { %v150_v3 = vpop.trf.xlu0 }
  0x79   : > { %347 = vmatmul.mubr.msk.bf16.vlgmr.msra.gmra.mrb[0].mxu0 %vm158_vm2, %v150_v3 }
 0x14c   : > { %v200_v4 = vpop.f32.mrb[0].mxu0 }
 0x14d   : > { %v348_v5 = vpop.f32.mrb[1].mxu0  ;;  %v207_v6 = vsel %vm206_vm3, %v200_v4, -inf }
 0x14e   : > { %208 = vmax.xlane.f32.xlu0 %v207_v6  ;;  %v203_v7 = vpop.f32.mrb[2].mxu0 }
 0x14f   : > { %v349_v8 = vpop.f32.mrb[3].mxu0 }
 0x1db   : > { %v209_v9 = vpop.xlane.xlu0 %208 }
 0x1dc   : > { %v210_v10 = vsub.f32 %v209_v9, %v200_v4 }
 0x1de   : > { %v211_v11 = vsel %vm206_vm3, %v210_v10, -inf }
 0x1df   : > { %212 = vmax.xlane.f32.xlu1 %v211_v11 }
 0x26c   : > { %v213_v12 = vpop.xlane.xlu1 %212 }
 0x26d   : > { %v214_v13 = vsub.f32 %v210_v10, %v213_v12 }
 0x26f   : > { %v215_v14 = vmul.f32 1.442695, %v214_v13 }
 0x271   : > { %367 = vpow2.f32 %v215_v14 }
 0x27b   : > { %v368_v15 = vpop.eup %367 }
 0x27c   : > { %v217_v16 = vsel %vm206_vm3, %v368_v15, 0.0 }
 0x27d   : > { %218 = vadd.xlane.f32.xlu1 %v217_v16 }
 0x30a   : > { %v219_v17 = vpop.xlane.xlu1 %218 }
 0x30b   : > { %369 = vrcp.f32 %v219_v17 }
 0x315   : > { %v370_v18 = vpop.eup %369 }
 0x316   : > { %v221_v19 = vmul.f32 %v370_v18, %v368_v15 }
 0x318   : > { %v222_v20 = vpack.c.bf16 %v221_v19, %v221_v19 }
 0x31a   : > { %v226_v21 = vsel %vm206_vm3, %v222_v20, 0 }
 0x31b   : > { %351 = vmatpush3.bf16.xpose.msra.mxu1 %v226_v21 }
 0x322   : > { %353 = vmatmul.mubr.msk.bf16.vlgmr.msra.gmra.mrb[0].mxu1 %vm206_vm3, %v141_v1 }
 0x3f5   : > { %v262_v24 = vpop.f32.mrb[0].mxu1 }
 0x3f6   : > { %v270_v25 = vmul.f32 %v269_v22, %v262_v24  ;;  %v354_v26 = vpop.f32.mrb[1].mxu1 }
 0x3f7   : > { %v265_v27 = vpop.f32.mrb[2].mxu1 }
 0x3f8   : > { %v272_v28 = vadd.f32 %v271_v23, %v270_v25  ;;  %v355_v29 = vpop.f32.mrb[3].mxu1 }
 0x3fa   : > { %v273_v30 = vpack.c.bf16 %v272_v28, %v272_v28 }
 0x3fc   : > { %275 = vst.msk [vmem:[%s139_s19] sm:$0x3] %vm274_vm4, %v273_v30 }
 0x3fd PF: > { %s13_s11 = sadd.s32 1, %s377_s11  }
 0x3fe   : > { %p10_p4 = scmp.ge.s32.totalorder %s13_s11, 4  }
 0x400   :  { %12 = sbr.rel (!%p10_p4) target bundleno = 2 (0x2), region = 58 }

// kernel: _lambda_.51
= control target key start
LH: loop header
LB: loop body
LE: loop exit
PB: predicated region body
PF: predicated region fallthrough
CT: control target
= control target key end

     0   :  { %s319_s9 = smov 0   ;;  %s339_s0 = inlined_call_operand.vmem [shape: bf16[16,2], index: 0, kind: input, shape index: {}]   ;;  %s340_s1 = inlined_call_operand.vmem [shape: bf16[2,2,64], index: 1, kind: input, shape index: {}]   ;;  %s341_s2 = inlined_call_operand.vmem [shape: bf16[2,16,64], index: 2, kind: output, shape index: {}]  }
   0x1 LB: > { %s259_s10 = sadd.s32 4294967295, %s300_s9   ;;  %p263_p0 = scmp.ge.s32.totalorder %s300_s9, 1  ;;  %s300_s9 = sphi %s319_s9, %s12_s9  }
   0x2   : > { %p110_p1 = scmp.lt.s32.totalorder %s300_s9, 3 }
   0x4   : > { %p111_p2 = pnand %p263_p0, %p110_p1 }
   0x5   : > { %p130_p3 = scmp.lt.s32.totalorder (!%p111_p2), %s259_s10, 1  ;;  %v302_v0 = vmov (!%p111_p2), 0.0   ;;  %vm303_vm0 = vmmov (!%p111_p2), 0   ;;  %vm151_vm1 = vcmask (!%p111_p2), 1040384   ;;  %v293_v3 = vld [vmem:[%s339_s0] sm:$0xff] (!%p111_p2)   ;;  %vm147_vm2 = vcmask (!%p111_p2), 15360  }
   0x6   : > { %114 = sbr.rel (%p111_p2) target bundleno = 237 (0xed), region = 28  ;;  %277 = vmatprep.subr.bf16.mxu0 (!%p111_p2), %v302_v0  ;;  %279 = vmatprep.mubr.msk.bf16.mxu0 (!%p111_p2), %vm303_vm0, %v302_v0  ;;  %vm204_vm3 = vcmask (!%p111_p2), 519168  }
   0xd   : > { %s343_s10 = smov (!%p130_p3, %s259_s10), 1 }
   0xe   : > { %s132_s13 = scalar_lea.vmem %s340_s1, %s343_s10  ;;  %s272_s16 = sshll.u32 %s343_s10, 3 }
   0xf   : > { %v141_v1 = vld [vmem:[%s132_s13] sm:$0x1]  ;;  %s137_s19 = scalar_lea.vmem %s341_s2, %s272_s16 }
  0x10   : > { %v153_v2 = vsel %vm151_vm1, %v141_v1, 0 }
  0x11   : > { %278 = vmatpush3.bf16.msra.mxu0 %v153_v2 }
  0x14   : > { %280 = vmatmul.mubr.msk.bf16.vlgmr.msra.gmra.mrb[0].mxu0 %vm147_vm2, %v293_v3 }
  0xe7   : > { %v189_v4 = vpop.f32.mrb[0].mxu0 }
  0xe8   : > { %v273_v5 = vpack.c.bf16 %v189_v4, %v189_v4  ;;  %v281_v6 = vpop.f32.mrb[1].mxu0 }
  0xe9   : > { %v192_v7 = vpop.f32.mrb[2].mxu0 }
  0xea   : > { %205 = vst.msk [vmem:[%s137_s19] sm:$0xf] %vm204_vm3, %v273_v5  ;;  %v274_v8 = vpack.c.bf16 %v192_v7, %v192_v7  ;;  %v282_v9 = vpop.f32.mrb[3].mxu0 }
  0xec   : > { %206 = vst.msk [vmem:[%s137_s19 + $0x4] sm:$0xf] %vm204_vm3, %v274_v8 }
  0xed PF: > { %s12_s9 = sadd.s32 1, %s300_s9  }
  0xee   : > { %p9_p4 = scmp.ge.s32.totalorder %s12_s9, 4  }
  0xf0   :  { %11 = sbr.rel (!%p9_p4) target bundleno = 1 (0x1), region = 58 }

// kernel: _lambda_.50
= control target key start
LH: loop header
LB: loop body
LE: loop exit
PB: predicated region body
PF: predicated region fallthrough
CT: control target
= control target key end

     0   :  { %s1598_s15 = smov 0   ;;  %s1600_s16 = smov 0   ;;  %s1772_s0 = inlined_call_operand.vmem [shape: bf16[512,128], index: 0, kind: input, shape index: {}]   ;;  %s1773_s1 = inlined_call_operand.vmem [shape: bf16[128,128], index: 1, kind: input, shape index: {}]   ;;  %s1774_s2 = inlined_call_operand.vmem [shape: f32[1,128], index: 2, kind: input, shape index: {}]   ;;  %s1775_s3 = inlined_call_operand.vmem [shape: f32[1,128], index: 3, kind: input, shape index: {}]   ;;  %s1776_s4 = inlined_call_operand.vmem [shape: bf16[512,128], index: 4, kind: output, shape index: {}]  }
   0x1   :  { %s1602_s17 = smov 0  }
   0x2 LB: > { %s33_s18 = sadd.s32 1, %s1567_s16  ;;  %p1221_p0 = scmp.ge.s32.totalorder %s1571_s17, 1  ;;  %s1571_s17 = sphi %s1602_s17, %s14_s17   ;;  %s1567_s16 = sphi %s1600_s16, %s1778_s16   ;;  %s1563_s15 = sphi %s1598_s15, %s1777_s15  }
   0x3   : > { %p35_p1 = scmp.ge.s32.totalorder %s33_s18, 2  ;;  %p221_p2 = scmp.lt.s32.totalorder %s1571_s17, 3 }
   0x5   : > { %s1780_s18 = smov (%p35_p1, %s33_s18), 0  ;;  %p222_p3 = pnand %p1221_p0, %p221_p2 }
   0x6   : > { %v1525_v0 = vld [vmem:[%s1773_s1] sm:$0xff] (!%p222_p3)   ;;  %s1222_s21 = sshll.u32 (!%p222_p3), %s1563_s15, 5  ;;  %v1526_v1 = vld [vmem:[%s1773_s1 + $0x8] sm:$0xff] (!%p222_p3)   ;;  %v1527_v2 = vld [vmem:[%s1773_s1 + $0x10] sm:$0xff] (!%p222_p3)  }
   0x7   : > { %225 = sbr.rel (%p222_p3) target bundleno = 288 (0x120), region = 36  ;;  %p268_p4 = scmp.lt.s32.totalorder (!%p222_p3), %s1222_s21, 63  ;;  %1437 = vmatprep.subr.bf16.mxu0 (!%p222_p3), %v1525_v0  ;;  %1485 = vmatprep.subr.bf16.mxu1 (!%p222_p3), %v1525_v0  ;;  %v1528_v3 = vld [vmem:[%s1773_s1 + $0x18] sm:$0xff] (!%p222_p3)   ;;  %v1529_v6 = vld [vmem:[%s1773_s1 + $0x20] sm:$0xff] (!%p222_p3)   ;;  %v1530_v7 = vld [vmem:[%s1773_s1 + $0x28] sm:$0xff] (!%p222_p3)  }
   0x8   : > { %1438 = vmatpush3.bf16.msra.mxu0 (!%p222_p3), %v1525_v0  ;;  %1493 = vmatpush3.bf16.msra.mxu1 (!%p222_p3), %v1525_v0  ;;  %v1531_v8 = vld [vmem:[%s1773_s1 + $0x30] sm:$0xff] (!%p222_p3)   ;;  %v1532_v9 = vld [vmem:[%s1773_s1 + $0x38] sm:$0xff] (!%p222_p3)   ;;  %v1669_v24 = vld [vmem:[%s1774_s2] ss:$0 sm:$0xff] (!%p222_p3) }
   0x9   : > { %1439 = vmatprep.subr.bf16.mxu0 (!%p222_p3), %v1526_v1  ;;  %1486 = vmatprep.subr.bf16.mxu1 (!%p222_p3), %v1526_v1  ;;  %v1674_v26 = vld [vmem:[%s1775_s3] ss:$0 sm:$0xff] (!%p222_p3) }
   0xc   : > { %1440 = vmatpush3.bf16.msra.mxu0 (!%p222_p3), %v1526_v1  ;;  %1494 = vmatpush3.bf16.msra.mxu1 (!%p222_p3), %v1526_v1 }
   0xd   : > { %1441 = vmatprep.subr.bf16.mxu0 (!%p222_p3), %v1527_v2  ;;  %1487 = vmatprep.subr.bf16.mxu1 (!%p222_p3), %v1527_v2 }
   0xe   : > { %s1782_s21 = smov (!%p268_p4, %s1222_s21), 63 }
   0xf   : > { %s1223_s26 = sshll.u32 %s1782_s21, 2 }
  0x10   : > { %s1633_s29 = scalar_lea.vmem %s1772_s0, %s1223_s26  ;;  %1442 = vmatpush3.bf16.msra.mxu0 %v1527_v2  ;;  %1495 = vmatpush3.bf16.msra.mxu1 %v1527_v2  ;;  %s1697_s24 = scalar_lea.vmem %s1776_s4, %s1223_s26 }
  0x11   : > { %v1533_v4 = vld [vmem:[%s1633_s29] sm:$0xff]   ;;  %1443 = vmatprep.subr.bf16.mxu0 %v1528_v3  ;;  %1488 = vmatprep.subr.bf16.mxu1 %v1528_v3  ;;  %v1535_v10 = vld [vmem:[%s1633_s29 + $0x8] sm:$0xff]   ;;  %v1537_v12 = vld [vmem:[%s1633_s29 + $0x10] sm:$0xff]  }
  0x12   : > { %v1534_v5 = vld [vmem:[%s1633_s29 + $0x40] sm:$0xff]   ;;  %1453 = vmatprep.mubr.bf16.mxu0 %v1533_v4  ;;  %v1536_v11 = vld [vmem:[%s1633_s29 + $0x48] sm:$0xff]   ;;  %v1538_v13 = vld [vmem:[%s1633_s29 + $0x50] sm:$0xff]  }
  0x13   : > { %1469 = vmatprep.mubr.bf16.mxu1 %v1534_v5  ;;  %v1539_v14 = vld [vmem:[%s1633_s29 + $0x18] sm:$0xff]   ;;  %v1541_v16 = vld [vmem:[%s1633_s29 + $0x20] sm:$0xff]   ;;  %v1543_v18 = vld [vmem:[%s1633_s29 + $0x28] sm:$0xff]  }
  0x14   : > { %1444 = vmatpush3.bf16.msra.mxu0 %v1528_v3  ;;  %1496 = vmatpush3.bf16.msra.mxu1 %v1528_v3  ;;  %v1540_v15 = vld [vmem:[%s1633_s29 + $0x58] sm:$0xff]   ;;  %v1542_v17 = vld [vmem:[%s1633_s29 + $0x60] sm:$0xff]   ;;  %v1544_v19 = vld [vmem:[%s1633_s29 + $0x68] sm:$0xff]  }
  0x15   : > { %1445 = vmatprep.subr.bf16.mxu0 %v1529_v6  ;;  %1489 = vmatprep.subr.bf16.mxu1 %v1529_v6  ;;  %v1545_v20 = vld [vmem:[%s1633_s29 + $0x30] sm:$0xff]   ;;  %v1547_v22 = vld [vmem:[%s1633_s29 + $0x38] sm:$0xff]  }
  0x16   : > { %v1546_v21 = vld [vmem:[%s1633_s29 + $0x70] sm:$0xff]   ;;  %v1548_v23 = vld [vmem:[%s1633_s29 + $0x78] sm:$0xff]  }
  0x18   : > { %1446 = vmatpush3.bf16.msra.mxu0 %v1529_v6  ;;  %1497 = vmatpush3.bf16.msra.mxu1 %v1529_v6 }
  0x19   : > { %1447 = vmatprep.subr.bf16.mxu0 %v1530_v7  ;;  %1490 = vmatprep.subr.bf16.mxu1 %v1530_v7 }
  0x1c   : > { %1448 = vmatpush3.bf16.msra.mxu0 %v1530_v7  ;;  %1498 = vmatpush3.bf16.msra.mxu1 %v1530_v7 }
  0x1d   : > { %1449 = vmatprep.subr.bf16.mxu0 %v1531_v8  ;;  %1491 = vmatprep.subr.bf16.mxu1 %v1531_v8 }
  0x20   : > { %1450 = vmatpush3.bf16.msra.mxu0 %v1531_v8  ;;  %1499 = vmatpush3.bf16.msra.mxu1 %v1531_v8 }
  0x21   : > { %1451 = vmatprep.subr.bf16.mxu0 %v1532_v9  ;;  %1492 = vmatprep.subr.bf16.mxu1 %v1532_v9 }
  0x24   : > { %1452 = vmatpush3.bf16.msra.mxu0 %v1532_v9  ;;  %1500 = vmatpush3.bf16.msra.mxu1 %v1532_v9 }
  0x27   : > { %1454 = vmatmul.mubr.bf16.vlgmr.msra.gmra.mrb[0].mxu0 %v1535_v10  ;;  %1470 = vmatmul.mubr.bf16.vlgmr.msra.gmra.mrb[0].mxu1 %v1536_v11 }
  0x28   : > { %1457 = vmatprep.mubr.bf16.mxu0 %v1537_v12  ;;  %1473 = vmatprep.mubr.bf16.mxu1 %v1538_v13 }
  0x2f   : > { %1458 = vmatmul.mubr.bf16.gmra.mrb[4].mxu0 %v1539_v14  ;;  %1474 = vmatmul.mubr.bf16.gmra.mrb[4].mxu1 %v1540_v15 }
  0x30   : > { %1461 = vmatprep.mubr.bf16.mxu0 %v1541_v16  ;;  %1477 = vmatprep.mubr.bf16.mxu1 %v1542_v17 }
  0x37   : > { %1462 = vmatmul.mubr.bf16.gmra.mrb[8].mxu0 %v1543_v18  ;;  %1478 = vmatmul.mubr.bf16.gmra.mrb[8].mxu1 %v1544_v19 }
  0x38   : > { %1465 = vmatprep.mubr.bf16.mxu0 %v1545_v20  ;;  %1481 = vmatprep.mubr.bf16.mxu1 %v1546_v21 }
  0x3f   : > { %1466 = vmatmul.mubr.bf16.gmra.mrb[12].mxu0 %v1547_v22  ;;  %1482 = vmatmul.mubr.bf16.gmra.mrb[12].mxu1 %v1548_v23 }
  0xfa   : > { %v1455_v25 = vpop.f32.mrb[0].mxu0  ;;  %v1471_v27 = vpop.f32.mrb[0].mxu1 }
  0xfb   : > { %v830_v28 = vmul.f32 %v1455_v25, %v1669_v24  ;;  %v846_v29 = vmul.f32 %v1471_v27, %v1669_v24  ;;  %v595_v30 = vpop.f32.mrb[1].mxu0  ;;  %v659_v31 = vpop.f32.mrb[1].mxu1 }
  0xfc   : > { %v828_v32 = vmul.f32 %v1669_v24, %v595_v30  ;;  %v844_v33 = vmul.f32 %v1669_v24, %v659_v31  ;;  %v1456_v34 = vpop.f32.mrb[2].mxu0  ;;  %v1472_v35 = vpop.f32.mrb[2].mxu1 }
  0xfd   : > { %v869_v36 = vadd.f32 %v1674_v26, %v830_v28  ;;  %v885_v37 = vadd.f32 %v1674_v26, %v846_v29  ;;  %v831_v38 = vmul.f32 %v1456_v34, %v1669_v24  ;;  %v847_v39 = vmul.f32 %v1472_v35, %v1669_v24  ;;  %v598_v40 = vpop.f32.mrb[3].mxu0  ;;  %v662_v41 = vpop.f32.mrb[3].mxu1 }
  0xfe   : > { %v867_v42 = vadd.f32 %v1674_v26, %v828_v32  ;;  %v883_v43 = vadd.f32 %v1674_v26, %v844_v33  ;;  %v829_v44 = vmul.f32 %v1669_v24, %v598_v40  ;;  %v845_v45 = vmul.f32 %v1669_v24, %v662_v41 }
  0xff   : > { %v870_v46 = vadd.f32 %v1674_v26, %v831_v38  ;;  %v886_v47 = vadd.f32 %v1674_v26, %v847_v39  ;;  %v901_v50 = vmax.f32 %v869_v36, 0.0  ;;  %v917_v51 = vmax.f32 %v885_v37, 0.0 }
 0x100   : > { %v868_v48 = vadd.f32 %v1674_v26, %v829_v44  ;;  %v884_v49 = vadd.f32 %v1674_v26, %v845_v45  ;;  %v899_v54 = vmax.f32 %v867_v42, 0.0  ;;  %v915_v55 = vmax.f32 %v883_v43, 0.0 }
 0x101   : > { %v902_v52 = vmax.f32 %v870_v46, 0.0  ;;  %v918_v53 = vmax.f32 %v886_v47, 0.0 }
 0x102   : > { %v900_v56 = vmax.f32 %v868_v48, 0.0  ;;  %v916_v57 = vmax.f32 %v884_v49, 0.0  ;;  %v1459_v58 = vpop.f32.mrb[4].mxu0  ;;  %v1475_v59 = vpop.f32.mrb[4].mxu1 }
 0x103   : > { %v1326_v60 = vpack.c.bf16 %v902_v52, %v901_v50  ;;  %v1366_v61 = vpack.c.bf16 %v918_v53, %v917_v51  ;;  %v834_v62 = vmul.f32 %v1459_v58, %v1669_v24  ;;  %v850_v63 = vmul.f32 %v1475_v59, %v1669_v24  ;;  %v611_v0 = vpop.f32.mrb[5].mxu0  ;;  %v675_v1 = vpop.f32.mrb[5].mxu1 }
 0x104   : > { %v1321_v2 = vpack.c.bf16 %v900_v56, %v899_v54  ;;  %v1361_v3 = vpack.c.bf16 %v916_v57, %v915_v55  ;;  %v832_v4 = vmul.f32 %v1669_v24, %v611_v0  ;;  %v848_v5 = vmul.f32 %v1669_v24, %v675_v1  ;;  %v1460_v6 = vpop.f32.mrb[6].mxu0  ;;  %v1476_v7 = vpop.f32.mrb[6].mxu1 }
 0x105   : > { %1398 = vst [vmem:[%s1697_s24 + $0x8] sm:$0xff] %v1326_v60   ;;  %1406 = vst [vmem:[%s1697_s24 + $0x48] sm:$0xff] %v1366_v61   ;;  %v873_v8 = vadd.f32 %v1674_v26, %v834_v62  ;;  %v889_v9 = vadd.f32 %v1674_v26, %v850_v63  ;;  %v835_v10 = vmul.f32 %v1460_v6, %v1669_v24  ;;  %v614_v12 = vpop.f32.mrb[7].mxu0  ;;  %v678_v13 = vpop.f32.mrb[7].mxu1 }
 0x106   : > { %v851_v11 = vmul.f32 %v1476_v7, %v1669_v24  ;;  %1322 = vst [vmem:[%s1697_s24] sm:$0xff] %v1321_v2   ;;  %1405 = vst [vmem:[%s1697_s24 + $0x40] sm:$0xff] %v1361_v3   ;;  %v871_v14 = vadd.f32 %v1674_v26, %v832_v4  ;;  %v887_v15 = vadd.f32 %v1674_v26, %v848_v5 }
 0x107   : > { %v833_v16 = vmul.f32 %v1669_v24, %v614_v12  ;;  %v849_v17 = vmul.f32 %v1669_v24, %v678_v13  ;;  %v874_v18 = vadd.f32 %v1674_v26, %v835_v10  ;;  %v905_v22 = vmax.f32 %v873_v8, 0.0 }
 0x108   : > { %v890_v19 = vadd.f32 %v1674_v26, %v851_v11  ;;  %v921_v23 = vmax.f32 %v889_v9, 0.0  ;;  %v903_v28 = vmax.f32 %v871_v14, 0.0  ;;  %v919_v29 = vmax.f32 %v887_v15, 0.0 }
 0x109   : > { %v872_v20 = vadd.f32 %v1674_v26, %v833_v16  ;;  %v888_v21 = vadd.f32 %v1674_v26, %v849_v17  ;;  %v906_v25 = vmax.f32 %v874_v18, 0.0 }
 0x10a   : > { %v922_v27 = vmax.f32 %v890_v19, 0.0  ;;  %v1463_v32 = vpop.f32.mrb[8].mxu0  ;;  %v1479_v33 = vpop.f32.mrb[8].mxu1 }
 0x10b   : > { %v904_v30 = vmax.f32 %v872_v20, 0.0  ;;  %v920_v31 = vmax.f32 %v888_v21, 0.0  ;;  %v1336_v34 = vpack.c.bf16 %v906_v25, %v905_v22  ;;  %v838_v36 = vmul.f32 %v1463_v32, %v1669_v24  ;;  %v627_v38 = vpop.f32.mrb[9].mxu0  ;;  %v691_v39 = vpop.f32.mrb[9].mxu1 }
 0x10c   : > { %v1376_v35 = vpack.c.bf16 %v922_v27, %v921_v23  ;;  %v854_v37 = vmul.f32 %v1479_v33, %v1669_v24  ;;  %v836_v42 = vmul.f32 %v1669_v24, %v627_v38  ;;  %v852_v43 = vmul.f32 %v1669_v24, %v691_v39  ;;  %v1464_v44 = vpop.f32.mrb[10].mxu0  ;;  %v1480_v45 = vpop.f32.mrb[10].mxu1 }
 0x10d   : > { %v1331_v40 = vpack.c.bf16 %v904_v30, %v903_v28  ;;  %v1371_v41 = vpack.c.bf16 %v920_v31, %v919_v29  ;;  %1400 = vst [vmem:[%s1697_s24 + $0x18] sm:$0xff] %v1336_v34   ;;  %v877_v46 = vadd.f32 %v1674_v26, %v838_v36  ;;  %v839_v48 = vmul.f32 %v1464_v44, %v1669_v24  ;;  %v630_v50 = vpop.f32.mrb[11].mxu0  ;;  %v694_v51 = vpop.f32.mrb[11].mxu1 }
 0x10e   : > { %1408 = vst [vmem:[%s1697_s24 + $0x58] sm:$0xff] %v1376_v35   ;;  %v893_v47 = vadd.f32 %v1674_v26, %v854_v37  ;;  %v855_v49 = vmul.f32 %v1480_v45, %v1669_v24  ;;  %v875_v52 = vadd.f32 %v1674_v26, %v836_v42  ;;  %v891_v53 = vadd.f32 %v1674_v26, %v852_v43 }
 0x10f   : > { %1399 = vst [vmem:[%s1697_s24 + $0x10] sm:$0xff] %v1331_v40   ;;  %1407 = vst [vmem:[%s1697_s24 + $0x50] sm:$0xff] %v1371_v41   ;;  %v837_v54 = vmul.f32 %v1669_v24, %v630_v50  ;;  %v853_v55 = vmul.f32 %v1669_v24, %v694_v51  ;;  %v878_v56 = vadd.f32 %v1674_v26, %v839_v48  ;;  %v909_v60 = vmax.f32 %v877_v46, 0.0 }
 0x110   : > { %v894_v57 = vadd.f32 %v1674_v26, %v855_v49  ;;  %v925_v61 = vmax.f32 %v893_v47, 0.0  ;;  %v907_v0 = vmax.f32 %v875_v52, 0.0  ;;  %v923_v1 = vmax.f32 %v891_v53, 0.0 }
 0x111   : > { %v876_v58 = vadd.f32 %v1674_v26, %v837_v54  ;;  %v892_v59 = vadd.f32 %v1674_v26, %v853_v55  ;;  %v910_v62 = vmax.f32 %v878_v56, 0.0 }
 0x112   : > { %v926_v63 = vmax.f32 %v894_v57, 0.0  ;;  %v1467_v4 = vpop.f32.mrb[12].mxu0  ;;  %v1483_v5 = vpop.f32.mrb[12].mxu1 }
 0x113   : > { %v908_v2 = vmax.f32 %v876_v58, 0.0  ;;  %v924_v3 = vmax.f32 %v892_v59, 0.0  ;;  %v1346_v6 = vpack.c.bf16 %v910_v62, %v909_v60  ;;  %v842_v8 = vmul.f32 %v1467_v4, %v1669_v24  ;;  %v643_v10 = vpop.f32.mrb[13].mxu0  ;;  %v707_v11 = vpop.f32.mrb[13].mxu1 }
 0x114   : > { %v1386_v7 = vpack.c.bf16 %v926_v63, %v925_v61  ;;  %v858_v9 = vmul.f32 %v1483_v5, %v1669_v24  ;;  %v840_v14 = vmul.f32 %v1669_v24, %v643_v10  ;;  %v856_v15 = vmul.f32 %v1669_v24, %v707_v11  ;;  %v1468_v16 = vpop.f32.mrb[14].mxu0  ;;  %v1484_v17 = vpop.f32.mrb[14].mxu1 }
 0x115   : > { %v1341_v12 = vpack.c.bf16 %v908_v2, %v907_v0  ;;  %v1381_v13 = vpack.c.bf16 %v924_v3, %v923_v1  ;;  %1402 = vst [vmem:[%s1697_s24 + $0x28] sm:$0xff] %v1346_v6   ;;  %v881_v18 = vadd.f32 %v1674_v26, %v842_v8  ;;  %v843_v20 = vmul.f32 %v1468_v16, %v1669_v24  ;;  %v646_v22 = vpop.f32.mrb[15].mxu0  ;;  %v710_v23 = vpop.f32.mrb[15].mxu1 }
 0x116   : > { %1410 = vst [vmem:[%s1697_s24 + $0x68] sm:$0xff] %v1386_v7   ;;  %v897_v19 = vadd.f32 %v1674_v26, %v858_v9  ;;  %v859_v21 = vmul.f32 %v1484_v17, %v1669_v24  ;;  %v879_v25 = vadd.f32 %v1674_v26, %v840_v14  ;;  %v895_v27 = vadd.f32 %v1674_v26, %v856_v15 }
 0x117   : > { %1401 = vst [vmem:[%s1697_s24 + $0x20] sm:$0xff] %v1341_v12   ;;  %1409 = vst [vmem:[%s1697_s24 + $0x60] sm:$0xff] %v1381_v13   ;;  %v841_v28 = vmul.f32 %v1669_v24, %v646_v22  ;;  %v857_v29 = vmul.f32 %v1669_v24, %v710_v23  ;;  %v882_v30 = vadd.f32 %v1674_v26, %v843_v20  ;;  %v913_v34 = vmax.f32 %v881_v18, 0.0 }
 0x118   : > { %v898_v31 = vadd.f32 %v1674_v26, %v859_v21  ;;  %v929_v35 = vmax.f32 %v897_v19, 0.0  ;;  %v911_v38 = vmax.f32 %v879_v25, 0.0  ;;  %v927_v39 = vmax.f32 %v895_v27, 0.0 }
 0x119   : > { %v880_v32 = vadd.f32 %v1674_v26, %v841_v28  ;;  %v896_v33 = vadd.f32 %v1674_v26, %v857_v29  ;;  %v914_v36 = vmax.f32 %v882_v30, 0.0 }
 0x11a   : > { %v930_v37 = vmax.f32 %v898_v31, 0.0 }
 0x11b   : > { %v912_v40 = vmax.f32 %v880_v32, 0.0  ;;  %v928_v24 = vmax.f32 %v896_v33, 0.0  ;;  %v1356_v41 = vpack.c.bf16 %v914_v36, %v913_v34 }
 0x11c   : > { %v1396_v42 = vpack.c.bf16 %v930_v37, %v929_v35 }
 0x11d   : > { %v1351_v43 = vpack.c.bf16 %v912_v40, %v911_v38  ;;  %v1391_v44 = vpack.c.bf16 %v928_v24, %v927_v39  ;;  %1404 = vst [vmem:[%s1697_s24 + $0x38] sm:$0xff] %v1356_v41  }
 0x11e   : > { %1412 = vst [vmem:[%s1697_s24 + $0x78] sm:$0xff] %v1396_v42  }
 0x11f   : > { %1403 = vst [vmem:[%s1697_s24 + $0x30] sm:$0xff] %v1351_v43   ;;  %1411 = vst [vmem:[%s1697_s24 + $0x70] sm:$0xff] %v1391_v44  }
 0x120 PF: > { %s14_s17 = sadd.s32 1, %s1571_s17   ;;  %s1777_s15 = smov %s1567_s16 }
 0x121   : > { %p11_p5 = scmp.ge.s32.totalorder %s14_s17, 4   ;;  %s1778_s16 = smov %s1780_s18 }
 0x123   :  { %13 = sbr.rel (!%p11_p5) target bundleno = 2 (0x2), region = 83 }

// kernel: _lambda_.52
= control target key start
LH: loop header
LB: loop body
LE: loop exit
PB: predicated region body
PF: predicated region fallthrough
CT: control target
= control target key end

     0   :  { %vm654_vm0 = vcmask 1040384   ;;  %vm461_vm1 = vcmask 15360   ;;  %vm1715_vm2 = vcmask 125952   ;;  %s3281_s1 = inlined_call_operand.vmem [shape: bf16[2,16], index: 1, kind: input, shape index: {}]   ;;  %s3282_s0 = inlined_call_operand.vmem [shape: bf16[1024,2], index: 0, kind: input, shape index: {}]   ;;  %s3283_s2 = inlined_call_operand.vmem [shape: bf16[1024,16], index: 2, kind: output, shape index: {}]  }
   0x1   :  { %v140_v0 = vld [vmem:[%s3281_s1] sm:$0x1]  ;;  %v2433_v4 = vld [vmem:[%s3282_s0 + $0x8] sm:$0xff]   ;;  %v2435_v6 = vld [vmem:[%s3282_s0 + $0x10] sm:$0xff]  }
   0x2   :  { %2429 = vmatprep.subr.msk.bf16.mxu0 %vm654_vm0, %v140_v0  ;;  %2430 = vmatprep.subr.msk.bf16.mxu1 %vm654_vm0, %v140_v0  ;;  %v656_v1 = vsel %vm654_vm0, %v140_v0, 0  ;;  %v2431_v2 = vld [vmem:[%s3282_s0] sm:$0xff]   ;;  %v2434_v5 = vld [vmem:[%s3282_s0 + $0x108] sm:$0xff]   ;;  %v2436_v7 = vld [vmem:[%s3282_s0 + $0x110] sm:$0xff]  }
   0x3   :  { %2298 = vmatpush3.bf16.msra.mxu0 %v656_v1  ;;  %2428 = vmatpush3.bf16.msra.mxu1 %v656_v1  ;;  %v2432_v3 = vld [vmem:[%s3282_s0 + $0x100] sm:$0xff]   ;;  %v2437_v8 = vld [vmem:[%s3282_s0 + $0x18] sm:$0xff]   ;;  %v2441_v12 = vld [vmem:[%s3282_s0 + $0x28] sm:$0xff]  }
   0x4   :  { %2299 = vmatprep.mubr.msk.bf16.mxu0 %vm461_vm1, %v2431_v2  ;;  %2363 = vmatprep.mubr.msk.bf16.mxu1 %vm461_vm1, %v2432_v3  ;;  %v2438_v9 = vld [vmem:[%s3282_s0 + $0x118] sm:$0xff]   ;;  %v2439_v10 = vld [vmem:[%s3282_s0 + $0x20] sm:$0xff]   ;;  %v2442_v13 = vld [vmem:[%s3282_s0 + $0x128] sm:$0xff]  }
   0x5   :  { %v2440_v11 = vld [vmem:[%s3282_s0 + $0x120] sm:$0xff]   ;;  %v2443_v14 = vld [vmem:[%s3282_s0 + $0x30] sm:$0xff]   ;;  %v2445_v16 = vld [vmem:[%s3282_s0 + $0x38] sm:$0xff]  }
   0x6   :  { %2300 = vmatmul.mubr.msk.bf16.vlgmr.msra.gmra.mrb[0].mxu0 %vm461_vm1, %v2433_v4  ;;  %2364 = vmatmul.mubr.msk.bf16.vlgmr.msra.gmra.mrb[0].mxu1 %vm461_vm1, %v2434_v5  ;;  %v2444_v15 = vld [vmem:[%s3282_s0 + $0x130] sm:$0xff]   ;;  %v2446_v17 = vld [vmem:[%s3282_s0 + $0x138] sm:$0xff]   ;;  %v2447_v18 = vld [vmem:[%s3282_s0 + $0x40] sm:$0xff]  }
   0x7   :  { %2303 = vmatprep.mubr.msk.bf16.mxu0 %vm461_vm1, %v2435_v6  ;;  %2367 = vmatprep.mubr.msk.bf16.mxu1 %vm461_vm1, %v2436_v7  ;;  %v2448_v19 = vld [vmem:[%s3282_s0 + $0x140] sm:$0xff]   ;;  %v2449_v20 = vld [vmem:[%s3282_s0 + $0x48] sm:$0xff]   ;;  %v2451_v22 = vld [vmem:[%s3282_s0 + $0x50] sm:$0xff]  }
   0x8   :  { %v2450_v21 = vld [vmem:[%s3282_s0 + $0x148] sm:$0xff]   ;;  %v2452_v23 = vld [vmem:[%s3282_s0 + $0x150] sm:$0xff]   ;;  %v2453_v24 = vld [vmem:[%s3282_s0 + $0x58] sm:$0xff]  }
   0x9   :  { %v2454_v25 = vld [vmem:[%s3282_s0 + $0x158] sm:$0xff]   ;;  %v2455_v26 = vld [vmem:[%s3282_s0 + $0x60] sm:$0xff]   ;;  %v2457_v28 = vld [vmem:[%s3282_s0 + $0x68] sm:$0xff]  }
   0xa   :  { %v2456_v27 = vld [vmem:[%s3282_s0 + $0x160] sm:$0xff]   ;;  %v2458_v29 = vld [vmem:[%s3282_s0 + $0x168] sm:$0xff]   ;;  %v2459_v30 = vld [vmem:[%s3282_s0 + $0x70] sm:$0xff]  }
   0xb   :  { %v2460_v31 = vld [vmem:[%s3282_s0 + $0x170] sm:$0xff]   ;;  %v2461_v32 = vld [vmem:[%s3282_s0 + $0x78] sm:$0xff]   ;;  %v2463_v34 = vld [vmem:[%s3282_s0 + $0x80] sm:$0xff]  }
   0xc   :  { %v2462_v33 = vld [vmem:[%s3282_s0 + $0x178] sm:$0xff]   ;;  %v2464_v35 = vld [vmem:[%s3282_s0 + $0x180] sm:$0xff]   ;;  %v2465_v36 = vld [vmem:[%s3282_s0 + $0x88] sm:$0xff]  }
   0xd   :  { %v2466_v37 = vld [vmem:[%s3282_s0 + $0x188] sm:$0xff]   ;;  %v2467_v38 = vld [vmem:[%s3282_s0 + $0x90] sm:$0xff]   ;;  %v2469_v40 = vld [vmem:[%s3282_s0 + $0x98] sm:$0xff]  }
   0xe   :  { %2304 = vmatmul.mubr.msk.bf16.gmra.mrb[4].mxu0 %vm461_vm1, %v2437_v8  ;;  %2368 = vmatmul.mubr.msk.bf16.gmra.mrb[4].mxu1 %vm461_vm1, %v2438_v9  ;;  %v2468_v39 = vld [vmem:[%s3282_s0 + $0x190] sm:$0xff]   ;;  %v2470_v41 = vld [vmem:[%s3282_s0 + $0x198] sm:$0xff]   ;;  %v2471_v42 = vld [vmem:[%s3282_s0 + $0xa0] sm:$0xff]  }
   0xf   :  { %2307 = vmatprep.mubr.msk.bf16.mxu0 %vm461_vm1, %v2439_v10  ;;  %2371 = vmatprep.mubr.msk.bf16.mxu1 %vm461_vm1, %v2440_v11  ;;  %v2472_v43 = vld [vmem:[%s3282_s0 + $0x1a0] sm:$0xff]   ;;  %v2473_v44 = vld [vmem:[%s3282_s0 + $0xa8] sm:$0xff]   ;;  %v2475_v46 = vld [vmem:[%s3282_s0 + $0xb0] sm:$0xff]  }
  0x10   :  { %v2474_v45 = vld [vmem:[%s3282_s0 + $0x1a8] sm:$0xff]   ;;  %v2476_v47 = vld [vmem:[%s3282_s0 + $0x1b0] sm:$0xff]   ;;  %v2477_v48 = vld [vmem:[%s3282_s0 + $0xb8] sm:$0xff]  }
  0x11   :  { %v2478_v49 = vld [vmem:[%s3282_s0 + $0x1b8] sm:$0xff]   ;;  %v2479_v50 = vld [vmem:[%s3282_s0 + $0xc0] sm:$0xff]   ;;  %v2481_v52 = vld [vmem:[%s3282_s0 + $0xc8] sm:$0xff]  }
  0x12   :  { %v2480_v51 = vld [vmem:[%s3282_s0 + $0x1c0] sm:$0xff]   ;;  %v2482_v53 = vld [vmem:[%s3282_s0 + $0x1c8] sm:$0xff]   ;;  %v2483_v54 = vld [vmem:[%s3282_s0 + $0xd0] sm:$0xff]  }
  0x13   :  { %v2484_v55 = vld [vmem:[%s3282_s0 + $0x1d0] sm:$0xff]   ;;  %v2485_v56 = vld [vmem:[%s3282_s0 + $0xd8] sm:$0xff]   ;;  %v2487_v58 = vld [vmem:[%s3282_s0 + $0xe0] sm:$0xff]  }
  0x14   :  { %v2486_v57 = vld [vmem:[%s3282_s0 + $0x1d8] sm:$0xff]   ;;  %v2488_v59 = vld [vmem:[%s3282_s0 + $0x1e0] sm:$0xff]   ;;  %v2489_v60 = vld [vmem:[%s3282_s0 + $0xe8] sm:$0xff]  }
  0x15   :  { %v2490_v61 = vld [vmem:[%s3282_s0 + $0x1e8] sm:$0xff]   ;;  %v2491_v62 = vld [vmem:[%s3282_s0 + $0xf0] sm:$0xff]   ;;  %v2493_v0 = vld [vmem:[%s3282_s0 + $0xf8] sm:$0xff]  }
  0x16   :  { %2308 = vmatmul.mubr.msk.bf16.gmra.mrb[8].mxu0 %vm461_vm1, %v2441_v12  ;;  %2372 = vmatmul.mubr.msk.bf16.gmra.mrb[8].mxu1 %vm461_vm1, %v2442_v13  ;;  %v2492_v63 = vld [vmem:[%s3282_s0 + $0x1f0] sm:$0xff]   ;;  %v2494_v1 = vld [vmem:[%s3282_s0 + $0x1f8] sm:$0xff]  }
  0x17   :  { %2311 = vmatprep.mubr.msk.bf16.mxu0 %vm461_vm1, %v2443_v14  ;;  %2375 = vmatprep.mubr.msk.bf16.mxu1 %vm461_vm1, %v2444_v15 }
  0x1e   :  { %2312 = vmatmul.mubr.msk.bf16.gmra.mrb[12].mxu0 %vm461_vm1, %v2445_v16  ;;  %2376 = vmatmul.mubr.msk.bf16.gmra.mrb[12].mxu1 %vm461_vm1, %v2446_v17 }
  0x1f   :  { %2315 = vmatprep.mubr.msk.bf16.mxu0 %vm461_vm1, %v2447_v18  ;;  %2379 = vmatprep.mubr.msk.bf16.mxu1 %vm461_vm1, %v2448_v19 }
  0x26   :  { %2316 = vmatmul.mubr.msk.bf16.gmra.mrb[16].mxu0 %vm461_vm1, %v2449_v20  ;;  %2380 = vmatmul.mubr.msk.bf16.gmra.mrb[16].mxu1 %vm461_vm1, %v2450_v21 }
  0x27   :  { %2319 = vmatprep.mubr.msk.bf16.mxu0 %vm461_vm1, %v2451_v22  ;;  %2383 = vmatprep.mubr.msk.bf16.mxu1 %vm461_vm1, %v2452_v23 }
  0x2e   :  { %2320 = vmatmul.mubr.msk.bf16.gmra.mrb[20].mxu0 %vm461_vm1, %v2453_v24  ;;  %2384 = vmatmul.mubr.msk.bf16.gmra.mrb[20].mxu1 %vm461_vm1, %v2454_v25 }
  0x2f   :  { %2323 = vmatprep.mubr.msk.bf16.mxu0 %vm461_vm1, %v2455_v26  ;;  %2387 = vmatprep.mubr.msk.bf16.mxu1 %vm461_vm1, %v2456_v27 }
  0x36   :  { %2324 = vmatmul.mubr.msk.bf16.gmra.mrb[24].mxu0 %vm461_vm1, %v2457_v28  ;;  %2388 = vmatmul.mubr.msk.bf16.gmra.mrb[24].mxu1 %vm461_vm1, %v2458_v29 }
  0x37   :  { %2327 = vmatprep.mubr.msk.bf16.mxu0 %vm461_vm1, %v2459_v30  ;;  %2391 = vmatprep.mubr.msk.bf16.mxu1 %vm461_vm1, %v2460_v31 }
  0x3e   :  { %2328 = vmatmul.mubr.msk.bf16.gmra.mrb[28].mxu0 %vm461_vm1, %v2461_v32  ;;  %2392 = vmatmul.mubr.msk.bf16.gmra.mrb[28].mxu1 %vm461_vm1, %v2462_v33 }
  0x3f   :  { %2331 = vmatprep.mubr.msk.bf16.mxu0 %vm461_vm1, %v2463_v34  ;;  %2395 = vmatprep.mubr.msk.bf16.mxu1 %vm461_vm1, %v2464_v35 }
  0x46   :  { %2332 = vmatmul.mubr.msk.bf16.gmra.mrb[32].mxu0 %vm461_vm1, %v2465_v36  ;;  %2396 = vmatmul.mubr.msk.bf16.gmra.mrb[32].mxu1 %vm461_vm1, %v2466_v37 }
  0x47   :  { %2335 = vmatprep.mubr.msk.bf16.mxu0 %vm461_vm1, %v2467_v38  ;;  %2399 = vmatprep.mubr.msk.bf16.mxu1 %vm461_vm1, %v2468_v39 }
  0x4e   :  { %2336 = vmatmul.mubr.msk.bf16.gmra.mrb[36].mxu0 %vm461_vm1, %v2469_v40  ;;  %2400 = vmatmul.mubr.msk.bf16.gmra.mrb[36].mxu1 %vm461_vm1, %v2470_v41 }
  0x4f   :  { %2339 = vmatprep.mubr.msk.bf16.mxu0 %vm461_vm1, %v2471_v42  ;;  %2403 = vmatprep.mubr.msk.bf16.mxu1 %vm461_vm1, %v2472_v43 }
  0x56   :  { %2340 = vmatmul.mubr.msk.bf16.gmra.mrb[40].mxu0 %vm461_vm1, %v2473_v44  ;;  %2404 = vmatmul.mubr.msk.bf16.gmra.mrb[40].mxu1 %vm461_vm1, %v2474_v45 }
  0x57   :  { %2343 = vmatprep.mubr.msk.bf16.mxu0 %vm461_vm1, %v2475_v46  ;;  %2407 = vmatprep.mubr.msk.bf16.mxu1 %vm461_vm1, %v2476_v47 }
  0x5e   :  { %2344 = vmatmul.mubr.msk.bf16.gmra.mrb[44].mxu0 %vm461_vm1, %v2477_v48  ;;  %2408 = vmatmul.mubr.msk.bf16.gmra.mrb[44].mxu1 %vm461_vm1, %v2478_v49 }
  0x5f   :  { %2347 = vmatprep.mubr.msk.bf16.mxu0 %vm461_vm1, %v2479_v50  ;;  %2411 = vmatprep.mubr.msk.bf16.mxu1 %vm461_vm1, %v2480_v51 }
  0x66   :  { %2348 = vmatmul.mubr.msk.bf16.gmra.mrb[48].mxu0 %vm461_vm1, %v2481_v52  ;;  %2412 = vmatmul.mubr.msk.bf16.gmra.mrb[48].mxu1 %vm461_vm1, %v2482_v53 }
  0x67   :  { %2351 = vmatprep.mubr.msk.bf16.mxu0 %vm461_vm1, %v2483_v54  ;;  %2415 = vmatprep.mubr.msk.bf16.mxu1 %vm461_vm1, %v2484_v55 }
  0x6e   :  { %2352 = vmatmul.mubr.msk.bf16.gmra.mrb[52].mxu0 %vm461_vm1, %v2485_v56  ;;  %2416 = vmatmul.mubr.msk.bf16.gmra.mrb[52].mxu1 %vm461_vm1, %v2486_v57 }
  0x6f   :  { %2355 = vmatprep.mubr.msk.bf16.mxu0 %vm461_vm1, %v2487_v58  ;;  %2419 = vmatprep.mubr.msk.bf16.mxu1 %vm461_vm1, %v2488_v59 }
  0x76   :  { %2356 = vmatmul.mubr.msk.bf16.gmra.mrb[56].mxu0 %vm461_vm1, %v2489_v60  ;;  %2420 = vmatmul.mubr.msk.bf16.gmra.mrb[56].mxu1 %vm461_vm1, %v2490_v61 }
  0x77   :  { %2359 = vmatprep.mubr.msk.bf16.mxu0 %vm461_vm1, %v2491_v62  ;;  %2423 = vmatprep.mubr.msk.bf16.mxu1 %vm461_vm1, %v2492_v63 }
  0x7e   :  { %2360 = vmatmul.mubr.msk.bf16.gmra.mrb[60].mxu0 %vm461_vm1, %v2493_v0  ;;  %2424 = vmatmul.mubr.msk.bf16.gmra.mrb[60].mxu1 %vm461_vm1, %v2494_v1 }
  0xd9   :  { %v2301_v2 = vpop.f32.mrb[0].mxu0  ;;  %v2365_v4 = vpop.f32.mrb[0].mxu1 }
  0xda   :  { %v2106_v3 = vpack.c.bf16 %v2301_v2, %v2301_v2  ;;  %v692_v5 = vpop.f32.mrb[1].mxu0  ;;  %v2170_v6 = vpack.c.bf16 %v2365_v4, %v2365_v4  ;;  %v948_v8 = vpop.f32.mrb[1].mxu1 }
  0xdb   :  { %v2104_v7 = vpack.c.bf16 %v692_v5, %v692_v5  ;;  %v2302_v9 = vpop.f32.mrb[2].mxu0  ;;  %v2168_v10 = vpack.c.bf16 %v948_v8, %v948_v8  ;;  %v2366_v12 = vpop.f32.mrb[2].mxu1 }
  0xdc   :  { %1718 = vst.msk [vmem:[%s3283_s2 + $0x8] sm:$0xf] %vm1715_vm2, %v2106_v3  ;;  %v2107_v11 = vpack.c.bf16 %v2302_v9, %v2302_v9  ;;  %v695_v13 = vpop.f32.mrb[3].mxu0  ;;  %1782 = vst.msk [vmem:[%s3283_s2 + $0x108] sm:$0xf] %vm1715_vm2, %v2170_v6  ;;  %v2171_v14 = vpack.c.bf16 %v2366_v12, %v2366_v12  ;;  %v951_v16 = vpop.f32.mrb[3].mxu1 }
  0xdd   :  { %1716 = vst.msk [vmem:[%s3283_s2] sm:$0xf] %vm1715_vm2, %v2104_v7  ;;  %v2105_v15 = vpack.c.bf16 %v695_v13, %v695_v13  ;;  %1780 = vst.msk [vmem:[%s3283_s2 + $0x100] sm:$0xf] %vm1715_vm2, %v2168_v10  ;;  %v2169_v17 = vpack.c.bf16 %v951_v16, %v951_v16 }
  0xde   :  { %1719 = vst.msk [vmem:[%s3283_s2 + $0xc] sm:$0xf] %vm1715_vm2, %v2107_v11  ;;  %1783 = vst.msk [vmem:[%s3283_s2 + $0x10c] sm:$0xf] %vm1715_vm2, %v2171_v14 }
  0xdf   :  { %1717 = vst.msk [vmem:[%s3283_s2 + $0x4] sm:$0xf] %vm1715_vm2, %v2105_v15  ;;  %1781 = vst.msk [vmem:[%s3283_s2 + $0x104] sm:$0xf] %vm1715_vm2, %v2169_v17 }
  0xe1   :  { %v2305_v18 = vpop.f32.mrb[4].mxu0  ;;  %v2369_v20 = vpop.f32.mrb[4].mxu1 }
  0xe2   :  { %v2110_v19 = vpack.c.bf16 %v2305_v18, %v2305_v18  ;;  %v708_v21 = vpop.f32.mrb[5].mxu0  ;;  %v2174_v22 = vpack.c.bf16 %v2369_v20, %v2369_v20  ;;  %v964_v24 = vpop.f32.mrb[5].mxu1 }
  0xe3   :  { %v2108_v23 = vpack.c.bf16 %v708_v21, %v708_v21  ;;  %v2306_v25 = vpop.f32.mrb[6].mxu0  ;;  %v2172_v26 = vpack.c.bf16 %v964_v24, %v964_v24  ;;  %v2370_v28 = vpop.f32.mrb[6].mxu1 }
  0xe4   :  { %1722 = vst.msk [vmem:[%s3283_s2 + $0x18] sm:$0xf] %vm1715_vm2, %v2110_v19  ;;  %v2111_v27 = vpack.c.bf16 %v2306_v25, %v2306_v25  ;;  %v711_v29 = vpop.f32.mrb[7].mxu0  ;;  %1786 = vst.msk [vmem:[%s3283_s2 + $0x118] sm:$0xf] %vm1715_vm2, %v2174_v22  ;;  %v2175_v30 = vpack.c.bf16 %v2370_v28, %v2370_v28  ;;  %v967_v32 = vpop.f32.mrb[7].mxu1 }
  0xe5   :  { %1720 = vst.msk [vmem:[%s3283_s2 + $0x10] sm:$0xf] %vm1715_vm2, %v2108_v23  ;;  %v2109_v31 = vpack.c.bf16 %v711_v29, %v711_v29  ;;  %1784 = vst.msk [vmem:[%s3283_s2 + $0x110] sm:$0xf] %vm1715_vm2, %v2172_v26  ;;  %v2173_v33 = vpack.c.bf16 %v967_v32, %v967_v32 }
  0xe6   :  { %1723 = vst.msk [vmem:[%s3283_s2 + $0x1c] sm:$0xf] %vm1715_vm2, %v2111_v27  ;;  %1787 = vst.msk [vmem:[%s3283_s2 + $0x11c] sm:$0xf] %vm1715_vm2, %v2175_v30 }
  0xe7   :  { %1721 = vst.msk [vmem:[%s3283_s2 + $0x14] sm:$0xf] %vm1715_vm2, %v2109_v31  ;;  %1785 = vst.msk [vmem:[%s3283_s2 + $0x114] sm:$0xf] %vm1715_vm2, %v2173_v33 }
  0xe9   :  { %v2309_v34 = vpop.f32.mrb[8].mxu0  ;;  %v2373_v36 = vpop.f32.mrb[8].mxu1 }
  0xea   :  { %v2114_v35 = vpack.c.bf16 %v2309_v34, %v2309_v34  ;;  %v724_v37 = vpop.f32.mrb[9].mxu0  ;;  %v2178_v38 = vpack.c.bf16 %v2373_v36, %v2373_v36  ;;  %v980_v40 = vpop.f32.mrb[9].mxu1 }
  0xeb   :  { %v2112_v39 = vpack.c.bf16 %v724_v37, %v724_v37  ;;  %v2310_v41 = vpop.f32.mrb[10].mxu0  ;;  %v2176_v42 = vpack.c.bf16 %v980_v40, %v980_v40  ;;  %v2374_v44 = vpop.f32.mrb[10].mxu1 }
  0xec   :  { %1726 = vst.msk [vmem:[%s3283_s2 + $0x28] sm:$0xf] %vm1715_vm2, %v2114_v35  ;;  %v2115_v43 = vpack.c.bf16 %v2310_v41, %v2310_v41  ;;  %v727_v45 = vpop.f32.mrb[11].mxu0  ;;  %1790 = vst.msk [vmem:[%s3283_s2 + $0x128] sm:$0xf] %vm1715_vm2, %v2178_v38  ;;  %v2179_v46 = vpack.c.bf16 %v2374_v44, %v2374_v44  ;;  %v983_v48 = vpop.f32.mrb[11].mxu1 }
  0xed   :  { %1724 = vst.msk [vmem:[%s3283_s2 + $0x20] sm:$0xf] %vm1715_vm2, %v2112_v39  ;;  %v2113_v47 = vpack.c.bf16 %v727_v45, %v727_v45  ;;  %1788 = vst.msk [vmem:[%s3283_s2 + $0x120] sm:$0xf] %vm1715_vm2, %v2176_v42  ;;  %v2177_v49 = vpack.c.bf16 %v983_v48, %v983_v48 }
  0xee   :  { %1727 = vst.msk [vmem:[%s3283_s2 + $0x2c] sm:$0xf] %vm1715_vm2, %v2115_v43  ;;  %1791 = vst.msk [vmem:[%s3283_s2 + $0x12c] sm:$0xf] %vm1715_vm2, %v2179_v46 }
  0xef   :  { %1725 = vst.msk [vmem:[%s3283_s2 + $0x24] sm:$0xf] %vm1715_vm2, %v2113_v47  ;;  %1789 = vst.msk [vmem:[%s3283_s2 + $0x124] sm:$0xf] %vm1715_vm2, %v2177_v49 }
  0xf1   :  { %v2313_v50 = vpop.f32.mrb[12].mxu0  ;;  %v2377_v52 = vpop.f32.mrb[12].mxu1 }
  0xf2   :  { %v2118_v51 = vpack.c.bf16 %v2313_v50, %v2313_v50  ;;  %v740_v53 = vpop.f32.mrb[13].mxu0  ;;  %v2182_v54 = vpack.c.bf16 %v2377_v52, %v2377_v52  ;;  %v996_v56 = vpop.f32.mrb[13].mxu1 }
  0xf3   :  { %v2116_v55 = vpack.c.bf16 %v740_v53, %v740_v53  ;;  %v2314_v57 = vpop.f32.mrb[14].mxu0  ;;  %v2180_v58 = vpack.c.bf16 %v996_v56, %v996_v56  ;;  %v2378_v60 = vpop.f32.mrb[14].mxu1 }
  0xf4   :  { %1730 = vst.msk [vmem:[%s3283_s2 + $0x38] sm:$0xf] %vm1715_vm2, %v2118_v51  ;;  %v2119_v59 = vpack.c.bf16 %v2314_v57, %v2314_v57  ;;  %v743_v61 = vpop.f32.mrb[15].mxu0  ;;  %1794 = vst.msk [vmem:[%s3283_s2 + $0x138] sm:$0xf] %vm1715_vm2, %v2182_v54  ;;  %v2183_v62 = vpack.c.bf16 %v2378_v60, %v2378_v60  ;;  %v999_v0 = vpop.f32.mrb[15].mxu1 }
  0xf5   :  { %1728 = vst.msk [vmem:[%s3283_s2 + $0x30] sm:$0xf] %vm1715_vm2, %v2116_v55  ;;  %v2117_v63 = vpack.c.bf16 %v743_v61, %v743_v61  ;;  %1792 = vst.msk [vmem:[%s3283_s2 + $0x130] sm:$0xf] %vm1715_vm2, %v2180_v58  ;;  %v2181_v1 = vpack.c.bf16 %v999_v0, %v999_v0 }
  0xf6   :  { %1731 = vst.msk [vmem:[%s3283_s2 + $0x3c] sm:$0xf] %vm1715_vm2, %v2119_v59  ;;  %1795 = vst.msk [vmem:[%s3283_s2 + $0x13c] sm:$0xf] %vm1715_vm2, %v2183_v62 }
  0xf7   :  { %1729 = vst.msk [vmem:[%s3283_s2 + $0x34] sm:$0xf] %vm1715_vm2, %v2117_v63  ;;  %1793 = vst.msk [vmem:[%s3283_s2 + $0x134] sm:$0xf] %vm1715_vm2, %v2181_v1 }
  0xf9   :  { %v2317_v2 = vpop.f32.mrb[16].mxu0  ;;  %v2381_v4 = vpop.f32.mrb[16].mxu1 }
  0xfa   :  { %v2122_v3 = vpack.c.bf16 %v2317_v2, %v2317_v2  ;;  %v756_v5 = vpop.f32.mrb[17].mxu0  ;;  %v2186_v6 = vpack.c.bf16 %v2381_v4, %v2381_v4  ;;  %v1012_v8 = vpop.f32.mrb[17].mxu1 }
  0xfb   :  { %v2120_v7 = vpack.c.bf16 %v756_v5, %v756_v5  ;;  %v2318_v9 = vpop.f32.mrb[18].mxu0  ;;  %v2184_v10 = vpack.c.bf16 %v1012_v8, %v1012_v8  ;;  %v2382_v12 = vpop.f32.mrb[18].mxu1 }
  0xfc   :  { %1734 = vst.msk [vmem:[%s3283_s2 + $0x48] sm:$0xf] %vm1715_vm2, %v2122_v3  ;;  %v2123_v11 = vpack.c.bf16 %v2318_v9, %v2318_v9  ;;  %v759_v13 = vpop.f32.mrb[19].mxu0  ;;  %1798 = vst.msk [vmem:[%s3283_s2 + $0x148] sm:$0xf] %vm1715_vm2, %v2186_v6  ;;  %v2187_v14 = vpack.c.bf16 %v2382_v12, %v2382_v12  ;;  %v1015_v16 = vpop.f32.mrb[19].mxu1 }
  0xfd   :  { %1732 = vst.msk [vmem:[%s3283_s2 + $0x40] sm:$0xf] %vm1715_vm2, %v2120_v7  ;;  %v2121_v15 = vpack.c.bf16 %v759_v13, %v759_v13  ;;  %1796 = vst.msk [vmem:[%s3283_s2 + $0x140] sm:$0xf] %vm1715_vm2, %v2184_v10  ;;  %v2185_v17 = vpack.c.bf16 %v1015_v16, %v1015_v16 }
  0xfe   :  { %1735 = vst.msk [vmem:[%s3283_s2 + $0x4c] sm:$0xf] %vm1715_vm2, %v2123_v11  ;;  %1799 = vst.msk [vmem:[%s3283_s2 + $0x14c] sm:$0xf] %vm1715_vm2, %v2187_v14 }
  0xff   :  { %1733 = vst.msk [vmem:[%s3283_s2 + $0x44] sm:$0xf] %vm1715_vm2, %v2121_v15  ;;  %1797 = vst.msk [vmem:[%s3283_s2 + $0x144] sm:$0xf] %vm1715_vm2, %v2185_v17 }
 0x101   :  { %v2321_v18 = vpop.f32.mrb[20].mxu0  ;;  %v2385_v20 = vpop.f32.mrb[20].mxu1 }
 0x102   :  { %v2126_v19 = vpack.c.bf16 %v2321_v18, %v2321_v18  ;;  %v772_v21 = vpop.f32.mrb[21].mxu0  ;;  %v2190_v22 = vpack.c.bf16 %v2385_v20, %v2385_v20  ;;  %v1028_v24 = vpop.f32.mrb[21].mxu1 }
 0x103   :  { %v2124_v23 = vpack.c.bf16 %v772_v21, %v772_v21  ;;  %v2322_v25 = vpop.f32.mrb[22].mxu0  ;;  %v2188_v26 = vpack.c.bf16 %v1028_v24, %v1028_v24  ;;  %v2386_v28 = vpop.f32.mrb[22].mxu1 }
 0x104   :  { %1738 = vst.msk [vmem:[%s3283_s2 + $0x58] sm:$0xf] %vm1715_vm2, %v2126_v19  ;;  %v2127_v27 = vpack.c.bf16 %v2322_v25, %v2322_v25  ;;  %v775_v29 = vpop.f32.mrb[23].mxu0  ;;  %1802 = vst.msk [vmem:[%s3283_s2 + $0x158] sm:$0xf] %vm1715_vm2, %v2190_v22  ;;  %v2191_v30 = vpack.c.bf16 %v2386_v28, %v2386_v28  ;;  %v1031_v32 = vpop.f32.mrb[23].mxu1 }
 0x105   :  { %1736 = vst.msk [vmem:[%s3283_s2 + $0x50] sm:$0xf] %vm1715_vm2, %v2124_v23  ;;  %v2125_v31 = vpack.c.bf16 %v775_v29, %v775_v29  ;;  %1800 = vst.msk [vmem:[%s3283_s2 + $0x150] sm:$0xf] %vm1715_vm2, %v2188_v26  ;;  %v2189_v33 = vpack.c.bf16 %v1031_v32, %v1031_v32 }
 0x106   :  { %1739 = vst.msk [vmem:[%s3283_s2 + $0x5c] sm:$0xf] %vm1715_vm2, %v2127_v27  ;;  %1803 = vst.msk [vmem:[%s3283_s2 + $0x15c] sm:$0xf] %vm1715_vm2, %v2191_v30 }
 0x107   :  { %1737 = vst.msk [vmem:[%s3283_s2 + $0x54] sm:$0xf] %vm1715_vm2, %v2125_v31  ;;  %1801 = vst.msk [vmem:[%s3283_s2 + $0x154] sm:$0xf] %vm1715_vm2, %v2189_v33 }
 0x109   :  { %v2325_v34 = vpop.f32.mrb[24].mxu0  ;;  %v2389_v36 = vpop.f32.mrb[24].mxu1 }
 0x10a   :  { %v2130_v35 = vpack.c.bf16 %v2325_v34, %v2325_v34  ;;  %v788_v37 = vpop.f32.mrb[25].mxu0  ;;  %v2194_v38 = vpack.c.bf16 %v2389_v36, %v2389_v36  ;;  %v1044_v40 = vpop.f32.mrb[25].mxu1 }
 0x10b   :  { %v2128_v39 = vpack.c.bf16 %v788_v37, %v788_v37  ;;  %v2326_v41 = vpop.f32.mrb[26].mxu0  ;;  %v2192_v42 = vpack.c.bf16 %v1044_v40, %v1044_v40  ;;  %v2390_v44 = vpop.f32.mrb[26].mxu1 }
 0x10c   :  { %1742 = vst.msk [vmem:[%s3283_s2 + $0x68] sm:$0xf] %vm1715_vm2, %v2130_v35  ;;  %v2131_v43 = vpack.c.bf16 %v2326_v41, %v2326_v41  ;;  %v791_v45 = vpop.f32.mrb[27].mxu0  ;;  %1806 = vst.msk [vmem:[%s3283_s2 + $0x168] sm:$0xf] %vm1715_vm2, %v2194_v38  ;;  %v2195_v46 = vpack.c.bf16 %v2390_v44, %v2390_v44  ;;  %v1047_v48 = vpop.f32.mrb[27].mxu1 }
 0x10d   :  { %1740 = vst.msk [vmem:[%s3283_s2 + $0x60] sm:$0xf] %vm1715_vm2, %v2128_v39  ;;  %v2129_v47 = vpack.c.bf16 %v791_v45, %v791_v45  ;;  %1804 = vst.msk [vmem:[%s3283_s2 + $0x160] sm:$0xf] %vm1715_vm2, %v2192_v42  ;;  %v2193_v49 = vpack.c.bf16 %v1047_v48, %v1047_v48 }
 0x10e   :  { %1743 = vst.msk [vmem:[%s3283_s2 + $0x6c] sm:$0xf] %vm1715_vm2, %v2131_v43  ;;  %1807 = vst.msk [vmem:[%s3283_s2 + $0x16c] sm:$0xf] %vm1715_vm2, %v2195_v46 }
 0x10f   :  { %1741 = vst.msk [vmem:[%s3283_s2 + $0x64] sm:$0xf] %vm1715_vm2, %v2129_v47  ;;  %1805 = vst.msk [vmem:[%s3283_s2 + $0x164] sm:$0xf] %vm1715_vm2, %v2193_v49 }
 0x111   :  { %v2329_v50 = vpop.f32.mrb[28].mxu0  ;;  %v2393_v52 = vpop.f32.mrb[28].mxu1 }
 0x112   :  { %v2134_v51 = vpack.c.bf16 %v2329_v50, %v2329_v50  ;;  %v804_v53 = vpop.f32.mrb[29].mxu0  ;;  %v2198_v54 = vpack.c.bf16 %v2393_v52, %v2393_v52  ;;  %v1060_v56 = vpop.f32.mrb[29].mxu1 }
 0x113   :  { %v2132_v55 = vpack.c.bf16 %v804_v53, %v804_v53  ;;  %v2330_v57 = vpop.f32.mrb[30].mxu0  ;;  %v2196_v58 = vpack.c.bf16 %v1060_v56, %v1060_v56  ;;  %v2394_v60 = vpop.f32.mrb[30].mxu1 }
 0x114   :  { %1746 = vst.msk [vmem:[%s3283_s2 + $0x78] sm:$0xf] %vm1715_vm2, %v2134_v51  ;;  %v2135_v59 = vpack.c.bf16 %v2330_v57, %v2330_v57  ;;  %v807_v61 = vpop.f32.mrb[31].mxu0  ;;  %1810 = vst.msk [vmem:[%s3283_s2 + $0x178] sm:$0xf] %vm1715_vm2, %v2198_v54  ;;  %v2199_v62 = vpack.c.bf16 %v2394_v60, %v2394_v60  ;;  %v1063_v0 = vpop.f32.mrb[31].mxu1 }
 0x115   :  { %1744 = vst.msk [vmem:[%s3283_s2 + $0x70] sm:$0xf] %vm1715_vm2, %v2132_v55  ;;  %v2133_v63 = vpack.c.bf16 %v807_v61, %v807_v61  ;;  %1808 = vst.msk [vmem:[%s3283_s2 + $0x170] sm:$0xf] %vm1715_vm2, %v2196_v58  ;;  %v2197_v1 = vpack.c.bf16 %v1063_v0, %v1063_v0 }
 0x116   :  { %1747 = vst.msk [vmem:[%s3283_s2 + $0x7c] sm:$0xf] %vm1715_vm2, %v2135_v59  ;;  %1811 = vst.msk [vmem:[%s3283_s2 + $0x17c] sm:$0xf] %vm1715_vm2, %v2199_v62 }
 0x117   :  { %1745 = vst.msk [vmem:[%s3283_s2 + $0x74] sm:$0xf] %vm1715_vm2, %v2133_v63  ;;  %1809 = vst.msk [vmem:[%s3283_s2 + $0x174] sm:$0xf] %vm1715_vm2, %v2197_v1 }
 0x119   :  { %v2333_v2 = vpop.f32.mrb[32].mxu0  ;;  %v2397_v4 = vpop.f32.mrb[32].mxu1 }
 0x11a   :  { %v2138_v3 = vpack.c.bf16 %v2333_v2, %v2333_v2  ;;  %v820_v5 = vpop.f32.mrb[33].mxu0  ;;  %v2202_v6 = vpack.c.bf16 %v2397_v4, %v2397_v4  ;;  %v1076_v8 = vpop.f32.mrb[33].mxu1 }
 0x11b   :  { %v2136_v7 = vpack.c.bf16 %v820_v5, %v820_v5  ;;  %v2334_v9 = vpop.f32.mrb[34].mxu0  ;;  %v2200_v10 = vpack.c.bf16 %v1076_v8, %v1076_v8  ;;  %v2398_v12 = vpop.f32.mrb[34].mxu1 }
 0x11c   :  { %1750 = vst.msk [vmem:[%s3283_s2 + $0x88] sm:$0xf] %vm1715_vm2, %v2138_v3  ;;  %v2139_v11 = vpack.c.bf16 %v2334_v9, %v2334_v9  ;;  %v823_v13 = vpop.f32.mrb[35].mxu0  ;;  %1814 = vst.msk [vmem:[%s3283_s2 + $0x188] sm:$0xf] %vm1715_vm2, %v2202_v6  ;;  %v2203_v14 = vpack.c.bf16 %v2398_v12, %v2398_v12  ;;  %v1079_v16 = vpop.f32.mrb[35].mxu1 }
 0x11d   :  { %1748 = vst.msk [vmem:[%s3283_s2 + $0x80] sm:$0xf] %vm1715_vm2, %v2136_v7  ;;  %v2137_v15 = vpack.c.bf16 %v823_v13, %v823_v13  ;;  %1812 = vst.msk [vmem:[%s3283_s2 + $0x180] sm:$0xf] %vm1715_vm2, %v2200_v10  ;;  %v2201_v17 = vpack.c.bf16 %v1079_v16, %v1079_v16 }
 0x11e   :  { %1751 = vst.msk [vmem:[%s3283_s2 + $0x8c] sm:$0xf] %vm1715_vm2, %v2139_v11  ;;  %1815 = vst.msk [vmem:[%s3283_s2 + $0x18c] sm:$0xf] %vm1715_vm2, %v2203_v14 }
 0x11f   :  { %1749 = vst.msk [vmem:[%s3283_s2 + $0x84] sm:$0xf] %vm1715_vm2, %v2137_v15  ;;  %1813 = vst.msk [vmem:[%s3283_s2 + $0x184] sm:$0xf] %vm1715_vm2, %v2201_v17 }
 0x121   :  { %v2337_v18 = vpop.f32.mrb[36].mxu0  ;;  %v2401_v20 = vpop.f32.mrb[36].mxu1 }
 0x122   :  { %v2142_v19 = vpack.c.bf16 %v2337_v18, %v2337_v18  ;;  %v836_v21 = vpop.f32.mrb[37].mxu0  ;;  %v2206_v22 = vpack.c.bf16 %v2401_v20, %v2401_v20  ;;  %v1092_v24 = vpop.f32.mrb[37].mxu1 }
 0x123   :  { %v2140_v23 = vpack.c.bf16 %v836_v21, %v836_v21  ;;  %v2338_v25 = vpop.f32.mrb[38].mxu0  ;;  %v2204_v26 = vpack.c.bf16 %v1092_v24, %v1092_v24  ;;  %v2402_v28 = vpop.f32.mrb[38].mxu1 }
 0x124   :  { %1754 = vst.msk [vmem:[%s3283_s2 + $0x98] sm:$0xf] %vm1715_vm2, %v2142_v19  ;;  %v2143_v27 = vpack.c.bf16 %v2338_v25, %v2338_v25  ;;  %v839_v29 = vpop.f32.mrb[39].mxu0  ;;  %1818 = vst.msk [vmem:[%s3283_s2 + $0x198] sm:$0xf] %vm1715_vm2, %v2206_v22  ;;  %v2207_v30 = vpack.c.bf16 %v2402_v28, %v2402_v28  ;;  %v1095_v32 = vpop.f32.mrb[39].mxu1 }
 0x125   :  { %1752 = vst.msk [vmem:[%s3283_s2 + $0x90] sm:$0xf] %vm1715_vm2, %v2140_v23  ;;  %v2141_v31 = vpack.c.bf16 %v839_v29, %v839_v29  ;;  %1816 = vst.msk [vmem:[%s3283_s2 + $0x190] sm:$0xf] %vm1715_vm2, %v2204_v26  ;;  %v2205_v33 = vpack.c.bf16 %v1095_v32, %v1095_v32 }
 0x126   :  { %1755 = vst.msk [vmem:[%s3283_s2 + $0x9c] sm:$0xf] %vm1715_vm2, %v2143_v27  ;;  %1819 = vst.msk [vmem:[%s3283_s2 + $0x19c] sm:$0xf] %vm1715_vm2, %v2207_v30 }
 0x127   :  { %1753 = vst.msk [vmem:[%s3283_s2 + $0x94] sm:$0xf] %vm1715_vm2, %v2141_v31  ;;  %1817 = vst.msk [vmem:[%s3283_s2 + $0x194] sm:$0xf] %vm1715_vm2, %v2205_v33 }
 0x129   :  { %v2341_v34 = vpop.f32.mrb[40].mxu0  ;;  %v2405_v36 = vpop.f32.mrb[40].mxu1 }
 0x12a   :  { %v2146_v35 = vpack.c.bf16 %v2341_v34, %v2341_v34  ;;  %v852_v37 = vpop.f32.mrb[41].mxu0  ;;  %v2210_v38 = vpack.c.bf16 %v2405_v36, %v2405_v36  ;;  %v1108_v40 = vpop.f32.mrb[41].mxu1 }
 0x12b   :  { %v2144_v39 = vpack.c.bf16 %v852_v37, %v852_v37  ;;  %v2342_v41 = vpop.f32.mrb[42].mxu0  ;;  %v2208_v42 = vpack.c.bf16 %v1108_v40, %v1108_v40  ;;  %v2406_v44 = vpop.f32.mrb[42].mxu1 }
 0x12c   :  { %1758 = vst.msk [vmem:[%s3283_s2 + $0xa8] sm:$0xf] %vm1715_vm2, %v2146_v35  ;;  %v2147_v43 = vpack.c.bf16 %v2342_v41, %v2342_v41  ;;  %v855_v45 = vpop.f32.mrb[43].mxu0  ;;  %1822 = vst.msk [vmem:[%s3283_s2 + $0x1a8] sm:$0xf] %vm1715_vm2, %v2210_v38  ;;  %v2211_v46 = vpack.c.bf16 %v2406_v44, %v2406_v44  ;;  %v1111_v48 = vpop.f32.mrb[43].mxu1 }
 0x12d   :  { %1756 = vst.msk [vmem:[%s3283_s2 + $0xa0] sm:$0xf] %vm1715_vm2, %v2144_v39  ;;  %v2145_v47 = vpack.c.bf16 %v855_v45, %v855_v45  ;;  %1820 = vst.msk [vmem:[%s3283_s2 + $0x1a0] sm:$0xf] %vm1715_vm2, %v2208_v42  ;;  %v2209_v49 = vpack.c.bf16 %v1111_v48, %v1111_v48 }
 0x12e   :  { %1759 = vst.msk [vmem:[%s3283_s2 + $0xac] sm:$0xf] %vm1715_vm2, %v2147_v43  ;;  %1823 = vst.msk [vmem:[%s3283_s2 + $0x1ac] sm:$0xf] %vm1715_vm2, %v2211_v46 }
 0x12f   :  { %1757 = vst.msk [vmem:[%s3283_s2 + $0xa4] sm:$0xf] %vm1715_vm2, %v2145_v47  ;;  %1821 = vst.msk [vmem:[%s3283_s2 + $0x1a4] sm:$0xf] %vm1715_vm2, %v2209_v49 }
 0x131   :  { %v2345_v50 = vpop.f32.mrb[44].mxu0  ;;  %v2409_v52 = vpop.f32.mrb[44].mxu1 }
 0x132   :  { %v2150_v51 = vpack.c.bf16 %v2345_v50, %v2345_v50  ;;  %v868_v53 = vpop.f32.mrb[45].mxu0  ;;  %v2214_v54 = vpack.c.bf16 %v2409_v52, %v2409_v52  ;;  %v1124_v56 = vpop.f32.mrb[45].mxu1 }
 0x133   :  { %v2148_v55 = vpack.c.bf16 %v868_v53, %v868_v53  ;;  %v2346_v57 = vpop.f32.mrb[46].mxu0  ;;  %v2212_v58 = vpack.c.bf16 %v1124_v56, %v1124_v56  ;;  %v2410_v60 = vpop.f32.mrb[46].mxu1 }
 0x134   :  { %1762 = vst.msk [vmem:[%s3283_s2 + $0xb8] sm:$0xf] %vm1715_vm2, %v2150_v51  ;;  %v2151_v59 = vpack.c.bf16 %v2346_v57, %v2346_v57  ;;  %v871_v61 = vpop.f32.mrb[47].mxu0  ;;  %1826 = vst.msk [vmem:[%s3283_s2 + $0x1b8] sm:$0xf] %vm1715_vm2, %v2214_v54  ;;  %v2215_v62 = vpack.c.bf16 %v2410_v60, %v2410_v60  ;;  %v1127_v0 = vpop.f32.mrb[47].mxu1 }
 0x135   :  { %1760 = vst.msk [vmem:[%s3283_s2 + $0xb0] sm:$0xf] %vm1715_vm2, %v2148_v55  ;;  %v2149_v63 = vpack.c.bf16 %v871_v61, %v871_v61  ;;  %1824 = vst.msk [vmem:[%s3283_s2 + $0x1b0] sm:$0xf] %vm1715_vm2, %v2212_v58  ;;  %v2213_v1 = vpack.c.bf16 %v1127_v0, %v1127_v0 }
 0x136   :  { %1763 = vst.msk [vmem:[%s3283_s2 + $0xbc] sm:$0xf] %vm1715_vm2, %v2151_v59  ;;  %1827 = vst.msk [vmem:[%s3283_s2 + $0x1bc] sm:$0xf] %vm1715_vm2, %v2215_v62 }
 0x137   :  { %1761 = vst.msk [vmem:[%s3283_s2 + $0xb4] sm:$0xf] %vm1715_vm2, %v2149_v63  ;;  %1825 = vst.msk [vmem:[%s3283_s2 + $0x1b4] sm:$0xf] %vm1715_vm2, %v2213_v1 }
 0x139   :  { %v2349_v2 = vpop.f32.mrb[48].mxu0  ;;  %v2413_v4 = vpop.f32.mrb[48].mxu1 }
 0x13a   :  { %v2154_v3 = vpack.c.bf16 %v2349_v2, %v2349_v2  ;;  %v884_v5 = vpop.f32.mrb[49].mxu0  ;;  %v2218_v6 = vpack.c.bf16 %v2413_v4, %v2413_v4  ;;  %v1140_v8 = vpop.f32.mrb[49].mxu1 }
 0x13b   :  { %v2152_v7 = vpack.c.bf16 %v884_v5, %v884_v5  ;;  %v2350_v9 = vpop.f32.mrb[50].mxu0  ;;  %v2216_v10 = vpack.c.bf16 %v1140_v8, %v1140_v8  ;;  %v2414_v12 = vpop.f32.mrb[50].mxu1 }
 0x13c   :  { %1766 = vst.msk [vmem:[%s3283_s2 + $0xc8] sm:$0xf] %vm1715_vm2, %v2154_v3  ;;  %v2155_v11 = vpack.c.bf16 %v2350_v9, %v2350_v9  ;;  %v887_v13 = vpop.f32.mrb[51].mxu0  ;;  %1830 = vst.msk [vmem:[%s3283_s2 + $0x1c8] sm:$0xf] %vm1715_vm2, %v2218_v6  ;;  %v2219_v14 = vpack.c.bf16 %v2414_v12, %v2414_v12  ;;  %v1143_v16 = vpop.f32.mrb[51].mxu1 }
 0x13d   :  { %1764 = vst.msk [vmem:[%s3283_s2 + $0xc0] sm:$0xf] %vm1715_vm2, %v2152_v7  ;;  %v2153_v15 = vpack.c.bf16 %v887_v13, %v887_v13  ;;  %1828 = vst.msk [vmem:[%s3283_s2 + $0x1c0] sm:$0xf] %vm1715_vm2, %v2216_v10  ;;  %v2217_v17 = vpack.c.bf16 %v1143_v16, %v1143_v16 }
 0x13e   :  { %1767 = vst.msk [vmem:[%s3283_s2 + $0xcc] sm:$0xf] %vm1715_vm2, %v2155_v11  ;;  %1831 = vst.msk [vmem:[%s3283_s2 + $0x1cc] sm:$0xf] %vm1715_vm2, %v2219_v14 }
 0x13f   :  { %1765 = vst.msk [vmem:[%s3283_s2 + $0xc4] sm:$0xf] %vm1715_vm2, %v2153_v15  ;;  %1829 = vst.msk [vmem:[%s3283_s2 + $0x1c4] sm:$0xf] %vm1715_vm2, %v2217_v17 }
 0x141   :  { %v2353_v18 = vpop.f32.mrb[52].mxu0  ;;  %v2417_v20 = vpop.f32.mrb[52].mxu1 }
 0x142   :  { %v2158_v19 = vpack.c.bf16 %v2353_v18, %v2353_v18  ;;  %v900_v21 = vpop.f32.mrb[53].mxu0  ;;  %v2222_v22 = vpack.c.bf16 %v2417_v20, %v2417_v20  ;;  %v1156_v24 = vpop.f32.mrb[53].mxu1 }
 0x143   :  { %v2156_v23 = vpack.c.bf16 %v900_v21, %v900_v21  ;;  %v2354_v25 = vpop.f32.mrb[54].mxu0  ;;  %v2220_v26 = vpack.c.bf16 %v1156_v24, %v1156_v24  ;;  %v2418_v28 = vpop.f32.mrb[54].mxu1 }
 0x144   :  { %1770 = vst.msk [vmem:[%s3283_s2 + $0xd8] sm:$0xf] %vm1715_vm2, %v2158_v19  ;;  %v2159_v27 = vpack.c.bf16 %v2354_v25, %v2354_v25  ;;  %v903_v29 = vpop.f32.mrb[55].mxu0  ;;  %1834 = vst.msk [vmem:[%s3283_s2 + $0x1d8] sm:$0xf] %vm1715_vm2, %v2222_v22  ;;  %v2223_v30 = vpack.c.bf16 %v2418_v28, %v2418_v28  ;;  %v1159_v32 = vpop.f32.mrb[55].mxu1 }
 0x145   :  { %1768 = vst.msk [vmem:[%s3283_s2 + $0xd0] sm:$0xf] %vm1715_vm2, %v2156_v23  ;;  %v2157_v31 = vpack.c.bf16 %v903_v29, %v903_v29  ;;  %1832 = vst.msk [vmem:[%s3283_s2 + $0x1d0] sm:$0xf] %vm1715_vm2, %v2220_v26  ;;  %v2221_v33 = vpack.c.bf16 %v1159_v32, %v1159_v32 }
 0x146   :  { %1771 = vst.msk [vmem:[%s3283_s2 + $0xdc] sm:$0xf] %vm1715_vm2, %v2159_v27  ;;  %1835 = vst.msk [vmem:[%s3283_s2 + $0x1dc] sm:$0xf] %vm1715_vm2, %v2223_v30 }
 0x147   :  { %1769 = vst.msk [vmem:[%s3283_s2 + $0xd4] sm:$0xf] %vm1715_vm2, %v2157_v31  ;;  %1833 = vst.msk [vmem:[%s3283_s2 + $0x1d4] sm:$0xf] %vm1715_vm2, %v2221_v33 }
 0x149   :  { %v2357_v34 = vpop.f32.mrb[56].mxu0  ;;  %v2421_v36 = vpop.f32.mrb[56].mxu1 }
 0x14a   :  { %v2162_v35 = vpack.c.bf16 %v2357_v34, %v2357_v34  ;;  %v916_v37 = vpop.f32.mrb[57].mxu0  ;;  %v2226_v38 = vpack.c.bf16 %v2421_v36, %v2421_v36  ;;  %v1172_v40 = vpop.f32.mrb[57].mxu1 }
 0x14b   :  { %v2160_v39 = vpack.c.bf16 %v916_v37, %v916_v37  ;;  %v2358_v41 = vpop.f32.mrb[58].mxu0  ;;  %v2224_v42 = vpack.c.bf16 %v1172_v40, %v1172_v40  ;;  %v2422_v44 = vpop.f32.mrb[58].mxu1 }
 0x14c   :  { %1774 = vst.msk [vmem:[%s3283_s2 + $0xe8] sm:$0xf] %vm1715_vm2, %v2162_v35  ;;  %v2163_v43 = vpack.c.bf16 %v2358_v41, %v2358_v41  ;;  %v919_v45 = vpop.f32.mrb[59].mxu0  ;;  %1838 = vst.msk [vmem:[%s3283_s2 + $0x1e8] sm:$0xf] %vm1715_vm2, %v2226_v38  ;;  %v2227_v46 = vpack.c.bf16 %v2422_v44, %v2422_v44  ;;  %v1175_v48 = vpop.f32.mrb[59].mxu1 }
 0x14d   :  { %1772 = vst.msk [vmem:[%s3283_s2 + $0xe0] sm:$0xf] %vm1715_vm2, %v2160_v39  ;;  %v2161_v47 = vpack.c.bf16 %v919_v45, %v919_v45  ;;  %1836 = vst.msk [vmem:[%s3283_s2 + $0x1e0] sm:$0xf] %vm1715_vm2, %v2224_v42  ;;  %v2225_v49 = vpack.c.bf16 %v1175_v48, %v1175_v48 }
 0x14e   :  { %1775 = vst.msk [vmem:[%s3283_s2 + $0xec] sm:$0xf] %vm1715_vm2, %v2163_v43  ;;  %1839 = vst.msk [vmem:[%s3283_s2 + $0x1ec] sm:$0xf] %vm1715_vm2, %v2227_v46 }
 0x14f   :  { %1773 = vst.msk [vmem:[%s3283_s2 + $0xe4] sm:$0xf] %vm1715_vm2, %v2161_v47  ;;  %1837 = vst.msk [vmem:[%s3283_s2 + $0x1e4] sm:$0xf] %vm1715_vm2, %v2225_v49 }
 0x151   :  { %v2361_v50 = vpop.f32.mrb[60].mxu0  ;;  %v2425_v52 = vpop.f32.mrb[60].mxu1 }
 0x152   :  { %v2166_v51 = vpack.c.bf16 %v2361_v50, %v2361_v50  ;;  %v932_v53 = vpop.f32.mrb[61].mxu0  ;;  %v2230_v54 = vpack.c.bf16 %v2425_v52, %v2425_v52  ;;  %v1188_v56 = vpop.f32.mrb[61].mxu1 }
 0x153   :  { %v2164_v55 = vpack.c.bf16 %v932_v53, %v932_v53  ;;  %v2362_v57 = vpop.f32.mrb[62].mxu0  ;;  %v2228_v58 = vpack.c.bf16 %v1188_v56, %v1188_v56  ;;  %v2426_v60 = vpop.f32.mrb[62].mxu1 }
 0x154   :  { %1778 = vst.msk [vmem:[%s3283_s2 + $0xf8] sm:$0xf] %vm1715_vm2, %v2166_v51  ;;  %v2167_v59 = vpack.c.bf16 %v2362_v57, %v2362_v57  ;;  %v935_v61 = vpop.f32.mrb[63].mxu0  ;;  %1842 = vst.msk [vmem:[%s3283_s2 + $0x1f8] sm:$0xf] %vm1715_vm2, %v2230_v54  ;;  %v2231_v62 = vpack.c.bf16 %v2426_v60, %v2426_v60  ;;  %v1191_v0 = vpop.f32.mrb[63].mxu1 }
 0x155   :  { %1776 = vst.msk [vmem:[%s3283_s2 + $0xf0] sm:$0xf] %vm1715_vm2, %v2164_v55  ;;  %v2165_v63 = vpack.c.bf16 %v935_v61, %v935_v61  ;;  %1840 = vst.msk [vmem:[%s3283_s2 + $0x1f0] sm:$0xf] %vm1715_vm2, %v2228_v58  ;;  %v2229_v1 = vpack.c.bf16 %v1191_v0, %v1191_v0 }
 0x156   :  { %1779 = vst.msk [vmem:[%s3283_s2 + $0xfc] sm:$0xf] %vm1715_vm2, %v2167_v59  ;;  %1843 = vst.msk [vmem:[%s3283_s2 + $0x1fc] sm:$0xf] %vm1715_vm2, %v2231_v62 }
 0x157   :  { %1777 = vst.msk [vmem:[%s3283_s2 + $0xf4] sm:$0xf] %vm1715_vm2, %v2165_v63  ;;  %1841 = vst.msk [vmem:[%s3283_s2 + $0x1f4] sm:$0xf] %vm1715_vm2, %v2229_v1 }

// kernel: _lambda_.53
= control target key start
LH: loop header
LB: loop body
LE: loop exit
PB: predicated region body
PF: predicated region fallthrough
CT: control target
= control target key end

     0   :  { %s2532_s15 = smov 0   ;;  %s2534_s16 = smov 0   ;;  %s2826_s0 = inlined_call_operand.vmem [shape: bf16[512,512], index: 0, kind: input, shape index: {}]   ;;  %s2827_s1 = inlined_call_operand.vmem [shape: bf16[512,128], index: 1, kind: input, shape index: {}]   ;;  %s2828_s2 = inlined_call_operand.vmem [shape: f32[1,128], index: 2, kind: input, shape index: {}]   ;;  %s2829_s3 = inlined_call_operand.vmem [shape: f32[1,128], index: 3, kind: input, shape index: {}]   ;;  %s2830_s4 = inlined_call_operand.vmem [shape: bf16[512,128], index: 4, kind: output, shape index: {}]  }
   0x1   :  { %s2536_s17 = smov 0  }
   0x2 LB: > { %s33_s18 = sadd.s32 1, %s2501_s16  ;;  %p1841_p0 = scmp.ge.s32.totalorder %s2505_s17, 1  ;;  %s2505_s17 = sphi %s2536_s17, %s14_s17   ;;  %s2501_s16 = sphi %s2534_s16, %s2832_s16   ;;  %s2497_s15 = sphi %s2532_s15, %s2831_s15  }
   0x3   : > { %p35_p1 = scmp.ge.s32.totalorder %s33_s18, 2  ;;  %p224_p2 = scmp.lt.s32.totalorder %s2505_s17, 3 }
   0x5   : > { %s2834_s18 = smov (%p35_p1, %s33_s18), 0  ;;  %p225_p3 = pnand %p1841_p0, %p224_p2 }
   0x6   : > { %v2355_v0 = vld [vmem:[%s2827_s1 + $0x40] sm:$0xff] (!%p225_p3)   ;;  %v2359_v4 = vld [vmem:[%s2827_s1 + $0x48] sm:$0xff] (!%p225_p3)   ;;  %v2363_v8 = vld [vmem:[%s2827_s1 + $0x50] sm:$0xff] (!%p225_p3)   ;;  %s1842_s29 = sshll.u32 (!%p225_p3), %s2497_s15, 5 }
   0x7   : > { %228 = sbr.rel (%p225_p3) target bundleno = 389 (0x185), region = 36  ;;  %v2356_v1 = vld [vmem:[%s2827_s1 + $0xc0] sm:$0xff] (!%p225_p3)   ;;  %2107 = vmatprep.subr.bf16.mxu0 (!%p225_p3), %v2355_v0  ;;  %v2360_v5 = vld [vmem:[%s2827_s1 + $0xc8] sm:$0xff] (!%p225_p3)   ;;  %v2364_v9 = vld [vmem:[%s2827_s1 + $0xd0] sm:$0xff] (!%p225_p3)   ;;  %p274_p4 = scmp.lt.s32.totalorder (!%p225_p3), %s1842_s29, 63 }
   0x8   : > { %v2357_v2 = vld [vmem:[%s2827_s1] sm:$0xff] (!%p225_p3)   ;;  %2219 = vmatprep.subr.bf16.mxu1 (!%p225_p3), %v2356_v1  ;;  %v2361_v6 = vld [vmem:[%s2827_s1 + $0x8] sm:$0xff] (!%p225_p3)   ;;  %v2365_v10 = vld [vmem:[%s2827_s1 + $0x10] sm:$0xff] (!%p225_p3)  }
   0x9   : > { %v2358_v3 = vld [vmem:[%s2827_s1 + $0x80] sm:$0xff] (!%p225_p3)   ;;  %2108 = vmatpush3.bf16.msra.mxu0 (!%p225_p3), %v2357_v2  ;;  %v2362_v7 = vld [vmem:[%s2827_s1 + $0x88] sm:$0xff] (!%p225_p3)   ;;  %v2366_v11 = vld [vmem:[%s2827_s1 + $0x90] sm:$0xff] (!%p225_p3)  }
   0xa   : > { %2220 = vmatpush3.bf16.msra.mxu1 (!%p225_p3), %v2358_v3  ;;  %2109 = vmatprep.subr.bf16.mxu0 (!%p225_p3), %v2359_v4  ;;  %v2367_v12 = vld [vmem:[%s2827_s1 + $0x58] sm:$0xff] (!%p225_p3)   ;;  %v2371_v16 = vld [vmem:[%s2827_s1 + $0x60] sm:$0xff] (!%p225_p3)   ;;  %v2375_v20 = vld [vmem:[%s2827_s1 + $0x68] sm:$0xff] (!%p225_p3)  }
   0xb   : > { %2221 = vmatprep.subr.bf16.mxu1 (!%p225_p3), %v2360_v5  ;;  %v2368_v13 = vld [vmem:[%s2827_s1 + $0xd8] sm:$0xff] (!%p225_p3)   ;;  %v2372_v17 = vld [vmem:[%s2827_s1 + $0xe0] sm:$0xff] (!%p225_p3)   ;;  %v2376_v21 = vld [vmem:[%s2827_s1 + $0xe8] sm:$0xff] (!%p225_p3)  }
   0xc   : > { %v2369_v14 = vld [vmem:[%s2827_s1 + $0x18] sm:$0xff] (!%p225_p3)   ;;  %v2373_v18 = vld [vmem:[%s2827_s1 + $0x20] sm:$0xff] (!%p225_p3)   ;;  %v2377_v22 = vld [vmem:[%s2827_s1 + $0x28] sm:$0xff] (!%p225_p3)  }
   0xd   : > { %2110 = vmatpush3.bf16.msra.mxu0 (!%p225_p3), %v2361_v6  ;;  %v2370_v15 = vld [vmem:[%s2827_s1 + $0x98] sm:$0xff] (!%p225_p3)   ;;  %v2374_v19 = vld [vmem:[%s2827_s1 + $0xa0] sm:$0xff] (!%p225_p3)   ;;  %v2378_v23 = vld [vmem:[%s2827_s1 + $0xa8] sm:$0xff] (!%p225_p3)  }
   0xe   : > { %2222 = vmatpush3.bf16.msra.mxu1 %v2362_v7  ;;  %2111 = vmatprep.subr.bf16.mxu0 %v2363_v8  ;;  %s2836_s29 = smov (!%p274_p4, %s1842_s29), 63  ;;  %v2379_v24 = vld [vmem:[%s2827_s1 + $0x70] sm:$0xff]   ;;  %v2383_v28 = vld [vmem:[%s2827_s1 + $0x78] sm:$0xff]  }
   0xf   : > { %2223 = vmatprep.subr.bf16.mxu1 %v2364_v9  ;;  %v2380_v25 = vld [vmem:[%s2827_s1 + $0xf0] sm:$0xff]   ;;  %s1979_s30 = sshll.u32 %s2836_s29, 4  ;;  %v2384_v29 = vld [vmem:[%s2827_s1 + $0xf8] sm:$0xff]   ;;  %s1846_s25 = sshll.u32 %s2836_s29, 2 }
  0x10   : > { %v2381_v26 = vld [vmem:[%s2827_s1 + $0x30] sm:$0xff]   ;;  %s2649_s12 = scalar_lea.vmem %s2826_s0, %s1979_s30  ;;  %v2385_v30 = vld [vmem:[%s2827_s1 + $0x38] sm:$0xff]   ;;  %s2739_s28 = scalar_lea.vmem %s2830_s4, %s1846_s25 }
  0x11   : > { %2112 = vmatpush3.bf16.msra.mxu0 %v2365_v10  ;;  %v2382_v27 = vld [vmem:[%s2827_s1 + $0xb0] sm:$0xff]   ;;  %v2386_v31 = vld [vmem:[%s2827_s1 + $0xb8] sm:$0xff]  }
  0x12   : > { %2224 = vmatpush3.bf16.msra.mxu1 %v2366_v11  ;;  %2113 = vmatprep.subr.bf16.mxu0 %v2367_v12  ;;  %v2387_v32 = vld [vmem:[%s2649_s12] ss:$16 sps:$4 sm:$0xff]   ;;  %v2389_v33 = vld [vmem:[%s2649_s12 + $0x4] ss:$16 sps:$4 sm:$0xff]   ;;  %v2390_v34 = vld [vmem:[%s2649_s12 + $0x8] ss:$16 sps:$4 sm:$0xff]  }
  0x13   : > { %2225 = vmatprep.subr.bf16.mxu1 %v2368_v13  ;;  %v2392_v35 = vld [vmem:[%s2649_s12 + $0xc] ss:$16 sps:$4 sm:$0xff]   ;;  %1049 = vmatprep.mubr.bf16.mxu0 %v2389_v33  ;;  %v2393_v36 = vld [vmem:[%s2649_s12 + $0x24] ss:$16 sps:$4 sm:$0xff]   ;;  %v2397_v38 = vld [vmem:[%s2649_s12 + $0x20] ss:$16 sps:$4 sm:$0xff]  }
  0x14   : > { %1210 = vmatprep.mubr.bf16.mxu1 %v2392_v35  ;;  %v2395_v37 = vld [vmem:[%s2649_s12 + $0x2c] ss:$16 sps:$4 sm:$0xff]   ;;  %v2398_v39 = vld [vmem:[%s2649_s12 + $0x28] ss:$16 sps:$4 sm:$0xff]   ;;  %v2399_v40 = vld [vmem:[%s2649_s12 + $0x44] ss:$16 sps:$4 sm:$0xff]  }
  0x15   : > { %2114 = vmatpush3.bf16.msra.mxu0 %v2369_v14  ;;  %v2401_v41 = vld [vmem:[%s2649_s12 + $0x4c] ss:$16 sps:$4 sm:$0xff]   ;;  %v2403_v42 = vld [vmem:[%s2649_s12 + $0x40] ss:$16 sps:$4 sm:$0xff]   ;;  %v2404_v43 = vld [vmem:[%s2649_s12 + $0x48] ss:$16 sps:$4 sm:$0xff]  }
  0x16   : > { %2226 = vmatpush3.bf16.msra.mxu1 %v2370_v15  ;;  %2115 = vmatprep.subr.bf16.mxu0 %v2371_v16  ;;  %v2405_v44 = vld [vmem:[%s2649_s12 + $0x64] ss:$16 sps:$4 sm:$0xff]   ;;  %v2407_v45 = vld [vmem:[%s2649_s12 + $0x6c] ss:$16 sps:$4 sm:$0xff]   ;;  %v2409_v46 = vld [vmem:[%s2649_s12 + $0x60] ss:$16 sps:$4 sm:$0xff]  }
  0x17   : > { %2227 = vmatprep.subr.bf16.mxu1 %v2372_v17  ;;  %v2410_v47 = vld [vmem:[%s2649_s12 + $0x68] ss:$16 sps:$4 sm:$0xff]   ;;  %v2411_v48 = vld [vmem:[%s2649_s12 + $0x84] ss:$16 sps:$4 sm:$0xff]   ;;  %v2413_v49 = vld [vmem:[%s2649_s12 + $0x8c] ss:$16 sps:$4 sm:$0xff]  }
  0x18   : > { %v2415_v50 = vld [vmem:[%s2649_s12 + $0x80] ss:$16 sps:$4 sm:$0xff]   ;;  %v2416_v51 = vld [vmem:[%s2649_s12 + $0x88] ss:$16 sps:$4 sm:$0xff]   ;;  %v2417_v52 = vld [vmem:[%s2649_s12 + $0xa4] ss:$16 sps:$4 sm:$0xff]  }
  0x19   : > { %2116 = vmatpush3.bf16.msra.mxu0 %v2373_v18  ;;  %v2419_v53 = vld [vmem:[%s2649_s12 + $0xac] ss:$16 sps:$4 sm:$0xff]   ;;  %v2421_v54 = vld [vmem:[%s2649_s12 + $0xa0] ss:$16 sps:$4 sm:$0xff]   ;;  %v2422_v55 = vld [vmem:[%s2649_s12 + $0xa8] ss:$16 sps:$4 sm:$0xff]  }
  0x1a   : > { %2228 = vmatpush3.bf16.msra.mxu1 %v2374_v19  ;;  %2117 = vmatprep.subr.bf16.mxu0 %v2375_v20  ;;  %v2423_v56 = vld [vmem:[%s2649_s12 + $0xc4] ss:$16 sps:$4 sm:$0xff]   ;;  %v2425_v57 = vld [vmem:[%s2649_s12 + $0xcc] ss:$16 sps:$4 sm:$0xff]   ;;  %v2427_v58 = vld [vmem:[%s2649_s12 + $0xc0] ss:$16 sps:$4 sm:$0xff]  }
  0x1b   : > { %2229 = vmatprep.subr.bf16.mxu1 %v2376_v21  ;;  %v2428_v59 = vld [vmem:[%s2649_s12 + $0xc8] ss:$16 sps:$4 sm:$0xff]   ;;  %v2429_v60 = vld [vmem:[%s2649_s12 + $0xe4] ss:$16 sps:$4 sm:$0xff]   ;;  %v2431_v61 = vld [vmem:[%s2649_s12 + $0xec] ss:$16 sps:$4 sm:$0xff]  }
  0x1c   : > { %v2433_v62 = vld [vmem:[%s2649_s12 + $0xe0] ss:$16 sps:$4 sm:$0xff]   ;;  %v2434_v63 = vld [vmem:[%s2649_s12 + $0xe8] ss:$16 sps:$4 sm:$0xff]   ;;  %v2435_v0 = vld [vmem:[%s2649_s12 + $0x104] ss:$16 sps:$4 sm:$0xff]  }
  0x1d   : > { %2118 = vmatpush3.bf16.msra.mxu0 %v2377_v22  ;;  %v2437_v1 = vld [vmem:[%s2649_s12 + $0x10c] ss:$16 sps:$4 sm:$0xff]   ;;  %v2439_v2 = vld [vmem:[%s2649_s12 + $0x100] ss:$16 sps:$4 sm:$0xff]   ;;  %v2440_v3 = vld [vmem:[%s2649_s12 + $0x108] ss:$16 sps:$4 sm:$0xff]  }
  0x1e   : > { %2230 = vmatpush3.bf16.msra.mxu1 %v2378_v23  ;;  %2119 = vmatprep.subr.bf16.mxu0 %v2379_v24  ;;  %v2441_v4 = vld [vmem:[%s2649_s12 + $0x124] ss:$16 sps:$4 sm:$0xff]   ;;  %v2443_v5 = vld [vmem:[%s2649_s12 + $0x12c] ss:$16 sps:$4 sm:$0xff]   ;;  %v2445_v6 = vld [vmem:[%s2649_s12 + $0x120] ss:$16 sps:$4 sm:$0xff]  }
  0x1f   : > { %2231 = vmatprep.subr.bf16.mxu1 %v2380_v25  ;;  %v2446_v7 = vld [vmem:[%s2649_s12 + $0x128] ss:$16 sps:$4 sm:$0xff]   ;;  %v2447_v8 = vld [vmem:[%s2649_s12 + $0x144] ss:$16 sps:$4 sm:$0xff]   ;;  %v2449_v9 = vld [vmem:[%s2649_s12 + $0x14c] ss:$16 sps:$4 sm:$0xff]  }
  0x20   : > { %v2451_v10 = vld [vmem:[%s2649_s12 + $0x140] ss:$16 sps:$4 sm:$0xff]   ;;  %v2452_v11 = vld [vmem:[%s2649_s12 + $0x148] ss:$16 sps:$4 sm:$0xff]   ;;  %v2453_v12 = vld [vmem:[%s2649_s12 + $0x164] ss:$16 sps:$4 sm:$0xff]  }
  0x21   : > { %2120 = vmatpush3.bf16.msra.mxu0 %v2381_v26  ;;  %v2455_v13 = vld [vmem:[%s2649_s12 + $0x16c] ss:$16 sps:$4 sm:$0xff]   ;;  %v2457_v14 = vld [vmem:[%s2649_s12 + $0x160] ss:$16 sps:$4 sm:$0xff]   ;;  %v2458_v15 = vld [vmem:[%s2649_s12 + $0x168] ss:$16 sps:$4 sm:$0xff]  }
  0x22   : > { %2232 = vmatpush3.bf16.msra.mxu1 %v2382_v27  ;;  %2121 = vmatprep.subr.bf16.mxu0 %v2383_v28  ;;  %v2459_v16 = vld [vmem:[%s2649_s12 + $0x184] ss:$16 sps:$4 sm:$0xff]   ;;  %v2461_v17 = vld [vmem:[%s2649_s12 + $0x18c] ss:$16 sps:$4 sm:$0xff]   ;;  %v2463_v18 = vld [vmem:[%s2649_s12 + $0x180] ss:$16 sps:$4 sm:$0xff]  }
  0x23   : > { %2233 = vmatprep.subr.bf16.mxu1 %v2384_v29  ;;  %v2464_v19 = vld [vmem:[%s2649_s12 + $0x188] ss:$16 sps:$4 sm:$0xff]   ;;  %v2465_v20 = vld [vmem:[%s2649_s12 + $0x1a4] ss:$16 sps:$4 sm:$0xff]   ;;  %v2467_v21 = vld [vmem:[%s2649_s12 + $0x1ac] ss:$16 sps:$4 sm:$0xff]  }
  0x24   : > { %v2469_v22 = vld [vmem:[%s2649_s12 + $0x1a0] ss:$16 sps:$4 sm:$0xff]   ;;  %v2470_v23 = vld [vmem:[%s2649_s12 + $0x1a8] ss:$16 sps:$4 sm:$0xff]   ;;  %v2471_v24 = vld [vmem:[%s2649_s12 + $0x1c4] ss:$16 sps:$4 sm:$0xff]  }
  0x25   : > { %2122 = vmatpush3.bf16.msra.mxu0 %v2385_v30  ;;  %v2473_v25 = vld [vmem:[%s2649_s12 + $0x1cc] ss:$16 sps:$4 sm:$0xff]   ;;  %v2475_v26 = vld [vmem:[%s2649_s12 + $0x1c0] ss:$16 sps:$4 sm:$0xff]   ;;  %v2476_v27 = vld [vmem:[%s2649_s12 + $0x1c8] ss:$16 sps:$4 sm:$0xff]  }
  0x26   : > { %2234 = vmatpush3.bf16.msra.mxu1 %v2386_v31  ;;  %v2477_v28 = vld [vmem:[%s2649_s12 + $0x1e4] ss:$16 sps:$4 sm:$0xff]   ;;  %v2479_v29 = vld [vmem:[%s2649_s12 + $0x1ec] ss:$16 sps:$4 sm:$0xff]   ;;  %v2481_v30 = vld [vmem:[%s2649_s12 + $0x1e0] ss:$16 sps:$4 sm:$0xff]  }
  0x27   : > { %v2482_v31 = vld [vmem:[%s2649_s12 + $0x1e8] ss:$16 sps:$4 sm:$0xff]  }
  0x28   : > { %1050 = vmatmul.mubr.bf16.vlgmr.msra.gmra.mrb[0].mxu0 %v2387_v32 }
  0x29   : > { %1211 = vmatmul.mubr.bf16.vlgmr.msra.gmra.mrb[0].mxu1 %v2390_v34  ;;  %1057 = vmatprep.mubr.bf16.mxu0 %v2393_v36 }
  0x2a   : > { %1218 = vmatprep.mubr.bf16.mxu1 %v2395_v37 }
  0x30   : > { %1058 = vmatmul.mubr.bf16.gmra.mrb[4].mxu0 %v2397_v38 }
  0x31   : > { %1219 = vmatmul.mubr.bf16.gmra.mrb[4].mxu1 %v2398_v39  ;;  %1065 = vmatprep.mubr.bf16.mxu0 %v2399_v40 }
  0x32   : > { %1226 = vmatprep.mubr.bf16.mxu1 %v2401_v41  ;;  %v2724_v41 = vld [vmem:[%s2828_s2] ss:$0 sm:$0xff] }
  0x38   : > { %1066 = vmatmul.mubr.bf16.gmra.mrb[8].mxu0 %v2403_v42 }
  0x39   : > { %1227 = vmatmul.mubr.bf16.gmra.mrb[8].mxu1 %v2404_v43  ;;  %1073 = vmatprep.mubr.bf16.mxu0 %v2405_v44 }
  0x3a   : > { %1234 = vmatprep.mubr.bf16.mxu1 %v2407_v45 }
  0x40   : > { %1074 = vmatmul.mubr.bf16.gmra.mrb[12].mxu0 %v2409_v46  ;;  %v2729_v46 = vld [vmem:[%s2829_s3] ss:$0 sm:$0xff] }
  0x41   : > { %1235 = vmatmul.mubr.bf16.gmra.mrb[12].mxu1 %v2410_v47  ;;  %1081 = vmatprep.mubr.bf16.mxu0 %v2411_v48 }
  0x42   : > { %1242 = vmatprep.mubr.bf16.mxu1 %v2413_v49 }
  0x48   : > { %1082 = vmatmul.mubr.bf16.gmra.mrb[16].mxu0 %v2415_v50 }
  0x49   : > { %1243 = vmatmul.mubr.bf16.gmra.mrb[16].mxu1 %v2416_v51  ;;  %1089 = vmatprep.mubr.bf16.mxu0 %v2417_v52 }
  0x4a   : > { %1250 = vmatprep.mubr.bf16.mxu1 %v2419_v53 }
  0x50   : > { %1090 = vmatmul.mubr.bf16.gmra.mrb[20].mxu0 %v2421_v54 }
  0x51   : > { %1251 = vmatmul.mubr.bf16.gmra.mrb[20].mxu1 %v2422_v55  ;;  %1097 = vmatprep.mubr.bf16.mxu0 %v2423_v56 }
  0x52   : > { %1258 = vmatprep.mubr.bf16.mxu1 %v2425_v57 }
  0x58   : > { %1098 = vmatmul.mubr.bf16.gmra.mrb[24].mxu0 %v2427_v58 }
  0x59   : > { %1259 = vmatmul.mubr.bf16.gmra.mrb[24].mxu1 %v2428_v59  ;;  %1105 = vmatprep.mubr.bf16.mxu0 %v2429_v60 }
  0x5a   : > { %1266 = vmatprep.mubr.bf16.mxu1 %v2431_v61 }
  0x60   : > { %1106 = vmatmul.mubr.bf16.gmra.mrb[28].mxu0 %v2433_v62 }
  0x61   : > { %1267 = vmatmul.mubr.bf16.gmra.mrb[28].mxu1 %v2434_v63  ;;  %1113 = vmatprep.mubr.bf16.mxu0 %v2435_v0 }
  0x62   : > { %1274 = vmatprep.mubr.bf16.mxu1 %v2437_v1 }
  0x68   : > { %1114 = vmatmul.mubr.bf16.gmra.mrb[32].mxu0 %v2439_v2 }
  0x69   : > { %1275 = vmatmul.mubr.bf16.gmra.mrb[32].mxu1 %v2440_v3  ;;  %1121 = vmatprep.mubr.bf16.mxu0 %v2441_v4 }
  0x6a   : > { %1282 = vmatprep.mubr.bf16.mxu1 %v2443_v5 }
  0x70   : > { %1122 = vmatmul.mubr.bf16.gmra.mrb[36].mxu0 %v2445_v6 }
  0x71   : > { %1283 = vmatmul.mubr.bf16.gmra.mrb[36].mxu1 %v2446_v7  ;;  %1129 = vmatprep.mubr.bf16.mxu0 %v2447_v8 }
  0x72   : > { %1290 = vmatprep.mubr.bf16.mxu1 %v2449_v9 }
  0x78   : > { %1130 = vmatmul.mubr.bf16.gmra.mrb[40].mxu0 %v2451_v10 }
  0x79   : > { %1291 = vmatmul.mubr.bf16.gmra.mrb[40].mxu1 %v2452_v11  ;;  %1137 = vmatprep.mubr.bf16.mxu0 %v2453_v12 }
  0x7a   : > { %1298 = vmatprep.mubr.bf16.mxu1 %v2455_v13 }
  0x80   : > { %1138 = vmatmul.mubr.bf16.gmra.mrb[44].mxu0 %v2457_v14 }
  0x81   : > { %1299 = vmatmul.mubr.bf16.gmra.mrb[44].mxu1 %v2458_v15  ;;  %1145 = vmatprep.mubr.bf16.mxu0 %v2459_v16 }
  0x82   : > { %1306 = vmatprep.mubr.bf16.mxu1 %v2461_v17 }
  0x88   : > { %1146 = vmatmul.mubr.bf16.gmra.mrb[48].mxu0 %v2463_v18 }
  0x89   : > { %1307 = vmatmul.mubr.bf16.gmra.mrb[48].mxu1 %v2464_v19  ;;  %1153 = vmatprep.mubr.bf16.mxu0 %v2465_v20 }
  0x8a   : > { %1314 = vmatprep.mubr.bf16.mxu1 %v2467_v21 }
  0x90   : > { %1154 = vmatmul.mubr.bf16.gmra.mrb[52].mxu0 %v2469_v22 }
  0x91   : > { %1315 = vmatmul.mubr.bf16.gmra.mrb[52].mxu1 %v2470_v23  ;;  %1161 = vmatprep.mubr.bf16.mxu0 %v2471_v24 }
  0x92   : > { %1322 = vmatprep.mubr.bf16.mxu1 %v2473_v25 }
  0x98   : > { %1162 = vmatmul.mubr.bf16.gmra.mrb[56].mxu0 %v2475_v26 }
  0x99   : > { %1323 = vmatmul.mubr.bf16.gmra.mrb[56].mxu1 %v2476_v27  ;;  %1169 = vmatprep.mubr.bf16.mxu0 %v2477_v28 }
  0x9a   : > { %1330 = vmatprep.mubr.bf16.mxu1 %v2479_v29 }
  0xa0   : > { %1170 = vmatmul.mubr.bf16.gmra.mrb[60].mxu0 %v2481_v30 }
  0xa1   : > { %1331 = vmatmul.mubr.bf16.gmra.mrb[60].mxu1 %v2482_v31 }
  0xfb   : > { %v2123_v32 = vpop.f32.mrb[0].mxu0 }
  0xfc   : > { %v2235_v33 = vpop.f32.mrb[0].mxu1  ;;  %v2124_v34 = vpop.f32.mrb[1].mxu0 }
  0xfd   : > { %v2125_v35 = vadd.f32 %v2124_v34, %v2123_v32  ;;  %v2236_v36 = vpop.f32.mrb[1].mxu1  ;;  %v2126_v37 = vpop.f32.mrb[2].mxu0 }
  0xfe   : > { %v2237_v38 = vadd.f32 %v2236_v36, %v2235_v33  ;;  %v2238_v39 = vpop.f32.mrb[2].mxu1  ;;  %v2127_v40 = vpop.f32.mrb[3].mxu0 }
  0xff   : > { %v2128_v42 = vadd.f32 %v2127_v40, %v2126_v37  ;;  %v2239_v43 = vpop.f32.mrb[3].mxu1 }
 0x100   : > { %v1213_v44 = vadd.f32 %v2237_v38, %v2125_v35  ;;  %v2240_v45 = vadd.f32 %v2239_v43, %v2238_v39 }
 0x102   : > { %v1445_v47 = vmul.f32 %v2724_v41, %v1213_v44  ;;  %v1216_v48 = vadd.f32 %v2240_v45, %v2128_v42 }
 0x103   : > { %v2129_v49 = vpop.f32.mrb[4].mxu0 }
 0x104   : > { %v1484_v50 = vadd.f32 %v2729_v46, %v1445_v47  ;;  %v1446_v51 = vmul.f32 %v2724_v41, %v1216_v48  ;;  %v2241_v52 = vpop.f32.mrb[4].mxu1  ;;  %v2130_v53 = vpop.f32.mrb[5].mxu0 }
 0x105   : > { %v2131_v54 = vadd.f32 %v2130_v53, %v2129_v49  ;;  %v2242_v55 = vpop.f32.mrb[5].mxu1  ;;  %v2132_v56 = vpop.f32.mrb[6].mxu0 }
 0x106   : > { %v1485_v57 = vadd.f32 %v2729_v46, %v1446_v51  ;;  %v2243_v58 = vadd.f32 %v2242_v55, %v2241_v52  ;;  %v2244_v59 = vpop.f32.mrb[6].mxu1  ;;  %v2133_v60 = vpop.f32.mrb[7].mxu0  ;;  %v1516_v63 = vmax.f32 %v1484_v50, 0.0 }
 0x107   : > { %v2134_v61 = vadd.f32 %v2133_v60, %v2132_v56  ;;  %v2245_v62 = vpop.f32.mrb[7].mxu1 }
 0x108   : > { %v1517_v0 = vmax.f32 %v1485_v57, 0.0  ;;  %v1221_v1 = vadd.f32 %v2243_v58, %v2131_v54  ;;  %v2246_v2 = vadd.f32 %v2245_v62, %v2244_v59 }
 0x10a   : > { %v2015_v3 = vpack.c.bf16 %v1517_v0, %v1516_v63  ;;  %v1447_v4 = vmul.f32 %v2724_v41, %v1221_v1  ;;  %v1224_v5 = vadd.f32 %v2246_v2, %v2134_v61 }
 0x10b   : > { %v2135_v6 = vpop.f32.mrb[8].mxu0 }
 0x10c   : > { %2016 = vst [vmem:[%s2739_s28] sm:$0xff] %v2015_v3   ;;  %v1486_v7 = vadd.f32 %v2729_v46, %v1447_v4  ;;  %v1448_v8 = vmul.f32 %v2724_v41, %v1224_v5  ;;  %v2247_v9 = vpop.f32.mrb[8].mxu1  ;;  %v2136_v10 = vpop.f32.mrb[9].mxu0 }
 0x10d   : > { %v2137_v11 = vadd.f32 %v2136_v10, %v2135_v6  ;;  %v2248_v12 = vpop.f32.mrb[9].mxu1  ;;  %v2138_v13 = vpop.f32.mrb[10].mxu0 }
 0x10e   : > { %v1487_v14 = vadd.f32 %v2729_v46, %v1448_v8  ;;  %v2249_v15 = vadd.f32 %v2248_v12, %v2247_v9  ;;  %v2250_v16 = vpop.f32.mrb[10].mxu1  ;;  %v2139_v17 = vpop.f32.mrb[11].mxu0  ;;  %v1518_v20 = vmax.f32 %v1486_v7, 0.0 }
 0x10f   : > { %v2140_v18 = vadd.f32 %v2139_v17, %v2138_v13  ;;  %v2251_v19 = vpop.f32.mrb[11].mxu1 }
 0x110   : > { %v1519_v21 = vmax.f32 %v1487_v14, 0.0  ;;  %v1229_v22 = vadd.f32 %v2249_v15, %v2137_v11  ;;  %v2252_v23 = vadd.f32 %v2251_v19, %v2250_v16 }
 0x112   : > { %v2020_v24 = vpack.c.bf16 %v1519_v21, %v1518_v20  ;;  %v1449_v25 = vmul.f32 %v2724_v41, %v1229_v22  ;;  %v1232_v26 = vadd.f32 %v2252_v23, %v2140_v18 }
 0x113   : > { %v2141_v27 = vpop.f32.mrb[12].mxu0 }
 0x114   : > { %2092 = vst [vmem:[%s2739_s28 + $0x8] sm:$0xff] %v2020_v24   ;;  %v1488_v28 = vadd.f32 %v2729_v46, %v1449_v25  ;;  %v1450_v29 = vmul.f32 %v2724_v41, %v1232_v26  ;;  %v2253_v30 = vpop.f32.mrb[12].mxu1  ;;  %v2142_v31 = vpop.f32.mrb[13].mxu0 }
 0x115   : > { %v2143_v32 = vadd.f32 %v2142_v31, %v2141_v27  ;;  %v2254_v33 = vpop.f32.mrb[13].mxu1  ;;  %v2144_v34 = vpop.f32.mrb[14].mxu0 }
 0x116   : > { %v1489_v35 = vadd.f32 %v2729_v46, %v1450_v29  ;;  %v2255_v36 = vadd.f32 %v2254_v33, %v2253_v30  ;;  %v2256_v37 = vpop.f32.mrb[14].mxu1  ;;  %v2145_v38 = vpop.f32.mrb[15].mxu0  ;;  %v1520_v42 = vmax.f32 %v1488_v28, 0.0 }
 0x117   : > { %v2146_v39 = vadd.f32 %v2145_v38, %v2144_v34  ;;  %v2257_v40 = vpop.f32.mrb[15].mxu1 }
 0x118   : > { %v1521_v43 = vmax.f32 %v1489_v35, 0.0  ;;  %v1237_v44 = vadd.f32 %v2255_v36, %v2143_v32  ;;  %v2258_v45 = vadd.f32 %v2257_v40, %v2256_v37 }
 0x11a   : > { %v2025_v47 = vpack.c.bf16 %v1521_v43, %v1520_v42  ;;  %v1451_v48 = vmul.f32 %v2724_v41, %v1237_v44  ;;  %v1240_v49 = vadd.f32 %v2258_v45, %v2146_v39 }
 0x11b   : > { %v2147_v50 = vpop.f32.mrb[16].mxu0 }
 0x11c   : > { %2093 = vst [vmem:[%s2739_s28 + $0x10] sm:$0xff] %v2025_v47   ;;  %v1490_v51 = vadd.f32 %v2729_v46, %v1451_v48  ;;  %v1452_v52 = vmul.f32 %v2724_v41, %v1240_v49  ;;  %v2259_v53 = vpop.f32.mrb[16].mxu1  ;;  %v2148_v54 = vpop.f32.mrb[17].mxu0 }
 0x11d   : > { %v2149_v55 = vadd.f32 %v2148_v54, %v2147_v50  ;;  %v2260_v56 = vpop.f32.mrb[17].mxu1  ;;  %v2150_v57 = vpop.f32.mrb[18].mxu0 }
 0x11e   : > { %v1491_v58 = vadd.f32 %v2729_v46, %v1452_v52  ;;  %v2261_v59 = vadd.f32 %v2260_v56, %v2259_v53  ;;  %v2262_v60 = vpop.f32.mrb[18].mxu1  ;;  %v2151_v61 = vpop.f32.mrb[19].mxu0  ;;  %v1522_v0 = vmax.f32 %v1490_v51, 0.0 }
 0x11f   : > { %v2152_v62 = vadd.f32 %v2151_v61, %v2150_v57  ;;  %v2263_v63 = vpop.f32.mrb[19].mxu1 }
 0x120   : > { %v1523_v1 = vmax.f32 %v1491_v58, 0.0  ;;  %v1245_v2 = vadd.f32 %v2261_v59, %v2149_v55  ;;  %v2264_v3 = vadd.f32 %v2263_v63, %v2262_v60 }
 0x122   : > { %v2030_v4 = vpack.c.bf16 %v1523_v1, %v1522_v0  ;;  %v1453_v5 = vmul.f32 %v2724_v41, %v1245_v2  ;;  %v1248_v6 = vadd.f32 %v2264_v3, %v2152_v62 }
 0x123   : > { %v2153_v7 = vpop.f32.mrb[20].mxu0 }
 0x124   : > { %2094 = vst [vmem:[%s2739_s28 + $0x18] sm:$0xff] %v2030_v4   ;;  %v1492_v8 = vadd.f32 %v2729_v46, %v1453_v5  ;;  %v1454_v9 = vmul.f32 %v2724_v41, %v1248_v6  ;;  %v2265_v10 = vpop.f32.mrb[20].mxu1  ;;  %v2154_v11 = vpop.f32.mrb[21].mxu0 }
 0x125   : > { %v2155_v12 = vadd.f32 %v2154_v11, %v2153_v7  ;;  %v2266_v13 = vpop.f32.mrb[21].mxu1  ;;  %v2156_v14 = vpop.f32.mrb[22].mxu0 }
 0x126   : > { %v1493_v15 = vadd.f32 %v2729_v46, %v1454_v9  ;;  %v2267_v16 = vadd.f32 %v2266_v13, %v2265_v10  ;;  %v2268_v17 = vpop.f32.mrb[22].mxu1  ;;  %v2157_v18 = vpop.f32.mrb[23].mxu0  ;;  %v1524_v21 = vmax.f32 %v1492_v8, 0.0 }
 0x127   : > { %v2158_v19 = vadd.f32 %v2157_v18, %v2156_v14  ;;  %v2269_v20 = vpop.f32.mrb[23].mxu1 }
 0x128   : > { %v1525_v22 = vmax.f32 %v1493_v15, 0.0  ;;  %v1253_v23 = vadd.f32 %v2267_v16, %v2155_v12  ;;  %v2270_v24 = vadd.f32 %v2269_v20, %v2268_v17 }
 0x12a   : > { %v2035_v25 = vpack.c.bf16 %v1525_v22, %v1524_v21  ;;  %v1455_v26 = vmul.f32 %v2724_v41, %v1253_v23  ;;  %v1256_v27 = vadd.f32 %v2270_v24, %v2158_v19 }
 0x12b   : > { %v2159_v28 = vpop.f32.mrb[24].mxu0 }
 0x12c   : > { %2095 = vst [vmem:[%s2739_s28 + $0x20] sm:$0xff] %v2035_v25   ;;  %v1494_v29 = vadd.f32 %v2729_v46, %v1455_v26  ;;  %v1456_v30 = vmul.f32 %v2724_v41, %v1256_v27  ;;  %v2271_v31 = vpop.f32.mrb[24].mxu1  ;;  %v2160_v32 = vpop.f32.mrb[25].mxu0 }
 0x12d   : > { %v2161_v33 = vadd.f32 %v2160_v32, %v2159_v28  ;;  %v2272_v34 = vpop.f32.mrb[25].mxu1  ;;  %v2162_v35 = vpop.f32.mrb[26].mxu0 }
 0x12e   : > { %v1495_v36 = vadd.f32 %v2729_v46, %v1456_v30  ;;  %v2273_v37 = vadd.f32 %v2272_v34, %v2271_v31  ;;  %v2274_v38 = vpop.f32.mrb[26].mxu1  ;;  %v2163_v39 = vpop.f32.mrb[27].mxu0  ;;  %v1526_v43 = vmax.f32 %v1494_v29, 0.0 }
 0x12f   : > { %v2164_v40 = vadd.f32 %v2163_v39, %v2162_v35  ;;  %v2275_v42 = vpop.f32.mrb[27].mxu1 }
 0x130   : > { %v1527_v44 = vmax.f32 %v1495_v36, 0.0  ;;  %v1261_v45 = vadd.f32 %v2273_v37, %v2161_v33  ;;  %v2276_v47 = vadd.f32 %v2275_v42, %v2274_v38 }
 0x132   : > { %v2040_v48 = vpack.c.bf16 %v1527_v44, %v1526_v43  ;;  %v1457_v49 = vmul.f32 %v2724_v41, %v1261_v45  ;;  %v1264_v50 = vadd.f32 %v2276_v47, %v2164_v40 }
 0x133   : > { %v2165_v51 = vpop.f32.mrb[28].mxu0 }
 0x134   : > { %2096 = vst [vmem:[%s2739_s28 + $0x28] sm:$0xff] %v2040_v48   ;;  %v1496_v52 = vadd.f32 %v2729_v46, %v1457_v49  ;;  %v1458_v53 = vmul.f32 %v2724_v41, %v1264_v50  ;;  %v2277_v54 = vpop.f32.mrb[28].mxu1  ;;  %v2166_v55 = vpop.f32.mrb[29].mxu0 }
 0x135   : > { %v2167_v56 = vadd.f32 %v2166_v55, %v2165_v51  ;;  %v2278_v57 = vpop.f32.mrb[29].mxu1  ;;  %v2168_v58 = vpop.f32.mrb[30].mxu0 }
 0x136   : > { %v1497_v59 = vadd.f32 %v2729_v46, %v1458_v53  ;;  %v2279_v60 = vadd.f32 %v2278_v57, %v2277_v54  ;;  %v2280_v61 = vpop.f32.mrb[30].mxu1  ;;  %v2169_v62 = vpop.f32.mrb[31].mxu0  ;;  %v1528_v1 = vmax.f32 %v1496_v52, 0.0 }
 0x137   : > { %v2170_v63 = vadd.f32 %v2169_v62, %v2168_v58  ;;  %v2281_v0 = vpop.f32.mrb[31].mxu1 }
 0x138   : > { %v1529_v2 = vmax.f32 %v1497_v59, 0.0  ;;  %v1269_v3 = vadd.f32 %v2279_v60, %v2167_v56  ;;  %v2282_v4 = vadd.f32 %v2281_v0, %v2280_v61 }
 0x13a   : > { %v2045_v5 = vpack.c.bf16 %v1529_v2, %v1528_v1  ;;  %v1459_v6 = vmul.f32 %v2724_v41, %v1269_v3  ;;  %v1272_v7 = vadd.f32 %v2282_v4, %v2170_v63 }
 0x13b   : > { %v2171_v8 = vpop.f32.mrb[32].mxu0 }
 0x13c   : > { %2097 = vst [vmem:[%s2739_s28 + $0x30] sm:$0xff] %v2045_v5   ;;  %v1498_v9 = vadd.f32 %v2729_v46, %v1459_v6  ;;  %v1460_v10 = vmul.f32 %v2724_v41, %v1272_v7  ;;  %v2283_v11 = vpop.f32.mrb[32].mxu1  ;;  %v2172_v12 = vpop.f32.mrb[33].mxu0 }
 0x13d   : > { %v2173_v13 = vadd.f32 %v2172_v12, %v2171_v8  ;;  %v2284_v14 = vpop.f32.mrb[33].mxu1  ;;  %v2174_v15 = vpop.f32.mrb[34].mxu0 }
 0x13e   : > { %v1499_v16 = vadd.f32 %v2729_v46, %v1460_v10  ;;  %v2285_v17 = vadd.f32 %v2284_v14, %v2283_v11  ;;  %v2286_v18 = vpop.f32.mrb[34].mxu1  ;;  %v2175_v19 = vpop.f32.mrb[35].mxu0  ;;  %v1530_v22 = vmax.f32 %v1498_v9, 0.0 }
 0x13f   : > { %v2176_v20 = vadd.f32 %v2175_v19, %v2174_v15  ;;  %v2287_v21 = vpop.f32.mrb[35].mxu1 }
 0x140   : > { %v1531_v23 = vmax.f32 %v1499_v16, 0.0  ;;  %v1277_v24 = vadd.f32 %v2285_v17, %v2173_v13  ;;  %v2288_v25 = vadd.f32 %v2287_v21, %v2286_v18 }
 0x142   : > { %v2050_v26 = vpack.c.bf16 %v1531_v23, %v1530_v22  ;;  %v1461_v27 = vmul.f32 %v2724_v41, %v1277_v24  ;;  %v1280_v28 = vadd.f32 %v2288_v25, %v2176_v20 }
 0x143   : > { %v2177_v29 = vpop.f32.mrb[36].mxu0 }
 0x144   : > { %2098 = vst [vmem:[%s2739_s28 + $0x38] sm:$0xff] %v2050_v26   ;;  %v1500_v30 = vadd.f32 %v2729_v46, %v1461_v27  ;;  %v1462_v31 = vmul.f32 %v2724_v41, %v1280_v28  ;;  %v2289_v32 = vpop.f32.mrb[36].mxu1  ;;  %v2178_v33 = vpop.f32.mrb[37].mxu0 }
 0x145   : > { %v2179_v34 = vadd.f32 %v2178_v33, %v2177_v29  ;;  %v2290_v35 = vpop.f32.mrb[37].mxu1  ;;  %v2180_v36 = vpop.f32.mrb[38].mxu0 }
 0x146   : > { %v1501_v37 = vadd.f32 %v2729_v46, %v1462_v31  ;;  %v2291_v38 = vadd.f32 %v2290_v35, %v2289_v32  ;;  %v2292_v39 = vpop.f32.mrb[38].mxu1  ;;  %v2181_v40 = vpop.f32.mrb[39].mxu0  ;;  %v1532_v44 = vmax.f32 %v1500_v30, 0.0 }
 0x147   : > { %v2182_v42 = vadd.f32 %v2181_v40, %v2180_v36  ;;  %v2293_v43 = vpop.f32.mrb[39].mxu1 }
 0x148   : > { %v1533_v45 = vmax.f32 %v1501_v37, 0.0  ;;  %v1285_v47 = vadd.f32 %v2291_v38, %v2179_v34  ;;  %v2294_v48 = vadd.f32 %v2293_v43, %v2292_v39 }
 0x14a   : > { %v2055_v49 = vpack.c.bf16 %v1533_v45, %v1532_v44  ;;  %v1463_v50 = vmul.f32 %v2724_v41, %v1285_v47  ;;  %v1288_v51 = vadd.f32 %v2294_v48, %v2182_v42 }
 0x14b   : > { %v2183_v52 = vpop.f32.mrb[40].mxu0 }
 0x14c   : > { %2099 = vst [vmem:[%s2739_s28 + $0x40] sm:$0xff] %v2055_v49   ;;  %v1502_v53 = vadd.f32 %v2729_v46, %v1463_v50  ;;  %v1464_v54 = vmul.f32 %v2724_v41, %v1288_v51  ;;  %v2295_v55 = vpop.f32.mrb[40].mxu1  ;;  %v2184_v56 = vpop.f32.mrb[41].mxu0 }
 0x14d   : > { %v2185_v57 = vadd.f32 %v2184_v56, %v2183_v52  ;;  %v2296_v58 = vpop.f32.mrb[41].mxu1  ;;  %v2186_v59 = vpop.f32.mrb[42].mxu0 }
 0x14e   : > { %v1503_v60 = vadd.f32 %v2729_v46, %v1464_v54  ;;  %v2297_v61 = vadd.f32 %v2296_v58, %v2295_v55  ;;  %v2298_v62 = vpop.f32.mrb[42].mxu1  ;;  %v2187_v63 = vpop.f32.mrb[43].mxu0  ;;  %v1534_v2 = vmax.f32 %v1502_v53, 0.0 }
 0x14f   : > { %v2188_v0 = vadd.f32 %v2187_v63, %v2186_v59  ;;  %v2299_v1 = vpop.f32.mrb[43].mxu1 }
 0x150   : > { %v1535_v3 = vmax.f32 %v1503_v60, 0.0  ;;  %v1293_v4 = vadd.f32 %v2297_v61, %v2185_v57  ;;  %v2300_v5 = vadd.f32 %v2299_v1, %v2298_v62 }
 0x152   : > { %v2060_v6 = vpack.c.bf16 %v1535_v3, %v1534_v2  ;;  %v1465_v7 = vmul.f32 %v2724_v41, %v1293_v4  ;;  %v1296_v8 = vadd.f32 %v2300_v5, %v2188_v0 }
 0x153   : > { %v2189_v9 = vpop.f32.mrb[44].mxu0 }
 0x154   : > { %2100 = vst [vmem:[%s2739_s28 + $0x48] sm:$0xff] %v2060_v6   ;;  %v1504_v10 = vadd.f32 %v2729_v46, %v1465_v7  ;;  %v1466_v11 = vmul.f32 %v2724_v41, %v1296_v8  ;;  %v2301_v12 = vpop.f32.mrb[44].mxu1  ;;  %v2190_v13 = vpop.f32.mrb[45].mxu0 }
 0x155   : > { %v2191_v14 = vadd.f32 %v2190_v13, %v2189_v9  ;;  %v2302_v15 = vpop.f32.mrb[45].mxu1  ;;  %v2192_v16 = vpop.f32.mrb[46].mxu0 }
 0x156   : > { %v1505_v17 = vadd.f32 %v2729_v46, %v1466_v11  ;;  %v2303_v18 = vadd.f32 %v2302_v15, %v2301_v12  ;;  %v2304_v19 = vpop.f32.mrb[46].mxu1  ;;  %v2193_v20 = vpop.f32.mrb[47].mxu0  ;;  %v1536_v23 = vmax.f32 %v1504_v10, 0.0 }
 0x157   : > { %v2194_v21 = vadd.f32 %v2193_v20, %v2192_v16  ;;  %v2305_v22 = vpop.f32.mrb[47].mxu1 }
 0x158   : > { %v1537_v24 = vmax.f32 %v1505_v17, 0.0  ;;  %v1301_v25 = vadd.f32 %v2303_v18, %v2191_v14  ;;  %v2306_v26 = vadd.f32 %v2305_v22, %v2304_v19 }
 0x15a   : > { %v2065_v27 = vpack.c.bf16 %v1537_v24, %v1536_v23  ;;  %v1467_v28 = vmul.f32 %v2724_v41, %v1301_v25  ;;  %v1304_v29 = vadd.f32 %v2306_v26, %v2194_v21 }
 0x15b   : > { %v2195_v30 = vpop.f32.mrb[48].mxu0 }
 0x15c   : > { %2101 = vst [vmem:[%s2739_s28 + $0x50] sm:$0xff] %v2065_v27   ;;  %v1506_v31 = vadd.f32 %v2729_v46, %v1467_v28  ;;  %v1468_v32 = vmul.f32 %v2724_v41, %v1304_v29  ;;  %v2307_v33 = vpop.f32.mrb[48].mxu1  ;;  %v2196_v34 = vpop.f32.mrb[49].mxu0 }
 0x15d   : > { %v2197_v35 = vadd.f32 %v2196_v34, %v2195_v30  ;;  %v2308_v36 = vpop.f32.mrb[49].mxu1  ;;  %v2198_v37 = vpop.f32.mrb[50].mxu0 }
 0x15e   : > { %v1507_v38 = vadd.f32 %v2729_v46, %v1468_v32  ;;  %v2309_v39 = vadd.f32 %v2308_v36, %v2307_v33  ;;  %v2310_v40 = vpop.f32.mrb[50].mxu1  ;;  %v2199_v42 = vpop.f32.mrb[51].mxu0  ;;  %v1538_v45 = vmax.f32 %v1506_v31, 0.0 }
 0x15f   : > { %v2200_v43 = vadd.f32 %v2199_v42, %v2198_v37  ;;  %v2311_v44 = vpop.f32.mrb[51].mxu1 }
 0x160   : > { %v1539_v47 = vmax.f32 %v1507_v38, 0.0  ;;  %v1309_v48 = vadd.f32 %v2309_v39, %v2197_v35  ;;  %v2312_v49 = vadd.f32 %v2311_v44, %v2310_v40 }
 0x162   : > { %v2070_v50 = vpack.c.bf16 %v1539_v47, %v1538_v45  ;;  %v1469_v51 = vmul.f32 %v2724_v41, %v1309_v48  ;;  %v1312_v52 = vadd.f32 %v2312_v49, %v2200_v43 }
 0x163   : > { %v2201_v53 = vpop.f32.mrb[52].mxu0 }
 0x164   : > { %2102 = vst [vmem:[%s2739_s28 + $0x58] sm:$0xff] %v2070_v50   ;;  %v1508_v54 = vadd.f32 %v2729_v46, %v1469_v51  ;;  %v1470_v55 = vmul.f32 %v2724_v41, %v1312_v52  ;;  %v2313_v56 = vpop.f32.mrb[52].mxu1  ;;  %v2202_v57 = vpop.f32.mrb[53].mxu0 }
 0x165   : > { %v2203_v58 = vadd.f32 %v2202_v57, %v2201_v53  ;;  %v2314_v59 = vpop.f32.mrb[53].mxu1  ;;  %v2204_v60 = vpop.f32.mrb[54].mxu0 }
 0x166   : > { %v1509_v61 = vadd.f32 %v2729_v46, %v1470_v55  ;;  %v2315_v62 = vadd.f32 %v2314_v59, %v2313_v56  ;;  %v2316_v63 = vpop.f32.mrb[54].mxu1  ;;  %v2205_v0 = vpop.f32.mrb[55].mxu0  ;;  %v1540_v3 = vmax.f32 %v1508_v54, 0.0 }
 0x167   : > { %v2206_v1 = vadd.f32 %v2205_v0, %v2204_v60  ;;  %v2317_v2 = vpop.f32.mrb[55].mxu1 }
 0x168   : > { %v1541_v4 = vmax.f32 %v1509_v61, 0.0  ;;  %v1317_v5 = vadd.f32 %v2315_v62, %v2203_v58  ;;  %v2318_v6 = vadd.f32 %v2317_v2, %v2316_v63 }
 0x16a   : > { %v2075_v7 = vpack.c.bf16 %v1541_v4, %v1540_v3  ;;  %v1471_v8 = vmul.f32 %v2724_v41, %v1317_v5  ;;  %v1320_v9 = vadd.f32 %v2318_v6, %v2206_v1 }
 0x16b   : > { %v2207_v10 = vpop.f32.mrb[56].mxu0 }
 0x16c   : > { %2103 = vst [vmem:[%s2739_s28 + $0x60] sm:$0xff] %v2075_v7   ;;  %v1510_v11 = vadd.f32 %v2729_v46, %v1471_v8  ;;  %v1472_v12 = vmul.f32 %v2724_v41, %v1320_v9  ;;  %v2319_v13 = vpop.f32.mrb[56].mxu1  ;;  %v2208_v14 = vpop.f32.mrb[57].mxu0 }
 0x16d   : > { %v2209_v15 = vadd.f32 %v2208_v14, %v2207_v10  ;;  %v2320_v16 = vpop.f32.mrb[57].mxu1  ;;  %v2210_v17 = vpop.f32.mrb[58].mxu0 }
 0x16e   : > { %v1511_v18 = vadd.f32 %v2729_v46, %v1472_v12  ;;  %v2321_v19 = vadd.f32 %v2320_v16, %v2319_v13  ;;  %v2322_v20 = vpop.f32.mrb[58].mxu1  ;;  %v2211_v21 = vpop.f32.mrb[59].mxu0  ;;  %v1542_v24 = vmax.f32 %v1510_v11, 0.0 }
 0x16f   : > { %v2212_v22 = vadd.f32 %v2211_v21, %v2210_v17  ;;  %v2323_v23 = vpop.f32.mrb[59].mxu1 }
 0x170   : > { %v1543_v25 = vmax.f32 %v1511_v18, 0.0  ;;  %v1325_v26 = vadd.f32 %v2321_v19, %v2209_v15  ;;  %v2324_v27 = vadd.f32 %v2323_v23, %v2322_v20 }
 0x172   : > { %v2080_v28 = vpack.c.bf16 %v1543_v25, %v1542_v24  ;;  %v1473_v29 = vmul.f32 %v2724_v41, %v1325_v26  ;;  %v1328_v30 = vadd.f32 %v2324_v27, %v2212_v22 }
 0x173   : > { %v2213_v31 = vpop.f32.mrb[60].mxu0 }
 0x174   : > { %2104 = vst [vmem:[%s2739_s28 + $0x68] sm:$0xff] %v2080_v28   ;;  %v1512_v32 = vadd.f32 %v2729_v46, %v1473_v29  ;;  %v1474_v33 = vmul.f32 %v2724_v41, %v1328_v30  ;;  %v2325_v34 = vpop.f32.mrb[60].mxu1  ;;  %v2214_v35 = vpop.f32.mrb[61].mxu0 }
 0x175   : > { %v2215_v36 = vadd.f32 %v2214_v35, %v2213_v31  ;;  %v2326_v37 = vpop.f32.mrb[61].mxu1  ;;  %v2216_v38 = vpop.f32.mrb[62].mxu0 }
 0x176   : > { %v1513_v39 = vadd.f32 %v2729_v46, %v1474_v33  ;;  %v2327_v40 = vadd.f32 %v2326_v37, %v2325_v34  ;;  %v2328_v42 = vpop.f32.mrb[62].mxu1  ;;  %v2217_v43 = vpop.f32.mrb[63].mxu0  ;;  %v1544_v47 = vmax.f32 %v1512_v32, 0.0 }
 0x177   : > { %v2218_v44 = vadd.f32 %v2217_v43, %v2216_v38  ;;  %v2329_v45 = vpop.f32.mrb[63].mxu1 }
 0x178   : > { %v1545_v48 = vmax.f32 %v1513_v39, 0.0  ;;  %v1333_v49 = vadd.f32 %v2327_v40, %v2215_v36  ;;  %v2330_v50 = vadd.f32 %v2329_v45, %v2328_v42 }
 0x17a   : > { %v2085_v51 = vpack.c.bf16 %v1545_v48, %v1544_v47  ;;  %v1475_v52 = vmul.f32 %v2724_v41, %v1333_v49  ;;  %v1336_v53 = vadd.f32 %v2330_v50, %v2218_v44 }
 0x17c   : > { %2105 = vst [vmem:[%s2739_s28 + $0x70] sm:$0xff] %v2085_v51   ;;  %v1514_v54 = vadd.f32 %v2729_v46, %v1475_v52  ;;  %v1476_v55 = vmul.f32 %v2724_v41, %v1336_v53 }
 0x17e   : > { %v1515_v56 = vadd.f32 %v2729_v46, %v1476_v55  ;;  %v1546_v57 = vmax.f32 %v1514_v54, 0.0 }
 0x180   : > { %v1547_v58 = vmax.f32 %v1515_v56, 0.0 }
 0x182   : > { %v2090_v59 = vpack.c.bf16 %v1547_v58, %v1546_v57 }
 0x184   : > { %2106 = vst [vmem:[%s2739_s28 + $0x78] sm:$0xff] %v2090_v59  }
 0x185 PF: > { %s14_s17 = sadd.s32 1, %s2505_s17   ;;  %s2831_s15 = smov %s2501_s16 }
 0x186   : > { %p11_p5 = scmp.ge.s32.totalorder %s14_s17, 4   ;;  %s2832_s16 = smov %s2834_s18 }
 0x188   :  { %13 = sbr.rel (!%p11_p5) target bundleno = 2 (0x2), region = 83 }

// kernel: _lambda_.55
= control target key start
LH: loop header
LB: loop body
LE: loop exit
PB: predicated region body
PF: predicated region fallthrough
CT: control target
= control target key end

     0   :  { %s1566_s15 = smov 0   ;;  %s1568_s16 = smov 0   ;;  %s1740_s0 = inlined_call_operand.vmem [shape: bf16[512,128], index: 0, kind: input, shape index: {}]   ;;  %s1741_s1 = inlined_call_operand.vmem [shape: bf16[128,128], index: 1, kind: input, shape index: {}]   ;;  %s1742_s2 = inlined_call_operand.vmem [shape: f32[1,128], index: 2, kind: input, shape index: {}]   ;;  %s1743_s3 = inlined_call_operand.vmem [shape: f32[1,128], index: 3, kind: input, shape index: {}]   ;;  %s1744_s4 = inlined_call_operand.vmem [shape: bf16[512,128], index: 4, kind: output, shape index: {}]  }
   0x1   :  { %s1570_s17 = smov 0  }
   0x2 LB: > { %s33_s18 = sadd.s32 1, %s1535_s16  ;;  %p1189_p0 = scmp.ge.s32.totalorder %s1539_s17, 1  ;;  %s1539_s17 = sphi %s1570_s17, %s14_s17   ;;  %s1535_s16 = sphi %s1568_s16, %s1746_s16   ;;  %s1531_s15 = sphi %s1566_s15, %s1745_s15  }
   0x3   : > { %p35_p1 = scmp.ge.s32.totalorder %s33_s18, 2  ;;  %p221_p2 = scmp.lt.s32.totalorder %s1539_s17, 3 }
   0x5   : > { %s1748_s18 = smov (%p35_p1, %s33_s18), 0  ;;  %p222_p3 = pnand %p1189_p0, %p221_p2 }
   0x6   : > { %v1493_v0 = vld [vmem:[%s1741_s1] sm:$0xff] (!%p222_p3)   ;;  %s1190_s21 = sshll.u32 (!%p222_p3), %s1531_s15, 5  ;;  %v1494_v1 = vld [vmem:[%s1741_s1 + $0x8] sm:$0xff] (!%p222_p3)   ;;  %v1495_v2 = vld [vmem:[%s1741_s1 + $0x10] sm:$0xff] (!%p222_p3)  }
   0x7   : > { %225 = sbr.rel (%p222_p3) target bundleno = 285 (0x11d), region = 36  ;;  %p268_p4 = scmp.lt.s32.totalorder (!%p222_p3), %s1190_s21, 63  ;;  %1405 = vmatprep.subr.bf16.mxu0 (!%p222_p3), %v1493_v0  ;;  %1453 = vmatprep.subr.bf16.mxu1 (!%p222_p3), %v1493_v0  ;;  %v1496_v3 = vld [vmem:[%s1741_s1 + $0x18] sm:$0xff] (!%p222_p3)   ;;  %v1497_v6 = vld [vmem:[%s1741_s1 + $0x20] sm:$0xff] (!%p222_p3)   ;;  %v1498_v7 = vld [vmem:[%s1741_s1 + $0x28] sm:$0xff] (!%p222_p3)  }
   0x8   : > { %1406 = vmatpush3.bf16.msra.mxu0 (!%p222_p3), %v1493_v0  ;;  %1461 = vmatpush3.bf16.msra.mxu1 (!%p222_p3), %v1493_v0  ;;  %v1499_v8 = vld [vmem:[%s1741_s1 + $0x30] sm:$0xff] (!%p222_p3)   ;;  %v1500_v9 = vld [vmem:[%s1741_s1 + $0x38] sm:$0xff] (!%p222_p3)   ;;  %v1637_v24 = vld [vmem:[%s1742_s2] ss:$0 sm:$0xff] (!%p222_p3) }
   0x9   : > { %1407 = vmatprep.subr.bf16.mxu0 (!%p222_p3), %v1494_v1  ;;  %1454 = vmatprep.subr.bf16.mxu1 (!%p222_p3), %v1494_v1  ;;  %v1644_v31 = vld [vmem:[%s1743_s3] ss:$0 sm:$0xff] (!%p222_p3) }
   0xc   : > { %1408 = vmatpush3.bf16.msra.mxu0 (!%p222_p3), %v1494_v1  ;;  %1462 = vmatpush3.bf16.msra.mxu1 (!%p222_p3), %v1494_v1 }
   0xd   : > { %1409 = vmatprep.subr.bf16.mxu0 (!%p222_p3), %v1495_v2  ;;  %1455 = vmatprep.subr.bf16.mxu1 (!%p222_p3), %v1495_v2 }
   0xe   : > { %s1750_s21 = smov (!%p268_p4, %s1190_s21), 63 }
   0xf   : > { %s1191_s26 = sshll.u32 %s1750_s21, 2 }
  0x10   : > { %s1601_s29 = scalar_lea.vmem %s1740_s0, %s1191_s26  ;;  %1410 = vmatpush3.bf16.msra.mxu0 %v1495_v2  ;;  %1463 = vmatpush3.bf16.msra.mxu1 %v1495_v2  ;;  %s1663_s24 = scalar_lea.vmem %s1744_s4, %s1191_s26 }
  0x11   : > { %v1501_v4 = vld [vmem:[%s1601_s29] sm:$0xff]   ;;  %1411 = vmatprep.subr.bf16.mxu0 %v1496_v3  ;;  %1456 = vmatprep.subr.bf16.mxu1 %v1496_v3  ;;  %v1503_v10 = vld [vmem:[%s1601_s29 + $0x8] sm:$0xff]   ;;  %v1505_v12 = vld [vmem:[%s1601_s29 + $0x10] sm:$0xff]  }
  0x12   : > { %v1502_v5 = vld [vmem:[%s1601_s29 + $0x40] sm:$0xff]   ;;  %1421 = vmatprep.mubr.bf16.mxu0 %v1501_v4  ;;  %v1504_v11 = vld [vmem:[%s1601_s29 + $0x48] sm:$0xff]   ;;  %v1506_v13 = vld [vmem:[%s1601_s29 + $0x50] sm:$0xff]  }
  0x13   : > { %1437 = vmatprep.mubr.bf16.mxu1 %v1502_v5  ;;  %v1507_v14 = vld [vmem:[%s1601_s29 + $0x18] sm:$0xff]   ;;  %v1509_v16 = vld [vmem:[%s1601_s29 + $0x20] sm:$0xff]   ;;  %v1511_v18 = vld [vmem:[%s1601_s29 + $0x28] sm:$0xff]  }
  0x14   : > { %1412 = vmatpush3.bf16.msra.mxu0 %v1496_v3  ;;  %1464 = vmatpush3.bf16.msra.mxu1 %v1496_v3  ;;  %v1508_v15 = vld [vmem:[%s1601_s29 + $0x58] sm:$0xff]   ;;  %v1510_v17 = vld [vmem:[%s1601_s29 + $0x60] sm:$0xff]   ;;  %v1512_v19 = vld [vmem:[%s1601_s29 + $0x68] sm:$0xff]  }
  0x15   : > { %1413 = vmatprep.subr.bf16.mxu0 %v1497_v6  ;;  %1457 = vmatprep.subr.bf16.mxu1 %v1497_v6  ;;  %v1513_v20 = vld [vmem:[%s1601_s29 + $0x30] sm:$0xff]   ;;  %v1515_v22 = vld [vmem:[%s1601_s29 + $0x38] sm:$0xff]  }
  0x16   : > { %v1514_v21 = vld [vmem:[%s1601_s29 + $0x70] sm:$0xff]   ;;  %v1516_v23 = vld [vmem:[%s1601_s29 + $0x78] sm:$0xff]  }
  0x18   : > { %1414 = vmatpush3.bf16.msra.mxu0 %v1497_v6  ;;  %1465 = vmatpush3.bf16.msra.mxu1 %v1497_v6 }
  0x19   : > { %1415 = vmatprep.subr.bf16.mxu0 %v1498_v7  ;;  %1458 = vmatprep.subr.bf16.mxu1 %v1498_v7 }
  0x1c   : > { %1416 = vmatpush3.bf16.msra.mxu0 %v1498_v7  ;;  %1466 = vmatpush3.bf16.msra.mxu1 %v1498_v7 }
  0x1d   : > { %1417 = vmatprep.subr.bf16.mxu0 %v1499_v8  ;;  %1459 = vmatprep.subr.bf16.mxu1 %v1499_v8 }
  0x20   : > { %1418 = vmatpush3.bf16.msra.mxu0 %v1499_v8  ;;  %1467 = vmatpush3.bf16.msra.mxu1 %v1499_v8 }
  0x21   : > { %1419 = vmatprep.subr.bf16.mxu0 %v1500_v9  ;;  %1460 = vmatprep.subr.bf16.mxu1 %v1500_v9 }
  0x24   : > { %1420 = vmatpush3.bf16.msra.mxu0 %v1500_v9  ;;  %1468 = vmatpush3.bf16.msra.mxu1 %v1500_v9 }
  0x27   : > { %1422 = vmatmul.mubr.bf16.vlgmr.msra.gmra.mrb[0].mxu0 %v1503_v10  ;;  %1438 = vmatmul.mubr.bf16.vlgmr.msra.gmra.mrb[0].mxu1 %v1504_v11 }
  0x28   : > { %1425 = vmatprep.mubr.bf16.mxu0 %v1505_v12  ;;  %1441 = vmatprep.mubr.bf16.mxu1 %v1506_v13 }
  0x2f   : > { %1426 = vmatmul.mubr.bf16.gmra.mrb[4].mxu0 %v1507_v14  ;;  %1442 = vmatmul.mubr.bf16.gmra.mrb[4].mxu1 %v1508_v15 }
  0x30   : > { %1429 = vmatprep.mubr.bf16.mxu0 %v1509_v16  ;;  %1445 = vmatprep.mubr.bf16.mxu1 %v1510_v17 }
  0x37   : > { %1430 = vmatmul.mubr.bf16.gmra.mrb[8].mxu0 %v1511_v18  ;;  %1446 = vmatmul.mubr.bf16.gmra.mrb[8].mxu1 %v1512_v19 }
  0x38   : > { %1433 = vmatprep.mubr.bf16.mxu0 %v1513_v20  ;;  %1449 = vmatprep.mubr.bf16.mxu1 %v1514_v21 }
  0x3f   : > { %1434 = vmatmul.mubr.bf16.gmra.mrb[12].mxu0 %v1515_v22  ;;  %1450 = vmatmul.mubr.bf16.gmra.mrb[12].mxu1 %v1516_v23 }
  0xfa   : > { %v1423_v25 = vpop.f32.mrb[0].mxu0  ;;  %v1439_v26 = vpop.f32.mrb[0].mxu1 }
  0xfb   : > { %v830_v27 = vmul.f32 %v1423_v25, %v1637_v24  ;;  %v846_v28 = vmul.f32 %v1439_v26, %v1637_v24  ;;  %v595_v29 = vpop.f32.mrb[1].mxu0  ;;  %v659_v30 = vpop.f32.mrb[1].mxu1 }
  0xfc   : > { %v828_v32 = vmul.f32 %v1637_v24, %v595_v29  ;;  %v844_v33 = vmul.f32 %v1637_v24, %v659_v30  ;;  %v1424_v34 = vpop.f32.mrb[2].mxu0  ;;  %v1440_v35 = vpop.f32.mrb[2].mxu1 }
  0xfd   : > { %v831_v36 = vmul.f32 %v1424_v34, %v1637_v24  ;;  %v847_v37 = vmul.f32 %v1440_v35, %v1637_v24  ;;  %v598_v38 = vpop.f32.mrb[3].mxu0  ;;  %v662_v39 = vpop.f32.mrb[3].mxu1  ;;  %v869_v42 = vadd.f32 %v1644_v31, %v830_v27  ;;  %v885_v43 = vadd.f32 %v1644_v31, %v846_v28 }
  0xfe   : > { %v829_v40 = vmul.f32 %v1637_v24, %v598_v38  ;;  %v845_v41 = vmul.f32 %v1637_v24, %v662_v39  ;;  %v867_v46 = vadd.f32 %v1644_v31, %v828_v32  ;;  %v883_v47 = vadd.f32 %v1644_v31, %v844_v33 }
  0xff   : > { %v870_v44 = vadd.f32 %v1644_v31, %v831_v36  ;;  %v886_v45 = vadd.f32 %v1644_v31, %v847_v37 }
 0x100   : > { %v868_v48 = vadd.f32 %v1644_v31, %v829_v40  ;;  %v884_v49 = vadd.f32 %v1644_v31, %v845_v41 }
 0x101   : > { %v1294_v50 = vpack.c.bf16 %v870_v44, %v869_v42  ;;  %v1334_v51 = vpack.c.bf16 %v886_v45, %v885_v43 }
 0x102   : > { %v1289_v52 = vpack.c.bf16 %v868_v48, %v867_v46  ;;  %v1329_v53 = vpack.c.bf16 %v884_v49, %v883_v47  ;;  %v1427_v54 = vpop.f32.mrb[4].mxu0  ;;  %v1443_v55 = vpop.f32.mrb[4].mxu1 }
 0x103   : > { %1366 = vst [vmem:[%s1663_s24 + $0x8] sm:$0xff] %v1294_v50   ;;  %1374 = vst [vmem:[%s1663_s24 + $0x48] sm:$0xff] %v1334_v51   ;;  %v834_v56 = vmul.f32 %v1427_v54, %v1637_v24  ;;  %v850_v57 = vmul.f32 %v1443_v55, %v1637_v24  ;;  %v611_v58 = vpop.f32.mrb[5].mxu0  ;;  %v675_v59 = vpop.f32.mrb[5].mxu1 }
 0x104   : > { %1290 = vst [vmem:[%s1663_s24] sm:$0xff] %v1289_v52   ;;  %1373 = vst [vmem:[%s1663_s24 + $0x40] sm:$0xff] %v1329_v53   ;;  %v832_v60 = vmul.f32 %v1637_v24, %v611_v58  ;;  %v848_v61 = vmul.f32 %v1637_v24, %v675_v59  ;;  %v1428_v62 = vpop.f32.mrb[6].mxu0  ;;  %v1444_v63 = vpop.f32.mrb[6].mxu1 }
 0x105   : > { %v835_v0 = vmul.f32 %v1428_v62, %v1637_v24  ;;  %v851_v1 = vmul.f32 %v1444_v63, %v1637_v24  ;;  %v614_v2 = vpop.f32.mrb[7].mxu0  ;;  %v678_v3 = vpop.f32.mrb[7].mxu1  ;;  %v873_v6 = vadd.f32 %v1644_v31, %v834_v56  ;;  %v889_v7 = vadd.f32 %v1644_v31, %v850_v57 }
 0x106   : > { %v833_v4 = vmul.f32 %v1637_v24, %v614_v2  ;;  %v849_v5 = vmul.f32 %v1637_v24, %v678_v3  ;;  %v871_v10 = vadd.f32 %v1644_v31, %v832_v60  ;;  %v887_v11 = vadd.f32 %v1644_v31, %v848_v61 }
 0x107   : > { %v874_v8 = vadd.f32 %v1644_v31, %v835_v0  ;;  %v890_v9 = vadd.f32 %v1644_v31, %v851_v1 }
 0x108   : > { %v872_v12 = vadd.f32 %v1644_v31, %v833_v4  ;;  %v888_v13 = vadd.f32 %v1644_v31, %v849_v5 }
 0x109   : > { %v1304_v14 = vpack.c.bf16 %v874_v8, %v873_v6  ;;  %v1344_v15 = vpack.c.bf16 %v890_v9, %v889_v7 }
 0x10a   : > { %v1299_v16 = vpack.c.bf16 %v872_v12, %v871_v10  ;;  %v1339_v17 = vpack.c.bf16 %v888_v13, %v887_v11  ;;  %v1431_v18 = vpop.f32.mrb[8].mxu0  ;;  %v1447_v19 = vpop.f32.mrb[8].mxu1 }
 0x10b   : > { %1368 = vst [vmem:[%s1663_s24 + $0x18] sm:$0xff] %v1304_v14   ;;  %1376 = vst [vmem:[%s1663_s24 + $0x58] sm:$0xff] %v1344_v15   ;;  %v838_v20 = vmul.f32 %v1431_v18, %v1637_v24  ;;  %v854_v21 = vmul.f32 %v1447_v19, %v1637_v24  ;;  %v627_v22 = vpop.f32.mrb[9].mxu0  ;;  %v691_v23 = vpop.f32.mrb[9].mxu1 }
 0x10c   : > { %1367 = vst [vmem:[%s1663_s24 + $0x10] sm:$0xff] %v1299_v16   ;;  %1375 = vst [vmem:[%s1663_s24 + $0x50] sm:$0xff] %v1339_v17   ;;  %v836_v25 = vmul.f32 %v1637_v24, %v627_v22  ;;  %v852_v26 = vmul.f32 %v1637_v24, %v691_v23  ;;  %v1432_v27 = vpop.f32.mrb[10].mxu0  ;;  %v1448_v28 = vpop.f32.mrb[10].mxu1 }
 0x10d   : > { %v839_v29 = vmul.f32 %v1432_v27, %v1637_v24  ;;  %v855_v30 = vmul.f32 %v1448_v28, %v1637_v24  ;;  %v630_v32 = vpop.f32.mrb[11].mxu0  ;;  %v694_v33 = vpop.f32.mrb[11].mxu1  ;;  %v877_v36 = vadd.f32 %v1644_v31, %v838_v20  ;;  %v893_v37 = vadd.f32 %v1644_v31, %v854_v21 }
 0x10e   : > { %v837_v34 = vmul.f32 %v1637_v24, %v630_v32  ;;  %v853_v35 = vmul.f32 %v1637_v24, %v694_v33  ;;  %v875_v40 = vadd.f32 %v1644_v31, %v836_v25  ;;  %v891_v41 = vadd.f32 %v1644_v31, %v852_v26 }
 0x10f   : > { %v878_v38 = vadd.f32 %v1644_v31, %v839_v29  ;;  %v894_v39 = vadd.f32 %v1644_v31, %v855_v30 }
 0x110   : > { %v876_v42 = vadd.f32 %v1644_v31, %v837_v34  ;;  %v892_v43 = vadd.f32 %v1644_v31, %v853_v35 }
 0x111   : > { %v1314_v44 = vpack.c.bf16 %v878_v38, %v877_v36  ;;  %v1354_v45 = vpack.c.bf16 %v894_v39, %v893_v37 }
 0x112   : > { %v1309_v46 = vpack.c.bf16 %v876_v42, %v875_v40  ;;  %v1349_v47 = vpack.c.bf16 %v892_v43, %v891_v41  ;;  %v1435_v48 = vpop.f32.mrb[12].mxu0  ;;  %v1451_v49 = vpop.f32.mrb[12].mxu1 }
 0x113   : > { %1370 = vst [vmem:[%s1663_s24 + $0x28] sm:$0xff] %v1314_v44   ;;  %1378 = vst [vmem:[%s1663_s24 + $0x68] sm:$0xff] %v1354_v45   ;;  %v842_v50 = vmul.f32 %v1435_v48, %v1637_v24  ;;  %v858_v51 = vmul.f32 %v1451_v49, %v1637_v24  ;;  %v643_v52 = vpop.f32.mrb[13].mxu0  ;;  %v707_v53 = vpop.f32.mrb[13].mxu1 }
 0x114   : > { %1369 = vst [vmem:[%s1663_s24 + $0x20] sm:$0xff] %v1309_v46   ;;  %1377 = vst [vmem:[%s1663_s24 + $0x60] sm:$0xff] %v1349_v47   ;;  %v840_v54 = vmul.f32 %v1637_v24, %v643_v52  ;;  %v856_v55 = vmul.f32 %v1637_v24, %v707_v53  ;;  %v1436_v56 = vpop.f32.mrb[14].mxu0  ;;  %v1452_v57 = vpop.f32.mrb[14].mxu1 }
 0x115   : > { %v843_v58 = vmul.f32 %v1436_v56, %v1637_v24  ;;  %v859_v59 = vmul.f32 %v1452_v57, %v1637_v24  ;;  %v646_v60 = vpop.f32.mrb[15].mxu0  ;;  %v710_v61 = vpop.f32.mrb[15].mxu1  ;;  %v881_v0 = vadd.f32 %v1644_v31, %v842_v50  ;;  %v897_v1 = vadd.f32 %v1644_v31, %v858_v51 }
 0x116   : > { %v841_v62 = vmul.f32 %v1637_v24, %v646_v60  ;;  %v857_v63 = vmul.f32 %v1637_v24, %v710_v61  ;;  %v879_v4 = vadd.f32 %v1644_v31, %v840_v54  ;;  %v895_v5 = vadd.f32 %v1644_v31, %v856_v55 }
 0x117   : > { %v882_v2 = vadd.f32 %v1644_v31, %v843_v58  ;;  %v898_v3 = vadd.f32 %v1644_v31, %v859_v59 }
 0x118   : > { %v880_v6 = vadd.f32 %v1644_v31, %v841_v62  ;;  %v896_v7 = vadd.f32 %v1644_v31, %v857_v63 }
 0x119   : > { %v1324_v8 = vpack.c.bf16 %v882_v2, %v881_v0  ;;  %v1364_v9 = vpack.c.bf16 %v898_v3, %v897_v1 }
 0x11a   : > { %v1319_v24 = vpack.c.bf16 %v880_v6, %v879_v4  ;;  %v1359_v10 = vpack.c.bf16 %v896_v7, %v895_v5 }
 0x11b   : > { %1372 = vst [vmem:[%s1663_s24 + $0x38] sm:$0xff] %v1324_v8   ;;  %1380 = vst [vmem:[%s1663_s24 + $0x78] sm:$0xff] %v1364_v9  }
 0x11c   : > { %1371 = vst [vmem:[%s1663_s24 + $0x30] sm:$0xff] %v1319_v24   ;;  %1379 = vst [vmem:[%s1663_s24 + $0x70] sm:$0xff] %v1359_v10  }
 0x11d PF: > { %s14_s17 = sadd.s32 1, %s1539_s17   ;;  %s1745_s15 = smov %s1535_s16 }
 0x11e   : > { %p11_p5 = scmp.ge.s32.totalorder %s14_s17, 4   ;;  %s1746_s16 = smov %s1748_s18 }
 0x120   :  { %13 = sbr.rel (!%p11_p5) target bundleno = 2 (0x2), region = 83 }

// kernel: _lambda_.54
= control target key start
LH: loop header
LB: loop body
LE: loop exit
PB: predicated region body
PF: predicated region fallthrough
CT: control target
= control target key end

     0   :  { %s2315_s15 = smov 0   ;;  %s2317_s16 = smov 0   ;;  %s2596_s0 = inlined_call_operand.vmem [shape: bf16[512,384], index: 0, kind: input, shape index: {}]   ;;  %s2597_s1 = inlined_call_operand.vmem [shape: bf16[384,128], index: 1, kind: input, shape index: {}]   ;;  %s2598_s2 = inlined_call_operand.vmem [shape: f32[1,128], index: 2, kind: input, shape index: {}]   ;;  %s2599_s3 = inlined_call_operand.vmem [shape: f32[1,128], index: 3, kind: input, shape index: {}]   ;;  %s2600_s4 = inlined_call_operand.vmem [shape: bf16[512,128], index: 4, kind: output, shape index: {}]  }
   0x1   :  { %s2319_s17 = smov 0  }
   0x2 LB: > { %s33_s18 = sadd.s32 1, %s2284_s16  ;;  %p1713_p0 = scmp.ge.s32.totalorder %s2288_s17, 1  ;;  %s2288_s17 = sphi %s2319_s17, %s14_s17   ;;  %s2284_s16 = sphi %s2317_s16, %s2602_s16   ;;  %s2280_s15 = sphi %s2315_s15, %s2601_s15  }
   0x3   : > { %p35_p1 = scmp.ge.s32.totalorder %s33_s18, 2  ;;  %p224_p2 = scmp.lt.s32.totalorder %s2288_s17, 3 }
   0x5   : > { %s2604_s18 = smov (%p35_p1, %s33_s18), 0  ;;  %p225_p3 = pnand %p1713_p0, %p224_p2 }
   0x6   : > { %v2178_v0 = vld [vmem:[%s2597_s1 + $0x40] sm:$0xff] (!%p225_p3)   ;;  %s1714_s21 = sshll.u32 (!%p225_p3), %s2280_s15, 5  ;;  %v2180_v2 = vld [vmem:[%s2597_s1 + $0x48] sm:$0xff] (!%p225_p3)   ;;  %v2182_v4 = vld [vmem:[%s2597_s1 + $0x50] sm:$0xff] (!%p225_p3)  }
   0x7   : > { %228 = sbr.rel (%p225_p3) target bundleno = 355 (0x163), region = 36  ;;  %v2179_v1 = vld [vmem:[%s2597_s1] sm:$0xff] (!%p225_p3)   ;;  %1953 = vmatprep.subr.bf16.mxu0 (!%p225_p3), %v2178_v0  ;;  %2137 = vmatprep.subr.bf16.mxu1 (!%p225_p3), %v2178_v0  ;;  %p274_p4 = scmp.lt.s32.totalorder (!%p225_p3), %s1714_s21, 63  ;;  %v2181_v3 = vld [vmem:[%s2597_s1 + $0x8] sm:$0xff] (!%p225_p3)   ;;  %v2183_v5 = vld [vmem:[%s2597_s1 + $0x10] sm:$0xff] (!%p225_p3)  }
   0x8   : > { %1954 = vmatpush3.bf16.msra.mxu0 (!%p225_p3), %v2179_v1  ;;  %2145 = vmatpush3.bf16.msra.mxu1 (!%p225_p3), %v2179_v1  ;;  %v2184_v6 = vld [vmem:[%s2597_s1 + $0x58] sm:$0xff] (!%p225_p3)   ;;  %v2186_v8 = vld [vmem:[%s2597_s1 + $0x60] sm:$0xff] (!%p225_p3)   ;;  %v2188_v10 = vld [vmem:[%s2597_s1 + $0x68] sm:$0xff] (!%p225_p3)  }
   0x9   : > { %1955 = vmatprep.subr.bf16.mxu0 (!%p225_p3), %v2180_v2  ;;  %2138 = vmatprep.subr.bf16.mxu1 (!%p225_p3), %v2180_v2  ;;  %v2185_v7 = vld [vmem:[%s2597_s1 + $0x18] sm:$0xff] (!%p225_p3)   ;;  %v2187_v9 = vld [vmem:[%s2597_s1 + $0x20] sm:$0xff] (!%p225_p3)   ;;  %v2189_v13 = vld [vmem:[%s2597_s1 + $0x28] sm:$0xff] (!%p225_p3)  }
   0xa   : > { %v2190_v14 = vld [vmem:[%s2597_s1 + $0x70] sm:$0xff] (!%p225_p3)   ;;  %v2192_v16 = vld [vmem:[%s2597_s1 + $0x78] sm:$0xff] (!%p225_p3)   ;;  %v2200_v18 = vld [vmem:[%s2597_s1 + $0x80] sm:$0xff] (!%p225_p3)  }
   0xb   : > { %v2191_v15 = vld [vmem:[%s2597_s1 + $0x30] sm:$0xff] (!%p225_p3)   ;;  %v2193_v17 = vld [vmem:[%s2597_s1 + $0x38] sm:$0xff] (!%p225_p3)   ;;  %v2201_v22 = vld [vmem:[%s2597_s1 + $0x88] sm:$0xff] (!%p225_p3)  }
   0xc   : > { %1956 = vmatpush3.bf16.msra.mxu0 (!%p225_p3), %v2181_v3  ;;  %2146 = vmatpush3.bf16.msra.mxu1 (!%p225_p3), %v2181_v3  ;;  %v2208_v25 = vld [vmem:[%s2597_s1 + $0x90] sm:$0xff] (!%p225_p3)   ;;  %v2209_v27 = vld [vmem:[%s2597_s1 + $0x98] sm:$0xff] (!%p225_p3)   ;;  %v2216_v30 = vld [vmem:[%s2597_s1 + $0xa0] sm:$0xff] (!%p225_p3)  }
   0xd   : > { %1957 = vmatprep.subr.bf16.mxu0 (!%p225_p3), %v2182_v4  ;;  %2139 = vmatprep.subr.bf16.mxu1 (!%p225_p3), %v2182_v4  ;;  %v2217_v33 = vld [vmem:[%s2597_s1 + $0xa8] sm:$0xff] (!%p225_p3)   ;;  %v2224_v36 = vld [vmem:[%s2597_s1 + $0xb0] sm:$0xff] (!%p225_p3)   ;;  %v2225_v40 = vld [vmem:[%s2597_s1 + $0xb8] sm:$0xff] (!%p225_p3)  }
   0xe   : > { %s2606_s21 = smov (!%p274_p4, %s1714_s21), 63 }
   0xf   : > { %s2153_s8 = smul.u32 12, %s2606_s21  ;;  %s1717_s6 = sshll.u32 %s2606_s21, 2 }
  0x10   : > { %1958 = vmatpush3.bf16.msra.mxu0 %v2183_v5  ;;  %2147 = vmatpush3.bf16.msra.mxu1 %v2183_v5  ;;  %s2499_s9 = scalar_lea.vmem %s2600_s4, %s1717_s6 }
  0x11   : > { %1959 = vmatprep.subr.bf16.mxu0 %v2184_v6  ;;  %2140 = vmatprep.subr.bf16.mxu1 %v2184_v6  ;;  %s2366_s15 = scalar_lea.vmem %s2596_s0, %s2153_s8 }
  0x12   : > { %v2196_v11 = vld [vmem:[%s2366_s15 + $0x4] ss:$12 sps:$4 sm:$0xff]   ;;  %v2194_v19 = vld [vmem:[%s2366_s15] ss:$12 sps:$4 sm:$0xff]   ;;  %v2202_v21 = vld [vmem:[%s2366_s15 + $0x1c] ss:$12 sps:$4 sm:$0xff]  }
  0x13   : > { %v2199_v12 = vld [vmem:[%s2366_s15 + $0x124] ss:$12 sps:$4 sm:$0xff]   ;;  %921 = vmatprep.mubr.bf16.mxu0 %v2196_v11  ;;  %v2197_v20 = vld [vmem:[%s2366_s15 + $0x120] ss:$12 sps:$4 sm:$0xff]   ;;  %v2204_v23 = vld [vmem:[%s2366_s15 + $0x13c] ss:$12 sps:$4 sm:$0xff]  }
  0x14   : > { %1960 = vmatpush3.bf16.msra.mxu0 %v2185_v7  ;;  %2148 = vmatpush3.bf16.msra.mxu1 %v2185_v7  ;;  %v2206_v24 = vld [vmem:[%s2366_s15 + $0x18] ss:$12 sps:$4 sm:$0xff]   ;;  %v2210_v28 = vld [vmem:[%s2366_s15 + $0x34] ss:$12 sps:$4 sm:$0xff]   ;;  %v2214_v31 = vld [vmem:[%s2366_s15 + $0x30] ss:$12 sps:$4 sm:$0xff]  }
  0x15   : > { %1961 = vmatprep.subr.bf16.mxu0 %v2186_v8  ;;  %2141 = vmatprep.subr.bf16.mxu1 %v2186_v8  ;;  %v2207_v26 = vld [vmem:[%s2366_s15 + $0x138] ss:$12 sps:$4 sm:$0xff]   ;;  %v2212_v29 = vld [vmem:[%s2366_s15 + $0x154] ss:$12 sps:$4 sm:$0xff]   ;;  %v2215_v32 = vld [vmem:[%s2366_s15 + $0x150] ss:$12 sps:$4 sm:$0xff]  }
  0x16   : > { %1017 = vmatprep.mubr.bf16.mxu1 %v2199_v12  ;;  %v2218_v34 = vld [vmem:[%s2366_s15 + $0x4c] ss:$12 sps:$4 sm:$0xff]   ;;  %v2222_v37 = vld [vmem:[%s2366_s15 + $0x48] ss:$12 sps:$4 sm:$0xff]   ;;  %v2226_v39 = vld [vmem:[%s2366_s15 + $0x64] ss:$12 sps:$4 sm:$0xff]  }
  0x17   : > { %v2220_v35 = vld [vmem:[%s2366_s15 + $0x16c] ss:$12 sps:$4 sm:$0xff]   ;;  %v2223_v38 = vld [vmem:[%s2366_s15 + $0x168] ss:$12 sps:$4 sm:$0xff]   ;;  %v2235_v47 = vld [vmem:[%s2366_s15 + $0x50] ss:$12 sps:$4 sm:$0xff]  }
  0x18   : > { %1962 = vmatpush3.bf16.msra.mxu0 %v2187_v9  ;;  %2149 = vmatpush3.bf16.msra.mxu1 %v2187_v9  ;;  %v2228_v41 = vld [vmem:[%s2366_s15 + $0x8] ss:$12 sps:$4 sm:$0xff]   ;;  %v2229_v42 = vld [vmem:[%s2366_s15 + $0x60] ss:$12 sps:$4 sm:$0xff]   ;;  %v2233_v45 = vld [vmem:[%s2366_s15 + $0x38] ss:$12 sps:$4 sm:$0xff]  }
  0x19   : > { %1963 = vmatprep.subr.bf16.mxu0 %v2188_v10  ;;  %2142 = vmatprep.subr.bf16.mxu1 %v2188_v10  ;;  %v2230_v43 = vld [vmem:[%s2366_s15 + $0x20] ss:$12 sps:$4 sm:$0xff]   ;;  %v2231_v44 = vld [vmem:[%s2366_s15 + $0x7c] ss:$12 sps:$4 sm:$0xff]   ;;  %v2234_v46 = vld [vmem:[%s2366_s15 + $0x78] ss:$12 sps:$4 sm:$0xff]  }
  0x1a   : > { %v2236_v48 = vld [vmem:[%s2366_s15 + $0x94] ss:$12 sps:$4 sm:$0xff]   ;;  %v2239_v50 = vld [vmem:[%s2366_s15 + $0x90] ss:$12 sps:$4 sm:$0xff]   ;;  %v2241_v52 = vld [vmem:[%s2366_s15 + $0xac] ss:$12 sps:$4 sm:$0xff]  }
  0x1b   : > { %v2238_v49 = vld [vmem:[%s2366_s15 + $0x68] ss:$12 sps:$4 sm:$0xff]   ;;  %v2240_v51 = vld [vmem:[%s2366_s15 + $0x80] ss:$12 sps:$4 sm:$0xff]   ;;  %v2243_v53 = vld [vmem:[%s2366_s15 + $0x98] ss:$12 sps:$4 sm:$0xff]  }
  0x1c   : > { %1964 = vmatpush3.bf16.msra.mxu0 %v2189_v13  ;;  %2150 = vmatpush3.bf16.msra.mxu1 %v2189_v13  ;;  %v2244_v54 = vld [vmem:[%s2366_s15 + $0xa8] ss:$12 sps:$4 sm:$0xff]   ;;  %v2245_v55 = vld [vmem:[%s2366_s15 + $0xb0] ss:$12 sps:$4 sm:$0xff]   ;;  %v2249_v58 = vld [vmem:[%s2366_s15 + $0xc0] ss:$12 sps:$4 sm:$0xff]  }
  0x1d   : > { %1965 = vmatprep.subr.bf16.mxu0 %v2190_v14  ;;  %2143 = vmatprep.subr.bf16.mxu1 %v2190_v14  ;;  %v2246_v56 = vld [vmem:[%s2366_s15 + $0xc4] ss:$12 sps:$4 sm:$0xff]   ;;  %v2248_v57 = vld [vmem:[%s2366_s15 + $0xc8] ss:$12 sps:$4 sm:$0xff]   ;;  %v2250_v59 = vld [vmem:[%s2366_s15 + $0xe0] ss:$12 sps:$4 sm:$0xff]  }
  0x1e   : > { %v2251_v60 = vld [vmem:[%s2366_s15 + $0xdc] ss:$12 sps:$4 sm:$0xff]   ;;  %v2253_v61 = vld [vmem:[%s2366_s15 + $0xf8] ss:$12 sps:$4 sm:$0xff]   ;;  %v2256_v0 = vld [vmem:[%s2366_s15 + $0xf4] ss:$12 sps:$4 sm:$0xff]  }
  0x1f   : > { %v2254_v62 = vld [vmem:[%s2366_s15 + $0xd8] ss:$12 sps:$4 sm:$0xff]   ;;  %v2255_v63 = vld [vmem:[%s2366_s15 + $0x110] ss:$12 sps:$4 sm:$0xff]   ;;  %v2258_v1 = vld [vmem:[%s2366_s15 + $0x128] ss:$12 sps:$4 sm:$0xff]  }
  0x20   : > { %1966 = vmatpush3.bf16.msra.mxu0 %v2191_v15  ;;  %2151 = vmatpush3.bf16.msra.mxu1 %v2191_v15  ;;  %v2259_v2 = vld [vmem:[%s2366_s15 + $0xf0] ss:$12 sps:$4 sm:$0xff]   ;;  %v2260_v3 = vld [vmem:[%s2366_s15 + $0x140] ss:$12 sps:$4 sm:$0xff]   ;;  %v2263_v5 = vld [vmem:[%s2366_s15 + $0x158] ss:$12 sps:$4 sm:$0xff]  }
  0x21   : > { %1967 = vmatprep.subr.bf16.mxu0 %v2192_v16  ;;  %2144 = vmatprep.subr.bf16.mxu1 %v2192_v16  ;;  %v2261_v4 = vld [vmem:[%s2366_s15 + $0x10c] ss:$12 sps:$4 sm:$0xff]   ;;  %v2264_v6 = vld [vmem:[%s2366_s15 + $0x108] ss:$12 sps:$4 sm:$0xff]   ;;  %v2265_v7 = vld [vmem:[%s2366_s15 + $0x170] ss:$12 sps:$4 sm:$0xff]  }
  0x24   : > { %1968 = vmatpush3.bf16.msra.mxu0 %v2193_v17  ;;  %2152 = vmatpush3.bf16.msra.mxu1 %v2193_v17 }
  0x25   : > { %2089 = vmatprep.subr.bf16.mxu1 %v2200_v18 }
  0x27   : > { %922 = vmatmul.mubr.bf16.vlgmr.msra.gmra.mrb[0].mxu0 %v2194_v19  ;;  %1018 = vmatmul.mubr.bf16.vlgmr.msra.gmra.mrb[0].mxu1 %v2197_v20 }
  0x28   : > { %2090 = vmatpush3.bf16.msra.mxu1 %v2200_v18  ;;  %929 = vmatprep.mubr.bf16.mxu0 %v2202_v21 }
  0x29   : > { %2091 = vmatprep.subr.bf16.mxu1 %v2201_v22  ;;  %1025 = vmatprep.mubr.bf16.mxu1 %v2204_v23 }
  0x2c   : > { %2092 = vmatpush3.bf16.msra.mxu1 %v2201_v22 }
  0x2d   : > { %2093 = vmatprep.subr.bf16.mxu1 %v2208_v25 }
  0x2f   : > { %930 = vmatmul.mubr.bf16.gmra.mrb[4].mxu0 %v2206_v24  ;;  %1026 = vmatmul.mubr.bf16.gmra.mrb[4].mxu1 %v2207_v26 }
  0x30   : > { %2094 = vmatpush3.bf16.msra.mxu1 %v2208_v25  ;;  %937 = vmatprep.mubr.bf16.mxu0 %v2210_v28 }
  0x31   : > { %2095 = vmatprep.subr.bf16.mxu1 %v2209_v27  ;;  %1033 = vmatprep.mubr.bf16.mxu1 %v2212_v29 }
  0x34   : > { %2096 = vmatpush3.bf16.msra.mxu1 %v2209_v27 }
  0x35   : > { %2097 = vmatprep.subr.bf16.mxu1 %v2216_v30 }
  0x37   : > { %938 = vmatmul.mubr.bf16.gmra.mrb[8].mxu0 %v2214_v31  ;;  %1034 = vmatmul.mubr.bf16.gmra.mrb[8].mxu1 %v2215_v32 }
  0x38   : > { %2098 = vmatpush3.bf16.msra.mxu1 %v2216_v30  ;;  %945 = vmatprep.mubr.bf16.mxu0 %v2218_v34 }
  0x39   : > { %2099 = vmatprep.subr.bf16.mxu1 %v2217_v33  ;;  %1041 = vmatprep.mubr.bf16.mxu1 %v2220_v35 }
  0x3c   : > { %2100 = vmatpush3.bf16.msra.mxu1 %v2217_v33 }
  0x3d   : > { %2101 = vmatprep.subr.bf16.mxu1 %v2224_v36 }
  0x3f   : > { %946 = vmatmul.mubr.bf16.gmra.mrb[12].mxu0 %v2222_v37  ;;  %1042 = vmatmul.mubr.bf16.gmra.mrb[12].mxu1 %v2223_v38 }
  0x40   : > { %2102 = vmatpush3.bf16.msra.mxu1 %v2224_v36  ;;  %953 = vmatprep.mubr.bf16.mxu0 %v2226_v39 }
  0x41   : > { %2103 = vmatprep.subr.bf16.mxu1 %v2225_v40  ;;  %2105 = vmatprep.mubr.bf16.mxu1 %v2228_v41 }
  0x44   : > { %2104 = vmatpush3.bf16.msra.mxu1 %v2225_v40 }
  0x47   : > { %954 = vmatmul.mubr.bf16.gmra.mrb[16].mxu0 %v2229_v42  ;;  %2106 = vmatmul.mubr.bf16.vlgmr.msra.gmra.mrb[16].mxu1 %v2230_v43 }
  0x48   : > { %961 = vmatprep.mubr.bf16.mxu0 %v2231_v44  ;;  %2109 = vmatprep.mubr.bf16.mxu1 %v2233_v45 }
  0x4f   : > { %962 = vmatmul.mubr.bf16.gmra.mrb[20].mxu0 %v2234_v46  ;;  %2110 = vmatmul.mubr.bf16.gmra.mrb[20].mxu1 %v2235_v47 }
  0x50   : > { %969 = vmatprep.mubr.bf16.mxu0 %v2236_v48  ;;  %2113 = vmatprep.mubr.bf16.mxu1 %v2238_v49 }
  0x57   : > { %970 = vmatmul.mubr.bf16.gmra.mrb[24].mxu0 %v2239_v50  ;;  %2114 = vmatmul.mubr.bf16.gmra.mrb[24].mxu1 %v2240_v51 }
  0x58   : > { %977 = vmatprep.mubr.bf16.mxu0 %v2241_v52  ;;  %2117 = vmatprep.mubr.bf16.mxu1 %v2243_v53 }
  0x5f   : > { %978 = vmatmul.mubr.bf16.gmra.mrb[28].mxu0 %v2244_v54  ;;  %2118 = vmatmul.mubr.bf16.gmra.mrb[28].mxu1 %v2245_v55 }
  0x60   : > { %985 = vmatprep.mubr.bf16.mxu0 %v2246_v56  ;;  %2121 = vmatprep.mubr.bf16.mxu1 %v2248_v57 }
  0x67   : > { %986 = vmatmul.mubr.bf16.gmra.mrb[32].mxu0 %v2249_v58  ;;  %2122 = vmatmul.mubr.bf16.gmra.mrb[32].mxu1 %v2250_v59  ;;  %v2480_v58 = vld [vmem:[%s2598_s2] ss:$0 sm:$0xff] }
  0x68   : > { %993 = vmatprep.mubr.bf16.mxu0 %v2251_v60  ;;  %2125 = vmatprep.mubr.bf16.mxu1 %v2253_v61 }
  0x6f   : > { %994 = vmatmul.mubr.bf16.gmra.mrb[36].mxu0 %v2254_v62  ;;  %2126 = vmatmul.mubr.bf16.gmra.mrb[36].mxu1 %v2255_v63  ;;  %v2485_v62 = vld [vmem:[%s2599_s3] ss:$0 sm:$0xff] }
  0x70   : > { %1001 = vmatprep.mubr.bf16.mxu0 %v2256_v0  ;;  %2129 = vmatprep.mubr.bf16.mxu1 %v2258_v1 }
  0x77   : > { %1002 = vmatmul.mubr.bf16.gmra.mrb[40].mxu0 %v2259_v2  ;;  %2130 = vmatmul.mubr.bf16.gmra.mrb[40].mxu1 %v2260_v3 }
  0x78   : > { %1009 = vmatprep.mubr.bf16.mxu0 %v2261_v4  ;;  %2133 = vmatprep.mubr.bf16.mxu1 %v2263_v5 }
  0x7f   : > { %1010 = vmatmul.mubr.bf16.gmra.mrb[44].mxu0 %v2264_v6  ;;  %2134 = vmatmul.mubr.bf16.gmra.mrb[44].mxu1 %v2265_v7 }
  0xfa   : > { %v1969_v8 = vpop.f32.mrb[0].mxu0  ;;  %v2041_v9 = vpop.f32.mrb[0].mxu1 }
  0xfb   : > { %v1970_v10 = vpop.f32.mrb[1].mxu0  ;;  %v2042_v11 = vpop.f32.mrb[1].mxu1 }
  0xfc   : > { %v1971_v12 = vadd.f32 %v1970_v10, %v1969_v8  ;;  %v2461_v13 = vadd.f32 %v2042_v11, %v2041_v9  ;;  %v1972_v14 = vpop.f32.mrb[2].mxu0  ;;  %v2044_v15 = vpop.f32.mrb[2].mxu1 }
  0xfd   : > { %v1973_v16 = vpop.f32.mrb[3].mxu0  ;;  %v2045_v17 = vpop.f32.mrb[3].mxu1 }
  0xfe   : > { %v1974_v18 = vadd.f32 %v1973_v16, %v1972_v14  ;;  %v2463_v19 = vadd.f32 %v2045_v17, %v2044_v15 }
 0x102   : > { %v1975_v20 = vpop.f32.mrb[4].mxu0  ;;  %v2047_v21 = vpop.f32.mrb[4].mxu1 }
 0x103   : > { %v1976_v22 = vpop.f32.mrb[5].mxu0  ;;  %v2048_v23 = vpop.f32.mrb[5].mxu1 }
 0x104   : > { %v1977_v24 = vadd.f32 %v1976_v22, %v1975_v20  ;;  %v2465_v25 = vadd.f32 %v2048_v23, %v2047_v21  ;;  %v1978_v26 = vpop.f32.mrb[6].mxu0  ;;  %v2050_v27 = vpop.f32.mrb[6].mxu1 }
 0x105   : > { %v1979_v28 = vpop.f32.mrb[7].mxu0  ;;  %v2051_v29 = vpop.f32.mrb[7].mxu1 }
 0x106   : > { %v1980_v30 = vadd.f32 %v1979_v28, %v1978_v26  ;;  %v2467_v31 = vadd.f32 %v2051_v29, %v2050_v27 }
 0x10a   : > { %v1981_v32 = vpop.f32.mrb[8].mxu0  ;;  %v2053_v33 = vpop.f32.mrb[8].mxu1 }
 0x10b   : > { %v1982_v34 = vpop.f32.mrb[9].mxu0  ;;  %v2054_v35 = vpop.f32.mrb[9].mxu1 }
 0x10c   : > { %v1983_v36 = vadd.f32 %v1982_v34, %v1981_v32  ;;  %v2469_v37 = vadd.f32 %v2054_v35, %v2053_v33  ;;  %v1984_v38 = vpop.f32.mrb[10].mxu0  ;;  %v2056_v39 = vpop.f32.mrb[10].mxu1 }
 0x10d   : > { %v1985_v40 = vpop.f32.mrb[11].mxu0  ;;  %v2057_v41 = vpop.f32.mrb[11].mxu1 }
 0x10e   : > { %v1986_v42 = vadd.f32 %v1985_v40, %v1984_v38  ;;  %v2471_v43 = vadd.f32 %v2057_v41, %v2056_v39 }
 0x112   : > { %v1987_v44 = vpop.f32.mrb[12].mxu0  ;;  %v2059_v45 = vpop.f32.mrb[12].mxu1 }
 0x113   : > { %v1988_v46 = vpop.f32.mrb[13].mxu0  ;;  %v2060_v47 = vpop.f32.mrb[13].mxu1 }
 0x114   : > { %v1989_v48 = vadd.f32 %v1988_v46, %v1987_v44  ;;  %v2473_v49 = vadd.f32 %v2060_v47, %v2059_v45  ;;  %v1990_v50 = vpop.f32.mrb[14].mxu0  ;;  %v2062_v51 = vpop.f32.mrb[14].mxu1 }
 0x115   : > { %v1991_v52 = vpop.f32.mrb[15].mxu0  ;;  %v2063_v53 = vpop.f32.mrb[15].mxu1 }
 0x116   : > { %v1992_v54 = vadd.f32 %v1991_v52, %v1990_v50  ;;  %v2475_v55 = vadd.f32 %v2063_v53, %v2062_v51 }
 0x11a   : > { %v1993_v56 = vpop.f32.mrb[16].mxu0  ;;  %v2107_v57 = vpop.f32.mrb[16].mxu1 }
 0x11b   : > { %v1093_v59 = vadd.f32 %v2107_v57, %v1977_v24  ;;  %v1994_v60 = vpop.f32.mrb[17].mxu0  ;;  %v1084_v61 = vpop.f32.mrb[17].mxu1 }
 0x11c   : > { %v1995_v63 = vadd.f32 %v1994_v60, %v1993_v56  ;;  %v1085_v0 = vadd.f32 %v1971_v12, %v1084_v61  ;;  %v1996_v1 = vpop.f32.mrb[18].mxu0  ;;  %v2108_v2 = vpop.f32.mrb[18].mxu1 }
 0x11d   : > { %v1319_v3 = vmul.f32 %v2480_v58, %v1093_v59  ;;  %v1096_v4 = vadd.f32 %v2108_v2, %v1980_v30  ;;  %v1997_v5 = vpop.f32.mrb[19].mxu0  ;;  %v1087_v6 = vpop.f32.mrb[19].mxu1 }
 0x11e   : > { %v1317_v7 = vmul.f32 %v2480_v58, %v1085_v0  ;;  %v1998_v8 = vadd.f32 %v1997_v5, %v1996_v1  ;;  %v1088_v9 = vadd.f32 %v1974_v18, %v1087_v6 }
 0x11f   : > { %v1358_v10 = vadd.f32 %v2485_v62, %v1319_v3  ;;  %v1320_v11 = vmul.f32 %v2480_v58, %v1096_v4 }
 0x120   : > { %v1356_v14 = vadd.f32 %v2485_v62, %v1317_v7  ;;  %v1318_v15 = vmul.f32 %v2480_v58, %v1088_v9 }
 0x121   : > { %v1359_v12 = vadd.f32 %v2485_v62, %v1320_v11  ;;  %v1390_v21 = vmax.f32 %v1358_v10, 0.0 }
 0x122   : > { %v1357_v16 = vadd.f32 %v2485_v62, %v1318_v15  ;;  %v1999_v17 = vpop.f32.mrb[20].mxu0  ;;  %v2111_v20 = vpop.f32.mrb[20].mxu1  ;;  %v1388_v26 = vmax.f32 %v1356_v14, 0.0 }
 0x123   : > { %v1391_v22 = vmax.f32 %v1359_v12, 0.0  ;;  %v1109_v23 = vadd.f32 %v2111_v20, %v1989_v48  ;;  %v2000_v24 = vpop.f32.mrb[21].mxu0  ;;  %v1100_v18 = vpop.f32.mrb[21].mxu1 }
 0x124   : > { %v1389_v27 = vmax.f32 %v1357_v16, 0.0  ;;  %v2001_v28 = vadd.f32 %v2000_v24, %v1999_v17  ;;  %v1101_v29 = vadd.f32 %v1983_v36, %v1100_v18  ;;  %v2002_v30 = vpop.f32.mrb[22].mxu0  ;;  %v2112_v32 = vpop.f32.mrb[22].mxu1 }
 0x125   : > { %v1866_v33 = vpack.c.bf16 %v1391_v22, %v1390_v21  ;;  %v1323_v34 = vmul.f32 %v2480_v58, %v1109_v23  ;;  %v1112_v35 = vadd.f32 %v2112_v32, %v1992_v54  ;;  %v2003_v38 = vpop.f32.mrb[23].mxu0  ;;  %v1103_v39 = vpop.f32.mrb[23].mxu1 }
 0x126   : > { %v1861_v40 = vpack.c.bf16 %v1389_v27, %v1388_v26  ;;  %v1321_v41 = vmul.f32 %v2480_v58, %v1101_v29  ;;  %v2004_v44 = vadd.f32 %v2003_v38, %v2002_v30  ;;  %v1104_v45 = vadd.f32 %v1986_v42, %v1103_v39 }
 0x127   : > { %1938 = vst [vmem:[%s2499_s9 + $0x8] sm:$0xff] %v1866_v33   ;;  %v1362_v46 = vadd.f32 %v2485_v62, %v1323_v34  ;;  %v1324_v47 = vmul.f32 %v2480_v58, %v1112_v35 }
 0x128   : > { %1862 = vst [vmem:[%s2499_s9] sm:$0xff] %v1861_v40   ;;  %v1360_v36 = vadd.f32 %v2485_v62, %v1321_v41  ;;  %v1322_v48 = vmul.f32 %v2480_v58, %v1104_v45 }
 0x129   : > { %v1363_v50 = vadd.f32 %v2485_v62, %v1324_v47  ;;  %v1394_v54 = vmax.f32 %v1362_v46, 0.0 }
 0x12a   : > { %v1361_v51 = vadd.f32 %v2485_v62, %v1322_v48  ;;  %v2005_v52 = vpop.f32.mrb[24].mxu0  ;;  %v2115_v53 = vpop.f32.mrb[24].mxu1  ;;  %v1392_v60 = vmax.f32 %v1360_v36, 0.0 }
 0x12b   : > { %v1395_v56 = vmax.f32 %v1363_v50, 0.0  ;;  %v1125_v57 = vadd.f32 %v2115_v53, %v2001_v28  ;;  %v2006_v42 = vpop.f32.mrb[25].mxu0  ;;  %v1116_v59 = vpop.f32.mrb[25].mxu1 }
 0x12c   : > { %v1393_v61 = vmax.f32 %v1361_v51, 0.0  ;;  %v2007_v0 = vadd.f32 %v2006_v42, %v2005_v52  ;;  %v1117_v1 = vadd.f32 %v1995_v63, %v1116_v59  ;;  %v2008_v2 = vpop.f32.mrb[26].mxu0  ;;  %v2116_v3 = vpop.f32.mrb[26].mxu1 }
 0x12d   : > { %v1876_v4 = vpack.c.bf16 %v1395_v56, %v1394_v54  ;;  %v1327_v5 = vmul.f32 %v2480_v58, %v1125_v57  ;;  %v1128_v6 = vadd.f32 %v2116_v3, %v2004_v44  ;;  %v2009_v7 = vpop.f32.mrb[27].mxu0  ;;  %v1119_v9 = vpop.f32.mrb[27].mxu1 }
 0x12e   : > { %v1871_v10 = vpack.c.bf16 %v1393_v61, %v1392_v60  ;;  %v1325_v11 = vmul.f32 %v2480_v58, %v1117_v1  ;;  %v2010_v14 = vadd.f32 %v2009_v7, %v2008_v2  ;;  %v1120_v15 = vadd.f32 %v1998_v8, %v1119_v9 }
 0x12f   : > { %1940 = vst [vmem:[%s2499_s9 + $0x18] sm:$0xff] %v1876_v4   ;;  %v1366_v12 = vadd.f32 %v2485_v62, %v1327_v5  ;;  %v1328_v16 = vmul.f32 %v2480_v58, %v1128_v6 }
 0x130   : > { %1939 = vst [vmem:[%s2499_s9 + $0x10] sm:$0xff] %v1871_v10   ;;  %v1364_v63 = vadd.f32 %v2485_v62, %v1325_v11  ;;  %v1326_v17 = vmul.f32 %v2480_v58, %v1120_v15 }
 0x131   : > { %v1367_v20 = vadd.f32 %v2485_v62, %v1328_v16  ;;  %v1398_v24 = vmax.f32 %v1366_v12, 0.0 }
 0x132   : > { %v1365_v21 = vadd.f32 %v2485_v62, %v1326_v17  ;;  %v2011_v22 = vpop.f32.mrb[28].mxu0  ;;  %v2119_v23 = vpop.f32.mrb[28].mxu1  ;;  %v1396_v27 = vmax.f32 %v1364_v63, 0.0 }
 0x133   : > { %v1399_v18 = vmax.f32 %v1367_v20, 0.0  ;;  %v2012_v8 = vpop.f32.mrb[29].mxu0  ;;  %v1132_v26 = vpop.f32.mrb[29].mxu1 }
 0x134   : > { %v1397_v28 = vmax.f32 %v1365_v21, 0.0  ;;  %v2013_v29 = vadd.f32 %v2012_v8, %v2011_v22  ;;  %v1133_v30 = vadd.f32 %v2007_v0, %v1132_v26  ;;  %v2014_v32 = vpop.f32.mrb[30].mxu0  ;;  %v2120_v33 = vpop.f32.mrb[30].mxu1 }
 0x135   : > { %v1886_v34 = vpack.c.bf16 %v1399_v18, %v1398_v24  ;;  %v2015_v35 = vpop.f32.mrb[31].mxu0  ;;  %v1135_v38 = vpop.f32.mrb[31].mxu1 }
 0x136   : > { %v1881_v39 = vpack.c.bf16 %v1397_v28, %v1396_v27  ;;  %v1141_v40 = vadd.f32 %v2119_v23, %v2013_v29  ;;  %v1329_v41 = vmul.f32 %v2480_v58, %v1133_v30  ;;  %v2016_v44 = vadd.f32 %v2015_v35, %v2014_v32 }
 0x137   : > { %1942 = vst [vmem:[%s2499_s9 + $0x28] sm:$0xff] %v1886_v34   ;;  %v1136_v45 = vadd.f32 %v2010_v14, %v1135_v38 }
 0x138   : > { %1941 = vst [vmem:[%s2499_s9 + $0x20] sm:$0xff] %v1881_v39   ;;  %v1331_v46 = vmul.f32 %v2480_v58, %v1141_v40  ;;  %v1144_v47 = vadd.f32 %v2120_v33, %v2016_v44  ;;  %v1368_v36 = vadd.f32 %v2485_v62, %v1329_v41 }
 0x139   : > { %v1330_v48 = vmul.f32 %v2480_v58, %v1136_v45 }
 0x13a   : > { %v1370_v50 = vadd.f32 %v2485_v62, %v1331_v46  ;;  %v1332_v51 = vmul.f32 %v2480_v58, %v1144_v47  ;;  %v2017_v52 = vpop.f32.mrb[32].mxu0  ;;  %v2123_v53 = vpop.f32.mrb[32].mxu1  ;;  %v1400_v0 = vmax.f32 %v1368_v36, 0.0 }
 0x13b   : > { %v1369_v54 = vadd.f32 %v2485_v62, %v1330_v48  ;;  %v2018_v56 = vpop.f32.mrb[33].mxu0  ;;  %v1148_v57 = vpop.f32.mrb[33].mxu1 }
 0x13c   : > { %v1371_v42 = vadd.f32 %v2485_v62, %v1332_v51  ;;  %v2019_v59 = vadd.f32 %v2018_v56, %v2017_v52  ;;  %v2020_v60 = vpop.f32.mrb[34].mxu0  ;;  %v2124_v61 = vpop.f32.mrb[34].mxu1  ;;  %v1402_v4 = vmax.f32 %v1370_v50, 0.0 }
 0x13d   : > { %v1401_v1 = vmax.f32 %v1369_v54, 0.0  ;;  %v2021_v2 = vpop.f32.mrb[35].mxu0  ;;  %v1151_v3 = vpop.f32.mrb[35].mxu1 }
 0x13e   : > { %v1403_v5 = vmax.f32 %v1371_v42, 0.0  ;;  %v1149_v6 = vadd.f32 %v2019_v59, %v1148_v57  ;;  %v2022_v7 = vadd.f32 %v2021_v2, %v2020_v60 }
 0x13f   : > { %v1891_v9 = vpack.c.bf16 %v1401_v1, %v1400_v0 }
 0x140   : > { %v1896_v10 = vpack.c.bf16 %v1403_v5, %v1402_v4  ;;  %v1333_v11 = vmul.f32 %v2480_v58, %v1149_v6  ;;  %v1152_v14 = vadd.f32 %v2022_v7, %v1151_v3 }
 0x141   : > { %1943 = vst [vmem:[%s2499_s9 + $0x30] sm:$0xff] %v1891_v9  }
 0x142   : > { %1944 = vst [vmem:[%s2499_s9 + $0x38] sm:$0xff] %v1896_v10   ;;  %v1372_v15 = vadd.f32 %v2485_v62, %v1333_v11  ;;  %v1334_v12 = vmul.f32 %v2480_v58, %v1152_v14  ;;  %v2023_v16 = vpop.f32.mrb[36].mxu0  ;;  %v2536_v63 = vpop.f32.mrb[36].mxu1 }
 0x143   : > { %v2024_v17 = vpop.f32.mrb[37].mxu0  ;;  %v1164_v20 = vpop.f32.mrb[37].mxu1 }
 0x144   : > { %v1373_v21 = vadd.f32 %v2485_v62, %v1334_v12  ;;  %v2025_v22 = vadd.f32 %v2024_v17, %v2023_v16  ;;  %v2026_v23 = vpop.f32.mrb[38].mxu0  ;;  %v2539_v24 = vpop.f32.mrb[38].mxu1  ;;  %v1404_v26 = vmax.f32 %v1372_v15, 0.0 }
 0x145   : > { %v2027_v18 = vpop.f32.mrb[39].mxu0  ;;  %v1167_v8 = vpop.f32.mrb[39].mxu1 }
 0x146   : > { %v1405_v27 = vmax.f32 %v1373_v21, 0.0  ;;  %v1157_v28 = vadd.f32 %v2123_v53, %v2025_v22  ;;  %v2028_v29 = vadd.f32 %v2027_v18, %v2026_v23 }
 0x148   : > { %v1901_v30 = vpack.c.bf16 %v1405_v27, %v1404_v26  ;;  %v1335_v32 = vmul.f32 %v2480_v58, %v1157_v28  ;;  %v1160_v33 = vadd.f32 %v2124_v61, %v2028_v29 }
 0x14a   : > { %1945 = vst [vmem:[%s2499_s9 + $0x40] sm:$0xff] %v1901_v30   ;;  %v1374_v34 = vadd.f32 %v2485_v62, %v1335_v32  ;;  %v1336_v35 = vmul.f32 %v2480_v58, %v1160_v33  ;;  %v2029_v38 = vpop.f32.mrb[40].mxu0  ;;  %v2131_v39 = vpop.f32.mrb[40].mxu1 }
 0x14b   : > { %v1189_v40 = vadd.f32 %v2131_v39, %v2465_v25  ;;  %v2030_v41 = vpop.f32.mrb[41].mxu0  ;;  %v1180_v44 = vpop.f32.mrb[41].mxu1 }
 0x14c   : > { %v1375_v45 = vadd.f32 %v2485_v62, %v1336_v35  ;;  %v2031_v46 = vadd.f32 %v2030_v41, %v2029_v38  ;;  %v1181_v47 = vadd.f32 %v2461_v13, %v1180_v44  ;;  %v2032_v36 = vpop.f32.mrb[42].mxu0  ;;  %v2132_v48 = vpop.f32.mrb[42].mxu1  ;;  %v1406_v50 = vmax.f32 %v1374_v34, 0.0 }
 0x14d   : > { %v1343_v51 = vmul.f32 %v2480_v58, %v1189_v40  ;;  %v1192_v52 = vadd.f32 %v2132_v48, %v2467_v31  ;;  %v2033_v53 = vpop.f32.mrb[43].mxu0  ;;  %v1183_v54 = vpop.f32.mrb[43].mxu1 }
 0x14e   : > { %v1407_v56 = vmax.f32 %v1375_v45, 0.0  ;;  %v1165_v57 = vadd.f32 %v2031_v46, %v1164_v20  ;;  %v1341_v25 = vmul.f32 %v2480_v58, %v1181_v47  ;;  %v2034_v42 = vadd.f32 %v2033_v53, %v2032_v36 }
 0x14f   : > { %v1382_v59 = vadd.f32 %v2485_v62, %v1343_v51  ;;  %v1344_v60 = vmul.f32 %v2480_v58, %v1192_v52  ;;  %v1184_v13 = vadd.f32 %v2463_v19, %v1183_v54 }
 0x150   : > { %v1906_v61 = vpack.c.bf16 %v1407_v56, %v1406_v50  ;;  %v1337_v0 = vmul.f32 %v2480_v58, %v1165_v57  ;;  %v1380_v1 = vadd.f32 %v2485_v62, %v1341_v25  ;;  %v1168_v31 = vadd.f32 %v2034_v42, %v1167_v8 }
 0x151   : > { %v1383_v2 = vadd.f32 %v2485_v62, %v1344_v60  ;;  %v1342_v3 = vmul.f32 %v2480_v58, %v1184_v13  ;;  %v1414_v4 = vmax.f32 %v1382_v59, 0.0 }
 0x152   : > { %1946 = vst [vmem:[%s2499_s9 + $0x48] sm:$0xff] %v1906_v61   ;;  %v1376_v5 = vadd.f32 %v2485_v62, %v1337_v0  ;;  %v1338_v6 = vmul.f32 %v2480_v58, %v1168_v31  ;;  %v2035_v7 = vpop.f32.mrb[44].mxu0  ;;  %v2135_v9 = vpop.f32.mrb[44].mxu1  ;;  %v1412_v10 = vmax.f32 %v1380_v1, 0.0 }
 0x153   : > { %v1415_v19 = vmax.f32 %v1383_v2, 0.0  ;;  %v1381_v11 = vadd.f32 %v2485_v62, %v1342_v3  ;;  %v1205_v14 = vadd.f32 %v2135_v9, %v2473_v49  ;;  %v2036_v15 = vpop.f32.mrb[45].mxu0  ;;  %v1196_v12 = vpop.f32.mrb[45].mxu1 }
 0x154   : > { %v1408_v16 = vmax.f32 %v1376_v5, 0.0  ;;  %v1377_v17 = vadd.f32 %v2485_v62, %v1338_v6  ;;  %v2037_v20 = vadd.f32 %v2036_v15, %v2035_v7  ;;  %v1197_v21 = vadd.f32 %v2469_v37, %v1196_v12  ;;  %v2038_v22 = vpop.f32.mrb[46].mxu0  ;;  %v2136_v23 = vpop.f32.mrb[46].mxu1 }
 0x155   : > { %v1926_v18 = vpack.c.bf16 %v1415_v19, %v1414_v4  ;;  %v1413_v8 = vmax.f32 %v1381_v11, 0.0  ;;  %v1347_v26 = vmul.f32 %v2480_v58, %v1205_v14  ;;  %v1208_v27 = vadd.f32 %v2136_v23, %v2475_v55  ;;  %v2039_v28 = vpop.f32.mrb[47].mxu0  ;;  %v1199_v49 = vpop.f32.mrb[47].mxu1 }
 0x156   : > { %v1409_v29 = vmax.f32 %v1377_v17, 0.0  ;;  %v1173_v30 = vadd.f32 %v2536_v63, %v2037_v20  ;;  %v1345_v32 = vmul.f32 %v2480_v58, %v1197_v21  ;;  %v2040_v33 = vadd.f32 %v2039_v28, %v2038_v22 }
 0x157   : > { %1950 = vst [vmem:[%s2499_s9 + $0x68] sm:$0xff] %v1926_v18   ;;  %v1921_v37 = vpack.c.bf16 %v1413_v8, %v1412_v10  ;;  %v1386_v34 = vadd.f32 %v2485_v62, %v1347_v26  ;;  %v1348_v35 = vmul.f32 %v2480_v58, %v1208_v27  ;;  %v1200_v38 = vadd.f32 %v2471_v43, %v1199_v49 }
 0x158   : > { %v1911_v39 = vpack.c.bf16 %v1409_v29, %v1408_v16  ;;  %v1339_v55 = vmul.f32 %v2480_v58, %v1173_v30  ;;  %v1176_v40 = vadd.f32 %v2539_v24, %v2040_v33  ;;  %v1384_v63 = vadd.f32 %v2485_v62, %v1345_v32 }
 0x159   : > { %1949 = vst [vmem:[%s2499_s9 + $0x60] sm:$0xff] %v1921_v37   ;;  %v1387_v41 = vadd.f32 %v2485_v62, %v1348_v35  ;;  %v1346_v44 = vmul.f32 %v2480_v58, %v1200_v38  ;;  %v1418_v46 = vmax.f32 %v1386_v34, 0.0 }
 0x15a   : > { %1947 = vst [vmem:[%s2499_s9 + $0x50] sm:$0xff] %v1911_v39   ;;  %v1378_v45 = vadd.f32 %v2485_v62, %v1339_v55  ;;  %v1340_v43 = vmul.f32 %v2480_v58, %v1176_v40  ;;  %v1416_v48 = vmax.f32 %v1384_v63, 0.0 }
 0x15b   : > { %v1419_v47 = vmax.f32 %v1387_v41, 0.0  ;;  %v1385_v36 = vadd.f32 %v2485_v62, %v1346_v44 }
 0x15c   : > { %v1379_v24 = vadd.f32 %v2485_v62, %v1340_v43  ;;  %v1410_v52 = vmax.f32 %v1378_v45, 0.0 }
 0x15d   : > { %v1936_v50 = vpack.c.bf16 %v1419_v47, %v1418_v46  ;;  %v1417_v51 = vmax.f32 %v1385_v36, 0.0 }
 0x15e   : > { %v1411_v53 = vmax.f32 %v1379_v24, 0.0 }
 0x15f   : > { %1952 = vst [vmem:[%s2499_s9 + $0x78] sm:$0xff] %v1936_v50   ;;  %v1931_v54 = vpack.c.bf16 %v1417_v51, %v1416_v48 }
 0x160   : > { %v1916_v56 = vpack.c.bf16 %v1411_v53, %v1410_v52 }
 0x161   : > { %1951 = vst [vmem:[%s2499_s9 + $0x70] sm:$0xff] %v1931_v54  }
 0x162   : > { %1948 = vst [vmem:[%s2499_s9 + $0x58] sm:$0xff] %v1916_v56  }
 0x163 PF: > { %s14_s17 = sadd.s32 1, %s2288_s17   ;;  %s2601_s15 = smov %s2284_s16 }
 0x164   : > { %p11_p5 = scmp.ge.s32.totalorder %s14_s17, 4   ;;  %s2602_s16 = smov %s2604_s18 }
 0x166   :  { %13 = sbr.rel (!%p11_p5) target bundleno = 2 (0x2), region = 83 }

// kernel: _lambda_.56
= control target key start
LH: loop header
LB: loop body
LE: loop exit
PB: predicated region body
PF: predicated region fallthrough
CT: control target
= control target key end

     0   :  { %s468_s9 = smov 0   ;;  %s497_s0 = inlined_call_operand.vmem [shape: bf16[64,16], index: 0, kind: input, shape index: {}]   ;;  %s498_s1 = inlined_call_operand.vmem [shape: bf16[2,16,128], index: 1, kind: input, shape index: {}]   ;;  %s499_s2 = inlined_call_operand.vmem [shape: bf16[2,64,128], index: 2, kind: output, shape index: {}]  }
   0x1 LB: > { %s354_s10 = sadd.s32 4294967295, %s451_s9   ;;  %p358_p0 = scmp.ge.s32.totalorder %s451_s9, 1  ;;  %s451_s9 = sphi %s468_s9, %s12_s9  }
   0x2   : > { %p112_p1 = scmp.lt.s32.totalorder %s451_s9, 3 }
   0x4   : > { %p113_p2 = pnand %p358_p0, %p112_p1 }
   0x5   : > { %p134_p3 = scmp.lt.s32.totalorder (!%p113_p2), %s354_s10, 1  ;;  %v441_v0 = vld [vmem:[%s497_s0] sm:$0xff] (!%p113_p2)   ;;  %vm181_vm0 = vcmask (!%p113_p2), 130048   ;;  %v442_v1 = vld [vmem:[%s497_s0 + $0x10] sm:$0xff] (!%p113_p2)   ;;  %v443_v3 = vld [vmem:[%s497_s0 + $0x8] sm:$0xff] (!%p113_p2)  }
   0x6   : > { %116 = sbr.rel (%p113_p2) target bundleno = 239 (0xef), region = 28  ;;  %422 = vmatprep.mubr.msk.bf16.mxu0 (!%p113_p2), %vm181_vm0, %v441_v0  ;;  %426 = vmatprep.mubr.msk.bf16.mxu1 (!%p113_p2), %vm181_vm0, %v442_v1  ;;  %v444_v4 = vld [vmem:[%s497_s0 + $0x18] sm:$0xff] (!%p113_p2)  }
   0xd   : > { %s501_s10 = smov (!%p134_p3, %s354_s10), 1 }
   0xe   : > { %s382_s15 = sshll.u32 %s501_s10, 3  ;;  %s383_s23 = sshll.u32 %s501_s10, 5 }
   0xf   : > { %s138_s18 = scalar_lea.vmem %s498_s1, %s382_s15  ;;  %s143_s26 = scalar_lea.vmem %s499_s2, %s383_s23 }
  0x10   : > { %v440_v2 = vld [vmem:[%s138_s18] sm:$0xff]  }
  0x11   : > { %420 = vmatprep.subr.bf16.mxu0 %v440_v2  ;;  %430 = vmatprep.subr.bf16.mxu1 %v440_v2 }
  0x12   : > { %421 = vmatpush3.bf16.msra.mxu0 %v440_v2  ;;  %431 = vmatpush3.bf16.msra.mxu1 %v440_v2 }
  0x15   : > { %423 = vmatmul.mubr.msk.bf16.vlgmr.msra.gmra.mrb[0].mxu0 %vm181_vm0, %v443_v3  ;;  %427 = vmatmul.mubr.msk.bf16.vlgmr.msra.gmra.mrb[0].mxu1 %vm181_vm0, %v444_v4 }
  0xe8   : > { %v424_v5 = vpop.f32.mrb[0].mxu0  ;;  %v428_v6 = vpop.f32.mrb[0].mxu1 }
  0xe9   : > { %v228_v7 = vpop.f32.mrb[1].mxu0  ;;  %v244_v8 = vpop.f32.mrb[1].mxu1 }
  0xea   : > { %v425_v9 = vpop.f32.mrb[2].mxu0  ;;  %v429_v10 = vpop.f32.mrb[2].mxu1 }
  0xeb   : > { %v400_v11 = vpack.c.bf16 %v425_v9, %v424_v5  ;;  %v410_v12 = vpack.c.bf16 %v429_v10, %v428_v6  ;;  %v231_v13 = vpop.f32.mrb[3].mxu0  ;;  %v247_v14 = vpop.f32.mrb[3].mxu1 }
  0xec   : > { %v395_v15 = vpack.c.bf16 %v231_v13, %v228_v7  ;;  %v405_v16 = vpack.c.bf16 %v247_v14, %v244_v8 }
  0xed   : > { %412 = vst [vmem:[%s143_s26 + $0x8] sm:$0xff] %v400_v11   ;;  %414 = vst [vmem:[%s143_s26 + $0x18] sm:$0xff] %v410_v12  }
  0xee   : > { %396 = vst [vmem:[%s143_s26] sm:$0xff] %v395_v15   ;;  %413 = vst [vmem:[%s143_s26 + $0x10] sm:$0xff] %v405_v16  }
  0xef PF: > { %s12_s9 = sadd.s32 1, %s451_s9  }
  0xf0   : > { %p9_p4 = scmp.ge.s32.totalorder %s12_s9, 4  }
  0xf2   :  { %11 = sbr.rel (!%p9_p4) target bundleno = 1 (0x1), region = 58 }

// kernel: _lambda_.57
= control target key start
LH: loop header
LB: loop body
LE: loop exit
PB: predicated region body
PF: predicated region fallthrough
CT: control target
= control target key end

     0   :  { %vm468_vm0 = vcmask 130048   ;;  %vm1718_vm1 = vcmask 519168   ;;  %s3284_s1 = inlined_call_operand.vmem [shape: bf16[16,64], index: 1, kind: input, shape index: {}]   ;;  %s3285_s0 = inlined_call_operand.vmem [shape: bf16[1024,16], index: 0, kind: input, shape index: {}]   ;;  %s3286_s2 = inlined_call_operand.vmem [shape: bf16[1024,64], index: 2, kind: output, shape index: {}]  }
   0x1   :  { %v2433_v0 = vld [vmem:[%s3284_s1] sm:$0xff]   ;;  %v2436_v3 = vld [vmem:[%s3285_s0 + $0x8] sm:$0xff]   ;;  %v2438_v5 = vld [vmem:[%s3285_s0 + $0x10] sm:$0xff]  }
   0x2   :  { %v2434_v1 = vld [vmem:[%s3285_s0] sm:$0xff]   ;;  %2301 = vmatprep.subr.bf16.mxu0 %v2433_v0  ;;  %2431 = vmatprep.subr.bf16.mxu1 %v2433_v0  ;;  %v2437_v4 = vld [vmem:[%s3285_s0 + $0x108] sm:$0xff]   ;;  %v2439_v6 = vld [vmem:[%s3285_s0 + $0x110] sm:$0xff]  }
   0x3   :  { %v2435_v2 = vld [vmem:[%s3285_s0 + $0x100] sm:$0xff]   ;;  %2302 = vmatpush3.bf16.msra.mxu0 %v2433_v0  ;;  %2432 = vmatpush3.bf16.msra.mxu1 %v2433_v0  ;;  %v2440_v7 = vld [vmem:[%s3285_s0 + $0x18] sm:$0xff]   ;;  %v2444_v11 = vld [vmem:[%s3285_s0 + $0x28] sm:$0xff]  }
   0x4   :  { %2303 = vmatprep.mubr.msk.bf16.mxu0 %vm468_vm0, %v2434_v1  ;;  %2367 = vmatprep.mubr.msk.bf16.mxu1 %vm468_vm0, %v2435_v2  ;;  %v2441_v8 = vld [vmem:[%s3285_s0 + $0x118] sm:$0xff]   ;;  %v2442_v9 = vld [vmem:[%s3285_s0 + $0x20] sm:$0xff]   ;;  %v2445_v12 = vld [vmem:[%s3285_s0 + $0x128] sm:$0xff]  }
   0x5   :  { %v2443_v10 = vld [vmem:[%s3285_s0 + $0x120] sm:$0xff]   ;;  %v2446_v13 = vld [vmem:[%s3285_s0 + $0x30] sm:$0xff]   ;;  %v2448_v15 = vld [vmem:[%s3285_s0 + $0x38] sm:$0xff]  }
   0x6   :  { %2304 = vmatmul.mubr.msk.bf16.vlgmr.msra.gmra.mrb[0].mxu0 %vm468_vm0, %v2436_v3  ;;  %2368 = vmatmul.mubr.msk.bf16.vlgmr.msra.gmra.mrb[0].mxu1 %vm468_vm0, %v2437_v4  ;;  %v2447_v14 = vld [vmem:[%s3285_s0 + $0x130] sm:$0xff]   ;;  %v2449_v16 = vld [vmem:[%s3285_s0 + $0x138] sm:$0xff]   ;;  %v2450_v17 = vld [vmem:[%s3285_s0 + $0x40] sm:$0xff]  }
   0x7   :  { %2307 = vmatprep.mubr.msk.bf16.mxu0 %vm468_vm0, %v2438_v5  ;;  %2371 = vmatprep.mubr.msk.bf16.mxu1 %vm468_vm0, %v2439_v6  ;;  %v2451_v18 = vld [vmem:[%s3285_s0 + $0x140] sm:$0xff]   ;;  %v2452_v19 = vld [vmem:[%s3285_s0 + $0x48] sm:$0xff]   ;;  %v2454_v21 = vld [vmem:[%s3285_s0 + $0x50] sm:$0xff]  }
   0x8   :  { %v2453_v20 = vld [vmem:[%s3285_s0 + $0x148] sm:$0xff]   ;;  %v2455_v22 = vld [vmem:[%s3285_s0 + $0x150] sm:$0xff]   ;;  %v2456_v23 = vld [vmem:[%s3285_s0 + $0x58] sm:$0xff]  }
   0x9   :  { %v2457_v24 = vld [vmem:[%s3285_s0 + $0x158] sm:$0xff]   ;;  %v2458_v25 = vld [vmem:[%s3285_s0 + $0x60] sm:$0xff]   ;;  %v2460_v27 = vld [vmem:[%s3285_s0 + $0x68] sm:$0xff]  }
   0xa   :  { %v2459_v26 = vld [vmem:[%s3285_s0 + $0x160] sm:$0xff]   ;;  %v2461_v28 = vld [vmem:[%s3285_s0 + $0x168] sm:$0xff]   ;;  %v2462_v29 = vld [vmem:[%s3285_s0 + $0x70] sm:$0xff]  }
   0xb   :  { %v2463_v30 = vld [vmem:[%s3285_s0 + $0x170] sm:$0xff]   ;;  %v2464_v31 = vld [vmem:[%s3285_s0 + $0x78] sm:$0xff]   ;;  %v2466_v33 = vld [vmem:[%s3285_s0 + $0x80] sm:$0xff]  }
   0xc   :  { %v2465_v32 = vld [vmem:[%s3285_s0 + $0x178] sm:$0xff]   ;;  %v2467_v34 = vld [vmem:[%s3285_s0 + $0x180] sm:$0xff]   ;;  %v2468_v35 = vld [vmem:[%s3285_s0 + $0x88] sm:$0xff]  }
   0xd   :  { %v2469_v36 = vld [vmem:[%s3285_s0 + $0x188] sm:$0xff]   ;;  %v2470_v37 = vld [vmem:[%s3285_s0 + $0x90] sm:$0xff]   ;;  %v2472_v39 = vld [vmem:[%s3285_s0 + $0x98] sm:$0xff]  }
   0xe   :  { %2308 = vmatmul.mubr.msk.bf16.gmra.mrb[4].mxu0 %vm468_vm0, %v2440_v7  ;;  %2372 = vmatmul.mubr.msk.bf16.gmra.mrb[4].mxu1 %vm468_vm0, %v2441_v8  ;;  %v2471_v38 = vld [vmem:[%s3285_s0 + $0x190] sm:$0xff]   ;;  %v2473_v40 = vld [vmem:[%s3285_s0 + $0x198] sm:$0xff]   ;;  %v2474_v41 = vld [vmem:[%s3285_s0 + $0xa0] sm:$0xff]  }
   0xf   :  { %2311 = vmatprep.mubr.msk.bf16.mxu0 %vm468_vm0, %v2442_v9  ;;  %2375 = vmatprep.mubr.msk.bf16.mxu1 %vm468_vm0, %v2443_v10  ;;  %v2475_v42 = vld [vmem:[%s3285_s0 + $0x1a0] sm:$0xff]   ;;  %v2476_v43 = vld [vmem:[%s3285_s0 + $0xa8] sm:$0xff]   ;;  %v2478_v45 = vld [vmem:[%s3285_s0 + $0xb0] sm:$0xff]  }
  0x10   :  { %v2477_v44 = vld [vmem:[%s3285_s0 + $0x1a8] sm:$0xff]   ;;  %v2479_v46 = vld [vmem:[%s3285_s0 + $0x1b0] sm:$0xff]   ;;  %v2480_v47 = vld [vmem:[%s3285_s0 + $0xb8] sm:$0xff]  }
  0x11   :  { %v2481_v48 = vld [vmem:[%s3285_s0 + $0x1b8] sm:$0xff]   ;;  %v2482_v49 = vld [vmem:[%s3285_s0 + $0xc0] sm:$0xff]   ;;  %v2484_v51 = vld [vmem:[%s3285_s0 + $0xc8] sm:$0xff]  }
  0x12   :  { %v2483_v50 = vld [vmem:[%s3285_s0 + $0x1c0] sm:$0xff]   ;;  %v2485_v52 = vld [vmem:[%s3285_s0 + $0x1c8] sm:$0xff]   ;;  %v2486_v53 = vld [vmem:[%s3285_s0 + $0xd0] sm:$0xff]  }
  0x13   :  { %v2487_v54 = vld [vmem:[%s3285_s0 + $0x1d0] sm:$0xff]   ;;  %v2488_v55 = vld [vmem:[%s3285_s0 + $0xd8] sm:$0xff]   ;;  %v2490_v57 = vld [vmem:[%s3285_s0 + $0xe0] sm:$0xff]  }
  0x14   :  { %v2489_v56 = vld [vmem:[%s3285_s0 + $0x1d8] sm:$0xff]   ;;  %v2491_v58 = vld [vmem:[%s3285_s0 + $0x1e0] sm:$0xff]   ;;  %v2492_v59 = vld [vmem:[%s3285_s0 + $0xe8] sm:$0xff]  }
  0x15   :  { %v2493_v60 = vld [vmem:[%s3285_s0 + $0x1e8] sm:$0xff]   ;;  %v2494_v61 = vld [vmem:[%s3285_s0 + $0xf0] sm:$0xff]   ;;  %v2496_v63 = vld [vmem:[%s3285_s0 + $0xf8] sm:$0xff]  }
  0x16   :  { %2312 = vmatmul.mubr.msk.bf16.gmra.mrb[8].mxu0 %vm468_vm0, %v2444_v11  ;;  %2376 = vmatmul.mubr.msk.bf16.gmra.mrb[8].mxu1 %vm468_vm0, %v2445_v12  ;;  %v2495_v62 = vld [vmem:[%s3285_s0 + $0x1f0] sm:$0xff]   ;;  %v2497_v0 = vld [vmem:[%s3285_s0 + $0x1f8] sm:$0xff]  }
  0x17   :  { %2315 = vmatprep.mubr.msk.bf16.mxu0 %vm468_vm0, %v2446_v13  ;;  %2379 = vmatprep.mubr.msk.bf16.mxu1 %vm468_vm0, %v2447_v14 }
  0x1e   :  { %2316 = vmatmul.mubr.msk.bf16.gmra.mrb[12].mxu0 %vm468_vm0, %v2448_v15  ;;  %2380 = vmatmul.mubr.msk.bf16.gmra.mrb[12].mxu1 %vm468_vm0, %v2449_v16 }
  0x1f   :  { %2319 = vmatprep.mubr.msk.bf16.mxu0 %vm468_vm0, %v2450_v17  ;;  %2383 = vmatprep.mubr.msk.bf16.mxu1 %vm468_vm0, %v2451_v18 }
  0x26   :  { %2320 = vmatmul.mubr.msk.bf16.gmra.mrb[16].mxu0 %vm468_vm0, %v2452_v19  ;;  %2384 = vmatmul.mubr.msk.bf16.gmra.mrb[16].mxu1 %vm468_vm0, %v2453_v20 }
  0x27   :  { %2323 = vmatprep.mubr.msk.bf16.mxu0 %vm468_vm0, %v2454_v21  ;;  %2387 = vmatprep.mubr.msk.bf16.mxu1 %vm468_vm0, %v2455_v22 }
  0x2e   :  { %2324 = vmatmul.mubr.msk.bf16.gmra.mrb[20].mxu0 %vm468_vm0, %v2456_v23  ;;  %2388 = vmatmul.mubr.msk.bf16.gmra.mrb[20].mxu1 %vm468_vm0, %v2457_v24 }
  0x2f   :  { %2327 = vmatprep.mubr.msk.bf16.mxu0 %vm468_vm0, %v2458_v25  ;;  %2391 = vmatprep.mubr.msk.bf16.mxu1 %vm468_vm0, %v2459_v26 }
  0x36   :  { %2328 = vmatmul.mubr.msk.bf16.gmra.mrb[24].mxu0 %vm468_vm0, %v2460_v27  ;;  %2392 = vmatmul.mubr.msk.bf16.gmra.mrb[24].mxu1 %vm468_vm0, %v2461_v28 }
  0x37   :  { %2331 = vmatprep.mubr.msk.bf16.mxu0 %vm468_vm0, %v2462_v29  ;;  %2395 = vmatprep.mubr.msk.bf16.mxu1 %vm468_vm0, %v2463_v30 }
  0x3e   :  { %2332 = vmatmul.mubr.msk.bf16.gmra.mrb[28].mxu0 %vm468_vm0, %v2464_v31  ;;  %2396 = vmatmul.mubr.msk.bf16.gmra.mrb[28].mxu1 %vm468_vm0, %v2465_v32 }
  0x3f   :  { %2335 = vmatprep.mubr.msk.bf16.mxu0 %vm468_vm0, %v2466_v33  ;;  %2399 = vmatprep.mubr.msk.bf16.mxu1 %vm468_vm0, %v2467_v34 }
  0x46   :  { %2336 = vmatmul.mubr.msk.bf16.gmra.mrb[32].mxu0 %vm468_vm0, %v2468_v35  ;;  %2400 = vmatmul.mubr.msk.bf16.gmra.mrb[32].mxu1 %vm468_vm0, %v2469_v36 }
  0x47   :  { %2339 = vmatprep.mubr.msk.bf16.mxu0 %vm468_vm0, %v2470_v37  ;;  %2403 = vmatprep.mubr.msk.bf16.mxu1 %vm468_vm0, %v2471_v38 }
  0x4e   :  { %2340 = vmatmul.mubr.msk.bf16.gmra.mrb[36].mxu0 %vm468_vm0, %v2472_v39  ;;  %2404 = vmatmul.mubr.msk.bf16.gmra.mrb[36].mxu1 %vm468_vm0, %v2473_v40 }
  0x4f   :  { %2343 = vmatprep.mubr.msk.bf16.mxu0 %vm468_vm0, %v2474_v41  ;;  %2407 = vmatprep.mubr.msk.bf16.mxu1 %vm468_vm0, %v2475_v42 }
  0x56   :  { %2344 = vmatmul.mubr.msk.bf16.gmra.mrb[40].mxu0 %vm468_vm0, %v2476_v43  ;;  %2408 = vmatmul.mubr.msk.bf16.gmra.mrb[40].mxu1 %vm468_vm0, %v2477_v44 }
  0x57   :  { %2347 = vmatprep.mubr.msk.bf16.mxu0 %vm468_vm0, %v2478_v45  ;;  %2411 = vmatprep.mubr.msk.bf16.mxu1 %vm468_vm0, %v2479_v46 }
  0x5e   :  { %2348 = vmatmul.mubr.msk.bf16.gmra.mrb[44].mxu0 %vm468_vm0, %v2480_v47  ;;  %2412 = vmatmul.mubr.msk.bf16.gmra.mrb[44].mxu1 %vm468_vm0, %v2481_v48 }
  0x5f   :  { %2351 = vmatprep.mubr.msk.bf16.mxu0 %vm468_vm0, %v2482_v49  ;;  %2415 = vmatprep.mubr.msk.bf16.mxu1 %vm468_vm0, %v2483_v50 }
  0x66   :  { %2352 = vmatmul.mubr.msk.bf16.gmra.mrb[48].mxu0 %vm468_vm0, %v2484_v51  ;;  %2416 = vmatmul.mubr.msk.bf16.gmra.mrb[48].mxu1 %vm468_vm0, %v2485_v52 }
  0x67   :  { %2355 = vmatprep.mubr.msk.bf16.mxu0 %vm468_vm0, %v2486_v53  ;;  %2419 = vmatprep.mubr.msk.bf16.mxu1 %vm468_vm0, %v2487_v54 }
  0x6e   :  { %2356 = vmatmul.mubr.msk.bf16.gmra.mrb[52].mxu0 %vm468_vm0, %v2488_v55  ;;  %2420 = vmatmul.mubr.msk.bf16.gmra.mrb[52].mxu1 %vm468_vm0, %v2489_v56 }
  0x6f   :  { %2359 = vmatprep.mubr.msk.bf16.mxu0 %vm468_vm0, %v2490_v57  ;;  %2423 = vmatprep.mubr.msk.bf16.mxu1 %vm468_vm0, %v2491_v58 }
  0x76   :  { %2360 = vmatmul.mubr.msk.bf16.gmra.mrb[56].mxu0 %vm468_vm0, %v2492_v59  ;;  %2424 = vmatmul.mubr.msk.bf16.gmra.mrb[56].mxu1 %vm468_vm0, %v2493_v60 }
  0x77   :  { %2363 = vmatprep.mubr.msk.bf16.mxu0 %vm468_vm0, %v2494_v61  ;;  %2427 = vmatprep.mubr.msk.bf16.mxu1 %vm468_vm0, %v2495_v62 }
  0x7e   :  { %2364 = vmatmul.mubr.msk.bf16.gmra.mrb[60].mxu0 %vm468_vm0, %v2496_v63  ;;  %2428 = vmatmul.mubr.msk.bf16.gmra.mrb[60].mxu1 %vm468_vm0, %v2497_v0 }
  0xd9   :  { %v2305_v1 = vpop.f32.mrb[0].mxu0  ;;  %v2369_v2 = vpop.f32.mrb[0].mxu1 }
  0xda   :  { %v2110_v3 = vpack.c.bf16 %v2305_v1, %v2305_v1  ;;  %v2174_v4 = vpack.c.bf16 %v2369_v2, %v2369_v2  ;;  %v695_v5 = vpop.f32.mrb[1].mxu0  ;;  %v951_v6 = vpop.f32.mrb[1].mxu1 }
  0xdb   :  { %v2108_v7 = vpack.c.bf16 %v695_v5, %v695_v5  ;;  %v2172_v8 = vpack.c.bf16 %v951_v6, %v951_v6  ;;  %v2306_v9 = vpop.f32.mrb[2].mxu0  ;;  %v2370_v10 = vpop.f32.mrb[2].mxu1 }
  0xdc   :  { %1721 = vst.msk [vmem:[%s3286_s2 + $0x8] sm:$0xf] %vm1718_vm1, %v2110_v3  ;;  %1785 = vst.msk [vmem:[%s3286_s2 + $0x108] sm:$0xf] %vm1718_vm1, %v2174_v4  ;;  %v2111_v11 = vpack.c.bf16 %v2306_v9, %v2306_v9  ;;  %v2175_v12 = vpack.c.bf16 %v2370_v10, %v2370_v10  ;;  %v698_v13 = vpop.f32.mrb[3].mxu0  ;;  %v954_v14 = vpop.f32.mrb[3].mxu1 }
  0xdd   :  { %1719 = vst.msk [vmem:[%s3286_s2] sm:$0xf] %vm1718_vm1, %v2108_v7  ;;  %1783 = vst.msk [vmem:[%s3286_s2 + $0x100] sm:$0xf] %vm1718_vm1, %v2172_v8  ;;  %v2109_v15 = vpack.c.bf16 %v698_v13, %v698_v13  ;;  %v2173_v16 = vpack.c.bf16 %v954_v14, %v954_v14 }
  0xde   :  { %1722 = vst.msk [vmem:[%s3286_s2 + $0xc] sm:$0xf] %vm1718_vm1, %v2111_v11  ;;  %1786 = vst.msk [vmem:[%s3286_s2 + $0x10c] sm:$0xf] %vm1718_vm1, %v2175_v12 }
  0xdf   :  { %1720 = vst.msk [vmem:[%s3286_s2 + $0x4] sm:$0xf] %vm1718_vm1, %v2109_v15  ;;  %1784 = vst.msk [vmem:[%s3286_s2 + $0x104] sm:$0xf] %vm1718_vm1, %v2173_v16 }
  0xe1   :  { %v2309_v17 = vpop.f32.mrb[4].mxu0  ;;  %v2373_v18 = vpop.f32.mrb[4].mxu1 }
  0xe2   :  { %v2114_v19 = vpack.c.bf16 %v2309_v17, %v2309_v17  ;;  %v2178_v20 = vpack.c.bf16 %v2373_v18, %v2373_v18  ;;  %v711_v21 = vpop.f32.mrb[5].mxu0  ;;  %v967_v22 = vpop.f32.mrb[5].mxu1 }
  0xe3   :  { %v2112_v23 = vpack.c.bf16 %v711_v21, %v711_v21  ;;  %v2176_v24 = vpack.c.bf16 %v967_v22, %v967_v22  ;;  %v2310_v25 = vpop.f32.mrb[6].mxu0  ;;  %v2374_v26 = vpop.f32.mrb[6].mxu1 }
  0xe4   :  { %1725 = vst.msk [vmem:[%s3286_s2 + $0x18] sm:$0xf] %vm1718_vm1, %v2114_v19  ;;  %1789 = vst.msk [vmem:[%s3286_s2 + $0x118] sm:$0xf] %vm1718_vm1, %v2178_v20  ;;  %v2115_v27 = vpack.c.bf16 %v2310_v25, %v2310_v25  ;;  %v2179_v28 = vpack.c.bf16 %v2374_v26, %v2374_v26  ;;  %v714_v29 = vpop.f32.mrb[7].mxu0  ;;  %v970_v30 = vpop.f32.mrb[7].mxu1 }
  0xe5   :  { %1723 = vst.msk [vmem:[%s3286_s2 + $0x10] sm:$0xf] %vm1718_vm1, %v2112_v23  ;;  %1787 = vst.msk [vmem:[%s3286_s2 + $0x110] sm:$0xf] %vm1718_vm1, %v2176_v24  ;;  %v2113_v31 = vpack.c.bf16 %v714_v29, %v714_v29  ;;  %v2177_v32 = vpack.c.bf16 %v970_v30, %v970_v30 }
  0xe6   :  { %1726 = vst.msk [vmem:[%s3286_s2 + $0x1c] sm:$0xf] %vm1718_vm1, %v2115_v27  ;;  %1790 = vst.msk [vmem:[%s3286_s2 + $0x11c] sm:$0xf] %vm1718_vm1, %v2179_v28 }
  0xe7   :  { %1724 = vst.msk [vmem:[%s3286_s2 + $0x14] sm:$0xf] %vm1718_vm1, %v2113_v31  ;;  %1788 = vst.msk [vmem:[%s3286_s2 + $0x114] sm:$0xf] %vm1718_vm1, %v2177_v32 }
  0xe9   :  { %v2313_v33 = vpop.f32.mrb[8].mxu0  ;;  %v2377_v34 = vpop.f32.mrb[8].mxu1 }
  0xea   :  { %v2118_v35 = vpack.c.bf16 %v2313_v33, %v2313_v33  ;;  %v2182_v36 = vpack.c.bf16 %v2377_v34, %v2377_v34  ;;  %v727_v37 = vpop.f32.mrb[9].mxu0  ;;  %v983_v38 = vpop.f32.mrb[9].mxu1 }
  0xeb   :  { %v2116_v39 = vpack.c.bf16 %v727_v37, %v727_v37  ;;  %v2180_v40 = vpack.c.bf16 %v983_v38, %v983_v38  ;;  %v2314_v41 = vpop.f32.mrb[10].mxu0  ;;  %v2378_v42 = vpop.f32.mrb[10].mxu1 }
  0xec   :  { %1729 = vst.msk [vmem:[%s3286_s2 + $0x28] sm:$0xf] %vm1718_vm1, %v2118_v35  ;;  %1793 = vst.msk [vmem:[%s3286_s2 + $0x128] sm:$0xf] %vm1718_vm1, %v2182_v36  ;;  %v2119_v43 = vpack.c.bf16 %v2314_v41, %v2314_v41  ;;  %v2183_v44 = vpack.c.bf16 %v2378_v42, %v2378_v42  ;;  %v730_v45 = vpop.f32.mrb[11].mxu0  ;;  %v986_v46 = vpop.f32.mrb[11].mxu1 }
  0xed   :  { %1727 = vst.msk [vmem:[%s3286_s2 + $0x20] sm:$0xf] %vm1718_vm1, %v2116_v39  ;;  %1791 = vst.msk [vmem:[%s3286_s2 + $0x120] sm:$0xf] %vm1718_vm1, %v2180_v40  ;;  %v2117_v47 = vpack.c.bf16 %v730_v45, %v730_v45  ;;  %v2181_v48 = vpack.c.bf16 %v986_v46, %v986_v46 }
  0xee   :  { %1730 = vst.msk [vmem:[%s3286_s2 + $0x2c] sm:$0xf] %vm1718_vm1, %v2119_v43  ;;  %1794 = vst.msk [vmem:[%s3286_s2 + $0x12c] sm:$0xf] %vm1718_vm1, %v2183_v44 }
  0xef   :  { %1728 = vst.msk [vmem:[%s3286_s2 + $0x24] sm:$0xf] %vm1718_vm1, %v2117_v47  ;;  %1792 = vst.msk [vmem:[%s3286_s2 + $0x124] sm:$0xf] %vm1718_vm1, %v2181_v48 }
  0xf1   :  { %v2317_v49 = vpop.f32.mrb[12].mxu0  ;;  %v2381_v50 = vpop.f32.mrb[12].mxu1 }
  0xf2   :  { %v2122_v51 = vpack.c.bf16 %v2317_v49, %v2317_v49  ;;  %v2186_v52 = vpack.c.bf16 %v2381_v50, %v2381_v50  ;;  %v743_v53 = vpop.f32.mrb[13].mxu0  ;;  %v999_v54 = vpop.f32.mrb[13].mxu1 }
  0xf3   :  { %v2120_v55 = vpack.c.bf16 %v743_v53, %v743_v53  ;;  %v2184_v56 = vpack.c.bf16 %v999_v54, %v999_v54  ;;  %v2318_v57 = vpop.f32.mrb[14].mxu0  ;;  %v2382_v58 = vpop.f32.mrb[14].mxu1 }
  0xf4   :  { %1733 = vst.msk [vmem:[%s3286_s2 + $0x38] sm:$0xf] %vm1718_vm1, %v2122_v51  ;;  %1797 = vst.msk [vmem:[%s3286_s2 + $0x138] sm:$0xf] %vm1718_vm1, %v2186_v52  ;;  %v2123_v59 = vpack.c.bf16 %v2318_v57, %v2318_v57  ;;  %v2187_v60 = vpack.c.bf16 %v2382_v58, %v2382_v58  ;;  %v746_v61 = vpop.f32.mrb[15].mxu0  ;;  %v1002_v62 = vpop.f32.mrb[15].mxu1 }
  0xf5   :  { %1731 = vst.msk [vmem:[%s3286_s2 + $0x30] sm:$0xf] %vm1718_vm1, %v2120_v55  ;;  %1795 = vst.msk [vmem:[%s3286_s2 + $0x130] sm:$0xf] %vm1718_vm1, %v2184_v56  ;;  %v2121_v63 = vpack.c.bf16 %v746_v61, %v746_v61  ;;  %v2185_v0 = vpack.c.bf16 %v1002_v62, %v1002_v62 }
  0xf6   :  { %1734 = vst.msk [vmem:[%s3286_s2 + $0x3c] sm:$0xf] %vm1718_vm1, %v2123_v59  ;;  %1798 = vst.msk [vmem:[%s3286_s2 + $0x13c] sm:$0xf] %vm1718_vm1, %v2187_v60 }
  0xf7   :  { %1732 = vst.msk [vmem:[%s3286_s2 + $0x34] sm:$0xf] %vm1718_vm1, %v2121_v63  ;;  %1796 = vst.msk [vmem:[%s3286_s2 + $0x134] sm:$0xf] %vm1718_vm1, %v2185_v0 }
  0xf9   :  { %v2321_v1 = vpop.f32.mrb[16].mxu0  ;;  %v2385_v2 = vpop.f32.mrb[16].mxu1 }
  0xfa   :  { %v2126_v3 = vpack.c.bf16 %v2321_v1, %v2321_v1  ;;  %v2190_v4 = vpack.c.bf16 %v2385_v2, %v2385_v2  ;;  %v759_v5 = vpop.f32.mrb[17].mxu0  ;;  %v1015_v6 = vpop.f32.mrb[17].mxu1 }
  0xfb   :  { %v2124_v7 = vpack.c.bf16 %v759_v5, %v759_v5  ;;  %v2188_v8 = vpack.c.bf16 %v1015_v6, %v1015_v6  ;;  %v2322_v9 = vpop.f32.mrb[18].mxu0  ;;  %v2386_v10 = vpop.f32.mrb[18].mxu1 }
  0xfc   :  { %1737 = vst.msk [vmem:[%s3286_s2 + $0x48] sm:$0xf] %vm1718_vm1, %v2126_v3  ;;  %1801 = vst.msk [vmem:[%s3286_s2 + $0x148] sm:$0xf] %vm1718_vm1, %v2190_v4  ;;  %v2127_v11 = vpack.c.bf16 %v2322_v9, %v2322_v9  ;;  %v2191_v12 = vpack.c.bf16 %v2386_v10, %v2386_v10  ;;  %v762_v13 = vpop.f32.mrb[19].mxu0  ;;  %v1018_v14 = vpop.f32.mrb[19].mxu1 }
  0xfd   :  { %1735 = vst.msk [vmem:[%s3286_s2 + $0x40] sm:$0xf] %vm1718_vm1, %v2124_v7  ;;  %1799 = vst.msk [vmem:[%s3286_s2 + $0x140] sm:$0xf] %vm1718_vm1, %v2188_v8  ;;  %v2125_v15 = vpack.c.bf16 %v762_v13, %v762_v13  ;;  %v2189_v16 = vpack.c.bf16 %v1018_v14, %v1018_v14 }
  0xfe   :  { %1738 = vst.msk [vmem:[%s3286_s2 + $0x4c] sm:$0xf] %vm1718_vm1, %v2127_v11  ;;  %1802 = vst.msk [vmem:[%s3286_s2 + $0x14c] sm:$0xf] %vm1718_vm1, %v2191_v12 }
  0xff   :  { %1736 = vst.msk [vmem:[%s3286_s2 + $0x44] sm:$0xf] %vm1718_vm1, %v2125_v15  ;;  %1800 = vst.msk [vmem:[%s3286_s2 + $0x144] sm:$0xf] %vm1718_vm1, %v2189_v16 }
 0x101   :  { %v2325_v17 = vpop.f32.mrb[20].mxu0  ;;  %v2389_v18 = vpop.f32.mrb[20].mxu1 }
 0x102   :  { %v2130_v19 = vpack.c.bf16 %v2325_v17, %v2325_v17  ;;  %v2194_v20 = vpack.c.bf16 %v2389_v18, %v2389_v18  ;;  %v775_v21 = vpop.f32.mrb[21].mxu0  ;;  %v1031_v22 = vpop.f32.mrb[21].mxu1 }
 0x103   :  { %v2128_v23 = vpack.c.bf16 %v775_v21, %v775_v21  ;;  %v2192_v24 = vpack.c.bf16 %v1031_v22, %v1031_v22  ;;  %v2326_v25 = vpop.f32.mrb[22].mxu0  ;;  %v2390_v26 = vpop.f32.mrb[22].mxu1 }
 0x104   :  { %1741 = vst.msk [vmem:[%s3286_s2 + $0x58] sm:$0xf] %vm1718_vm1, %v2130_v19  ;;  %1805 = vst.msk [vmem:[%s3286_s2 + $0x158] sm:$0xf] %vm1718_vm1, %v2194_v20  ;;  %v2131_v27 = vpack.c.bf16 %v2326_v25, %v2326_v25  ;;  %v2195_v28 = vpack.c.bf16 %v2390_v26, %v2390_v26  ;;  %v778_v29 = vpop.f32.mrb[23].mxu0  ;;  %v1034_v30 = vpop.f32.mrb[23].mxu1 }
 0x105   :  { %1739 = vst.msk [vmem:[%s3286_s2 + $0x50] sm:$0xf] %vm1718_vm1, %v2128_v23  ;;  %1803 = vst.msk [vmem:[%s3286_s2 + $0x150] sm:$0xf] %vm1718_vm1, %v2192_v24  ;;  %v2129_v31 = vpack.c.bf16 %v778_v29, %v778_v29  ;;  %v2193_v32 = vpack.c.bf16 %v1034_v30, %v1034_v30 }
 0x106   :  { %1742 = vst.msk [vmem:[%s3286_s2 + $0x5c] sm:$0xf] %vm1718_vm1, %v2131_v27  ;;  %1806 = vst.msk [vmem:[%s3286_s2 + $0x15c] sm:$0xf] %vm1718_vm1, %v2195_v28 }
 0x107   :  { %1740 = vst.msk [vmem:[%s3286_s2 + $0x54] sm:$0xf] %vm1718_vm1, %v2129_v31  ;;  %1804 = vst.msk [vmem:[%s3286_s2 + $0x154] sm:$0xf] %vm1718_vm1, %v2193_v32 }
 0x109   :  { %v2329_v33 = vpop.f32.mrb[24].mxu0  ;;  %v2393_v34 = vpop.f32.mrb[24].mxu1 }
 0x10a   :  { %v2134_v35 = vpack.c.bf16 %v2329_v33, %v2329_v33  ;;  %v2198_v36 = vpack.c.bf16 %v2393_v34, %v2393_v34  ;;  %v791_v37 = vpop.f32.mrb[25].mxu0  ;;  %v1047_v38 = vpop.f32.mrb[25].mxu1 }
 0x10b   :  { %v2132_v39 = vpack.c.bf16 %v791_v37, %v791_v37  ;;  %v2196_v40 = vpack.c.bf16 %v1047_v38, %v1047_v38  ;;  %v2330_v41 = vpop.f32.mrb[26].mxu0  ;;  %v2394_v42 = vpop.f32.mrb[26].mxu1 }
 0x10c   :  { %1745 = vst.msk [vmem:[%s3286_s2 + $0x68] sm:$0xf] %vm1718_vm1, %v2134_v35  ;;  %1809 = vst.msk [vmem:[%s3286_s2 + $0x168] sm:$0xf] %vm1718_vm1, %v2198_v36  ;;  %v2135_v43 = vpack.c.bf16 %v2330_v41, %v2330_v41  ;;  %v2199_v44 = vpack.c.bf16 %v2394_v42, %v2394_v42  ;;  %v794_v45 = vpop.f32.mrb[27].mxu0  ;;  %v1050_v46 = vpop.f32.mrb[27].mxu1 }
 0x10d   :  { %1743 = vst.msk [vmem:[%s3286_s2 + $0x60] sm:$0xf] %vm1718_vm1, %v2132_v39  ;;  %1807 = vst.msk [vmem:[%s3286_s2 + $0x160] sm:$0xf] %vm1718_vm1, %v2196_v40  ;;  %v2133_v47 = vpack.c.bf16 %v794_v45, %v794_v45  ;;  %v2197_v48 = vpack.c.bf16 %v1050_v46, %v1050_v46 }
 0x10e   :  { %1746 = vst.msk [vmem:[%s3286_s2 + $0x6c] sm:$0xf] %vm1718_vm1, %v2135_v43  ;;  %1810 = vst.msk [vmem:[%s3286_s2 + $0x16c] sm:$0xf] %vm1718_vm1, %v2199_v44 }
 0x10f   :  { %1744 = vst.msk [vmem:[%s3286_s2 + $0x64] sm:$0xf] %vm1718_vm1, %v2133_v47  ;;  %1808 = vst.msk [vmem:[%s3286_s2 + $0x164] sm:$0xf] %vm1718_vm1, %v2197_v48 }
 0x111   :  { %v2333_v49 = vpop.f32.mrb[28].mxu0  ;;  %v2397_v50 = vpop.f32.mrb[28].mxu1 }
 0x112   :  { %v2138_v51 = vpack.c.bf16 %v2333_v49, %v2333_v49  ;;  %v2202_v52 = vpack.c.bf16 %v2397_v50, %v2397_v50  ;;  %v807_v53 = vpop.f32.mrb[29].mxu0  ;;  %v1063_v54 = vpop.f32.mrb[29].mxu1 }
 0x113   :  { %v2136_v55 = vpack.c.bf16 %v807_v53, %v807_v53  ;;  %v2200_v56 = vpack.c.bf16 %v1063_v54, %v1063_v54  ;;  %v2334_v57 = vpop.f32.mrb[30].mxu0  ;;  %v2398_v58 = vpop.f32.mrb[30].mxu1 }
 0x114   :  { %1749 = vst.msk [vmem:[%s3286_s2 + $0x78] sm:$0xf] %vm1718_vm1, %v2138_v51  ;;  %1813 = vst.msk [vmem:[%s3286_s2 + $0x178] sm:$0xf] %vm1718_vm1, %v2202_v52  ;;  %v2139_v59 = vpack.c.bf16 %v2334_v57, %v2334_v57  ;;  %v2203_v60 = vpack.c.bf16 %v2398_v58, %v2398_v58  ;;  %v810_v61 = vpop.f32.mrb[31].mxu0  ;;  %v1066_v62 = vpop.f32.mrb[31].mxu1 }
 0x115   :  { %1747 = vst.msk [vmem:[%s3286_s2 + $0x70] sm:$0xf] %vm1718_vm1, %v2136_v55  ;;  %1811 = vst.msk [vmem:[%s3286_s2 + $0x170] sm:$0xf] %vm1718_vm1, %v2200_v56  ;;  %v2137_v63 = vpack.c.bf16 %v810_v61, %v810_v61  ;;  %v2201_v0 = vpack.c.bf16 %v1066_v62, %v1066_v62 }
 0x116   :  { %1750 = vst.msk [vmem:[%s3286_s2 + $0x7c] sm:$0xf] %vm1718_vm1, %v2139_v59  ;;  %1814 = vst.msk [vmem:[%s3286_s2 + $0x17c] sm:$0xf] %vm1718_vm1, %v2203_v60 }
 0x117   :  { %1748 = vst.msk [vmem:[%s3286_s2 + $0x74] sm:$0xf] %vm1718_vm1, %v2137_v63  ;;  %1812 = vst.msk [vmem:[%s3286_s2 + $0x174] sm:$0xf] %vm1718_vm1, %v2201_v0 }
 0x119   :  { %v2337_v1 = vpop.f32.mrb[32].mxu0  ;;  %v2401_v2 = vpop.f32.mrb[32].mxu1 }
 0x11a   :  { %v2142_v3 = vpack.c.bf16 %v2337_v1, %v2337_v1  ;;  %v2206_v4 = vpack.c.bf16 %v2401_v2, %v2401_v2  ;;  %v823_v5 = vpop.f32.mrb[33].mxu0  ;;  %v1079_v6 = vpop.f32.mrb[33].mxu1 }
 0x11b   :  { %v2140_v7 = vpack.c.bf16 %v823_v5, %v823_v5  ;;  %v2204_v8 = vpack.c.bf16 %v1079_v6, %v1079_v6  ;;  %v2338_v9 = vpop.f32.mrb[34].mxu0  ;;  %v2402_v10 = vpop.f32.mrb[34].mxu1 }
 0x11c   :  { %1753 = vst.msk [vmem:[%s3286_s2 + $0x88] sm:$0xf] %vm1718_vm1, %v2142_v3  ;;  %1817 = vst.msk [vmem:[%s3286_s2 + $0x188] sm:$0xf] %vm1718_vm1, %v2206_v4  ;;  %v2143_v11 = vpack.c.bf16 %v2338_v9, %v2338_v9  ;;  %v2207_v12 = vpack.c.bf16 %v2402_v10, %v2402_v10  ;;  %v826_v13 = vpop.f32.mrb[35].mxu0  ;;  %v1082_v14 = vpop.f32.mrb[35].mxu1 }
 0x11d   :  { %1751 = vst.msk [vmem:[%s3286_s2 + $0x80] sm:$0xf] %vm1718_vm1, %v2140_v7  ;;  %1815 = vst.msk [vmem:[%s3286_s2 + $0x180] sm:$0xf] %vm1718_vm1, %v2204_v8  ;;  %v2141_v15 = vpack.c.bf16 %v826_v13, %v826_v13  ;;  %v2205_v16 = vpack.c.bf16 %v1082_v14, %v1082_v14 }
 0x11e   :  { %1754 = vst.msk [vmem:[%s3286_s2 + $0x8c] sm:$0xf] %vm1718_vm1, %v2143_v11  ;;  %1818 = vst.msk [vmem:[%s3286_s2 + $0x18c] sm:$0xf] %vm1718_vm1, %v2207_v12 }
 0x11f   :  { %1752 = vst.msk [vmem:[%s3286_s2 + $0x84] sm:$0xf] %vm1718_vm1, %v2141_v15  ;;  %1816 = vst.msk [vmem:[%s3286_s2 + $0x184] sm:$0xf] %vm1718_vm1, %v2205_v16 }
 0x121   :  { %v2341_v17 = vpop.f32.mrb[36].mxu0  ;;  %v2405_v18 = vpop.f32.mrb[36].mxu1 }
 0x122   :  { %v2146_v19 = vpack.c.bf16 %v2341_v17, %v2341_v17  ;;  %v2210_v20 = vpack.c.bf16 %v2405_v18, %v2405_v18  ;;  %v839_v21 = vpop.f32.mrb[37].mxu0  ;;  %v1095_v22 = vpop.f32.mrb[37].mxu1 }
 0x123   :  { %v2144_v23 = vpack.c.bf16 %v839_v21, %v839_v21  ;;  %v2208_v24 = vpack.c.bf16 %v1095_v22, %v1095_v22  ;;  %v2342_v25 = vpop.f32.mrb[38].mxu0  ;;  %v2406_v26 = vpop.f32.mrb[38].mxu1 }
 0x124   :  { %1757 = vst.msk [vmem:[%s3286_s2 + $0x98] sm:$0xf] %vm1718_vm1, %v2146_v19  ;;  %1821 = vst.msk [vmem:[%s3286_s2 + $0x198] sm:$0xf] %vm1718_vm1, %v2210_v20  ;;  %v2147_v27 = vpack.c.bf16 %v2342_v25, %v2342_v25  ;;  %v2211_v28 = vpack.c.bf16 %v2406_v26, %v2406_v26  ;;  %v842_v29 = vpop.f32.mrb[39].mxu0  ;;  %v1098_v30 = vpop.f32.mrb[39].mxu1 }
 0x125   :  { %1755 = vst.msk [vmem:[%s3286_s2 + $0x90] sm:$0xf] %vm1718_vm1, %v2144_v23  ;;  %1819 = vst.msk [vmem:[%s3286_s2 + $0x190] sm:$0xf] %vm1718_vm1, %v2208_v24  ;;  %v2145_v31 = vpack.c.bf16 %v842_v29, %v842_v29  ;;  %v2209_v32 = vpack.c.bf16 %v1098_v30, %v1098_v30 }
 0x126   :  { %1758 = vst.msk [vmem:[%s3286_s2 + $0x9c] sm:$0xf] %vm1718_vm1, %v2147_v27  ;;  %1822 = vst.msk [vmem:[%s3286_s2 + $0x19c] sm:$0xf] %vm1718_vm1, %v2211_v28 }
 0x127   :  { %1756 = vst.msk [vmem:[%s3286_s2 + $0x94] sm:$0xf] %vm1718_vm1, %v2145_v31  ;;  %1820 = vst.msk [vmem:[%s3286_s2 + $0x194] sm:$0xf] %vm1718_vm1, %v2209_v32 }
 0x129   :  { %v2345_v33 = vpop.f32.mrb[40].mxu0  ;;  %v2409_v34 = vpop.f32.mrb[40].mxu1 }
 0x12a   :  { %v2150_v35 = vpack.c.bf16 %v2345_v33, %v2345_v33  ;;  %v2214_v36 = vpack.c.bf16 %v2409_v34, %v2409_v34  ;;  %v855_v37 = vpop.f32.mrb[41].mxu0  ;;  %v1111_v38 = vpop.f32.mrb[41].mxu1 }
 0x12b   :  { %v2148_v39 = vpack.c.bf16 %v855_v37, %v855_v37  ;;  %v2212_v40 = vpack.c.bf16 %v1111_v38, %v1111_v38  ;;  %v2346_v41 = vpop.f32.mrb[42].mxu0  ;;  %v2410_v42 = vpop.f32.mrb[42].mxu1 }
 0x12c   :  { %1761 = vst.msk [vmem:[%s3286_s2 + $0xa8] sm:$0xf] %vm1718_vm1, %v2150_v35  ;;  %1825 = vst.msk [vmem:[%s3286_s2 + $0x1a8] sm:$0xf] %vm1718_vm1, %v2214_v36  ;;  %v2151_v43 = vpack.c.bf16 %v2346_v41, %v2346_v41  ;;  %v2215_v44 = vpack.c.bf16 %v2410_v42, %v2410_v42  ;;  %v858_v45 = vpop.f32.mrb[43].mxu0  ;;  %v1114_v46 = vpop.f32.mrb[43].mxu1 }
 0x12d   :  { %1759 = vst.msk [vmem:[%s3286_s2 + $0xa0] sm:$0xf] %vm1718_vm1, %v2148_v39  ;;  %1823 = vst.msk [vmem:[%s3286_s2 + $0x1a0] sm:$0xf] %vm1718_vm1, %v2212_v40  ;;  %v2149_v47 = vpack.c.bf16 %v858_v45, %v858_v45  ;;  %v2213_v48 = vpack.c.bf16 %v1114_v46, %v1114_v46 }
 0x12e   :  { %1762 = vst.msk [vmem:[%s3286_s2 + $0xac] sm:$0xf] %vm1718_vm1, %v2151_v43  ;;  %1826 = vst.msk [vmem:[%s3286_s2 + $0x1ac] sm:$0xf] %vm1718_vm1, %v2215_v44 }
 0x12f   :  { %1760 = vst.msk [vmem:[%s3286_s2 + $0xa4] sm:$0xf] %vm1718_vm1, %v2149_v47  ;;  %1824 = vst.msk [vmem:[%s3286_s2 + $0x1a4] sm:$0xf] %vm1718_vm1, %v2213_v48 }
 0x131   :  { %v2349_v49 = vpop.f32.mrb[44].mxu0  ;;  %v2413_v50 = vpop.f32.mrb[44].mxu1 }
 0x132   :  { %v2154_v51 = vpack.c.bf16 %v2349_v49, %v2349_v49  ;;  %v2218_v52 = vpack.c.bf16 %v2413_v50, %v2413_v50  ;;  %v871_v53 = vpop.f32.mrb[45].mxu0  ;;  %v1127_v54 = vpop.f32.mrb[45].mxu1 }
 0x133   :  { %v2152_v55 = vpack.c.bf16 %v871_v53, %v871_v53  ;;  %v2216_v56 = vpack.c.bf16 %v1127_v54, %v1127_v54  ;;  %v2350_v57 = vpop.f32.mrb[46].mxu0  ;;  %v2414_v58 = vpop.f32.mrb[46].mxu1 }
 0x134   :  { %1765 = vst.msk [vmem:[%s3286_s2 + $0xb8] sm:$0xf] %vm1718_vm1, %v2154_v51  ;;  %1829 = vst.msk [vmem:[%s3286_s2 + $0x1b8] sm:$0xf] %vm1718_vm1, %v2218_v52  ;;  %v2155_v59 = vpack.c.bf16 %v2350_v57, %v2350_v57  ;;  %v2219_v60 = vpack.c.bf16 %v2414_v58, %v2414_v58  ;;  %v874_v61 = vpop.f32.mrb[47].mxu0  ;;  %v1130_v62 = vpop.f32.mrb[47].mxu1 }
 0x135   :  { %1763 = vst.msk [vmem:[%s3286_s2 + $0xb0] sm:$0xf] %vm1718_vm1, %v2152_v55  ;;  %1827 = vst.msk [vmem:[%s3286_s2 + $0x1b0] sm:$0xf] %vm1718_vm1, %v2216_v56  ;;  %v2153_v63 = vpack.c.bf16 %v874_v61, %v874_v61  ;;  %v2217_v0 = vpack.c.bf16 %v1130_v62, %v1130_v62 }
 0x136   :  { %1766 = vst.msk [vmem:[%s3286_s2 + $0xbc] sm:$0xf] %vm1718_vm1, %v2155_v59  ;;  %1830 = vst.msk [vmem:[%s3286_s2 + $0x1bc] sm:$0xf] %vm1718_vm1, %v2219_v60 }
 0x137   :  { %1764 = vst.msk [vmem:[%s3286_s2 + $0xb4] sm:$0xf] %vm1718_vm1, %v2153_v63  ;;  %1828 = vst.msk [vmem:[%s3286_s2 + $0x1b4] sm:$0xf] %vm1718_vm1, %v2217_v0 }
 0x139   :  { %v2353_v1 = vpop.f32.mrb[48].mxu0  ;;  %v2417_v2 = vpop.f32.mrb[48].mxu1 }
 0x13a   :  { %v2158_v3 = vpack.c.bf16 %v2353_v1, %v2353_v1  ;;  %v2222_v4 = vpack.c.bf16 %v2417_v2, %v2417_v2  ;;  %v887_v5 = vpop.f32.mrb[49].mxu0  ;;  %v1143_v6 = vpop.f32.mrb[49].mxu1 }
 0x13b   :  { %v2156_v7 = vpack.c.bf16 %v887_v5, %v887_v5  ;;  %v2220_v8 = vpack.c.bf16 %v1143_v6, %v1143_v6  ;;  %v2354_v9 = vpop.f32.mrb[50].mxu0  ;;  %v2418_v10 = vpop.f32.mrb[50].mxu1 }
 0x13c   :  { %1769 = vst.msk [vmem:[%s3286_s2 + $0xc8] sm:$0xf] %vm1718_vm1, %v2158_v3  ;;  %1833 = vst.msk [vmem:[%s3286_s2 + $0x1c8] sm:$0xf] %vm1718_vm1, %v2222_v4  ;;  %v2159_v11 = vpack.c.bf16 %v2354_v9, %v2354_v9  ;;  %v2223_v12 = vpack.c.bf16 %v2418_v10, %v2418_v10  ;;  %v890_v13 = vpop.f32.mrb[51].mxu0  ;;  %v1146_v14 = vpop.f32.mrb[51].mxu1 }
 0x13d   :  { %1767 = vst.msk [vmem:[%s3286_s2 + $0xc0] sm:$0xf] %vm1718_vm1, %v2156_v7  ;;  %1831 = vst.msk [vmem:[%s3286_s2 + $0x1c0] sm:$0xf] %vm1718_vm1, %v2220_v8  ;;  %v2157_v15 = vpack.c.bf16 %v890_v13, %v890_v13  ;;  %v2221_v16 = vpack.c.bf16 %v1146_v14, %v1146_v14 }
 0x13e   :  { %1770 = vst.msk [vmem:[%s3286_s2 + $0xcc] sm:$0xf] %vm1718_vm1, %v2159_v11  ;;  %1834 = vst.msk [vmem:[%s3286_s2 + $0x1cc] sm:$0xf] %vm1718_vm1, %v2223_v12 }
 0x13f   :  { %1768 = vst.msk [vmem:[%s3286_s2 + $0xc4] sm:$0xf] %vm1718_vm1, %v2157_v15  ;;  %1832 = vst.msk [vmem:[%s3286_s2 + $0x1c4] sm:$0xf] %vm1718_vm1, %v2221_v16 }
 0x141   :  { %v2357_v17 = vpop.f32.mrb[52].mxu0  ;;  %v2421_v18 = vpop.f32.mrb[52].mxu1 }
 0x142   :  { %v2162_v19 = vpack.c.bf16 %v2357_v17, %v2357_v17  ;;  %v2226_v20 = vpack.c.bf16 %v2421_v18, %v2421_v18  ;;  %v903_v21 = vpop.f32.mrb[53].mxu0  ;;  %v1159_v22 = vpop.f32.mrb[53].mxu1 }
 0x143   :  { %v2160_v23 = vpack.c.bf16 %v903_v21, %v903_v21  ;;  %v2224_v24 = vpack.c.bf16 %v1159_v22, %v1159_v22  ;;  %v2358_v25 = vpop.f32.mrb[54].mxu0  ;;  %v2422_v26 = vpop.f32.mrb[54].mxu1 }
 0x144   :  { %1773 = vst.msk [vmem:[%s3286_s2 + $0xd8] sm:$0xf] %vm1718_vm1, %v2162_v19  ;;  %1837 = vst.msk [vmem:[%s3286_s2 + $0x1d8] sm:$0xf] %vm1718_vm1, %v2226_v20  ;;  %v2163_v27 = vpack.c.bf16 %v2358_v25, %v2358_v25  ;;  %v2227_v28 = vpack.c.bf16 %v2422_v26, %v2422_v26  ;;  %v906_v29 = vpop.f32.mrb[55].mxu0  ;;  %v1162_v30 = vpop.f32.mrb[55].mxu1 }
 0x145   :  { %1771 = vst.msk [vmem:[%s3286_s2 + $0xd0] sm:$0xf] %vm1718_vm1, %v2160_v23  ;;  %1835 = vst.msk [vmem:[%s3286_s2 + $0x1d0] sm:$0xf] %vm1718_vm1, %v2224_v24  ;;  %v2161_v31 = vpack.c.bf16 %v906_v29, %v906_v29  ;;  %v2225_v32 = vpack.c.bf16 %v1162_v30, %v1162_v30 }
 0x146   :  { %1774 = vst.msk [vmem:[%s3286_s2 + $0xdc] sm:$0xf] %vm1718_vm1, %v2163_v27  ;;  %1838 = vst.msk [vmem:[%s3286_s2 + $0x1dc] sm:$0xf] %vm1718_vm1, %v2227_v28 }
 0x147   :  { %1772 = vst.msk [vmem:[%s3286_s2 + $0xd4] sm:$0xf] %vm1718_vm1, %v2161_v31  ;;  %1836 = vst.msk [vmem:[%s3286_s2 + $0x1d4] sm:$0xf] %vm1718_vm1, %v2225_v32 }
 0x149   :  { %v2361_v33 = vpop.f32.mrb[56].mxu0  ;;  %v2425_v34 = vpop.f32.mrb[56].mxu1 }
 0x14a   :  { %v2166_v35 = vpack.c.bf16 %v2361_v33, %v2361_v33  ;;  %v2230_v36 = vpack.c.bf16 %v2425_v34, %v2425_v34  ;;  %v919_v37 = vpop.f32.mrb[57].mxu0  ;;  %v1175_v38 = vpop.f32.mrb[57].mxu1 }
 0x14b   :  { %v2164_v39 = vpack.c.bf16 %v919_v37, %v919_v37  ;;  %v2228_v40 = vpack.c.bf16 %v1175_v38, %v1175_v38  ;;  %v2362_v41 = vpop.f32.mrb[58].mxu0  ;;  %v2426_v42 = vpop.f32.mrb[58].mxu1 }
 0x14c   :  { %1777 = vst.msk [vmem:[%s3286_s2 + $0xe8] sm:$0xf] %vm1718_vm1, %v2166_v35  ;;  %1841 = vst.msk [vmem:[%s3286_s2 + $0x1e8] sm:$0xf] %vm1718_vm1, %v2230_v36  ;;  %v2167_v43 = vpack.c.bf16 %v2362_v41, %v2362_v41  ;;  %v2231_v44 = vpack.c.bf16 %v2426_v42, %v2426_v42  ;;  %v922_v45 = vpop.f32.mrb[59].mxu0  ;;  %v1178_v46 = vpop.f32.mrb[59].mxu1 }
 0x14d   :  { %1775 = vst.msk [vmem:[%s3286_s2 + $0xe0] sm:$0xf] %vm1718_vm1, %v2164_v39  ;;  %1839 = vst.msk [vmem:[%s3286_s2 + $0x1e0] sm:$0xf] %vm1718_vm1, %v2228_v40  ;;  %v2165_v47 = vpack.c.bf16 %v922_v45, %v922_v45  ;;  %v2229_v48 = vpack.c.bf16 %v1178_v46, %v1178_v46 }
 0x14e   :  { %1778 = vst.msk [vmem:[%s3286_s2 + $0xec] sm:$0xf] %vm1718_vm1, %v2167_v43  ;;  %1842 = vst.msk [vmem:[%s3286_s2 + $0x1ec] sm:$0xf] %vm1718_vm1, %v2231_v44 }
 0x14f   :  { %1776 = vst.msk [vmem:[%s3286_s2 + $0xe4] sm:$0xf] %vm1718_vm1, %v2165_v47  ;;  %1840 = vst.msk [vmem:[%s3286_s2 + $0x1e4] sm:$0xf] %vm1718_vm1, %v2229_v48 }
 0x151   :  { %v2365_v49 = vpop.f32.mrb[60].mxu0  ;;  %v2429_v50 = vpop.f32.mrb[60].mxu1 }
 0x152   :  { %v2170_v51 = vpack.c.bf16 %v2365_v49, %v2365_v49  ;;  %v2234_v52 = vpack.c.bf16 %v2429_v50, %v2429_v50  ;;  %v935_v53 = vpop.f32.mrb[61].mxu0  ;;  %v1191_v54 = vpop.f32.mrb[61].mxu1 }
 0x153   :  { %v2168_v55 = vpack.c.bf16 %v935_v53, %v935_v53  ;;  %v2232_v56 = vpack.c.bf16 %v1191_v54, %v1191_v54  ;;  %v2366_v57 = vpop.f32.mrb[62].mxu0  ;;  %v2430_v58 = vpop.f32.mrb[62].mxu1 }
 0x154   :  { %1781 = vst.msk [vmem:[%s3286_s2 + $0xf8] sm:$0xf] %vm1718_vm1, %v2170_v51  ;;  %1845 = vst.msk [vmem:[%s3286_s2 + $0x1f8] sm:$0xf] %vm1718_vm1, %v2234_v52  ;;  %v2171_v59 = vpack.c.bf16 %v2366_v57, %v2366_v57  ;;  %v2235_v60 = vpack.c.bf16 %v2430_v58, %v2430_v58  ;;  %v938_v61 = vpop.f32.mrb[63].mxu0  ;;  %v1194_v62 = vpop.f32.mrb[63].mxu1 }
 0x155   :  { %1779 = vst.msk [vmem:[%s3286_s2 + $0xf0] sm:$0xf] %vm1718_vm1, %v2168_v55  ;;  %1843 = vst.msk [vmem:[%s3286_s2 + $0x1f0] sm:$0xf] %vm1718_vm1, %v2232_v56  ;;  %v2169_v63 = vpack.c.bf16 %v938_v61, %v938_v61  ;;  %v2233_v0 = vpack.c.bf16 %v1194_v62, %v1194_v62 }
 0x156   :  { %1782 = vst.msk [vmem:[%s3286_s2 + $0xfc] sm:$0xf] %vm1718_vm1, %v2171_v59  ;;  %1846 = vst.msk [vmem:[%s3286_s2 + $0x1fc] sm:$0xf] %vm1718_vm1, %v2235_v60 }
 0x157   :  { %1780 = vst.msk [vmem:[%s3286_s2 + $0xf4] sm:$0xf] %vm1718_vm1, %v2169_v63  ;;  %1844 = vst.msk [vmem:[%s3286_s2 + $0x1f4] sm:$0xf] %vm1718_vm1, %v2233_v0 }

</bundles_post_ra>
